<compile_context>
chip_gen: v7x
topology: tpu7x:2x2x1
jax: 0.10.0
libtpu: 0.0.40
codegen_flags: <defaults>
</compile_context>

<pallas_src>
import functools
import numpy as np
import jax
import jax.numpy as jnp
from jax.experimental import pallas as pl
from jax.experimental.pallas import tpu as pltpu

BACKBONE_CHANNELS = 2048   # ResNet50 final stage channels
DOWNSAMPLE = 32            # ResNet50 output stride


# ---------------------------------------------------------------------------
# Fused kernel (one batch element per grid step):
#   projection (VPU, f32) -> 1x1 class conv (MXU, bf16) -> ReLU
#   -> GAP (lane reduction) -> separable bilinear upsample (2 MXU passes, bf16)
# ---------------------------------------------------------------------------
def _fused_forward_kernel(xp_ref, wb_ref, bb_ref, wc_ref, bc_ref,
                          rh_ref, rwt_ref, logits_ref, seg_ref, cam_scr):
    h_out, hf = rh_ref.shape          # full H, feature Hf
    wf, w_out = rwt_ref.shape         # feature Wf, full W
    k = wc_ref.shape[0]               # num classes

    xp = xp_ref[...]                  # [3, S]  pooled input, S = Hf*Wf (lanes)
    wb = wb_ref[...]                  # [C, 3]

    # Backbone stand-in 3 -> 2048 projection + ReLU: three broadcast FMAs on
    # the VPU over the lane-dense [C, S] tensor (keeps the MXU free).
    acc = wb[:, 0:1] * xp[0:1, :]
    for ci in range(1, xp.shape[0]):                   # static unroll (3 chans)
        acc = acc + wb[:, ci:ci + 1] * xp[ci:ci + 1, :]
    feats = jnp.maximum(acc + bb_ref[...], 0.0)        # [C, S] f32

    # class_specific Conv2d(2048, K, 1) == channel matmul; bf16 operands,
    # f32 accumulation on the MXU.
    cam = jnp.dot(wc_ref[...], feats.astype(jnp.bfloat16),
                  preferred_element_type=jnp.float32) + bc_ref[...]
    cam = jnp.maximum(cam, 0.0)                        # [K, S] f32 (ReLU'd CAM)

    # AdaptiveAvgPool2d(1): mean over the flattened spatial (lane) axis.
    logits_ref[...] = jnp.mean(cam, axis=1, keepdims=True)      # [K, 1]

    # Pivot cam [K, Hf*Wf] -> cam_scr [K, Hf, Wf] (bf16) with Hf static lane
    # slices through a tiny VMEM scratch (avoids an in-kernel lane-split
    # reshape; a few KiB at most).
    for f in range(hf):
        cam_scr[:, f, :] = cam[:, f * wf:(f + 1) * wf].astype(jnp.bfloat16)

    # Separable bilinear upsample (align_corners=False):
    #   H pass: per class   rh [H, Hf] @ cam_k [Hf, Wf] -> [H, Wf]   (tiny)
    #   W pass: one stacked [K*H, Wf] @ rwT [Wf, W]     -> [K*H, W]  (dominant,
    #           lane-dense output, M = K*H rows for good MXU occupancy)
    rh = rh_ref[...]                                   # [H, Hf] bf16
    v = jnp.concatenate(
        [jnp.dot(rh, cam_scr[kk], preferred_element_type=jnp.float32)
         for kk in range(k)], axis=0)                  # [K*H, Wf] f32
    seg = jnp.dot(v.astype(jnp.bfloat16), rwt_ref[...],
                  preferred_element_type=jnp.float32)  # [K*H, W] f32
    for kk in range(k):                                # static sublane slices
        seg_ref[kk, :, :] = seg[kk * h_out:(kk + 1) * h_out, :]
    # F.relu(segmentation_maps) elided: cam >= 0 and rh/rwT >= 0 -> seg >= 0.


def _bilinear_matrix(in_size, out_size):
    """Row-interpolation matrix matching F.interpolate(mode='bilinear',
    align_corners=False). Returns np.float32 [out_size, in_size]."""
    dst = np.arange(out_size, dtype=np.float64)
    src = (dst + 0.5) * (in_size / out_size) - 0.5
    src = np.maximum(src, 0.0)
    i0 = np.minimum(np.floor(src).astype(np.int64), in_size - 1)
    i1 = np.minimum(i0 + 1, in_size - 1)
    frac = src - i0
    mat = np.zeros((out_size, in_size), dtype=np.float32)
    mat[np.arange(out_size), i0] += (1.0 - frac).astype(np.float32)
    mat[np.arange(out_size), i1] += frac.astype(np.float32)
    return mat


def init_params(key, num_classes):
    kb, kc = jax.random.split(key)
    # TODO(synk): pretrained torchvision ResNet50 backbone has no in-script
    # equivalent (no checkpoint loading); replaced by a deterministic 32x
    # avg-pool + dense 3->2048 projection stand-in.
    wb = jax.random.normal(kb, (BACKBONE_CHANNELS, 3), jnp.float32) \
        * np.sqrt(2.0 / BACKBONE_CHANNELS)                       # [C, 3]
    bb = jnp.zeros((BACKBONE_CHANNELS, 1), jnp.float32)          # [C, 1]
    # class_specific Conv2d(2048, K, 1): kaiming_normal_, fan_out, relu
    # -> std = sqrt(2 / (K * 1 * 1)); bias = 0.
    fan_out = num_classes * 1 * 1
    wc = jax.random.normal(kc, (num_classes, BACKBONE_CHANNELS), jnp.float32) \
        * np.sqrt(2.0 / fan_out)                                 # [K, C]
    bc = jnp.zeros((num_classes, 1), jnp.float32)                # [K, 1]
    return wb, bb, wc, bc


def forward(params, x, num_classes):
    wb, bb, wc, bc = params
    n, c_in, h, w = x.shape
    assert h % DOWNSAMPLE == 0 and w % DOWNSAMPLE == 0
    hf, wf = h // DOWNSAMPLE, w // DOWNSAMPLE
    s = hf * wf
    k = num_classes
    c = wb.shape[0]

    # Backbone stand-in /32 average pool (single XLA pass over x; would fuse
    # into the backbone producer in a real pipeline).  Channels-first kept,
    # spatial flattened -> [N, 3, S].
    xp = x.reshape(n, c_in, hf, DOWNSAMPLE, wf, DOWNSAMPLE).mean(axis=(3, 5))
    xp = xp.reshape(n, c_in, s)

    # Separable bilinear-upsample operators (align_corners=False), bf16.
    rh = jnp.asarray(_bilinear_matrix(hf, h), dtype=jnp.bfloat16)      # [H, Hf]
    rwt = jnp.asarray(_bilinear_matrix(wf, w).T, dtype=jnp.bfloat16)   # [Wf, W]
    wc_bf16 = wc.astype(jnp.bfloat16)

    # Explicit VMEM budget: double-buffered per-step blocks + resident
    # invariants + in-kernel intermediates, clamped to v7x's 64 MiB physical.
    blk_bytes = (2 * c_in * s * 4            # xp block (double-buffered)
                 + 2 * k * h * w * 4         # seg block (double-buffered)
                 + 2 * k * 4                 # logits block
                 + (c * c_in + c + k) * 4 + k * c * 2     # weights / biases
                 + (h * hf + wf * w) * 2)                 # rh, rwT
    interm_bytes = (c * s + k * s + k * h * wf + k * h * w) * 4
    vmem_limit = int(min(max(2 * (blk_bytes + interm_bytes), 16 * 2**20),
                         64 * 2**20))

    logits3, seg = pl.pallas_call(
        _fused_forward_kernel,
        out_shape=(jax.ShapeDtypeStruct((n, k, 1), jnp.float32),      # logits
                   jax.ShapeDtypeStruct((n, k, h, w), jnp.float32)),  # seg NCHW
        grid=(n,),
        in_specs=[
            pl.BlockSpec((None, c_in, s), lambda i: (i, 0, 0)),   # xp (per image)
            pl.BlockSpec((c, c_in), lambda i: (0, 0)),            # wb (invariant)
            pl.BlockSpec((c, 1), lambda i: (0, 0)),               # bb
            pl.BlockSpec((k, c), lambda i: (0, 0)),               # wc (bf16)
            pl.BlockSpec((k, 1), lambda i: (0, 0)),               # bc
            pl.BlockSpec((h, hf), lambda i: (0, 0)),              # rh (bf16)
            pl.BlockSpec((wf, w), lambda i: (0, 0)),              # rwT (bf16)
        ],
        out_specs=(
            pl.BlockSpec((None, k, 1), lambda i: (i, 0, 0)),
            pl.BlockSpec((None, k, h, w), lambda i: (i, 0, 0, 0)),
        ),
        scratch_shapes=[pltpu.VMEM((k, hf, wf), jnp.bfloat16)],   # cam pivot
        compiler_params=pltpu.CompilerParams(
            dimension_semantics=("parallel",),
            vmem_limit_bytes=vmem_limit),
    )(xp, wb, bb, wc_bf16, bc, rh, rwt)

    return {'logits': logits3.reshape(n, k), 'segmentation_maps': seg}


def forward_reference(params, x):
    """Pure-JAX (f32) reference of the same stand-in forward pass."""
    wb, bb, wc, bc = params
    n, c_in, h, w = x.shape
    hf, wf = h // DOWNSAMPLE, w // DOWNSAMPLE
    xp = x.reshape(n, c_in, hf, DOWNSAMPLE, wf, DOWNSAMPLE).mean(axis=(3, 5))
    feats = jnp.maximum(jnp.einsum('oc,ncfg->nofg', wb, xp)
                        + bb.reshape(1, -1, 1, 1), 0.0)
    cam = jnp.maximum(jnp.einsum('ko,nofg->nkfg', wc, feats)
                      + bc.reshape(1, -1, 1, 1), 0.0)
    logits = cam.mean(axis=(2, 3))
    rh = jnp.asarray(_bilinear_matrix(hf, h))
    rw = jnp.asarray(_bilinear_matrix(wf, w))
    seg = jnp.einsum('hf,nkfg,wg->nkhw', rh, cam, rw)
    return {'logits': logits, 'segmentation_maps': jnp.maximum(seg, 0.0)}


if __name__ == "__main__":
    num_classes = 4
    key = jax.random.PRNGKey(0)
    kx, kp = jax.random.split(key)
    x = jax.random.normal(kx, (2, 3, 64, 64), jnp.float32)   # NCHW input
    params = init_params(kp, num_classes)

    fwd = jax.jit(functools.partial(forward, num_classes=num_classes))
    out = fwd(params, x)
    jax.block_until_ready(out)

    assert out['logits'].shape == (2, num_classes)
    assert out['segmentation_maps'].shape == (2, num_classes, 64, 64)
    assert bool(jnp.all(jnp.isfinite(out['logits'])))
    assert bool(jnp.all(out['segmentation_maps'] >= 0.0))

    # Tolerance-asserted pure-JAX reference (bf16 class-head / upsample
    # operands introduce ~1e-3 relative deviation).
    ref = forward_reference(params, x)
    np.testing.assert_allclose(np.asarray(out['logits']),
                               np.asarray(ref['logits']),
                               rtol=5e-2, atol=3e-3)
    np.testing.assert_allclose(np.asarray(out['segmentation_maps']),
                               np.asarray(ref['segmentation_maps']),
                               rtol=5e-2, atol=3e-3)

    print("KERNEL_OK")
</pallas_src>

<mosaic_0001>
module attributes {stable_mosaic.version = 11 : i64} {
  func.func @_fused_forward_kernel(%arg0: i32, %arg1: memref<1x3x4xf32, #tpu.memory_space<vmem>>, %arg2: memref<2048x3xf32, #tpu.memory_space<vmem>>, %arg3: memref<2048x1xf32, #tpu.memory_space<vmem>>, %arg4: memref<4x2048xbf16, #tpu.memory_space<vmem>>, %arg5: memref<4x1xf32, #tpu.memory_space<vmem>>, %arg6: memref<64x2xbf16, #tpu.memory_space<vmem>>, %arg7: memref<2x64xbf16, #tpu.memory_space<vmem>>, %arg8: memref<1x4x1xf32, #tpu.memory_space<vmem>>, %arg9: memref<1x4x64x64xf32, #tpu.memory_space<vmem>>, %arg10: memref<4x2x2xbf16, #tpu.memory_space<vmem>>) attributes {dimension_semantics = [#tpu.dimension_semantics<parallel>], iteration_bounds = array<i64: 2>, scalar_prefetch = 0 : i64, scratch_operands = 1 : i64, tpu.core_type = #tpu.core_type<tc>, window_params = [{transform_indices = @transform_0, window_bounds = array<i64: 1, 3, 4>}, {pipeline_mode = #tpu.pipeline_mode<synchronous>, transform_indices = @transform_1, window_bounds = array<i64: 2048, 3>}, {pipeline_mode = #tpu.pipeline_mode<synchronous>, transform_indices = @transform_2, window_bounds = array<i64: 2048, 1>}, {pipeline_mode = #tpu.pipeline_mode<synchronous>, transform_indices = @transform_3, window_bounds = array<i64: 4, 2048>}, {pipeline_mode = #tpu.pipeline_mode<synchronous>, transform_indices = @transform_4, window_bounds = array<i64: 4, 1>}, {pipeline_mode = #tpu.pipeline_mode<synchronous>, transform_indices = @transform_5, window_bounds = array<i64: 64, 2>}, {pipeline_mode = #tpu.pipeline_mode<synchronous>, transform_indices = @transform_6, window_bounds = array<i64: 2, 64>}, {transform_indices = @transform_7, window_bounds = array<i64: 1, 4, 1>}, {transform_indices = @transform_8, window_bounds = array<i64: 1, 4, 64, 64>}]} {
    %c0 = arith.constant 0 : index
    %c0_0 = arith.constant 0 : index
    %c0_1 = arith.constant 0 : index
    %0 = vector.load %arg1[%c0, %c0_0, %c0_1] : memref<1x3x4xf32, #tpu.memory_space<vmem>>, vector<1x3x4xf32>
    %1 = vector.shape_cast %0 : vector<1x3x4xf32> to vector<3x4xf32>
    %c0_2 = arith.constant 0 : index
    %c0_3 = arith.constant 0 : index
    %2 = vector.load %arg2[%c0_2, %c0_3] : memref<2048x3xf32, #tpu.memory_space<vmem>>, vector<2048x3xf32>
    %3 = vector.extract_strided_slice %2 {offsets = [0, 0], sizes = [2048, 1], strides = [1, 1]} : vector<2048x3xf32> to vector<2048x1xf32>
    %4 = vector.extract_strided_slice %1 {offsets = [0, 0], sizes = [1, 4], strides = [1, 1]} : vector<3x4xf32> to vector<1x4xf32>
    %5 = vector.broadcast %3 : vector<2048x1xf32> to vector<2048x4xf32>
    %6 = vector.broadcast %4 : vector<1x4xf32> to vector<2048x4xf32>
    %7 = arith.mulf %5, %6 : vector<2048x4xf32>
    %8 = vector.extract_strided_slice %2 {offsets = [0, 1], sizes = [2048, 1], strides = [1, 1]} : vector<2048x3xf32> to vector<2048x1xf32>
    %9 = vector.extract_strided_slice %1 {offsets = [1, 0], sizes = [1, 4], strides = [1, 1]} : vector<3x4xf32> to vector<1x4xf32>
    %10 = vector.broadcast %8 : vector<2048x1xf32> to vector<2048x4xf32>
    %11 = vector.broadcast %9 : vector<1x4xf32> to vector<2048x4xf32>
    %12 = arith.mulf %10, %11 : vector<2048x4xf32>
    %13 = arith.addf %7, %12 : vector<2048x4xf32>
    %14 = vector.extract_strided_slice %2 {offsets = [0, 2], sizes = [2048, 1], strides = [1, 1]} : vector<2048x3xf32> to vector<2048x1xf32>
    %15 = vector.extract_strided_slice %1 {offsets = [2, 0], sizes = [1, 4], strides = [1, 1]} : vector<3x4xf32> to vector<1x4xf32>
    %16 = vector.broadcast %14 : vector<2048x1xf32> to vector<2048x4xf32>
    %17 = vector.broadcast %15 : vector<1x4xf32> to vector<2048x4xf32>
    %18 = arith.mulf %16, %17 : vector<2048x4xf32>
    %19 = arith.addf %13, %18 : vector<2048x4xf32>
    %c0_4 = arith.constant 0 : index
    %c0_5 = arith.constant 0 : index
    %20 = vector.load %arg3[%c0_4, %c0_5] : memref<2048x1xf32, #tpu.memory_space<vmem>>, vector<2048x1xf32>
    %21 = vector.broadcast %20 : vector<2048x1xf32> to vector<2048x4xf32>
    %22 = arith.addf %19, %21 : vector<2048x4xf32>
    %cst = arith.constant 0.000000e+00 : f32
    %23 = vector.broadcast %cst : f32 to vector<2048x4xf32>
    %24 = arith.maximumf %22, %23 : vector<2048x4xf32>
    %c0_6 = arith.constant 0 : index
    %c0_7 = arith.constant 0 : index
    %25 = vector.load %arg4[%c0_6, %c0_7] : memref<4x2048xbf16, #tpu.memory_space<vmem>>, vector<4x2048xbf16>
    %26 = arith.truncf %24 : vector<2048x4xf32> to vector<2048x4xbf16>
    %cst_8 = arith.constant dense<0.000000e+00> : vector<4x4xf32>
    %27 = tpu.matmul %25, %26, %cst_8 {dimension_numbers = #tpu.dot_dimension_numbers<[1], [0], [0], [1], [0, 0, 1, 1], [], []>} : vector<4x2048xbf16>, vector<2048x4xbf16>, vector<4x4xf32> -> vector<4x4xf32>
    %c0_9 = arith.constant 0 : index
    %c0_10 = arith.constant 0 : index
    %28 = vector.load %arg5[%c0_9, %c0_10] : memref<4x1xf32, #tpu.memory_space<vmem>>, vector<4x1xf32>
    %29 = vector.broadcast %28 : vector<4x1xf32> to vector<4x4xf32>
    %30 = arith.addf %27, %29 : vector<4x4xf32>
    %cst_11 = arith.constant 0.000000e+00 : f32
    %31 = vector.broadcast %cst_11 : f32 to vector<4x4xf32>
    %32 = arith.maximumf %30, %31 : vector<4x4xf32>
    %cst_12 = arith.constant dense<0.000000e+00> : vector<4xf32>
    %33 = vector.multi_reduction <add>, %32, %cst_12 [1] : vector<4x4xf32> to vector<4xf32>
    %34 = vector.shape_cast %33 : vector<4xf32> to vector<4x1xf32>
    %cst_13 = arith.constant 4.000000e+00 : f32
    %35 = vector.broadcast %cst_13 : f32 to vector<4x1xf32>
    %36 = arith.divf %34, %35 : vector<4x1xf32>
    %c0_14 = arith.constant 0 : index
    %c0_15 = arith.constant 0 : index
    %c0_16 = arith.constant 0 : index
    %37 = vector.load %arg8[%c0_14, %c0_15, %c0_16] : memref<1x4x1xf32, #tpu.memory_space<vmem>>, vector<1x4x1xf32>
    %38 = vector.shape_cast %37 : vector<1x4x1xf32> to vector<4x1xf32>
    %39 = vector.shape_cast %36 : vector<4x1xf32> to vector<1x4x1xf32>
    tpu.vector_store %arg8[%c0_14, %c0_15, %c0_16], %39 {strides = array<i32>} : memref<1x4x1xf32, #tpu.memory_space<vmem>>, vector<1x4x1xf32>,
    %40 = vector.extract_strided_slice %32 {offsets = [0, 0], sizes = [4, 2], strides = [1, 1]} : vector<4x4xf32> to vector<4x2xf32>
    %41 = arith.truncf %40 : vector<4x2xf32> to vector<4x2xbf16>
    %c0_17 = arith.constant 0 : index
    %c0_18 = arith.constant 0 : index
    %c0_19 = arith.constant 0 : index
    %42 = vector.load %arg10[%c0_17, %c0_18, %c0_19] : memref<4x2x2xbf16, #tpu.memory_space<vmem>>, vector<4x1x2xbf16>
    %43 = vector.shape_cast %42 : vector<4x1x2xbf16> to vector<4x2xbf16>
    %44 = vector.shape_cast %41 : vector<4x2xbf16> to vector<4x1x2xbf16>
    tpu.vector_store %arg10[%c0_17, %c0_18, %c0_19], %44 {strides = array<i32>} : memref<4x2x2xbf16, #tpu.memory_space<vmem>>, vector<4x1x2xbf16>,
    %45 = vector.extract_strided_slice %32 {offsets = [0, 2], sizes = [4, 2], strides = [1, 1]} : vector<4x4xf32> to vector<4x2xf32>
    %46 = arith.truncf %45 : vector<4x2xf32> to vector<4x2xbf16>
    %c0_20 = arith.constant 0 : index
    %c1 = arith.constant 1 : index
    %c0_21 = arith.constant 0 : index
    %47 = vector.load %arg10[%c0_20, %c1, %c0_21] : memref<4x2x2xbf16, #tpu.memory_space<vmem>>, vector<4x1x2xbf16>
    %48 = vector.shape_cast %47 : vector<4x1x2xbf16> to vector<4x2xbf16>
    %49 = vector.shape_cast %46 : vector<4x2xbf16> to vector<4x1x2xbf16>
    tpu.vector_store %arg10[%c0_20, %c1, %c0_21], %49 {strides = array<i32>} : memref<4x2x2xbf16, #tpu.memory_space<vmem>>, vector<4x1x2xbf16>,
    %c0_22 = arith.constant 0 : index
    %c0_23 = arith.constant 0 : index
    %50 = vector.load %arg6[%c0_22, %c0_23] : memref<64x2xbf16, #tpu.memory_space<vmem>>, vector<64x2xbf16>
    %c0_24 = arith.constant 0 : index
    %c0_25 = arith.constant 0 : index
    %c0_26 = arith.constant 0 : index
    %51 = vector.load %arg10[%c0_24, %c0_25, %c0_26] : memref<4x2x2xbf16, #tpu.memory_space<vmem>>, vector<1x2x2xbf16>
    %52 = vector.shape_cast %51 : vector<1x2x2xbf16> to vector<2x2xbf16>
    %cst_27 = arith.constant dense<0.000000e+00> : vector<64x2xf32>
    %53 = tpu.matmul %50, %52, %cst_27 {dimension_numbers = #tpu.dot_dimension_numbers<[1], [0], [0], [1], [0, 0, 1, 1], [], []>} : vector<64x2xbf16>, vector<2x2xbf16>, vector<64x2xf32> -> vector<64x2xf32>
    %c1_28 = arith.constant 1 : index
    %c0_29 = arith.constant 0 : index
    %c0_30 = arith.constant 0 : index
    %54 = vector.load %arg10[%c1_28, %c0_29, %c0_30] : memref<4x2x2xbf16, #tpu.memory_space<vmem>>, vector<1x2x2xbf16>
    %55 = vector.shape_cast %54 : vector<1x2x2xbf16> to vector<2x2xbf16>
    %cst_31 = arith.constant dense<0.000000e+00> : vector<64x2xf32>
    %56 = tpu.matmul %50, %55, %cst_31 {dimension_numbers = #tpu.dot_dimension_numbers<[1], [0], [0], [1], [0, 0, 1, 1], [], []>} : vector<64x2xbf16>, vector<2x2xbf16>, vector<64x2xf32> -> vector<64x2xf32>
    %c2 = arith.constant 2 : index
    %c0_32 = arith.constant 0 : index
    %c0_33 = arith.constant 0 : index
    %57 = vector.load %arg10[%c2, %c0_32, %c0_33] : memref<4x2x2xbf16, #tpu.memory_space<vmem>>, vector<1x2x2xbf16>
    %58 = vector.shape_cast %57 : vector<1x2x2xbf16> to vector<2x2xbf16>
    %cst_34 = arith.constant dense<0.000000e+00> : vector<64x2xf32>
    %59 = tpu.matmul %50, %58, %cst_34 {dimension_numbers = #tpu.dot_dimension_numbers<[1], [0], [0], [1], [0, 0, 1, 1], [], []>} : vector<64x2xbf16>, vector<2x2xbf16>, vector<64x2xf32> -> vector<64x2xf32>
    %c3 = arith.constant 3 : index
    %c0_35 = arith.constant 0 : index
    %c0_36 = arith.constant 0 : index
    %60 = vector.load %arg10[%c3, %c0_35, %c0_36] : memref<4x2x2xbf16, #tpu.memory_space<vmem>>, vector<1x2x2xbf16>
    %61 = vector.shape_cast %60 : vector<1x2x2xbf16> to vector<2x2xbf16>
    %cst_37 = arith.constant dense<0.000000e+00> : vector<64x2xf32>
    %62 = tpu.matmul %50, %61, %cst_37 {dimension_numbers = #tpu.dot_dimension_numbers<[1], [0], [0], [1], [0, 0, 1, 1], [], []>} : vector<64x2xbf16>, vector<2x2xbf16>, vector<64x2xf32> -> vector<64x2xf32>
    %63 = tpu.concatenate %53, %56, %59, %62 in 0 : vector<64x2xf32>, vector<64x2xf32>, vector<64x2xf32>, vector<64x2xf32> -> vector<256x2xf32>
    %64 = arith.truncf %63 : vector<256x2xf32> to vector<256x2xbf16>
    %c0_38 = arith.constant 0 : index
    %c0_39 = arith.constant 0 : index
    %65 = vector.load %arg7[%c0_38, %c0_39] : memref<2x64xbf16, #tpu.memory_space<vmem>>, vector<2x64xbf16>
    %cst_40 = arith.constant dense<0.000000e+00> : vector<256x64xf32>
    %66 = tpu.matmul %64, %65, %cst_40 {dimension_numbers = #tpu.dot_dimension_numbers<[1], [0], [0], [1], [0, 0, 1, 1], [], []>} : vector<256x2xbf16>, vector<2x64xbf16>, vector<256x64xf32> -> vector<256x64xf32>
    %67 = vector.extract_strided_slice %66 {offsets = [0, 0], sizes = [64, 64], strides = [1, 1]} : vector<256x64xf32> to vector<64x64xf32>
    %c0_41 = arith.constant 0 : index
    %c0_42 = arith.constant 0 : index
    %c0_43 = arith.constant 0 : index
    %c0_44 = arith.constant 0 : index
    %68 = vector.load %arg9[%c0_41, %c0_42, %c0_43, %c0_44] : memref<1x4x64x64xf32, #tpu.memory_space<vmem>>, vector<1x1x64x64xf32>
    %69 = vector.shape_cast %68 : vector<1x1x64x64xf32> to vector<64x64xf32>
    %70 = vector.shape_cast %67 : vector<64x64xf32> to vector<1x1x64x64xf32>
    tpu.vector_store %arg9[%c0_41, %c0_42, %c0_43, %c0_44], %70 {strides = array<i32>} : memref<1x4x64x64xf32, #tpu.memory_space<vmem>>, vector<1x1x64x64xf32>,
    %71 = vector.extract_strided_slice %66 {offsets = [64, 0], sizes = [64, 64], strides = [1, 1]} : vector<256x64xf32> to vector<64x64xf32>
    %c0_45 = arith.constant 0 : index
    %c1_46 = arith.constant 1 : index
    %c0_47 = arith.constant 0 : index
    %c0_48 = arith.constant 0 : index
    %72 = vector.load %arg9[%c0_45, %c1_46, %c0_47, %c0_48] : memref<1x4x64x64xf32, #tpu.memory_space<vmem>>, vector<1x1x64x64xf32>
    %73 = vector.shape_cast %72 : vector<1x1x64x64xf32> to vector<64x64xf32>
    %74 = vector.shape_cast %71 : vector<64x64xf32> to vector<1x1x64x64xf32>
    tpu.vector_store %arg9[%c0_45, %c1_46, %c0_47, %c0_48], %74 {strides = array<i32>} : memref<1x4x64x64xf32, #tpu.memory_space<vmem>>, vector<1x1x64x64xf32>,
    %75 = vector.extract_strided_slice %66 {offsets = [128, 0], sizes = [64, 64], strides = [1, 1]} : vector<256x64xf32> to vector<64x64xf32>
    %c0_49 = arith.constant 0 : index
    %c2_50 = arith.constant 2 : index
    %c0_51 = arith.constant 0 : index
    %c0_52 = arith.constant 0 : index
    %76 = vector.load %arg9[%c0_49, %c2_50, %c0_51, %c0_52] : memref<1x4x64x64xf32, #tpu.memory_space<vmem>>, vector<1x1x64x64xf32>
    %77 = vector.shape_cast %76 : vector<1x1x64x64xf32> to vector<64x64xf32>
    %78 = vector.shape_cast %75 : vector<64x64xf32> to vector<1x1x64x64xf32>
    tpu.vector_store %arg9[%c0_49, %c2_50, %c0_51, %c0_52], %78 {strides = array<i32>} : memref<1x4x64x64xf32, #tpu.memory_space<vmem>>, vector<1x1x64x64xf32>,
    %79 = vector.extract_strided_slice %66 {offsets = [192, 0], sizes = [64, 64], strides = [1, 1]} : vector<256x64xf32> to vector<64x64xf32>
    %c0_53 = arith.constant 0 : index
    %c3_54 = arith.constant 3 : index
    %c0_55 = arith.constant 0 : index
    %c0_56 = arith.constant 0 : index
    %80 = vector.load %arg9[%c0_53, %c3_54, %c0_55, %c0_56] : memref<1x4x64x64xf32, #tpu.memory_space<vmem>>, vector<1x1x64x64xf32>
    %81 = vector.shape_cast %80 : vector<1x1x64x64xf32> to vector<64x64xf32>
    %82 = vector.shape_cast %79 : vector<64x64xf32> to vector<1x1x64x64xf32>
    tpu.vector_store %arg9[%c0_53, %c3_54, %c0_55, %c0_56], %82 {strides = array<i32>} : memref<1x4x64x64xf32, #tpu.memory_space<vmem>>, vector<1x1x64x64xf32>,
    return
  }
  func.func @transform_0(%arg0: i32) -> (i32, i32, i32) {
    %c0_i32 = arith.constant 0 : i32
    %c0_i32_0 = arith.constant 0 : i32
    %c0_i32_1 = arith.constant 0 : i32
    return %arg0, %c0_i32, %c0_i32_0 : i32, i32, i32
  }
  func.func @transform_1(%arg0: i32) -> (i32, i32) {
    %c0_i32 = arith.constant 0 : i32
    %c0_i32_0 = arith.constant 0 : i32
    %c0_i32_1 = arith.constant 0 : i32
    return %c0_i32, %c0_i32_0 : i32, i32
  }
  func.func @transform_2(%arg0: i32) -> (i32, i32) {
    %c0_i32 = arith.constant 0 : i32
    %c0_i32_0 = arith.constant 0 : i32
    %c0_i32_1 = arith.constant 0 : i32
    return %c0_i32, %c0_i32_0 : i32, i32
  }
  func.func @transform_3(%arg0: i32) -> (i32, i32) {
    %c0_i32 = arith.constant 0 : i32
    %c0_i32_0 = arith.constant 0 : i32
    %c0_i32_1 = arith.constant 0 : i32
    return %c0_i32, %c0_i32_0 : i32, i32
  }
  func.func @transform_4(%arg0: i32) -> (i32, i32) {
    %c0_i32 = arith.constant 0 : i32
    %c0_i32_0 = arith.constant 0 : i32
    %c0_i32_1 = arith.constant 0 : i32
    return %c0_i32, %c0_i32_0 : i32, i32
  }
  func.func @transform_5(%arg0: i32) -> (i32, i32) {
    %c0_i32 = arith.constant 0 : i32
    %c0_i32_0 = arith.constant 0 : i32
    %c0_i32_1 = arith.constant 0 : i32
    return %c0_i32, %c0_i32_0 : i32, i32
  }
  func.func @transform_6(%arg0: i32) -> (i32, i32) {
    %c0_i32 = arith.constant 0 : i32
    %c0_i32_0 = arith.constant 0 : i32
    %c0_i32_1 = arith.constant 0 : i32
    return %c0_i32, %c0_i32_0 : i32, i32
  }
  func.func @transform_7(%arg0: i32) -> (i32, i32, i32) {
    %c0_i32 = arith.constant 0 : i32
    %c0_i32_0 = arith.constant 0 : i32
    %c0_i32_1 = arith.constant 0 : i32
    return %arg0, %c0_i32, %c0_i32_0 : i32, i32, i32
  }
  func.func @transform_8(%arg0: i32) -> (i32, i32, i32, i32) {
    %c0_i32 = arith.constant 0 : i32
    %c0_i32_0 = arith.constant 0 : i32
    %c0_i32_1 = arith.constant 0 : i32
    %c0_i32_2 = arith.constant 0 : i32
    return %arg0, %c0_i32, %c0_i32_0, %c0_i32_1 : i32, i32, i32, i32
  }
}

</mosaic_0001>

<bundles_post_ra>
// kernel: forward.1
= control target key start
LH: loop header
LB: loop body
LE: loop exit
PB: predicated region body
PF: predicated region fallthrough
CT: control target
= control target key end

     0   :  { %14 = vsyncpa [#allocation4], 0  ;;  %s15292_s0 = inlined_call_operand.vmem [shape: f32[2,3,4], index: 0, kind: input, shape index: {}]   ;;  %s15293_s1 = inlined_call_operand.vmem [shape: f32[2048,3], index: 1, kind: input, shape index: {}]   ;;  %s15294_s2 = inlined_call_operand.vmem [shape: f32[2048,1], index: 2, kind: input, shape index: {}]   ;;  %s15295_s3 = inlined_call_operand.vmem [shape: bf16[4,2048], index: 3, kind: input, shape index: {}]   ;;  %s15296_s4 = inlined_call_operand.vmem [shape: f32[4,1], index: 4, kind: input, shape index: {}]   ;;  %s15297_s5 = inlined_call_operand.vmem [shape: bf16[64,2], index: 5, kind: input, shape index: {}]   ;;  %s15298_s6 = inlined_call_operand.vmem [shape: bf16[2,64], index: 6, kind: input, shape index: {}]   ;;  %s15299_s7 = inlined_call_operand.vmem [shape: f32[2,4,1], index: 7, kind: output, shape index: {0}]   ;;  %s15300_s8 = inlined_call_operand.hbm [shape: f32[2,4,64,64], index: 8, kind: output, shape index: {1}]  }
   0x1   :  { %16 = vsyncpa [#allocation4 + $0x1], 0  ;;  %s9367_s27 = smov 0   ;;  %s9369_s28 = smov 0  }
   0x2   :  { %s9371_s29 = smov 0   ;;  %s9373_s30 = smov 0  }
   0x3 LB: > { %s9388_s9 = sadd.s32 4294967295, %s9311_s30   ;;  %s8563_s10 = sadd.s32 4294967294, %s9311_s30   ;;  %s9311_s30 = sphi %s9373_s30, %s16800_s30   ;;  %s9307_s29 = sphi %s9371_s29, %s16799_s29   ;;  %s9303_s28 = sphi %s9369_s28, %s16798_s28   ;;  %s9299_s27 = sphi %s9367_s27, %s16797_s27  }
   0x4   : > { %s9392_s11 = sadd.s32 1, %s9311_s30   ;;  %s207_s12 = sadd.s32 1, %s9307_s29 }
   0x5   : > { %s204_s13 = ssub.s32 %s9311_s30, %s9392_s11  ;;  %p217_p0 = scmp.ne.s32.totalorder %s9307_s29, %s9303_s28 }
   0x6   : > { %p205_p1 = scmp.eq.s32.totalorder %s204_s13, 0  ;;  %p218_p2 = scmp.eq.s32.totalorder %s9388_s9, 1 }
   0x7   : > { %p223_p3 = scmp.ne.s32.totalorder %s9303_s28, %s9299_s27  ;;  %p224_p4 = scmp.eq.s32.totalorder %s8563_s10, 1 }
   0x8   : > { %s9403_s14 = scalar_select %p205_p1, %s9307_s29, %s207_s12  }
   0x9   : > { %p9405_p5 = por %p218_p2, %p217_p0  ;;  %p9409_p6 = por %p224_p4, %p223_p3 }
   0xa   : > { %p8566_p7 = scmp.ge.s32.totalorder %s9311_s30, 1  ;;  %p267_p8 = scmp.lt.s32.totalorder %s9311_s30, 3 }
   0xc   : > { %p268_p9 = pnand %p8566_p7, %p267_p8 }
   0xe   : > { %271 = sbr.rel (%p268_p9) target bundleno = 3070 (0xbfe), region = 48 }
  0x15   : > { %v316_v0 = vld [vmem:[%s15293_s1 + $0x10] sm:$0xff]  ;;  %v314_v1 = vld [vmem:[%s15293_s1] sm:$0xff]  ;;  %v15303_v2 = vmov 1   ;;  %v15301_v3 = vmov 0   ;;  %v317_v4 = vld [vmem:[%s15293_s1 + $0x18] sm:$0xff]  ;;  %p304_p10 = scmp.lt.s32.totalorder %s9388_s9, 1 }
  0x16   : > { %8978 = vset.pattern.permute.xlu0 %v15303_v2  ;;  %8977 = vset.pattern.permute.xlu1 %v15301_v3  ;;  %v319_v5 = vld [vmem:[%s15293_s1 + $0x28] sm:$0xff]  ;;  %v321_v6 = vld [vmem:[%s15293_s1 + $0x38] sm:$0xff]  ;;  %vm7829_vm0 = vcmask 8192   ;;  %vm7830_vm1 = vsmask.f32 256  ;;  %vm7899_vm3 = vcmask 15360  }
  0x17   : > { %582 = vperm.xlu1 %8977, %v316_v0   ;;  %2111 = vperm.xlu0 %8978, %v314_v1   ;;  %v323_v7 = vld [vmem:[%s15293_s1 + $0x48] sm:$0xff]  ;;  %v325_v8 = vld [vmem:[%s15293_s1 + $0x58] sm:$0xff]  ;;  %s12677_s17 = scalar_select %p304_p10, %s9388_s9, 1  ;;  %vm15078_vm2 = vmand %vm7829_vm0, %vm7830_vm1  ;;  %vm7785_vm4 = vcmask 27648   ;;  %vm7856_vm5 = vsmask.f32 7938 }
  0x18   : > { %v327_v9 = vld [vmem:[%s15293_s1 + $0x68] sm:$0xff]  ;;  %v329_v10 = vld [vmem:[%s15293_s1 + $0x78] sm:$0xff]  ;;  %s9318_s20 = smov 126   ;;  %vm15100_vm6 = vmand %vm7829_vm0, %vm7856_vm5  ;;  %vm7912_vm7 = vcmask 1040384   ;;  %vm7791_vm8 = vcmask 3072   ;;  %vm8420_vm9 = vcmask 523264  }
  0x19   : > { %v331_v11 = vld [vmem:[%s15293_s1 + $0x88] sm:$0xff]  ;;  %v333_v12 = vld [vmem:[%s15293_s1 + $0x98] sm:$0xff]  ;;  %s8568_s22 = sshll.u32 %s12677_s17, 2  ;;  %s301_s17 = sand.u32 1, %s9303_s28  }
  0x1a   : > { %v335_v13 = vld [vmem:[%s15293_s1 + $0xa8] sm:$0xff]  ;;  %v337_v14 = vld [vmem:[%s15293_s1 + $0xb8] sm:$0xff]  ;;  %s307_s13 = scalar_lea.vmem %s15292_s0, %s8568_s22  ;;  %s8637_s23 = sshll.u32 %s9388_s9, 12 }
  0x1b   : > { %587 = vperm.xlu1 %8977, %v317_v4   ;;  %2123 = vperm.xlu0 %8978, %v317_v4   ;;  %v339_v15 = vld [vmem:[%s15293_s1 + $0xc8] sm:$0xff]  ;;  %v341_v16 = vld [vmem:[%s15293_s1 + $0xd8] sm:$0xff]  ;;  %s15239_s10 = scalar_lea.hbm %s15300_s8, %s8637_s23  ;;  %s15251_s9 = scalar_lea.sflag [#allocation4], %s301_s17 }
  0x1c   : > { %v343_v17 = vld [vmem:[%s15293_s1 + $0xe8] sm:$0xff]  ;;  %v345_v18 = vld [vmem:[%s15293_s1 + $0xf8] sm:$0xff] }
  0x1d   : > { %v347_v19 = vld [vmem:[%s15293_s1 + $0x108] sm:$0xff]  ;;  %v349_v20 = vld [vmem:[%s15293_s1 + $0x118] sm:$0xff] }
  0x1e   : > { %v351_v21 = vld [vmem:[%s15293_s1 + $0x128] sm:$0xff]  ;;  %v353_v22 = vld [vmem:[%s15293_s1 + $0x138] sm:$0xff] }
  0x1f   : > { %597 = vperm.xlu1 %8977, %v319_v5   ;;  %2131 = vperm.xlu0 %8978, %v319_v5   ;;  %v355_v23 = vld [vmem:[%s15293_s1 + $0x148] sm:$0xff]  ;;  %v357_v24 = vld [vmem:[%s15293_s1 + $0x158] sm:$0xff] }
  0x20   : > { %v359_v25 = vld [vmem:[%s15293_s1 + $0x168] sm:$0xff]  ;;  %v361_v26 = vld [vmem:[%s15293_s1 + $0x178] sm:$0xff] }
  0x21   : > { %v363_v27 = vld [vmem:[%s15293_s1 + $0x188] sm:$0xff]  ;;  %v365_v28 = vld [vmem:[%s15293_s1 + $0x198] sm:$0xff] }
  0x22   : > { %v367_v29 = vld [vmem:[%s15293_s1 + $0x1a8] sm:$0xff]  ;;  %v369_v30 = vld [vmem:[%s15293_s1 + $0x1b8] sm:$0xff] }
  0x23   : > { %607 = vperm.xlu1 %8977, %v321_v6   ;;  %2139 = vperm.xlu0 %8978, %v321_v6   ;;  %v371_v31 = vld [vmem:[%s15293_s1 + $0x1c8] sm:$0xff]  ;;  %v373_v32 = vld [vmem:[%s15293_s1 + $0x1d8] sm:$0xff] }
  0x24   : > { %v375_v33 = vld [vmem:[%s15293_s1 + $0x1e8] sm:$0xff]  ;;  %v377_v34 = vld [vmem:[%s15293_s1 + $0x1f8] sm:$0xff] }
  0x25   : > { %v379_v35 = vld [vmem:[%s15293_s1 + $0x208] sm:$0xff]  ;;  %v381_v38 = vld [vmem:[%s15293_s1 + $0x218] sm:$0xff] }
  0x26   : > { %v383_v41 = vld [vmem:[%s15293_s1 + $0x228] sm:$0xff]  ;;  %v385_v44 = vld [vmem:[%s15293_s1 + $0x238] sm:$0xff] }
  0x27   : > { %617 = vperm.xlu1 %8977, %v323_v7   ;;  %2147 = vperm.xlu0 %8978, %v323_v7   ;;  %v387_v47 = vld [vmem:[%s15293_s1 + $0x248] sm:$0xff]  ;;  %v389_v50 = vld [vmem:[%s15293_s1 + $0x258] sm:$0xff] }
  0x28   : > { %v391_v53 = vld [vmem:[%s15293_s1 + $0x268] sm:$0xff]  ;;  %v393_v56 = vld [vmem:[%s15293_s1 + $0x278] sm:$0xff] }
  0x29   : > { %v395_v59 = vld [vmem:[%s15293_s1 + $0x288] sm:$0xff]  ;;  %v397_v62 = vld [vmem:[%s15293_s1 + $0x298] sm:$0xff] }
  0x2a   : > { %v399_v1 = vld [vmem:[%s15293_s1 + $0x2a8] sm:$0xff]  ;;  %v401_v6 = vld [vmem:[%s15293_s1 + $0x2b8] sm:$0xff] }
  0x2b   : > { %627 = vperm.xlu1 %8977, %v325_v8   ;;  %2155 = vperm.xlu0 %8978, %v325_v8  }
  0x2f   : > { %637 = vperm.xlu1 %8977, %v327_v9   ;;  %2163 = vperm.xlu0 %8978, %v327_v9   ;;  %v403_v9 = vld [vmem:[%s15293_s1 + $0x2c8] sm:$0xff] }
  0x33   : > { %647 = vperm.xlu1 %8977, %v329_v10   ;;  %2171 = vperm.xlu0 %8978, %v329_v10  }
  0x37   : > { %657 = vperm.xlu1 %8977, %v331_v11   ;;  %2179 = vperm.xlu0 %8978, %v331_v11  }
  0x3b   : > { %667 = vperm.xlu1 %8977, %v333_v12   ;;  %2187 = vperm.xlu0 %8978, %v333_v12   ;;  %v405_v12 = vld [vmem:[%s15293_s1 + $0x2d8] sm:$0xff] }
  0x3f   : > { %677 = vperm.xlu1 %8977, %v335_v13   ;;  %2195 = vperm.xlu0 %8978, %v335_v13  }
  0x43   : > { %687 = vperm.xlu1 %8977, %v337_v14   ;;  %2203 = vperm.xlu0 %8978, %v337_v14  }
  0x47   : > { %697 = vperm.xlu1 %8977, %v339_v15   ;;  %2211 = vperm.xlu0 %8978, %v339_v15   ;;  %v407_v15 = vld [vmem:[%s15293_s1 + $0x2e8] sm:$0xff] }
  0x4b   : > { %707 = vperm.xlu1 %8977, %v341_v16   ;;  %2219 = vperm.xlu0 %8978, %v341_v16  }
  0x4f   : > { %717 = vperm.xlu1 %8977, %v343_v17   ;;  %2227 = vperm.xlu0 %8978, %v343_v17  }
  0x53   : > { %727 = vperm.xlu1 %8977, %v345_v18   ;;  %2235 = vperm.xlu0 %8978, %v345_v18   ;;  %v409_v18 = vld [vmem:[%s15293_s1 + $0x2f8] sm:$0xff] }
  0x57   : > { %737 = vperm.xlu1 %8977, %v347_v19   ;;  %2243 = vperm.xlu0 %8978, %v347_v19  }
  0x5b   : > { %747 = vperm.xlu1 %8977, %v349_v20   ;;  %2251 = vperm.xlu0 %8978, %v349_v20  }
  0x5f   : > { %757 = vperm.xlu1 %8977, %v351_v21   ;;  %2259 = vperm.xlu0 %8978, %v351_v21   ;;  %v411_v21 = vld [vmem:[%s15293_s1 + $0x308] sm:$0xff] }
  0x63   : > { %767 = vperm.xlu1 %8977, %v353_v22   ;;  %2267 = vperm.xlu0 %8978, %v353_v22  }
  0x67   : > { %777 = vperm.xlu1 %8977, %v355_v23   ;;  %2275 = vperm.xlu0 %8978, %v355_v23  }
  0x6b   : > { %787 = vperm.xlu1 %8977, %v357_v24   ;;  %2283 = vperm.xlu0 %8978, %v357_v24   ;;  %v413_v24 = vld [vmem:[%s15293_s1 + $0x318] sm:$0xff] }
  0x6f   : > { %797 = vperm.xlu1 %8977, %v359_v25   ;;  %2291 = vperm.xlu0 %8978, %v359_v25  }
  0x73   : > { %807 = vperm.xlu1 %8977, %v361_v26   ;;  %2299 = vperm.xlu0 %8978, %v361_v26  }
  0x77   : > { %817 = vperm.xlu1 %8977, %v363_v27   ;;  %2307 = vperm.xlu0 %8978, %v363_v27   ;;  %v415_v27 = vld [vmem:[%s15293_s1 + $0x328] sm:$0xff] }
  0x7b   : > { %827 = vperm.xlu1 %8977, %v365_v28   ;;  %2315 = vperm.xlu0 %8978, %v365_v28  }
  0x7f   : > { %837 = vperm.xlu1 %8977, %v367_v29   ;;  %2323 = vperm.xlu0 %8978, %v367_v29  }
  0x83   : > { %847 = vperm.xlu1 %8977, %v369_v30   ;;  %2331 = vperm.xlu0 %8978, %v369_v30   ;;  %v417_v30 = vld [vmem:[%s15293_s1 + $0x338] sm:$0xff] }
  0x87   : > { %857 = vperm.xlu1 %8977, %v371_v31   ;;  %2339 = vperm.xlu0 %8978, %v371_v31  }
  0x8b   : > { %867 = vperm.xlu1 %8977, %v373_v32   ;;  %2347 = vperm.xlu0 %8978, %v373_v32  }
  0x8f   : > { %877 = vperm.xlu1 %8977, %v375_v33   ;;  %2355 = vperm.xlu0 %8978, %v375_v33   ;;  %v419_v33 = vld [vmem:[%s15293_s1 + $0x348] sm:$0xff] }
  0x93   : > { %887 = vperm.xlu1 %8977, %v377_v34   ;;  %2363 = vperm.xlu0 %8978, %v377_v34  }
  0x96   : > { %v9519_v36 = vpop.permute.xlu1 %582  ;;  %v9521_v37 = vpop.permute.xlu0 %2111 }
  0x97   : > { %897 = vperm.xlu1 %8977, %v379_v35   ;;  %2371 = vperm.xlu0 %8978, %v379_v35  }
  0x9a   : > { %v9526_v39 = vpop.permute.xlu1 %587  ;;  %v9528_v40 = vpop.permute.xlu0 %2123 }
  0x9b   : > { %907 = vperm.xlu1 %8977, %v381_v38   ;;  %2379 = vperm.xlu0 %8978, %v381_v38   ;;  %v421_v38 = vld [vmem:[%s15293_s1 + $0x358] sm:$0xff] }
  0x9e   : > { %v9533_v42 = vpop.permute.xlu1 %597  ;;  %v9535_v43 = vpop.permute.xlu0 %2131 }
  0x9f   : > { %917 = vperm.xlu1 %8977, %v383_v41   ;;  %2387 = vperm.xlu0 %8978, %v383_v41  }
  0xa2   : > { %v9540_v45 = vpop.permute.xlu1 %607  ;;  %v9542_v46 = vpop.permute.xlu0 %2139 }
  0xa3   : > { %927 = vperm.xlu1 %8977, %v385_v44   ;;  %2395 = vperm.xlu0 %8978, %v385_v44  }
  0xa6   : > { %v9547_v48 = vpop.permute.xlu1 %617  ;;  %v9549_v49 = vpop.permute.xlu0 %2147 }
  0xa7   : > { %937 = vperm.xlu1 %8977, %v387_v47   ;;  %2403 = vperm.xlu0 %8978, %v387_v47   ;;  %v423_v47 = vld [vmem:[%s15293_s1 + $0x368] sm:$0xff] }
  0xaa   : > { %v9554_v51 = vpop.permute.xlu1 %627  ;;  %v9556_v52 = vpop.permute.xlu0 %2155 }
  0xab   : > { %947 = vperm.xlu1 %8977, %v389_v50   ;;  %2411 = vperm.xlu0 %8978, %v389_v50  }
  0xae   : > { %v9561_v54 = vpop.permute.xlu1 %637  ;;  %v9563_v55 = vpop.permute.xlu0 %2163 }
  0xaf   : > { %957 = vperm.xlu1 %8977, %v391_v53   ;;  %2419 = vperm.xlu0 %8978, %v391_v53  }
  0xb2   : > { %v9568_v57 = vpop.permute.xlu1 %647  ;;  %v9570_v58 = vpop.permute.xlu0 %2171 }
  0xb3   : > { %15314 = vst [vmem:[#allocation6_spill] sm:$0xff] %v9570_v58  ;;  %967 = vperm.xlu1 %8977, %v393_v56   ;;  %2427 = vperm.xlu0 %8978, %v393_v56   ;;  %v425_v56 = vld [vmem:[%s15293_s1 + $0x378] sm:$0xff] }
  0xb6   : > { %v9575_v60 = vpop.permute.xlu1 %657  ;;  %v9577_v61 = vpop.permute.xlu0 %2179 }
  0xb7   : > { %977 = vperm.xlu1 %8977, %v395_v59   ;;  %2435 = vperm.xlu0 %8978, %v395_v59  }
  0xba   : > { %v9582_v63 = vpop.permute.xlu1 %667  ;;  %v9584_v0 = vpop.permute.xlu0 %2187 }
  0xbb   : > { %987 = vperm.xlu1 %8977, %v397_v62   ;;  %2443 = vperm.xlu0 %8978, %v397_v62  }
  0xbe   : > { %v9589_v4 = vpop.permute.xlu1 %677  ;;  %v9591_v5 = vpop.permute.xlu0 %2195 }
  0xbf   : > { %997 = vperm.xlu1 %8977, %v399_v1   ;;  %2451 = vperm.xlu0 %8978, %v399_v1   ;;  %v427_v1 = vld [vmem:[%s15293_s1 + $0x388] sm:$0xff] }
  0xc2   : > { %v9596_v7 = vpop.permute.xlu1 %687  ;;  %v9598_v8 = vpop.permute.xlu0 %2203 }
  0xc3   : > { %1007 = vperm.xlu1 %8977, %v401_v6   ;;  %2459 = vperm.xlu0 %8978, %v401_v6  }
  0xc6   : > { %v9603_v10 = vpop.permute.xlu1 %697  ;;  %v9605_v11 = vpop.permute.xlu0 %2211 }
  0xc7   : > { %1017 = vperm.xlu1 %8977, %v403_v9   ;;  %2467 = vperm.xlu0 %8978, %v403_v9  }
  0xca   : > { %v9610_v13 = vpop.permute.xlu1 %707  ;;  %v9612_v14 = vpop.permute.xlu0 %2219 }
  0xcb   : > { %1027 = vperm.xlu1 %8977, %v405_v12   ;;  %2475 = vperm.xlu0 %8978, %v405_v12   ;;  %v429_v12 = vld [vmem:[%s15293_s1 + $0x398] sm:$0xff] }
  0xce   : > { %v9617_v16 = vpop.permute.xlu1 %717  ;;  %v9619_v17 = vpop.permute.xlu0 %2227 }
  0xcf   : > { %1037 = vperm.xlu1 %8977, %v407_v15   ;;  %2483 = vperm.xlu0 %8978, %v407_v15  }
  0xd2   : > { %v9624_v19 = vpop.permute.xlu1 %727  ;;  %v9626_v20 = vpop.permute.xlu0 %2235 }
  0xd3   : > { %1047 = vperm.xlu1 %8977, %v409_v18   ;;  %2491 = vperm.xlu0 %8978, %v409_v18  }
  0xd6   : > { %v9631_v22 = vpop.permute.xlu1 %737  ;;  %v9633_v23 = vpop.permute.xlu0 %2243 }
  0xd7   : > { %15315 = vst [vmem:[#allocation7_spill] sm:$0xff] %v9631_v22  ;;  %15316 = vst [vmem:[#allocation8_spill] sm:$0xff] %v9633_v23  ;;  %1057 = vperm.xlu1 %8977, %v411_v21   ;;  %2499 = vperm.xlu0 %8978, %v411_v21   ;;  %v431_v21 = vld [vmem:[%s15293_s1 + $0x3a8] sm:$0xff] }
  0xda   : > { %v9638_v25 = vpop.permute.xlu1 %747  ;;  %v9640_v26 = vpop.permute.xlu0 %2251 }
  0xdb   : > { %15317 = vst [vmem:[#allocation9_spill] sm:$0xff] %v9638_v25  ;;  %15318 = vst [vmem:[#allocation10_spill] sm:$0xff] %v9640_v26  ;;  %1067 = vperm.xlu1 %8977, %v413_v24   ;;  %2507 = vperm.xlu0 %8978, %v413_v24  }
  0xde   : > { %v9645_v28 = vpop.permute.xlu1 %757  ;;  %v9647_v29 = vpop.permute.xlu0 %2259 }
  0xdf   : > { %15319 = vst [vmem:[#allocation11_spill] sm:$0xff] %v9645_v28  ;;  %15320 = vst [vmem:[#allocation12_spill] sm:$0xff] %v9647_v29  ;;  %1077 = vperm.xlu1 %8977, %v415_v27   ;;  %2515 = vperm.xlu0 %8978, %v415_v27  }
  0xe2   : > { %v9652_v31 = vpop.permute.xlu1 %767  ;;  %v9654_v32 = vpop.permute.xlu0 %2267 }
  0xe3   : > { %15321 = vst [vmem:[#allocation13_spill] sm:$0xff] %v9652_v31  ;;  %15322 = vst [vmem:[#allocation14_spill] sm:$0xff] %v9654_v32  ;;  %1087 = vperm.xlu1 %8977, %v417_v30   ;;  %2523 = vperm.xlu0 %8978, %v417_v30   ;;  %v433_v30 = vld [vmem:[%s15293_s1 + $0x3b8] sm:$0xff] }
  0xe6   : > { %v9659_v34 = vpop.permute.xlu1 %777  ;;  %v9661_v35 = vpop.permute.xlu0 %2275 }
  0xe7   : > { %15323 = vst [vmem:[#allocation15_spill] sm:$0xff] %v9659_v34  ;;  %15324 = vst [vmem:[#allocation16_spill] sm:$0xff] %v9661_v35  ;;  %1097 = vperm.xlu1 %8977, %v419_v33   ;;  %2531 = vperm.xlu0 %8978, %v419_v33  }
  0xea   : > { %v9666_v41 = vpop.permute.xlu1 %787  ;;  %v9668_v44 = vpop.permute.xlu0 %2283 }
  0xeb   : > { %15325 = vst [vmem:[#allocation17_spill] sm:$0xff] %v9666_v41  ;;  %15326 = vst [vmem:[#allocation18_spill] sm:$0xff] %v9668_v44  ;;  %1107 = vperm.xlu1 %8977, %v421_v38   ;;  %2539 = vperm.xlu0 %8978, %v421_v38  }
  0xee   : > { %v9673_v50 = vpop.permute.xlu1 %797  ;;  %v9675_v53 = vpop.permute.xlu0 %2291 }
  0xef   : > { %15327 = vst [vmem:[#allocation19_spill] sm:$0xff] %v9673_v50  ;;  %15328 = vst [vmem:[#allocation20_spill] sm:$0xff] %v9675_v53  ;;  %1117 = vperm.xlu1 %8977, %v423_v47   ;;  %2547 = vperm.xlu0 %8978, %v423_v47   ;;  %v435_v47 = vld [vmem:[%s15293_s1 + $0x3c8] sm:$0xff] }
  0xf2   : > { %v9680_v59 = vpop.permute.xlu1 %807  ;;  %v9682_v62 = vpop.permute.xlu0 %2299 }
  0xf3   : > { %15329 = vst [vmem:[#allocation21_spill] sm:$0xff] %v9680_v59  ;;  %15330 = vst [vmem:[#allocation22_spill] sm:$0xff] %v9682_v62  ;;  %1127 = vperm.xlu1 %8977, %v425_v56   ;;  %2555 = vperm.xlu0 %8978, %v425_v56  }
  0xf6   : > { %v9687_v6 = vpop.permute.xlu1 %817  ;;  %v9689_v9 = vpop.permute.xlu0 %2307 }
  0xf7   : > { %15331 = vst [vmem:[#allocation23_spill] sm:$0xff] %v9687_v6  ;;  %15332 = vst [vmem:[#allocation24_spill] sm:$0xff] %v9689_v9  ;;  %1137 = vperm.xlu1 %8977, %v427_v1   ;;  %2563 = vperm.xlu0 %8978, %v427_v1  }
  0xfa   : > { %v9694_v15 = vpop.permute.xlu1 %827  ;;  %v9696_v18 = vpop.permute.xlu0 %2315 }
  0xfb   : > { %15333 = vst [vmem:[#allocation25_spill] sm:$0xff] %v9694_v15  ;;  %15334 = vst [vmem:[#allocation26_spill] sm:$0xff] %v9696_v18  ;;  %1147 = vperm.xlu1 %8977, %v429_v12   ;;  %2571 = vperm.xlu0 %8978, %v429_v12   ;;  %v437_v12 = vld [vmem:[%s15293_s1 + $0x3d8] sm:$0xff] }
  0xfe   : > { %v9701_v24 = vpop.permute.xlu1 %837  ;;  %v9703_v27 = vpop.permute.xlu0 %2323 }
  0xff   : > { %15335 = vst [vmem:[#allocation27_spill] sm:$0xff] %v9701_v24  ;;  %15336 = vst [vmem:[#allocation28_spill] sm:$0xff] %v9703_v27  ;;  %1157 = vperm.xlu1 %8977, %v431_v21   ;;  %2579 = vperm.xlu0 %8978, %v431_v21  }
 0x102   : > { %v9708_v33 = vpop.permute.xlu1 %847  ;;  %v9710_v38 = vpop.permute.xlu0 %2331 }
 0x103   : > { %15337 = vst [vmem:[#allocation29_spill] sm:$0xff] %v9708_v33  ;;  %15338 = vst [vmem:[#allocation30_spill] sm:$0xff] %v9710_v38  ;;  %1167 = vperm.xlu1 %8977, %v433_v30   ;;  %2587 = vperm.xlu0 %8978, %v433_v30   ;;  %v439_v30 = vld [vmem:[%s15293_s1 + $0x3e8] sm:$0xff] }
 0x106   : > { %v9715_v56 = vpop.permute.xlu1 %857  ;;  %v9717_v1 = vpop.permute.xlu0 %2339 }
 0x107   : > { %15339 = vst [vmem:[#allocation31_spill] sm:$0xff] %v9715_v56  ;;  %15340 = vst [vmem:[#allocation32_spill] sm:$0xff] %v9717_v1  ;;  %1177 = vperm.xlu1 %8977, %v435_v47   ;;  %2595 = vperm.xlu0 %8978, %v435_v47   ;;  %v441_v47 = vld [vmem:[%s15293_s1 + $0x3f8] sm:$0xff] }
 0x10a   : > { %v9722_v21 = vpop.permute.xlu1 %867  ;;  %v9724_v3 = vpop.permute.xlu0 %2347 }
 0x10b   : > { %15341 = vst [vmem:[#allocation33_spill] sm:$0xff] %v9722_v21  ;;  %15342 = vst [vmem:[#allocation34_spill] sm:$0xff] %v9724_v3  ;;  %1187 = vperm.xlu1 %8977, %v437_v12   ;;  %2603 = vperm.xlu0 %8978, %v437_v12   ;;  %v443_v12 = vld [vmem:[%s15293_s1 + $0x408] sm:$0xff] }
 0x10e   : > { %v9729_v2 = vpop.permute.xlu1 %877  ;;  %v9731_v62 = vpop.permute.xlu0 %2355 }
 0x10f   : > { %15343 = vst [vmem:[#allocation35_spill] sm:$0xff] %v9729_v2  ;;  %15344 = vst [vmem:[#allocation36_spill] sm:$0xff] %v9731_v62  ;;  %1197 = vperm.xlu1 %8977, %v439_v30   ;;  %2611 = vperm.xlu0 %8978, %v439_v30   ;;  %v445_v30 = vld [vmem:[%s15293_s1 + $0x418] sm:$0xff] }
 0x112   : > { %v9736_v59 = vpop.permute.xlu1 %887  ;;  %v9738_v53 = vpop.permute.xlu0 %2363 }
 0x113   : > { %15345 = vst [vmem:[#allocation37_spill] sm:$0xff] %v9736_v59  ;;  %15346 = vst [vmem:[#allocation38_spill] sm:$0xff] %v9738_v53  ;;  %1207 = vperm.xlu1 %8977, %v441_v47   ;;  %2619 = vperm.xlu0 %8978, %v441_v47   ;;  %v447_v47 = vld [vmem:[%s15293_s1 + $0x428] sm:$0xff] }
 0x116   : > { %v9743_v50 = vpop.permute.xlu1 %897  ;;  %v9745_v2 = vpop.permute.xlu0 %2371 }
 0x117   : > { %15347 = vst [vmem:[#allocation39_spill] sm:$0xff] %v9743_v50  ;;  %15348 = vst [vmem:[#allocation40_spill] sm:$0xff] %v9745_v2  ;;  %1217 = vperm.xlu1 %8977, %v443_v12   ;;  %2627 = vperm.xlu0 %8978, %v443_v12   ;;  %v449_v12 = vld [vmem:[%s15293_s1 + $0x438] sm:$0xff] }
 0x11a   : > { %v9750_v62 = vpop.permute.xlu1 %907  ;;  %v9752_v59 = vpop.permute.xlu0 %2379 }
 0x11b   : > { %15349 = vst [vmem:[#allocation41_spill] sm:$0xff] %v9750_v62  ;;  %15350 = vst [vmem:[#allocation42_spill] sm:$0xff] %v9752_v59  ;;  %1227 = vperm.xlu1 %8977, %v445_v30   ;;  %2635 = vperm.xlu0 %8978, %v445_v30   ;;  %v451_v30 = vld [vmem:[%s15293_s1 + $0x448] sm:$0xff] }
 0x11e   : > { %v9757_v53 = vpop.permute.xlu1 %917  ;;  %v9759_v50 = vpop.permute.xlu0 %2387 }
 0x11f   : > { %15351 = vst [vmem:[#allocation43_spill] sm:$0xff] %v9757_v53  ;;  %15352 = vst [vmem:[#allocation44_spill] sm:$0xff] %v9759_v50  ;;  %1237 = vperm.xlu1 %8977, %v447_v47   ;;  %2643 = vperm.xlu0 %8978, %v447_v47   ;;  %v453_v47 = vld [vmem:[%s15293_s1 + $0x458] sm:$0xff] }
 0x122   : > { %v9764_v2 = vpop.permute.xlu1 %927  ;;  %v9766_v62 = vpop.permute.xlu0 %2395 }
 0x123   : > { %15353 = vst [vmem:[#allocation45_spill] sm:$0xff] %v9764_v2  ;;  %15354 = vst [vmem:[#allocation46_spill] sm:$0xff] %v9766_v62  ;;  %1247 = vperm.xlu1 %8977, %v449_v12   ;;  %2651 = vperm.xlu0 %8978, %v449_v12   ;;  %v455_v12 = vld [vmem:[%s15293_s1 + $0x468] sm:$0xff] }
 0x126   : > { %v9771_v59 = vpop.permute.xlu1 %937  ;;  %v9773_v53 = vpop.permute.xlu0 %2403 }
 0x127   : > { %15355 = vst [vmem:[#allocation47_spill] sm:$0xff] %v9771_v59  ;;  %15356 = vst [vmem:[#allocation48_spill] sm:$0xff] %v9773_v53  ;;  %1257 = vperm.xlu1 %8977, %v451_v30   ;;  %2659 = vperm.xlu0 %8978, %v451_v30   ;;  %v457_v30 = vld [vmem:[%s15293_s1 + $0x478] sm:$0xff] }
 0x12a   : > { %v9778_v50 = vpop.permute.xlu1 %947  ;;  %v9780_v2 = vpop.permute.xlu0 %2411 }
 0x12b   : > { %15357 = vst [vmem:[#allocation49_spill] sm:$0xff] %v9778_v50  ;;  %15358 = vst [vmem:[#allocation50_spill] sm:$0xff] %v9780_v2  ;;  %1267 = vperm.xlu1 %8977, %v453_v47   ;;  %2667 = vperm.xlu0 %8978, %v453_v47   ;;  %v459_v47 = vld [vmem:[%s15293_s1 + $0x488] sm:$0xff] }
 0x12e   : > { %v9785_v62 = vpop.permute.xlu1 %957  ;;  %v9787_v59 = vpop.permute.xlu0 %2419 }
 0x12f   : > { %15359 = vst [vmem:[#allocation51_spill] sm:$0xff] %v9785_v62  ;;  %15360 = vst [vmem:[#allocation52_spill] sm:$0xff] %v9787_v59  ;;  %1277 = vperm.xlu1 %8977, %v455_v12   ;;  %2675 = vperm.xlu0 %8978, %v455_v12   ;;  %v461_v12 = vld [vmem:[%s15293_s1 + $0x498] sm:$0xff] }
 0x132   : > { %v9792_v53 = vpop.permute.xlu1 %967  ;;  %v9794_v50 = vpop.permute.xlu0 %2427 }
 0x133   : > { %15361 = vst [vmem:[#allocation53_spill] sm:$0xff] %v9792_v53  ;;  %15362 = vst [vmem:[#allocation54_spill] sm:$0xff] %v9794_v50  ;;  %1287 = vperm.xlu1 %8977, %v457_v30   ;;  %2683 = vperm.xlu0 %8978, %v457_v30   ;;  %v463_v30 = vld [vmem:[%s15293_s1 + $0x4a8] sm:$0xff] }
 0x136   : > { %v9799_v2 = vpop.permute.xlu1 %977  ;;  %v9801_v62 = vpop.permute.xlu0 %2435 }
 0x137   : > { %15363 = vst [vmem:[#allocation55_spill] sm:$0xff] %v9799_v2  ;;  %15364 = vst [vmem:[#allocation56_spill] sm:$0xff] %v9801_v62  ;;  %1297 = vperm.xlu1 %8977, %v459_v47   ;;  %2691 = vperm.xlu0 %8978, %v459_v47   ;;  %v465_v47 = vld [vmem:[%s15293_s1 + $0x4b8] sm:$0xff] }
 0x13a   : > { %v9806_v59 = vpop.permute.xlu1 %987  ;;  %v9808_v53 = vpop.permute.xlu0 %2443 }
 0x13b   : > { %15365 = vst [vmem:[#allocation57_spill] sm:$0xff] %v9806_v59  ;;  %15366 = vst [vmem:[#allocation58_spill] sm:$0xff] %v9808_v53  ;;  %1307 = vperm.xlu1 %8977, %v461_v12   ;;  %2699 = vperm.xlu0 %8978, %v461_v12   ;;  %v467_v12 = vld [vmem:[%s15293_s1 + $0x4c8] sm:$0xff] }
 0x13e   : > { %v9813_v50 = vpop.permute.xlu1 %997  ;;  %v9815_v2 = vpop.permute.xlu0 %2451 }
 0x13f   : > { %15367 = vst [vmem:[#allocation59_spill] sm:$0xff] %v9813_v50  ;;  %15368 = vst [vmem:[#allocation60_spill] sm:$0xff] %v9815_v2  ;;  %1317 = vperm.xlu1 %8977, %v463_v30   ;;  %2707 = vperm.xlu0 %8978, %v463_v30   ;;  %v469_v30 = vld [vmem:[%s15293_s1 + $0x4d8] sm:$0xff] }
 0x142   : > { %v9820_v62 = vpop.permute.xlu1 %1007  ;;  %v9822_v59 = vpop.permute.xlu0 %2459 }
 0x143   : > { %15369 = vst [vmem:[#allocation61_spill] sm:$0xff] %v9820_v62  ;;  %15370 = vst [vmem:[#allocation62_spill] sm:$0xff] %v9822_v59  ;;  %1327 = vperm.xlu1 %8977, %v465_v47   ;;  %2715 = vperm.xlu0 %8978, %v465_v47   ;;  %v471_v47 = vld [vmem:[%s15293_s1 + $0x4e8] sm:$0xff] }
 0x146   : > { %v9827_v53 = vpop.permute.xlu1 %1017  ;;  %v9829_v50 = vpop.permute.xlu0 %2467 }
 0x147   : > { %15371 = vst [vmem:[#allocation63_spill] sm:$0xff] %v9827_v53  ;;  %15372 = vst [vmem:[#allocation64_spill] sm:$0xff] %v9829_v50  ;;  %1337 = vperm.xlu1 %8977, %v467_v12   ;;  %2723 = vperm.xlu0 %8978, %v467_v12   ;;  %v473_v12 = vld [vmem:[%s15293_s1 + $0x4f8] sm:$0xff] }
 0x14a   : > { %v9834_v2 = vpop.permute.xlu1 %1027  ;;  %v9836_v62 = vpop.permute.xlu0 %2475 }
 0x14b   : > { %15373 = vst [vmem:[#allocation65_spill] sm:$0xff] %v9834_v2  ;;  %15374 = vst [vmem:[#allocation66_spill] sm:$0xff] %v9836_v62  ;;  %1347 = vperm.xlu1 %8977, %v469_v30   ;;  %2731 = vperm.xlu0 %8978, %v469_v30   ;;  %v475_v30 = vld [vmem:[%s15293_s1 + $0x508] sm:$0xff] }
 0x14e   : > { %v9841_v59 = vpop.permute.xlu1 %1037  ;;  %v9843_v53 = vpop.permute.xlu0 %2483 }
 0x14f   : > { %15375 = vst [vmem:[#allocation67_spill] sm:$0xff] %v9841_v59  ;;  %15376 = vst [vmem:[#allocation68_spill] sm:$0xff] %v9843_v53  ;;  %1357 = vperm.xlu1 %8977, %v471_v47   ;;  %2739 = vperm.xlu0 %8978, %v471_v47   ;;  %v477_v47 = vld [vmem:[%s15293_s1 + $0x518] sm:$0xff] }
 0x152   : > { %v9848_v50 = vpop.permute.xlu1 %1047  ;;  %v9850_v2 = vpop.permute.xlu0 %2491 }
 0x153   : > { %15377 = vst [vmem:[#allocation69_spill] sm:$0xff] %v9848_v50  ;;  %15378 = vst [vmem:[#allocation70_spill] sm:$0xff] %v9850_v2  ;;  %1367 = vperm.xlu1 %8977, %v473_v12   ;;  %2747 = vperm.xlu0 %8978, %v473_v12   ;;  %v479_v12 = vld [vmem:[%s15293_s1 + $0x528] sm:$0xff] }
 0x156   : > { %v9855_v62 = vpop.permute.xlu1 %1057  ;;  %v9857_v59 = vpop.permute.xlu0 %2499 }
 0x157   : > { %15379 = vst [vmem:[#allocation71_spill] sm:$0xff] %v9855_v62  ;;  %15380 = vst [vmem:[#allocation72_spill] sm:$0xff] %v9857_v59  ;;  %1377 = vperm.xlu1 %8977, %v475_v30   ;;  %2755 = vperm.xlu0 %8978, %v475_v30   ;;  %v481_v30 = vld [vmem:[%s15293_s1 + $0x538] sm:$0xff] }
 0x15a   : > { %v9862_v53 = vpop.permute.xlu1 %1067  ;;  %v9864_v50 = vpop.permute.xlu0 %2507 }
 0x15b   : > { %15381 = vst [vmem:[#allocation73_spill] sm:$0xff] %v9862_v53  ;;  %15382 = vst [vmem:[#allocation74_spill] sm:$0xff] %v9864_v50  ;;  %1387 = vperm.xlu1 %8977, %v477_v47   ;;  %2763 = vperm.xlu0 %8978, %v477_v47   ;;  %v483_v47 = vld [vmem:[%s15293_s1 + $0x548] sm:$0xff] }
 0x15e   : > { %v9869_v2 = vpop.permute.xlu1 %1077  ;;  %v9871_v62 = vpop.permute.xlu0 %2515 }
 0x15f   : > { %15383 = vst [vmem:[#allocation75_spill] sm:$0xff] %v9869_v2  ;;  %15384 = vst [vmem:[#allocation76_spill] sm:$0xff] %v9871_v62  ;;  %1397 = vperm.xlu1 %8977, %v479_v12   ;;  %2771 = vperm.xlu0 %8978, %v479_v12   ;;  %v485_v12 = vld [vmem:[%s15293_s1 + $0x558] sm:$0xff] }
 0x162   : > { %v9876_v59 = vpop.permute.xlu1 %1087  ;;  %v9878_v53 = vpop.permute.xlu0 %2523 }
 0x163   : > { %15385 = vst [vmem:[#allocation77_spill] sm:$0xff] %v9876_v59  ;;  %15386 = vst [vmem:[#allocation78_spill] sm:$0xff] %v9878_v53  ;;  %1407 = vperm.xlu1 %8977, %v481_v30   ;;  %2779 = vperm.xlu0 %8978, %v481_v30   ;;  %v487_v30 = vld [vmem:[%s15293_s1 + $0x568] sm:$0xff] }
 0x166   : > { %v9883_v50 = vpop.permute.xlu1 %1097  ;;  %v9885_v2 = vpop.permute.xlu0 %2531 }
 0x167   : > { %15387 = vst [vmem:[#allocation79_spill] sm:$0xff] %v9883_v50  ;;  %15388 = vst [vmem:[#allocation80_spill] sm:$0xff] %v9885_v2  ;;  %1417 = vperm.xlu1 %8977, %v483_v47   ;;  %2787 = vperm.xlu0 %8978, %v483_v47   ;;  %v489_v47 = vld [vmem:[%s15293_s1 + $0x578] sm:$0xff] }
 0x16a   : > { %v9890_v62 = vpop.permute.xlu1 %1107  ;;  %v9892_v59 = vpop.permute.xlu0 %2539 }
 0x16b   : > { %15389 = vst [vmem:[#allocation81_spill] sm:$0xff] %v9890_v62  ;;  %15390 = vst [vmem:[#allocation82_spill] sm:$0xff] %v9892_v59  ;;  %1427 = vperm.xlu1 %8977, %v485_v12   ;;  %2795 = vperm.xlu0 %8978, %v485_v12   ;;  %v491_v12 = vld [vmem:[%s15293_s1 + $0x588] sm:$0xff] }
 0x16e   : > { %v9897_v53 = vpop.permute.xlu1 %1117  ;;  %v9899_v50 = vpop.permute.xlu0 %2547 }
 0x16f   : > { %15391 = vst [vmem:[#allocation83_spill] sm:$0xff] %v9897_v53  ;;  %15392 = vst [vmem:[#allocation84_spill] sm:$0xff] %v9899_v50  ;;  %1437 = vperm.xlu1 %8977, %v487_v30   ;;  %2803 = vperm.xlu0 %8978, %v487_v30   ;;  %v493_v30 = vld [vmem:[%s15293_s1 + $0x598] sm:$0xff] }
 0x172   : > { %v9904_v2 = vpop.permute.xlu1 %1127  ;;  %v9906_v62 = vpop.permute.xlu0 %2555 }
 0x173   : > { %15393 = vst [vmem:[#allocation85_spill] sm:$0xff] %v9904_v2  ;;  %15394 = vst [vmem:[#allocation86_spill] sm:$0xff] %v9906_v62  ;;  %1447 = vperm.xlu1 %8977, %v489_v47   ;;  %2811 = vperm.xlu0 %8978, %v489_v47   ;;  %v495_v47 = vld [vmem:[%s15293_s1 + $0x5a8] sm:$0xff] }
 0x176   : > { %v9911_v59 = vpop.permute.xlu1 %1137  ;;  %v9913_v53 = vpop.permute.xlu0 %2563 }
 0x177   : > { %15395 = vst [vmem:[#allocation87_spill] sm:$0xff] %v9911_v59  ;;  %15396 = vst [vmem:[#allocation88_spill] sm:$0xff] %v9913_v53  ;;  %1457 = vperm.xlu1 %8977, %v491_v12   ;;  %2819 = vperm.xlu0 %8978, %v491_v12   ;;  %v497_v12 = vld [vmem:[%s15293_s1 + $0x5b8] sm:$0xff] }
 0x17a   : > { %v9918_v50 = vpop.permute.xlu1 %1147  ;;  %v9920_v2 = vpop.permute.xlu0 %2571 }
 0x17b   : > { %15397 = vst [vmem:[#allocation89_spill] sm:$0xff] %v9918_v50  ;;  %15398 = vst [vmem:[#allocation90_spill] sm:$0xff] %v9920_v2  ;;  %1467 = vperm.xlu1 %8977, %v493_v30   ;;  %2827 = vperm.xlu0 %8978, %v493_v30   ;;  %v499_v30 = vld [vmem:[%s15293_s1 + $0x5c8] sm:$0xff] }
 0x17e   : > { %v9925_v62 = vpop.permute.xlu1 %1157  ;;  %v9927_v59 = vpop.permute.xlu0 %2579 }
 0x17f   : > { %15399 = vst [vmem:[#allocation91_spill] sm:$0xff] %v9925_v62  ;;  %15400 = vst [vmem:[#allocation92_spill] sm:$0xff] %v9927_v59  ;;  %1477 = vperm.xlu1 %8977, %v495_v47   ;;  %2835 = vperm.xlu0 %8978, %v495_v47   ;;  %v501_v47 = vld [vmem:[%s15293_s1 + $0x5d8] sm:$0xff] }
 0x182   : > { %v9932_v53 = vpop.permute.xlu1 %1167  ;;  %v9934_v50 = vpop.permute.xlu0 %2587 }
 0x183   : > { %15401 = vst [vmem:[#allocation93_spill] sm:$0xff] %v9932_v53  ;;  %15402 = vst [vmem:[#allocation94_spill] sm:$0xff] %v9934_v50  ;;  %1487 = vperm.xlu1 %8977, %v497_v12   ;;  %2843 = vperm.xlu0 %8978, %v497_v12   ;;  %v503_v12 = vld [vmem:[%s15293_s1 + $0x5e8] sm:$0xff] }
 0x186   : > { %v9939_v2 = vpop.permute.xlu1 %1177  ;;  %v9941_v62 = vpop.permute.xlu0 %2595 }
 0x187   : > { %15403 = vst [vmem:[#allocation95_spill] sm:$0xff] %v9939_v2  ;;  %15404 = vst [vmem:[#allocation96_spill] sm:$0xff] %v9941_v62  ;;  %1497 = vperm.xlu1 %8977, %v499_v30   ;;  %2851 = vperm.xlu0 %8978, %v499_v30   ;;  %v505_v30 = vld [vmem:[%s15293_s1 + $0x5f8] sm:$0xff] }
 0x18a   : > { %v9946_v59 = vpop.permute.xlu1 %1187  ;;  %v9948_v53 = vpop.permute.xlu0 %2603 }
 0x18b   : > { %15405 = vst [vmem:[#allocation97_spill] sm:$0xff] %v9946_v59  ;;  %15406 = vst [vmem:[#allocation98_spill] sm:$0xff] %v9948_v53  ;;  %1507 = vperm.xlu1 %8977, %v501_v47   ;;  %2859 = vperm.xlu0 %8978, %v501_v47   ;;  %v507_v47 = vld [vmem:[%s15293_s1 + $0x608] sm:$0xff] }
 0x18e   : > { %v9953_v50 = vpop.permute.xlu1 %1197  ;;  %v9955_v2 = vpop.permute.xlu0 %2611 }
 0x18f   : > { %15407 = vst [vmem:[#allocation99_spill] sm:$0xff] %v9953_v50  ;;  %15408 = vst [vmem:[#allocation100_spill] sm:$0xff] %v9955_v2  ;;  %1517 = vperm.xlu1 %8977, %v503_v12   ;;  %2867 = vperm.xlu0 %8978, %v503_v12   ;;  %v509_v12 = vld [vmem:[%s15293_s1 + $0x618] sm:$0xff] }
 0x192   : > { %v9960_v62 = vpop.permute.xlu1 %1207  ;;  %v9962_v59 = vpop.permute.xlu0 %2619 }
 0x193   : > { %15409 = vst [vmem:[#allocation101_spill] sm:$0xff] %v9960_v62  ;;  %15410 = vst [vmem:[#allocation102_spill] sm:$0xff] %v9962_v59  ;;  %1527 = vperm.xlu1 %8977, %v505_v30   ;;  %2875 = vperm.xlu0 %8978, %v505_v30   ;;  %v511_v30 = vld [vmem:[%s15293_s1 + $0x628] sm:$0xff] }
 0x196   : > { %v9967_v53 = vpop.permute.xlu1 %1217  ;;  %v9969_v50 = vpop.permute.xlu0 %2627 }
 0x197   : > { %15411 = vst [vmem:[#allocation103_spill] sm:$0xff] %v9967_v53  ;;  %15412 = vst [vmem:[#allocation104_spill] sm:$0xff] %v9969_v50  ;;  %1537 = vperm.xlu1 %8977, %v507_v47   ;;  %2883 = vperm.xlu0 %8978, %v507_v47   ;;  %v513_v47 = vld [vmem:[%s15293_s1 + $0x638] sm:$0xff] }
 0x19a   : > { %v9974_v2 = vpop.permute.xlu1 %1227  ;;  %v9976_v62 = vpop.permute.xlu0 %2635 }
 0x19b   : > { %15413 = vst [vmem:[#allocation105_spill] sm:$0xff] %v9974_v2  ;;  %15414 = vst [vmem:[#allocation106_spill] sm:$0xff] %v9976_v62  ;;  %1547 = vperm.xlu1 %8977, %v509_v12   ;;  %2891 = vperm.xlu0 %8978, %v509_v12   ;;  %v515_v12 = vld [vmem:[%s15293_s1 + $0x648] sm:$0xff] }
 0x19e   : > { %v9981_v59 = vpop.permute.xlu1 %1237  ;;  %v9983_v53 = vpop.permute.xlu0 %2643 }
 0x19f   : > { %15415 = vst [vmem:[#allocation107_spill] sm:$0xff] %v9981_v59  ;;  %15416 = vst [vmem:[#allocation108_spill] sm:$0xff] %v9983_v53  ;;  %1557 = vperm.xlu1 %8977, %v511_v30   ;;  %2899 = vperm.xlu0 %8978, %v511_v30   ;;  %v517_v30 = vld [vmem:[%s15293_s1 + $0x658] sm:$0xff] }
 0x1a2   : > { %v9988_v50 = vpop.permute.xlu1 %1247  ;;  %v9990_v2 = vpop.permute.xlu0 %2651 }
 0x1a3   : > { %15417 = vst [vmem:[#allocation109_spill] sm:$0xff] %v9988_v50  ;;  %15418 = vst [vmem:[#allocation110_spill] sm:$0xff] %v9990_v2  ;;  %1567 = vperm.xlu1 %8977, %v513_v47   ;;  %2907 = vperm.xlu0 %8978, %v513_v47   ;;  %v519_v47 = vld [vmem:[%s15293_s1 + $0x668] sm:$0xff] }
 0x1a6   : > { %v9995_v62 = vpop.permute.xlu1 %1257  ;;  %v9997_v59 = vpop.permute.xlu0 %2659 }
 0x1a7   : > { %15419 = vst [vmem:[#allocation111_spill] sm:$0xff] %v9995_v62  ;;  %15420 = vst [vmem:[#allocation112_spill] sm:$0xff] %v9997_v59  ;;  %1577 = vperm.xlu1 %8977, %v515_v12   ;;  %2915 = vperm.xlu0 %8978, %v515_v12   ;;  %v521_v12 = vld [vmem:[%s15293_s1 + $0x678] sm:$0xff] }
 0x1aa   : > { %v10002_v53 = vpop.permute.xlu1 %1267  ;;  %v10004_v50 = vpop.permute.xlu0 %2667 }
 0x1ab   : > { %15421 = vst [vmem:[#allocation113_spill] sm:$0xff] %v10002_v53  ;;  %15422 = vst [vmem:[#allocation114_spill] sm:$0xff] %v10004_v50  ;;  %1587 = vperm.xlu1 %8977, %v517_v30   ;;  %2923 = vperm.xlu0 %8978, %v517_v30   ;;  %v523_v30 = vld [vmem:[%s15293_s1 + $0x688] sm:$0xff] }
 0x1ae   : > { %v10009_v2 = vpop.permute.xlu1 %1277  ;;  %v10011_v62 = vpop.permute.xlu0 %2675 }
 0x1af   : > { %15423 = vst [vmem:[#allocation115_spill] sm:$0xff] %v10009_v2  ;;  %15424 = vst [vmem:[#allocation116_spill] sm:$0xff] %v10011_v62  ;;  %1597 = vperm.xlu1 %8977, %v519_v47   ;;  %2931 = vperm.xlu0 %8978, %v519_v47   ;;  %v525_v47 = vld [vmem:[%s15293_s1 + $0x698] sm:$0xff] }
 0x1b2   : > { %v10016_v59 = vpop.permute.xlu1 %1287  ;;  %v10018_v53 = vpop.permute.xlu0 %2683 }
 0x1b3   : > { %15425 = vst [vmem:[#allocation117_spill] sm:$0xff] %v10016_v59  ;;  %15426 = vst [vmem:[#allocation118_spill] sm:$0xff] %v10018_v53  ;;  %1607 = vperm.xlu1 %8977, %v521_v12   ;;  %2939 = vperm.xlu0 %8978, %v521_v12   ;;  %v527_v12 = vld [vmem:[%s15293_s1 + $0x6a8] sm:$0xff] }
 0x1b6   : > { %v10023_v50 = vpop.permute.xlu1 %1297  ;;  %v10025_v2 = vpop.permute.xlu0 %2691 }
 0x1b7   : > { %15427 = vst [vmem:[#allocation119_spill] sm:$0xff] %v10023_v50  ;;  %15428 = vst [vmem:[#allocation120_spill] sm:$0xff] %v10025_v2  ;;  %1617 = vperm.xlu1 %8977, %v523_v30   ;;  %2947 = vperm.xlu0 %8978, %v523_v30   ;;  %v529_v30 = vld [vmem:[%s15293_s1 + $0x6b8] sm:$0xff] }
 0x1ba   : > { %v10030_v62 = vpop.permute.xlu1 %1307  ;;  %v10032_v59 = vpop.permute.xlu0 %2699 }
 0x1bb   : > { %15429 = vst [vmem:[#allocation121_spill] sm:$0xff] %v10030_v62  ;;  %15430 = vst [vmem:[#allocation122_spill] sm:$0xff] %v10032_v59  ;;  %1627 = vperm.xlu1 %8977, %v525_v47   ;;  %2955 = vperm.xlu0 %8978, %v525_v47   ;;  %v531_v47 = vld [vmem:[%s15293_s1 + $0x6c8] sm:$0xff] }
 0x1be   : > { %v10037_v53 = vpop.permute.xlu1 %1317  ;;  %v10039_v50 = vpop.permute.xlu0 %2707 }
 0x1bf   : > { %15431 = vst [vmem:[#allocation123_spill] sm:$0xff] %v10037_v53  ;;  %15432 = vst [vmem:[#allocation124_spill] sm:$0xff] %v10039_v50  ;;  %1637 = vperm.xlu1 %8977, %v527_v12   ;;  %2963 = vperm.xlu0 %8978, %v527_v12   ;;  %v533_v12 = vld [vmem:[%s15293_s1 + $0x6d8] sm:$0xff] }
 0x1c2   : > { %v10044_v2 = vpop.permute.xlu1 %1327  ;;  %v10046_v62 = vpop.permute.xlu0 %2715 }
 0x1c3   : > { %15433 = vst [vmem:[#allocation125_spill] sm:$0xff] %v10044_v2  ;;  %15434 = vst [vmem:[#allocation126_spill] sm:$0xff] %v10046_v62  ;;  %1647 = vperm.xlu1 %8977, %v529_v30   ;;  %2971 = vperm.xlu0 %8978, %v529_v30   ;;  %v535_v30 = vld [vmem:[%s15293_s1 + $0x6e8] sm:$0xff] }
 0x1c6   : > { %v10051_v59 = vpop.permute.xlu1 %1337  ;;  %v10053_v53 = vpop.permute.xlu0 %2723 }
 0x1c7   : > { %15435 = vst [vmem:[#allocation127_spill] sm:$0xff] %v10051_v59  ;;  %15436 = vst [vmem:[#allocation128_spill] sm:$0xff] %v10053_v53  ;;  %1657 = vperm.xlu1 %8977, %v531_v47   ;;  %2979 = vperm.xlu0 %8978, %v531_v47   ;;  %v537_v47 = vld [vmem:[%s15293_s1 + $0x6f8] sm:$0xff] }
 0x1ca   : > { %v10058_v50 = vpop.permute.xlu1 %1347  ;;  %v10060_v2 = vpop.permute.xlu0 %2731 }
 0x1cb   : > { %15437 = vst [vmem:[#allocation129_spill] sm:$0xff] %v10058_v50  ;;  %15438 = vst [vmem:[#allocation130_spill] sm:$0xff] %v10060_v2  ;;  %1667 = vperm.xlu1 %8977, %v533_v12   ;;  %2987 = vperm.xlu0 %8978, %v533_v12   ;;  %v539_v12 = vld [vmem:[%s15293_s1 + $0x708] sm:$0xff] }
 0x1ce   : > { %v10065_v62 = vpop.permute.xlu1 %1357  ;;  %v10067_v59 = vpop.permute.xlu0 %2739 }
 0x1cf   : > { %15439 = vst [vmem:[#allocation131_spill] sm:$0xff] %v10065_v62  ;;  %15440 = vst [vmem:[#allocation132_spill] sm:$0xff] %v10067_v59  ;;  %1677 = vperm.xlu1 %8977, %v535_v30   ;;  %2995 = vperm.xlu0 %8978, %v535_v30   ;;  %v541_v30 = vld [vmem:[%s15293_s1 + $0x718] sm:$0xff] }
 0x1d2   : > { %v10072_v53 = vpop.permute.xlu1 %1367  ;;  %v10074_v50 = vpop.permute.xlu0 %2747 }
 0x1d3   : > { %15441 = vst [vmem:[#allocation133_spill] sm:$0xff] %v10072_v53  ;;  %15442 = vst [vmem:[#allocation134_spill] sm:$0xff] %v10074_v50  ;;  %1687 = vperm.xlu1 %8977, %v537_v47   ;;  %3003 = vperm.xlu0 %8978, %v537_v47   ;;  %v543_v47 = vld [vmem:[%s15293_s1 + $0x728] sm:$0xff] }
 0x1d6   : > { %v10079_v2 = vpop.permute.xlu1 %1377  ;;  %v10081_v62 = vpop.permute.xlu0 %2755 }
 0x1d7   : > { %15443 = vst [vmem:[#allocation135_spill] sm:$0xff] %v10079_v2  ;;  %15444 = vst [vmem:[#allocation136_spill] sm:$0xff] %v10081_v62  ;;  %1697 = vperm.xlu1 %8977, %v539_v12   ;;  %3011 = vperm.xlu0 %8978, %v539_v12   ;;  %v545_v12 = vld [vmem:[%s15293_s1 + $0x738] sm:$0xff] }
 0x1da   : > { %v10086_v59 = vpop.permute.xlu1 %1387  ;;  %v10088_v53 = vpop.permute.xlu0 %2763 }
 0x1db   : > { %15445 = vst [vmem:[#allocation137_spill] sm:$0xff] %v10086_v59  ;;  %15446 = vst [vmem:[#allocation138_spill] sm:$0xff] %v10088_v53  ;;  %1707 = vperm.xlu1 %8977, %v541_v30   ;;  %3019 = vperm.xlu0 %8978, %v541_v30   ;;  %v547_v30 = vld [vmem:[%s15293_s1 + $0x748] sm:$0xff] }
 0x1de   : > { %v10093_v50 = vpop.permute.xlu1 %1397  ;;  %v10095_v2 = vpop.permute.xlu0 %2771 }
 0x1df   : > { %15447 = vst [vmem:[#allocation139_spill] sm:$0xff] %v10093_v50  ;;  %15448 = vst [vmem:[#allocation140_spill] sm:$0xff] %v10095_v2  ;;  %1717 = vperm.xlu1 %8977, %v543_v47   ;;  %3027 = vperm.xlu0 %8978, %v543_v47   ;;  %v549_v47 = vld [vmem:[%s15293_s1 + $0x758] sm:$0xff] }
 0x1e2   : > { %v10100_v62 = vpop.permute.xlu1 %1407  ;;  %v10102_v59 = vpop.permute.xlu0 %2779 }
 0x1e3   : > { %15449 = vst [vmem:[#allocation141_spill] sm:$0xff] %v10100_v62  ;;  %15450 = vst [vmem:[#allocation142_spill] sm:$0xff] %v10102_v59  ;;  %1727 = vperm.xlu1 %8977, %v545_v12   ;;  %3035 = vperm.xlu0 %8978, %v545_v12   ;;  %v551_v12 = vld [vmem:[%s15293_s1 + $0x768] sm:$0xff] }
 0x1e6   : > { %v10107_v53 = vpop.permute.xlu1 %1417  ;;  %v10109_v50 = vpop.permute.xlu0 %2787 }
 0x1e7   : > { %15451 = vst [vmem:[#allocation143_spill] sm:$0xff] %v10107_v53  ;;  %15452 = vst [vmem:[#allocation144_spill] sm:$0xff] %v10109_v50  ;;  %1737 = vperm.xlu1 %8977, %v547_v30   ;;  %3043 = vperm.xlu0 %8978, %v547_v30   ;;  %v553_v30 = vld [vmem:[%s15293_s1 + $0x778] sm:$0xff] }
 0x1ea   : > { %v10114_v2 = vpop.permute.xlu1 %1427  ;;  %v10116_v62 = vpop.permute.xlu0 %2795 }
 0x1eb   : > { %15453 = vst [vmem:[#allocation145_spill] sm:$0xff] %v10114_v2  ;;  %15454 = vst [vmem:[#allocation146_spill] sm:$0xff] %v10116_v62  ;;  %1747 = vperm.xlu1 %8977, %v549_v47   ;;  %3051 = vperm.xlu0 %8978, %v549_v47   ;;  %v555_v47 = vld [vmem:[%s15293_s1 + $0x788] sm:$0xff] }
 0x1ee   : > { %v10121_v59 = vpop.permute.xlu1 %1437  ;;  %v10123_v53 = vpop.permute.xlu0 %2803 }
 0x1ef   : > { %15455 = vst [vmem:[#allocation147_spill] sm:$0xff] %v10121_v59  ;;  %15456 = vst [vmem:[#allocation148_spill] sm:$0xff] %v10123_v53  ;;  %1757 = vperm.xlu1 %8977, %v551_v12   ;;  %3059 = vperm.xlu0 %8978, %v551_v12   ;;  %v557_v12 = vld [vmem:[%s15293_s1 + $0x798] sm:$0xff] }
 0x1f2   : > { %v10128_v50 = vpop.permute.xlu1 %1447  ;;  %v10130_v2 = vpop.permute.xlu0 %2811 }
 0x1f3   : > { %15457 = vst [vmem:[#allocation149_spill] sm:$0xff] %v10128_v50  ;;  %15458 = vst [vmem:[#allocation150_spill] sm:$0xff] %v10130_v2  ;;  %1767 = vperm.xlu1 %8977, %v553_v30   ;;  %3067 = vperm.xlu0 %8978, %v553_v30   ;;  %v559_v30 = vld [vmem:[%s15293_s1 + $0x7a8] sm:$0xff] }
 0x1f6   : > { %v10135_v62 = vpop.permute.xlu1 %1457  ;;  %v10137_v59 = vpop.permute.xlu0 %2819 }
 0x1f7   : > { %15459 = vst [vmem:[#allocation151_spill] sm:$0xff] %v10135_v62  ;;  %15460 = vst [vmem:[#allocation152_spill] sm:$0xff] %v10137_v59  ;;  %1777 = vperm.xlu1 %8977, %v555_v47   ;;  %3075 = vperm.xlu0 %8978, %v555_v47   ;;  %v561_v47 = vld [vmem:[%s15293_s1 + $0x7b8] sm:$0xff] }
 0x1fa   : > { %v10142_v53 = vpop.permute.xlu1 %1467  ;;  %v10144_v50 = vpop.permute.xlu0 %2827 }
 0x1fb   : > { %15461 = vst [vmem:[#allocation153_spill] sm:$0xff] %v10142_v53  ;;  %15462 = vst [vmem:[#allocation154_spill] sm:$0xff] %v10144_v50  ;;  %1787 = vperm.xlu1 %8977, %v557_v12   ;;  %3083 = vperm.xlu0 %8978, %v557_v12   ;;  %v563_v12 = vld [vmem:[%s15293_s1 + $0x7c8] sm:$0xff] }
 0x1fe   : > { %v10149_v2 = vpop.permute.xlu1 %1477  ;;  %v10151_v62 = vpop.permute.xlu0 %2835 }
 0x1ff   : > { %15463 = vst [vmem:[#allocation155_spill] sm:$0xff] %v10149_v2  ;;  %15464 = vst [vmem:[#allocation156_spill] sm:$0xff] %v10151_v62  ;;  %1797 = vperm.xlu1 %8977, %v559_v30   ;;  %3091 = vperm.xlu0 %8978, %v559_v30   ;;  %v565_v30 = vld [vmem:[%s15293_s1 + $0x7d8] sm:$0xff] }
 0x202   : > { %v10156_v59 = vpop.permute.xlu1 %1487  ;;  %v10158_v53 = vpop.permute.xlu0 %2843 }
 0x203   : > { %15465 = vst [vmem:[#allocation157_spill] sm:$0xff] %v10156_v59  ;;  %15466 = vst [vmem:[#allocation158_spill] sm:$0xff] %v10158_v53  ;;  %1807 = vperm.xlu1 %8977, %v561_v47   ;;  %3099 = vperm.xlu0 %8978, %v561_v47   ;;  %v567_v47 = vld [vmem:[%s15293_s1 + $0x7e8] sm:$0xff] }
 0x206   : > { %v10163_v50 = vpop.permute.xlu1 %1497  ;;  %v10165_v2 = vpop.permute.xlu0 %2851 }
 0x207   : > { %15467 = vst [vmem:[#allocation159_spill] sm:$0xff] %v10163_v50  ;;  %15468 = vst [vmem:[#allocation160_spill] sm:$0xff] %v10165_v2  ;;  %1817 = vperm.xlu1 %8977, %v563_v12   ;;  %3107 = vperm.xlu0 %8978, %v563_v12   ;;  %v569_v12 = vld [vmem:[%s15293_s1 + $0x7f8] sm:$0xff] }
 0x20a   : > { %v10170_v62 = vpop.permute.xlu1 %1507  ;;  %v10172_v59 = vpop.permute.xlu0 %2859 }
 0x20b   : > { %15469 = vst [vmem:[#allocation161_spill] sm:$0xff] %v10170_v62  ;;  %15470 = vst [vmem:[#allocation162_spill] sm:$0xff] %v10172_v59  ;;  %1827 = vperm.xlu1 %8977, %v565_v30   ;;  %3115 = vperm.xlu0 %8978, %v565_v30   ;;  %v315_v30 = vld [vmem:[%s15293_s1 + $0x8] sm:$0xff] }
 0x20e   : > { %v10177_v53 = vpop.permute.xlu1 %1517  ;;  %v10179_v50 = vpop.permute.xlu0 %2867 }
 0x20f   : > { %15471 = vst [vmem:[#allocation163_spill] sm:$0xff] %v10177_v53  ;;  %15472 = vst [vmem:[#allocation164_spill] sm:$0xff] %v10179_v50  ;;  %1837 = vperm.xlu1 %8977, %v567_v47   ;;  %3123 = vperm.xlu0 %8978, %v567_v47   ;;  %v15477_v50 = vmov 1   ;;  %v15304_v47 = vmov 2  }
 0x212   : > { %v10184_v2 = vpop.permute.xlu1 %1527  ;;  %v10186_v62 = vpop.permute.xlu0 %2875 }
 0x213   : > { %15473 = vst [vmem:[#allocation165_spill] sm:$0xff] %v10184_v2  ;;  %15474 = vst [vmem:[#allocation166_spill] sm:$0xff] %v10186_v62  ;;  %1847 = vperm.xlu1 %8977, %v569_v12   ;;  %3131 = vperm.xlu0 %8978, %v569_v12   ;;  %v318_v62 = vld [vmem:[%s15293_s1 + $0x20] sm:$0xff] }
 0x216   : > { %v10191_v59 = vpop.permute.xlu1 %1537  ;;  %v10193_v53 = vpop.permute.xlu0 %2883 }
 0x217   : > { %15475 = vst [vmem:[#allocation167_spill] sm:$0xff] %v10191_v59  ;;  %15476 = vst [vmem:[#allocation168_spill] sm:$0xff] %v10193_v53  ;;  %8979 = vset.pattern.permute.xlu1 %v15477_v50  ;;  %8981 = vset.pattern.permute.xlu0 %v15304_v47  ;;  %v8992_v59 = vld [vmem:[%s15293_s1 + $0x10] sm:$0xff] }
 0x218   : > { %2115 = vperm.xlu1 %8979, %v315_v30   ;;  %3655 = vperm.xlu0 %8981, %v315_v30   ;;  %v320_v50 = vld [vmem:[%s15293_s1 + $0x30] sm:$0xff] }
 0x21a   : > { %v10200_v12 = vpop.permute.xlu1 %1547  ;;  %v10202_v2 = vpop.permute.xlu0 %2891 }
 0x21b   : > { %15478 = vst [vmem:[#allocation169_spill] sm:$0xff] %v10200_v12  ;;  %15479 = vst [vmem:[#allocation170_spill] sm:$0xff] %v10202_v2  ;;  %v322_v2 = vld [vmem:[%s15293_s1 + $0x40] sm:$0xff] }
 0x21c   : > { %2119 = vperm.xlu1 %8979, %v8992_v59   ;;  %3667 = vperm.xlu0 %8981, %v318_v62   ;;  %v324_v59 = vld [vmem:[%s15293_s1 + $0x50] sm:$0xff] }
 0x21e   : > { %v10210_v47 = vpop.permute.xlu1 %1557  ;;  %v10212_v30 = vpop.permute.xlu0 %2899 }
 0x21f   : > { %15480 = vst [vmem:[#allocation171_spill] sm:$0xff] %v10210_v47  ;;  %15481 = vst [vmem:[#allocation172_spill] sm:$0xff] %v10212_v30 }
 0x220   : > { %2127 = vperm.xlu1 %8979, %v318_v62   ;;  %3675 = vperm.xlu0 %8981, %v320_v50   ;;  %v326_v62 = vld [vmem:[%s15293_s1 + $0x60] sm:$0xff] }
 0x222   : > { %v10217_v12 = vpop.permute.xlu1 %1567  ;;  %v10219_v53 = vpop.permute.xlu0 %2907 }
 0x223   : > { %15482 = vst [vmem:[#allocation173_spill] sm:$0xff] %v10217_v12  ;;  %15483 = vst [vmem:[#allocation174_spill] sm:$0xff] %v10219_v53 }
 0x224   : > { %2135 = vperm.xlu1 %8979, %v320_v50   ;;  %3683 = vperm.xlu0 %8981, %v322_v2   ;;  %v328_v50 = vld [vmem:[%s15293_s1 + $0x70] sm:$0xff] }
 0x226   : > { %v10224_v44 = vpop.permute.xlu1 %1577  ;;  %v10226_v47 = vpop.permute.xlu0 %2915 }
 0x227   : > { %15484 = vst [vmem:[#allocation175_spill] sm:$0xff] %v10224_v44  ;;  %15485 = vst [vmem:[#allocation176_spill] sm:$0xff] %v10226_v47 }
 0x228   : > { %2143 = vperm.xlu1 %8979, %v322_v2   ;;  %3691 = vperm.xlu0 %8981, %v324_v59   ;;  %v330_v2 = vld [vmem:[%s15293_s1 + $0x80] sm:$0xff] }
 0x22a   : > { %v10231_v30 = vpop.permute.xlu1 %1587  ;;  %v10233_v12 = vpop.permute.xlu0 %2923 }
 0x22b   : > { %15486 = vst [vmem:[#allocation177_spill] sm:$0xff] %v10231_v30  ;;  %15487 = vst [vmem:[#allocation178_spill] sm:$0xff] %v10233_v12 }
 0x22c   : > { %2151 = vperm.xlu1 %8979, %v324_v59   ;;  %3699 = vperm.xlu0 %8981, %v326_v62   ;;  %v332_v59 = vld [vmem:[%s15293_s1 + $0x90] sm:$0xff] }
 0x22e   : > { %v10238_v53 = vpop.permute.xlu1 %1597  ;;  %v10240_v44 = vpop.permute.xlu0 %2931 }
 0x22f   : > { %15488 = vst [vmem:[#allocation179_spill] sm:$0xff] %v10238_v53  ;;  %15489 = vst [vmem:[#allocation180_spill] sm:$0xff] %v10240_v44 }
 0x230   : > { %2159 = vperm.xlu1 %8979, %v326_v62   ;;  %3707 = vperm.xlu0 %8981, %v328_v50   ;;  %v334_v62 = vld [vmem:[%s15293_s1 + $0xa0] sm:$0xff] }
 0x232   : > { %v10245_v47 = vpop.permute.xlu1 %1607  ;;  %v10247_v30 = vpop.permute.xlu0 %2939 }
 0x233   : > { %15490 = vst [vmem:[#allocation181_spill] sm:$0xff] %v10245_v47  ;;  %15491 = vst [vmem:[#allocation182_spill] sm:$0xff] %v10247_v30 }
 0x234   : > { %2167 = vperm.xlu1 %8979, %v328_v50   ;;  %3715 = vperm.xlu0 %8981, %v330_v2   ;;  %v336_v50 = vld [vmem:[%s15293_s1 + $0xb0] sm:$0xff] }
 0x236   : > { %v10252_v12 = vpop.permute.xlu1 %1617  ;;  %v10254_v53 = vpop.permute.xlu0 %2947 }
 0x237   : > { %15492 = vst [vmem:[#allocation183_spill] sm:$0xff] %v10252_v12  ;;  %15493 = vst [vmem:[#allocation184_spill] sm:$0xff] %v10254_v53 }
 0x238   : > { %2175 = vperm.xlu1 %8979, %v330_v2   ;;  %3723 = vperm.xlu0 %8981, %v332_v59   ;;  %v338_v2 = vld [vmem:[%s15293_s1 + $0xc0] sm:$0xff] }
 0x23a   : > { %v10259_v44 = vpop.permute.xlu1 %1627  ;;  %v10261_v47 = vpop.permute.xlu0 %2955 }
 0x23b   : > { %15494 = vst [vmem:[#allocation185_spill] sm:$0xff] %v10259_v44  ;;  %15495 = vst [vmem:[#allocation186_spill] sm:$0xff] %v10261_v47 }
 0x23c   : > { %2183 = vperm.xlu1 %8979, %v332_v59   ;;  %3731 = vperm.xlu0 %8981, %v334_v62   ;;  %v340_v59 = vld [vmem:[%s15293_s1 + $0xd0] sm:$0xff] }
 0x23e   : > { %v10266_v30 = vpop.permute.xlu1 %1637  ;;  %v10268_v12 = vpop.permute.xlu0 %2963 }
 0x23f   : > { %15496 = vst [vmem:[#allocation187_spill] sm:$0xff] %v10266_v30  ;;  %15497 = vst [vmem:[#allocation188_spill] sm:$0xff] %v10268_v12 }
 0x240   : > { %2191 = vperm.xlu1 %8979, %v334_v62   ;;  %3739 = vperm.xlu0 %8981, %v336_v50   ;;  %v342_v62 = vld [vmem:[%s15293_s1 + $0xe0] sm:$0xff] }
 0x242   : > { %v10273_v53 = vpop.permute.xlu1 %1647  ;;  %v10275_v44 = vpop.permute.xlu0 %2971 }
 0x243   : > { %15498 = vst [vmem:[#allocation189_spill] sm:$0xff] %v10273_v53  ;;  %15499 = vst [vmem:[#allocation190_spill] sm:$0xff] %v10275_v44 }
 0x244   : > { %2199 = vperm.xlu1 %8979, %v336_v50   ;;  %3747 = vperm.xlu0 %8981, %v338_v2   ;;  %v344_v50 = vld [vmem:[%s15293_s1 + $0xf0] sm:$0xff] }
 0x246   : > { %v10280_v47 = vpop.permute.xlu1 %1657  ;;  %v10282_v30 = vpop.permute.xlu0 %2979 }
 0x247   : > { %15500 = vst [vmem:[#allocation191_spill] sm:$0xff] %v10280_v47  ;;  %15501 = vst [vmem:[#allocation192_spill] sm:$0xff] %v10282_v30 }
 0x248   : > { %2207 = vperm.xlu1 %8979, %v338_v2   ;;  %3755 = vperm.xlu0 %8981, %v340_v59   ;;  %v346_v2 = vld [vmem:[%s15293_s1 + $0x100] sm:$0xff] }
 0x24a   : > { %v10287_v12 = vpop.permute.xlu1 %1667  ;;  %v10289_v53 = vpop.permute.xlu0 %2987 }
 0x24b   : > { %15502 = vst [vmem:[#allocation193_spill] sm:$0xff] %v10287_v12  ;;  %15503 = vst [vmem:[#allocation194_spill] sm:$0xff] %v10289_v53 }
 0x24c   : > { %2215 = vperm.xlu1 %8979, %v340_v59   ;;  %3763 = vperm.xlu0 %8981, %v342_v62   ;;  %v348_v59 = vld [vmem:[%s15293_s1 + $0x110] sm:$0xff] }
 0x24e   : > { %v10294_v44 = vpop.permute.xlu1 %1677  ;;  %v10296_v47 = vpop.permute.xlu0 %2995 }
 0x24f   : > { %15504 = vst [vmem:[#allocation195_spill] sm:$0xff] %v10294_v44  ;;  %15505 = vst [vmem:[#allocation196_spill] sm:$0xff] %v10296_v47 }
 0x250   : > { %2223 = vperm.xlu1 %8979, %v342_v62   ;;  %3771 = vperm.xlu0 %8981, %v344_v50   ;;  %v350_v62 = vld [vmem:[%s15293_s1 + $0x120] sm:$0xff] }
 0x252   : > { %v10301_v30 = vpop.permute.xlu1 %1687  ;;  %v10303_v12 = vpop.permute.xlu0 %3003 }
 0x253   : > { %15506 = vst [vmem:[#allocation197_spill] sm:$0xff] %v10301_v30  ;;  %15507 = vst [vmem:[#allocation198_spill] sm:$0xff] %v10303_v12 }
 0x254   : > { %2231 = vperm.xlu1 %8979, %v344_v50   ;;  %3779 = vperm.xlu0 %8981, %v346_v2   ;;  %v352_v50 = vld [vmem:[%s15293_s1 + $0x130] sm:$0xff] }
 0x256   : > { %v10308_v53 = vpop.permute.xlu1 %1697  ;;  %v10310_v44 = vpop.permute.xlu0 %3011 }
 0x257   : > { %15508 = vst [vmem:[#allocation199_spill] sm:$0xff] %v10308_v53  ;;  %15509 = vst [vmem:[#allocation200_spill] sm:$0xff] %v10310_v44 }
 0x258   : > { %2239 = vperm.xlu1 %8979, %v346_v2   ;;  %3787 = vperm.xlu0 %8981, %v348_v59   ;;  %v354_v2 = vld [vmem:[%s15293_s1 + $0x140] sm:$0xff] }
 0x25a   : > { %v10315_v47 = vpop.permute.xlu1 %1707  ;;  %v10317_v30 = vpop.permute.xlu0 %3019 }
 0x25b   : > { %15510 = vst [vmem:[#allocation201_spill] sm:$0xff] %v10315_v47  ;;  %15511 = vst [vmem:[#allocation202_spill] sm:$0xff] %v10317_v30 }
 0x25c   : > { %2247 = vperm.xlu1 %8979, %v348_v59   ;;  %3795 = vperm.xlu0 %8981, %v350_v62   ;;  %v356_v59 = vld [vmem:[%s15293_s1 + $0x150] sm:$0xff] }
 0x25e   : > { %v10322_v12 = vpop.permute.xlu1 %1717  ;;  %v10324_v53 = vpop.permute.xlu0 %3027 }
 0x25f   : > { %15512 = vst [vmem:[#allocation203_spill] sm:$0xff] %v10322_v12  ;;  %15513 = vst [vmem:[#allocation204_spill] sm:$0xff] %v10324_v53 }
 0x260   : > { %2255 = vperm.xlu1 %8979, %v350_v62   ;;  %3803 = vperm.xlu0 %8981, %v352_v50   ;;  %v358_v62 = vld [vmem:[%s15293_s1 + $0x160] sm:$0xff] }
 0x262   : > { %v10329_v44 = vpop.permute.xlu1 %1727  ;;  %v10331_v47 = vpop.permute.xlu0 %3035 }
 0x263   : > { %15514 = vst [vmem:[#allocation205_spill] sm:$0xff] %v10329_v44  ;;  %15515 = vst [vmem:[#allocation206_spill] sm:$0xff] %v10331_v47 }
 0x264   : > { %2263 = vperm.xlu1 %8979, %v352_v50   ;;  %3811 = vperm.xlu0 %8981, %v354_v2   ;;  %v360_v50 = vld [vmem:[%s15293_s1 + $0x170] sm:$0xff] }
 0x266   : > { %v10336_v30 = vpop.permute.xlu1 %1737  ;;  %v10338_v12 = vpop.permute.xlu0 %3043 }
 0x267   : > { %15516 = vst [vmem:[#allocation207_spill] sm:$0xff] %v10336_v30  ;;  %15517 = vst [vmem:[#allocation208_spill] sm:$0xff] %v10338_v12 }
 0x268   : > { %2271 = vperm.xlu1 %8979, %v354_v2   ;;  %3819 = vperm.xlu0 %8981, %v356_v59   ;;  %v362_v2 = vld [vmem:[%s15293_s1 + $0x180] sm:$0xff] }
 0x26a   : > { %v10343_v53 = vpop.permute.xlu1 %1747  ;;  %v10345_v44 = vpop.permute.xlu0 %3051 }
 0x26b   : > { %15518 = vst [vmem:[#allocation209_spill] sm:$0xff] %v10343_v53  ;;  %15519 = vst [vmem:[#allocation210_spill] sm:$0xff] %v10345_v44 }
 0x26c   : > { %2279 = vperm.xlu1 %8979, %v356_v59   ;;  %3827 = vperm.xlu0 %8981, %v358_v62   ;;  %v364_v59 = vld [vmem:[%s15293_s1 + $0x190] sm:$0xff] }
 0x26e   : > { %v10350_v47 = vpop.permute.xlu1 %1757  ;;  %v10352_v30 = vpop.permute.xlu0 %3059 }
 0x26f   : > { %15520 = vst [vmem:[#allocation211_spill] sm:$0xff] %v10350_v47  ;;  %15521 = vst [vmem:[#allocation212_spill] sm:$0xff] %v10352_v30 }
 0x270   : > { %2287 = vperm.xlu1 %8979, %v358_v62   ;;  %3835 = vperm.xlu0 %8981, %v360_v50   ;;  %v366_v62 = vld [vmem:[%s15293_s1 + $0x1a0] sm:$0xff] }
 0x272   : > { %v10357_v12 = vpop.permute.xlu1 %1767  ;;  %v10359_v53 = vpop.permute.xlu0 %3067 }
 0x273   : > { %15522 = vst [vmem:[#allocation213_spill] sm:$0xff] %v10357_v12  ;;  %15523 = vst [vmem:[#allocation214_spill] sm:$0xff] %v10359_v53 }
 0x274   : > { %2295 = vperm.xlu1 %8979, %v360_v50   ;;  %3843 = vperm.xlu0 %8981, %v362_v2   ;;  %v368_v50 = vld [vmem:[%s15293_s1 + $0x1b0] sm:$0xff] }
 0x276   : > { %v10364_v44 = vpop.permute.xlu1 %1777  ;;  %v10366_v47 = vpop.permute.xlu0 %3075 }
 0x277   : > { %15524 = vst [vmem:[#allocation215_spill] sm:$0xff] %v10364_v44  ;;  %15525 = vst [vmem:[#allocation216_spill] sm:$0xff] %v10366_v47 }
 0x278   : > { %2303 = vperm.xlu1 %8979, %v362_v2   ;;  %3851 = vperm.xlu0 %8981, %v364_v59   ;;  %v370_v2 = vld [vmem:[%s15293_s1 + $0x1c0] sm:$0xff] }
 0x27a   : > { %v10371_v30 = vpop.permute.xlu1 %1787  ;;  %v10373_v12 = vpop.permute.xlu0 %3083 }
 0x27b   : > { %15526 = vst [vmem:[#allocation217_spill] sm:$0xff] %v10371_v30  ;;  %15527 = vst [vmem:[#allocation218_spill] sm:$0xff] %v10373_v12 }
 0x27c   : > { %2311 = vperm.xlu1 %8979, %v364_v59   ;;  %3859 = vperm.xlu0 %8981, %v366_v62   ;;  %v372_v59 = vld [vmem:[%s15293_s1 + $0x1d0] sm:$0xff] }
 0x27e   : > { %v10378_v53 = vpop.permute.xlu1 %1797  ;;  %v10380_v44 = vpop.permute.xlu0 %3091 }
 0x27f   : > { %15528 = vst [vmem:[#allocation219_spill] sm:$0xff] %v10378_v53  ;;  %15529 = vst [vmem:[#allocation220_spill] sm:$0xff] %v10380_v44 }
 0x280   : > { %2319 = vperm.xlu1 %8979, %v366_v62   ;;  %3867 = vperm.xlu0 %8981, %v368_v50   ;;  %v374_v62 = vld [vmem:[%s15293_s1 + $0x1e0] sm:$0xff] }
 0x282   : > { %v10385_v47 = vpop.permute.xlu1 %1807  ;;  %v10387_v30 = vpop.permute.xlu0 %3099 }
 0x283   : > { %15530 = vst [vmem:[#allocation221_spill] sm:$0xff] %v10385_v47  ;;  %15531 = vst [vmem:[#allocation222_spill] sm:$0xff] %v10387_v30 }
 0x284   : > { %2327 = vperm.xlu1 %8979, %v368_v50   ;;  %3875 = vperm.xlu0 %8981, %v370_v2   ;;  %v376_v50 = vld [vmem:[%s15293_s1 + $0x1f0] sm:$0xff] }
 0x286   : > { %v10392_v12 = vpop.permute.xlu1 %1817  ;;  %v10394_v53 = vpop.permute.xlu0 %3107 }
 0x287   : > { %15532 = vst [vmem:[#allocation223_spill] sm:$0xff] %v10392_v12  ;;  %15533 = vst [vmem:[#allocation224_spill] sm:$0xff] %v10394_v53 }
 0x288   : > { %2335 = vperm.xlu1 %8979, %v370_v2   ;;  %3883 = vperm.xlu0 %8981, %v372_v59   ;;  %v378_v2 = vld [vmem:[%s15293_s1 + $0x200] sm:$0xff] }
 0x28a   : > { %v10399_v44 = vpop.permute.xlu1 %1827  ;;  %v10401_v47 = vpop.permute.xlu0 %3115 }
 0x28b   : > { %15534 = vst [vmem:[#allocation225_spill] sm:$0xff] %v10399_v44  ;;  %15535 = vst [vmem:[#allocation226_spill] sm:$0xff] %v10401_v47 }
 0x28c   : > { %2343 = vperm.xlu1 %8979, %v372_v59   ;;  %3891 = vperm.xlu0 %8981, %v374_v62   ;;  %v380_v59 = vld [vmem:[%s15293_s1 + $0x210] sm:$0xff] }
 0x28e   : > { %v10406_v30 = vpop.permute.xlu1 %1837  ;;  %v10408_v12 = vpop.permute.xlu0 %3123 }
 0x28f   : > { %15536 = vst [vmem:[#allocation227_spill] sm:$0xff] %v10406_v30  ;;  %15537 = vst [vmem:[#allocation228_spill] sm:$0xff] %v10408_v12 }
 0x290   : > { %2351 = vperm.xlu1 %8979, %v374_v62   ;;  %3899 = vperm.xlu0 %8981, %v376_v50   ;;  %v382_v62 = vld [vmem:[%s15293_s1 + $0x220] sm:$0xff] }
 0x292   : > { %v10413_v53 = vpop.permute.xlu1 %1847  ;;  %v10415_v44 = vpop.permute.xlu0 %3131 }
 0x293   : > { %15538 = vst [vmem:[#allocation229_spill] sm:$0xff] %v10413_v53  ;;  %15539 = vst [vmem:[#allocation230_spill] sm:$0xff] %v10415_v44 }
 0x294   : > { %2359 = vperm.xlu1 %8979, %v376_v50   ;;  %3907 = vperm.xlu0 %8981, %v378_v2   ;;  %v384_v50 = vld [vmem:[%s15293_s1 + $0x230] sm:$0xff] }
 0x297   : > { %v10420_v47 = vpop.permute.xlu1 %2115  ;;  %v10422_v30 = vpop.permute.xlu0 %3655 }
 0x298   : > { %2367 = vperm.xlu1 %8979, %v378_v2   ;;  %3915 = vperm.xlu0 %8981, %v380_v59   ;;  %v386_v2 = vld [vmem:[%s15293_s1 + $0x240] sm:$0xff] }
 0x29b   : > { %v10427_v12 = vpop.permute.xlu1 %2119  ;;  %v10429_v53 = vpop.permute.xlu0 %3667 }
 0x29c   : > { %2375 = vperm.xlu1 %8979, %v380_v59   ;;  %3923 = vperm.xlu0 %8981, %v382_v62   ;;  %v388_v59 = vld [vmem:[%s15293_s1 + $0x250] sm:$0xff] }
 0x29f   : > { %v10434_v44 = vpop.permute.xlu1 %2127  ;;  %v10436_v41 = vpop.permute.xlu0 %3675 }
 0x2a0   : > { %2383 = vperm.xlu1 %8979, %v382_v62   ;;  %3931 = vperm.xlu0 %8981, %v384_v50   ;;  %v390_v62 = vld [vmem:[%s15293_s1 + $0x260] sm:$0xff] }
 0x2a3   : > { %v10441_v3 = vpop.permute.xlu1 %2135  ;;  %v10443_v21 = vpop.permute.xlu0 %3683 }
 0x2a4   : > { %2391 = vperm.xlu1 %8979, %v384_v50   ;;  %3939 = vperm.xlu0 %8981, %v386_v2   ;;  %v392_v50 = vld [vmem:[%s15293_s1 + $0x270] sm:$0xff] }
 0x2a7   : > { %v10448_v35 = vpop.permute.xlu1 %2143  ;;  %v10450_v34 = vpop.permute.xlu0 %3691 }
 0x2a8   : > { %2399 = vperm.xlu1 %8979, %v386_v2   ;;  %3947 = vperm.xlu0 %8981, %v388_v59   ;;  %v394_v2 = vld [vmem:[%s15293_s1 + $0x280] sm:$0xff] }
 0x2ab   : > { %v10455_v1 = vpop.permute.xlu1 %2151  ;;  %v10457_v56 = vpop.permute.xlu0 %3699 }
 0x2ac   : > { %15540 = vst [vmem:[#allocation231_spill] sm:$0xff] %v10457_v56  ;;  %2407 = vperm.xlu1 %8979, %v388_v59   ;;  %3955 = vperm.xlu0 %8981, %v390_v62   ;;  %v396_v59 = vld [vmem:[%s15293_s1 + $0x290] sm:$0xff] }
 0x2af   : > { %v10462_v32 = vpop.permute.xlu1 %2159  ;;  %v10464_v31 = vpop.permute.xlu0 %3707 }
 0x2b0   : > { %15541 = vst [vmem:[#allocation232_spill] sm:$0xff] %v10462_v32  ;;  %15542 = vst [vmem:[#allocation233_spill] sm:$0xff] %v10464_v31  ;;  %2415 = vperm.xlu1 %8979, %v390_v62   ;;  %3963 = vperm.xlu0 %8981, %v392_v50   ;;  %v398_v62 = vld [vmem:[%s15293_s1 + $0x2a0] sm:$0xff] }
 0x2b3   : > { %v10469_v38 = vpop.permute.xlu1 %2167  ;;  %v10471_v33 = vpop.permute.xlu0 %3715 }
 0x2b4   : > { %15543 = vst [vmem:[#allocation234_spill] sm:$0xff] %v10469_v38  ;;  %2423 = vperm.xlu1 %8979, %v392_v50   ;;  %3971 = vperm.xlu0 %8981, %v394_v2   ;;  %v400_v50 = vld [vmem:[%s15293_s1 + $0x2b0] sm:$0xff] }
 0x2b7   : > { %v10476_v29 = vpop.permute.xlu1 %2175  ;;  %v10478_v28 = vpop.permute.xlu0 %3723 }
 0x2b8   : > { %2431 = vperm.xlu1 %8979, %v394_v2   ;;  %3979 = vperm.xlu0 %8981, %v396_v59   ;;  %v402_v2 = vld [vmem:[%s15293_s1 + $0x2c0] sm:$0xff] }
 0x2bb   : > { %v10483_v27 = vpop.permute.xlu1 %2183  ;;  %v10485_v24 = vpop.permute.xlu0 %3731 }
 0x2bc   : > { %2439 = vperm.xlu1 %8979, %v396_v59   ;;  %3987 = vperm.xlu0 %8981, %v398_v62   ;;  %v404_v59 = vld [vmem:[%s15293_s1 + $0x2d0] sm:$0xff] }
 0x2bf   : > { %v10490_v26 = vpop.permute.xlu1 %2191  ;;  %v10492_v25 = vpop.permute.xlu0 %3739 }
 0x2c0   : > { %15544 = vst [vmem:[#allocation235_spill] sm:$0xff] %v10490_v26  ;;  %15545 = vst [vmem:[#allocation236_spill] sm:$0xff] %v10492_v25  ;;  %2447 = vperm.xlu1 %8979, %v398_v62   ;;  %3995 = vperm.xlu0 %8981, %v400_v50   ;;  %v406_v62 = vld [vmem:[%s15293_s1 + $0x2e0] sm:$0xff] }
 0x2c3   : > { %v10497_v18 = vpop.permute.xlu1 %2199  ;;  %v10499_v15 = vpop.permute.xlu0 %3747 }
 0x2c4   : > { %15546 = vst [vmem:[#allocation237_spill] sm:$0xff] %v10497_v18  ;;  %15547 = vst [vmem:[#allocation238_spill] sm:$0xff] %v10499_v15  ;;  %2455 = vperm.xlu1 %8979, %v400_v50   ;;  %4003 = vperm.xlu0 %8981, %v402_v2   ;;  %v408_v50 = vld [vmem:[%s15293_s1 + $0x2f0] sm:$0xff]  ;;  %v9316_v18 = vmov 1983009808  }
 0x2c7   : > { %v10504_v31 = vpop.permute.xlu1 %2207  ;;  %v10506_v23 = vpop.permute.xlu0 %3755 }
 0x2c8   : > { %15548 = vst [vmem:[#allocation239_spill] sm:$0xff] %v10504_v31  ;;  %15549 = vst [vmem:[#allocation240_spill] sm:$0xff] %v10506_v23  ;;  %2463 = vperm.xlu1 %8979, %v402_v2   ;;  %4011 = vperm.xlu0 %8981, %v404_v59   ;;  %v410_v2 = vld [vmem:[%s15293_s1 + $0x300] sm:$0xff] }
 0x2cb   : > { %v10511_v22 = vpop.permute.xlu1 %2215  ;;  %v10513_v9 = vpop.permute.xlu0 %3763 }
 0x2cc   : > { %15550 = vst [vmem:[#allocation241_spill] sm:$0xff] %v10511_v22  ;;  %15551 = vst [vmem:[#allocation242_spill] sm:$0xff] %v10513_v9  ;;  %2471 = vperm.xlu1 %8979, %v404_v59   ;;  %4019 = vperm.xlu0 %8981, %v406_v62   ;;  %v412_v59 = vld [vmem:[%s15293_s1 + $0x310] sm:$0xff] }
 0x2cf   : > { %v10518_v6 = vpop.permute.xlu1 %2223  ;;  %v10520_v38 = vpop.permute.xlu0 %3771 }
 0x2d0   : > { %15552 = vst [vmem:[#allocation243_spill] sm:$0xff] %v10518_v6  ;;  %15553 = vst [vmem:[#allocation244_spill] sm:$0xff] %v10520_v38  ;;  %2479 = vperm.xlu1 %8979, %v406_v62   ;;  %4027 = vperm.xlu0 %8981, %v408_v50   ;;  %v414_v62 = vld [vmem:[%s15293_s1 + $0x320] sm:$0xff] }
 0x2d3   : > { %v10525_v56 = vpop.permute.xlu1 %2231  ;;  %v10527_v58 = vpop.permute.xlu0 %3779 }
 0x2d4   : > { %15554 = vst [vmem:[#allocation245_spill] sm:$0xff] %v10525_v56  ;;  %15555 = vst [vmem:[#allocation246_spill] sm:$0xff] %v10527_v58  ;;  %2487 = vperm.xlu1 %8979, %v408_v50   ;;  %4035 = vperm.xlu0 %8981, %v410_v2   ;;  %v416_v50 = vld [vmem:[%s15293_s1 + $0x330] sm:$0xff] }
 0x2d7   : > { %v10532_v9 = vpop.permute.xlu1 %2239  ;;  %v10534_v32 = vpop.permute.xlu0 %3787 }
 0x2d8   : > { %15556 = vst [vmem:[#allocation247_spill] sm:$0xff] %v10532_v9  ;;  %15557 = vst [vmem:[#allocation248_spill] sm:$0xff] %v10534_v32  ;;  %2495 = vperm.xlu1 %8979, %v410_v2   ;;  %4043 = vperm.xlu0 %8981, %v412_v59   ;;  %v418_v2 = vld [vmem:[%s15293_s1 + $0x340] sm:$0xff] }
 0x2db   : > { %v10539_v38 = vpop.permute.xlu1 %2247  ;;  %v10541_v56 = vpop.permute.xlu0 %3795 }
 0x2dc   : > { %15558 = vst [vmem:[#allocation249_spill] sm:$0xff] %v10539_v38  ;;  %15559 = vst [vmem:[#allocation250_spill] sm:$0xff] %v10541_v56  ;;  %2503 = vperm.xlu1 %8979, %v412_v59   ;;  %4051 = vperm.xlu0 %8981, %v414_v62   ;;  %v420_v59 = vld [vmem:[%s15293_s1 + $0x350] sm:$0xff] }
 0x2df   : > { %v10546_v58 = vpop.permute.xlu1 %2255  ;;  %v10548_v9 = vpop.permute.xlu0 %3803 }
 0x2e0   : > { %15560 = vst [vmem:[#allocation251_spill] sm:$0xff] %v10546_v58  ;;  %15561 = vst [vmem:[#allocation252_spill] sm:$0xff] %v10548_v9  ;;  %2511 = vperm.xlu1 %8979, %v414_v62   ;;  %4059 = vperm.xlu0 %8981, %v416_v50   ;;  %v422_v62 = vld [vmem:[%s15293_s1 + $0x360] sm:$0xff] }
 0x2e3   : > { %v10553_v32 = vpop.permute.xlu1 %2263  ;;  %v10555_v38 = vpop.permute.xlu0 %3811 }
 0x2e4   : > { %15562 = vst [vmem:[#allocation253_spill] sm:$0xff] %v10553_v32  ;;  %15563 = vst [vmem:[#allocation254_spill] sm:$0xff] %v10555_v38  ;;  %2519 = vperm.xlu1 %8979, %v416_v50   ;;  %4067 = vperm.xlu0 %8981, %v418_v2   ;;  %v424_v50 = vld [vmem:[%s15293_s1 + $0x370] sm:$0xff] }
 0x2e7   : > { %v10560_v56 = vpop.permute.xlu1 %2271  ;;  %v10562_v58 = vpop.permute.xlu0 %3819 }
 0x2e8   : > { %15564 = vst [vmem:[#allocation255_spill] sm:$0xff] %v10560_v56  ;;  %15565 = vst [vmem:[#allocation256_spill] sm:$0xff] %v10562_v58  ;;  %2527 = vperm.xlu1 %8979, %v418_v2   ;;  %4075 = vperm.xlu0 %8981, %v420_v59   ;;  %v426_v2 = vld [vmem:[%s15293_s1 + $0x380] sm:$0xff] }
 0x2eb   : > { %v10567_v9 = vpop.permute.xlu1 %2279  ;;  %v10569_v32 = vpop.permute.xlu0 %3827 }
 0x2ec   : > { %15566 = vst [vmem:[#allocation257_spill] sm:$0xff] %v10567_v9  ;;  %15567 = vst [vmem:[#allocation258_spill] sm:$0xff] %v10569_v32  ;;  %2535 = vperm.xlu1 %8979, %v420_v59   ;;  %4083 = vperm.xlu0 %8981, %v422_v62   ;;  %v428_v59 = vld [vmem:[%s15293_s1 + $0x390] sm:$0xff] }
 0x2ef   : > { %v10574_v38 = vpop.permute.xlu1 %2287  ;;  %v10576_v56 = vpop.permute.xlu0 %3835 }
 0x2f0   : > { %15568 = vst [vmem:[#allocation259_spill] sm:$0xff] %v10574_v38  ;;  %15569 = vst [vmem:[#allocation260_spill] sm:$0xff] %v10576_v56  ;;  %2543 = vperm.xlu1 %8979, %v422_v62   ;;  %4091 = vperm.xlu0 %8981, %v424_v50   ;;  %v430_v62 = vld [vmem:[%s15293_s1 + $0x3a0] sm:$0xff] }
 0x2f3   : > { %v10581_v58 = vpop.permute.xlu1 %2295  ;;  %v10583_v9 = vpop.permute.xlu0 %3843 }
 0x2f4   : > { %15570 = vst [vmem:[#allocation261_spill] sm:$0xff] %v10581_v58  ;;  %15571 = vst [vmem:[#allocation262_spill] sm:$0xff] %v10583_v9  ;;  %2551 = vperm.xlu1 %8979, %v424_v50   ;;  %4099 = vperm.xlu0 %8981, %v426_v2   ;;  %v432_v50 = vld [vmem:[%s15293_s1 + $0x3b0] sm:$0xff] }
 0x2f7   : > { %v10588_v32 = vpop.permute.xlu1 %2303  ;;  %v10590_v38 = vpop.permute.xlu0 %3851 }
 0x2f8   : > { %15572 = vst [vmem:[#allocation263_spill] sm:$0xff] %v10588_v32  ;;  %15573 = vst [vmem:[#allocation264_spill] sm:$0xff] %v10590_v38  ;;  %2559 = vperm.xlu1 %8979, %v426_v2   ;;  %4107 = vperm.xlu0 %8981, %v428_v59   ;;  %v434_v2 = vld [vmem:[%s15293_s1 + $0x3c0] sm:$0xff] }
 0x2fb   : > { %v10595_v56 = vpop.permute.xlu1 %2311  ;;  %v10597_v58 = vpop.permute.xlu0 %3859 }
 0x2fc   : > { %15574 = vst [vmem:[#allocation265_spill] sm:$0xff] %v10595_v56  ;;  %15575 = vst [vmem:[#allocation266_spill] sm:$0xff] %v10597_v58  ;;  %2567 = vperm.xlu1 %8979, %v428_v59   ;;  %4115 = vperm.xlu0 %8981, %v430_v62   ;;  %v436_v59 = vld [vmem:[%s15293_s1 + $0x3d0] sm:$0xff] }
 0x2ff   : > { %v10602_v9 = vpop.permute.xlu1 %2319  ;;  %v10604_v32 = vpop.permute.xlu0 %3867 }
 0x300   : > { %15576 = vst [vmem:[#allocation267_spill] sm:$0xff] %v10602_v9  ;;  %15577 = vst [vmem:[#allocation268_spill] sm:$0xff] %v10604_v32  ;;  %2575 = vperm.xlu1 %8979, %v430_v62   ;;  %4123 = vperm.xlu0 %8981, %v432_v50   ;;  %v438_v62 = vld [vmem:[%s15293_s1 + $0x3e0] sm:$0xff] }
 0x303   : > { %v10609_v38 = vpop.permute.xlu1 %2327  ;;  %v10611_v56 = vpop.permute.xlu0 %3875 }
 0x304   : > { %15578 = vst [vmem:[#allocation269_spill] sm:$0xff] %v10609_v38  ;;  %15579 = vst [vmem:[#allocation270_spill] sm:$0xff] %v10611_v56  ;;  %2583 = vperm.xlu1 %8979, %v432_v50   ;;  %4131 = vperm.xlu0 %8981, %v434_v2   ;;  %v440_v50 = vld [vmem:[%s15293_s1 + $0x3f0] sm:$0xff] }
 0x307   : > { %v10616_v58 = vpop.permute.xlu1 %2335  ;;  %v10618_v9 = vpop.permute.xlu0 %3883 }
 0x308   : > { %15580 = vst [vmem:[#allocation271_spill] sm:$0xff] %v10616_v58  ;;  %15581 = vst [vmem:[#allocation272_spill] sm:$0xff] %v10618_v9  ;;  %2591 = vperm.xlu1 %8979, %v434_v2   ;;  %4139 = vperm.xlu0 %8981, %v436_v59   ;;  %v442_v2 = vld [vmem:[%s15293_s1 + $0x400] sm:$0xff] }
 0x30b   : > { %v10623_v32 = vpop.permute.xlu1 %2343  ;;  %v10625_v38 = vpop.permute.xlu0 %3891 }
 0x30c   : > { %15582 = vst [vmem:[#allocation273_spill] sm:$0xff] %v10623_v32  ;;  %15583 = vst [vmem:[#allocation274_spill] sm:$0xff] %v10625_v38  ;;  %2599 = vperm.xlu1 %8979, %v436_v59   ;;  %4147 = vperm.xlu0 %8981, %v438_v62   ;;  %v444_v59 = vld [vmem:[%s15293_s1 + $0x410] sm:$0xff] }
 0x30f   : > { %v10630_v56 = vpop.permute.xlu1 %2351  ;;  %v10632_v58 = vpop.permute.xlu0 %3899 }
 0x310   : > { %15584 = vst [vmem:[#allocation275_spill] sm:$0xff] %v10630_v56  ;;  %15585 = vst [vmem:[#allocation276_spill] sm:$0xff] %v10632_v58  ;;  %2607 = vperm.xlu1 %8979, %v438_v62   ;;  %4155 = vperm.xlu0 %8981, %v440_v50   ;;  %v446_v62 = vld [vmem:[%s15293_s1 + $0x420] sm:$0xff] }
 0x313   : > { %v10637_v9 = vpop.permute.xlu1 %2359  ;;  %v10639_v32 = vpop.permute.xlu0 %3907 }
 0x314   : > { %15586 = vst [vmem:[#allocation277_spill] sm:$0xff] %v10637_v9  ;;  %15587 = vst [vmem:[#allocation278_spill] sm:$0xff] %v10639_v32  ;;  %2615 = vperm.xlu1 %8979, %v440_v50   ;;  %4163 = vperm.xlu0 %8981, %v442_v2   ;;  %v448_v50 = vld [vmem:[%s15293_s1 + $0x430] sm:$0xff] }
 0x317   : > { %v10644_v38 = vpop.permute.xlu1 %2367  ;;  %v10646_v56 = vpop.permute.xlu0 %3915 }
 0x318   : > { %15588 = vst [vmem:[#allocation279_spill] sm:$0xff] %v10644_v38  ;;  %15589 = vst [vmem:[#allocation280_spill] sm:$0xff] %v10646_v56  ;;  %2623 = vperm.xlu1 %8979, %v442_v2   ;;  %4171 = vperm.xlu0 %8981, %v444_v59   ;;  %v450_v2 = vld [vmem:[%s15293_s1 + $0x440] sm:$0xff] }
 0x31b   : > { %v10651_v58 = vpop.permute.xlu1 %2375  ;;  %v10653_v9 = vpop.permute.xlu0 %3923 }
 0x31c   : > { %15590 = vst [vmem:[#allocation281_spill] sm:$0xff] %v10651_v58  ;;  %15591 = vst [vmem:[#allocation282_spill] sm:$0xff] %v10653_v9  ;;  %2631 = vperm.xlu1 %8979, %v444_v59   ;;  %4179 = vperm.xlu0 %8981, %v446_v62   ;;  %v452_v59 = vld [vmem:[%s15293_s1 + $0x450] sm:$0xff] }
 0x31f   : > { %v10658_v32 = vpop.permute.xlu1 %2383  ;;  %v10660_v38 = vpop.permute.xlu0 %3931 }
 0x320   : > { %15592 = vst [vmem:[#allocation283_spill] sm:$0xff] %v10658_v32  ;;  %15593 = vst [vmem:[#allocation284_spill] sm:$0xff] %v10660_v38  ;;  %2639 = vperm.xlu1 %8979, %v446_v62   ;;  %4187 = vperm.xlu0 %8981, %v448_v50   ;;  %v454_v62 = vld [vmem:[%s15293_s1 + $0x460] sm:$0xff] }
 0x323   : > { %v10665_v56 = vpop.permute.xlu1 %2391  ;;  %v10667_v58 = vpop.permute.xlu0 %3939 }
 0x324   : > { %15594 = vst [vmem:[#allocation285_spill] sm:$0xff] %v10665_v56  ;;  %15595 = vst [vmem:[#allocation286_spill] sm:$0xff] %v10667_v58  ;;  %2647 = vperm.xlu1 %8979, %v448_v50   ;;  %4195 = vperm.xlu0 %8981, %v450_v2   ;;  %v456_v50 = vld [vmem:[%s15293_s1 + $0x470] sm:$0xff] }
 0x327   : > { %v10672_v9 = vpop.permute.xlu1 %2399  ;;  %v10674_v32 = vpop.permute.xlu0 %3947 }
 0x328   : > { %15596 = vst [vmem:[#allocation287_spill] sm:$0xff] %v10672_v9  ;;  %15597 = vst [vmem:[#allocation288_spill] sm:$0xff] %v10674_v32  ;;  %2655 = vperm.xlu1 %8979, %v450_v2   ;;  %4203 = vperm.xlu0 %8981, %v452_v59   ;;  %v458_v2 = vld [vmem:[%s15293_s1 + $0x480] sm:$0xff] }
 0x32b   : > { %v10679_v38 = vpop.permute.xlu1 %2407  ;;  %v10681_v56 = vpop.permute.xlu0 %3955 }
 0x32c   : > { %15598 = vst [vmem:[#allocation289_spill] sm:$0xff] %v10679_v38  ;;  %15599 = vst [vmem:[#allocation290_spill] sm:$0xff] %v10681_v56  ;;  %2663 = vperm.xlu1 %8979, %v452_v59   ;;  %4211 = vperm.xlu0 %8981, %v454_v62   ;;  %v460_v59 = vld [vmem:[%s15293_s1 + $0x490] sm:$0xff] }
 0x32f   : > { %v10686_v58 = vpop.permute.xlu1 %2415  ;;  %v10688_v9 = vpop.permute.xlu0 %3963 }
 0x330   : > { %15600 = vst [vmem:[#allocation291_spill] sm:$0xff] %v10686_v58  ;;  %15601 = vst [vmem:[#allocation292_spill] sm:$0xff] %v10688_v9  ;;  %2671 = vperm.xlu1 %8979, %v454_v62   ;;  %4219 = vperm.xlu0 %8981, %v456_v50   ;;  %v462_v62 = vld [vmem:[%s15293_s1 + $0x4a0] sm:$0xff] }
 0x333   : > { %v10693_v32 = vpop.permute.xlu1 %2423  ;;  %v10695_v38 = vpop.permute.xlu0 %3971 }
 0x334   : > { %15602 = vst [vmem:[#allocation293_spill] sm:$0xff] %v10693_v32  ;;  %15603 = vst [vmem:[#allocation294_spill] sm:$0xff] %v10695_v38  ;;  %2679 = vperm.xlu1 %8979, %v456_v50   ;;  %4227 = vperm.xlu0 %8981, %v458_v2   ;;  %v464_v50 = vld [vmem:[%s15293_s1 + $0x4b0] sm:$0xff] }
 0x337   : > { %v10700_v56 = vpop.permute.xlu1 %2431  ;;  %v10702_v58 = vpop.permute.xlu0 %3979 }
 0x338   : > { %15604 = vst [vmem:[#allocation295_spill] sm:$0xff] %v10700_v56  ;;  %15605 = vst [vmem:[#allocation296_spill] sm:$0xff] %v10702_v58  ;;  %2687 = vperm.xlu1 %8979, %v458_v2   ;;  %4235 = vperm.xlu0 %8981, %v460_v59   ;;  %v466_v2 = vld [vmem:[%s15293_s1 + $0x4c0] sm:$0xff] }
 0x33b   : > { %v10707_v9 = vpop.permute.xlu1 %2439  ;;  %v10709_v32 = vpop.permute.xlu0 %3987 }
 0x33c   : > { %15606 = vst [vmem:[#allocation297_spill] sm:$0xff] %v10707_v9  ;;  %15607 = vst [vmem:[#allocation298_spill] sm:$0xff] %v10709_v32  ;;  %2695 = vperm.xlu1 %8979, %v460_v59   ;;  %4243 = vperm.xlu0 %8981, %v462_v62   ;;  %v468_v59 = vld [vmem:[%s15293_s1 + $0x4d0] sm:$0xff] }
 0x33f   : > { %v10714_v38 = vpop.permute.xlu1 %2447  ;;  %v10716_v56 = vpop.permute.xlu0 %3995 }
 0x340   : > { %15608 = vst [vmem:[#allocation299_spill] sm:$0xff] %v10714_v38  ;;  %15609 = vst [vmem:[#allocation300_spill] sm:$0xff] %v10716_v56  ;;  %2703 = vperm.xlu1 %8979, %v462_v62   ;;  %4251 = vperm.xlu0 %8981, %v464_v50   ;;  %v470_v62 = vld [vmem:[%s15293_s1 + $0x4e0] sm:$0xff] }
 0x343   : > { %v10721_v58 = vpop.permute.xlu1 %2455  ;;  %v10723_v9 = vpop.permute.xlu0 %4003 }
 0x344   : > { %15610 = vst [vmem:[#allocation301_spill] sm:$0xff] %v10721_v58  ;;  %15611 = vst [vmem:[#allocation302_spill] sm:$0xff] %v10723_v9  ;;  %2711 = vperm.xlu1 %8979, %v464_v50   ;;  %4259 = vperm.xlu0 %8981, %v466_v2   ;;  %v472_v50 = vld [vmem:[%s15293_s1 + $0x4f0] sm:$0xff] }
 0x347   : > { %v10728_v32 = vpop.permute.xlu1 %2463  ;;  %v10730_v38 = vpop.permute.xlu0 %4011 }
 0x348   : > { %15612 = vst [vmem:[#allocation303_spill] sm:$0xff] %v10728_v32  ;;  %15613 = vst [vmem:[#allocation304_spill] sm:$0xff] %v10730_v38  ;;  %2719 = vperm.xlu1 %8979, %v466_v2   ;;  %4267 = vperm.xlu0 %8981, %v468_v59   ;;  %v474_v2 = vld [vmem:[%s15293_s1 + $0x500] sm:$0xff] }
 0x34b   : > { %v10735_v56 = vpop.permute.xlu1 %2471  ;;  %v10737_v58 = vpop.permute.xlu0 %4019 }
 0x34c   : > { %15614 = vst [vmem:[#allocation305_spill] sm:$0xff] %v10735_v56  ;;  %15615 = vst [vmem:[#allocation306_spill] sm:$0xff] %v10737_v58  ;;  %2727 = vperm.xlu1 %8979, %v468_v59   ;;  %4275 = vperm.xlu0 %8981, %v470_v62   ;;  %v476_v59 = vld [vmem:[%s15293_s1 + $0x510] sm:$0xff] }
 0x34f   : > { %v10742_v9 = vpop.permute.xlu1 %2479  ;;  %v10744_v32 = vpop.permute.xlu0 %4027 }
 0x350   : > { %15616 = vst [vmem:[#allocation307_spill] sm:$0xff] %v10742_v9  ;;  %15617 = vst [vmem:[#allocation308_spill] sm:$0xff] %v10744_v32  ;;  %2735 = vperm.xlu1 %8979, %v470_v62   ;;  %4283 = vperm.xlu0 %8981, %v472_v50   ;;  %v478_v62 = vld [vmem:[%s15293_s1 + $0x520] sm:$0xff] }
 0x353   : > { %v10749_v38 = vpop.permute.xlu1 %2487  ;;  %v10751_v56 = vpop.permute.xlu0 %4035 }
 0x354   : > { %15618 = vst [vmem:[#allocation309_spill] sm:$0xff] %v10749_v38  ;;  %15619 = vst [vmem:[#allocation310_spill] sm:$0xff] %v10751_v56  ;;  %2743 = vperm.xlu1 %8979, %v472_v50   ;;  %4291 = vperm.xlu0 %8981, %v474_v2   ;;  %v480_v50 = vld [vmem:[%s15293_s1 + $0x530] sm:$0xff] }
 0x357   : > { %v10756_v58 = vpop.permute.xlu1 %2495  ;;  %v10758_v9 = vpop.permute.xlu0 %4043 }
 0x358   : > { %15620 = vst [vmem:[#allocation311_spill] sm:$0xff] %v10756_v58  ;;  %15621 = vst [vmem:[#allocation312_spill] sm:$0xff] %v10758_v9  ;;  %2751 = vperm.xlu1 %8979, %v474_v2   ;;  %4299 = vperm.xlu0 %8981, %v476_v59   ;;  %v482_v2 = vld [vmem:[%s15293_s1 + $0x540] sm:$0xff] }
 0x35b   : > { %v10763_v32 = vpop.permute.xlu1 %2503  ;;  %v10765_v38 = vpop.permute.xlu0 %4051 }
 0x35c   : > { %15622 = vst [vmem:[#allocation313_spill] sm:$0xff] %v10763_v32  ;;  %15623 = vst [vmem:[#allocation314_spill] sm:$0xff] %v10765_v38  ;;  %2759 = vperm.xlu1 %8979, %v476_v59   ;;  %4307 = vperm.xlu0 %8981, %v478_v62   ;;  %v484_v59 = vld [vmem:[%s15293_s1 + $0x550] sm:$0xff] }
 0x35f   : > { %v10770_v56 = vpop.permute.xlu1 %2511  ;;  %v10772_v58 = vpop.permute.xlu0 %4059 }
 0x360   : > { %15624 = vst [vmem:[#allocation315_spill] sm:$0xff] %v10770_v56  ;;  %15625 = vst [vmem:[#allocation316_spill] sm:$0xff] %v10772_v58  ;;  %2767 = vperm.xlu1 %8979, %v478_v62   ;;  %4315 = vperm.xlu0 %8981, %v480_v50   ;;  %v486_v62 = vld [vmem:[%s15293_s1 + $0x560] sm:$0xff] }
 0x363   : > { %v10777_v9 = vpop.permute.xlu1 %2519  ;;  %v10779_v32 = vpop.permute.xlu0 %4067 }
 0x364   : > { %15626 = vst [vmem:[#allocation317_spill] sm:$0xff] %v10777_v9  ;;  %15627 = vst [vmem:[#allocation318_spill] sm:$0xff] %v10779_v32  ;;  %2775 = vperm.xlu1 %8979, %v480_v50   ;;  %4323 = vperm.xlu0 %8981, %v482_v2   ;;  %v488_v50 = vld [vmem:[%s15293_s1 + $0x570] sm:$0xff] }
 0x367   : > { %v10784_v38 = vpop.permute.xlu1 %2527  ;;  %v10786_v56 = vpop.permute.xlu0 %4075 }
 0x368   : > { %15628 = vst [vmem:[#allocation319_spill] sm:$0xff] %v10784_v38  ;;  %15629 = vst [vmem:[#allocation320_spill] sm:$0xff] %v10786_v56  ;;  %2783 = vperm.xlu1 %8979, %v482_v2   ;;  %4331 = vperm.xlu0 %8981, %v484_v59   ;;  %v490_v2 = vld [vmem:[%s15293_s1 + $0x580] sm:$0xff] }
 0x36b   : > { %v10791_v58 = vpop.permute.xlu1 %2535  ;;  %v10793_v9 = vpop.permute.xlu0 %4083 }
 0x36c   : > { %15630 = vst [vmem:[#allocation321_spill] sm:$0xff] %v10791_v58  ;;  %15631 = vst [vmem:[#allocation322_spill] sm:$0xff] %v10793_v9  ;;  %2791 = vperm.xlu1 %8979, %v484_v59   ;;  %4339 = vperm.xlu0 %8981, %v486_v62   ;;  %v492_v59 = vld [vmem:[%s15293_s1 + $0x590] sm:$0xff] }
 0x36f   : > { %v10798_v32 = vpop.permute.xlu1 %2543  ;;  %v10800_v38 = vpop.permute.xlu0 %4091 }
 0x370   : > { %15632 = vst [vmem:[#allocation323_spill] sm:$0xff] %v10798_v32  ;;  %15633 = vst [vmem:[#allocation324_spill] sm:$0xff] %v10800_v38  ;;  %2799 = vperm.xlu1 %8979, %v486_v62   ;;  %4347 = vperm.xlu0 %8981, %v488_v50   ;;  %v494_v62 = vld [vmem:[%s15293_s1 + $0x5a0] sm:$0xff] }
 0x373   : > { %v10805_v56 = vpop.permute.xlu1 %2551  ;;  %v10807_v58 = vpop.permute.xlu0 %4099 }
 0x374   : > { %15634 = vst [vmem:[#allocation325_spill] sm:$0xff] %v10805_v56  ;;  %15635 = vst [vmem:[#allocation326_spill] sm:$0xff] %v10807_v58  ;;  %2807 = vperm.xlu1 %8979, %v488_v50   ;;  %4355 = vperm.xlu0 %8981, %v490_v2   ;;  %v496_v50 = vld [vmem:[%s15293_s1 + $0x5b0] sm:$0xff] }
 0x377   : > { %v10812_v9 = vpop.permute.xlu1 %2559  ;;  %v10814_v32 = vpop.permute.xlu0 %4107 }
 0x378   : > { %15636 = vst [vmem:[#allocation327_spill] sm:$0xff] %v10812_v9  ;;  %15637 = vst [vmem:[#allocation328_spill] sm:$0xff] %v10814_v32  ;;  %2815 = vperm.xlu1 %8979, %v490_v2   ;;  %4363 = vperm.xlu0 %8981, %v492_v59   ;;  %v498_v2 = vld [vmem:[%s15293_s1 + $0x5c0] sm:$0xff] }
 0x37b   : > { %v10819_v38 = vpop.permute.xlu1 %2567  ;;  %v10821_v56 = vpop.permute.xlu0 %4115 }
 0x37c   : > { %15638 = vst [vmem:[#allocation329_spill] sm:$0xff] %v10819_v38  ;;  %15639 = vst [vmem:[#allocation330_spill] sm:$0xff] %v10821_v56  ;;  %2823 = vperm.xlu1 %8979, %v492_v59   ;;  %4371 = vperm.xlu0 %8981, %v494_v62   ;;  %v500_v59 = vld [vmem:[%s15293_s1 + $0x5d0] sm:$0xff] }
 0x37f   : > { %v10826_v58 = vpop.permute.xlu1 %2575  ;;  %v10828_v9 = vpop.permute.xlu0 %4123 }
 0x380   : > { %15640 = vst [vmem:[#allocation331_spill] sm:$0xff] %v10826_v58  ;;  %15641 = vst [vmem:[#allocation332_spill] sm:$0xff] %v10828_v9  ;;  %2831 = vperm.xlu1 %8979, %v494_v62   ;;  %4379 = vperm.xlu0 %8981, %v496_v50   ;;  %v502_v62 = vld [vmem:[%s15293_s1 + $0x5e0] sm:$0xff] }
 0x383   : > { %v10833_v32 = vpop.permute.xlu1 %2583  ;;  %v10835_v38 = vpop.permute.xlu0 %4131 }
 0x384   : > { %15642 = vst [vmem:[#allocation333_spill] sm:$0xff] %v10833_v32  ;;  %15643 = vst [vmem:[#allocation334_spill] sm:$0xff] %v10835_v38  ;;  %2839 = vperm.xlu1 %8979, %v496_v50   ;;  %4387 = vperm.xlu0 %8981, %v498_v2   ;;  %v504_v50 = vld [vmem:[%s15293_s1 + $0x5f0] sm:$0xff] }
 0x387   : > { %v10840_v56 = vpop.permute.xlu1 %2591  ;;  %v10842_v58 = vpop.permute.xlu0 %4139 }
 0x388   : > { %15644 = vst [vmem:[#allocation335_spill] sm:$0xff] %v10840_v56  ;;  %15645 = vst [vmem:[#allocation336_spill] sm:$0xff] %v10842_v58  ;;  %2847 = vperm.xlu1 %8979, %v498_v2   ;;  %4395 = vperm.xlu0 %8981, %v500_v59   ;;  %v506_v2 = vld [vmem:[%s15293_s1 + $0x600] sm:$0xff] }
 0x38b   : > { %v10847_v9 = vpop.permute.xlu1 %2599  ;;  %v10849_v32 = vpop.permute.xlu0 %4147 }
 0x38c   : > { %15646 = vst [vmem:[#allocation337_spill] sm:$0xff] %v10847_v9  ;;  %15647 = vst [vmem:[#allocation338_spill] sm:$0xff] %v10849_v32  ;;  %2855 = vperm.xlu1 %8979, %v500_v59   ;;  %4403 = vperm.xlu0 %8981, %v502_v62   ;;  %v508_v59 = vld [vmem:[%s15293_s1 + $0x610] sm:$0xff] }
 0x38f   : > { %v10854_v38 = vpop.permute.xlu1 %2607  ;;  %v10856_v56 = vpop.permute.xlu0 %4155 }
 0x390   : > { %15648 = vst [vmem:[#allocation339_spill] sm:$0xff] %v10854_v38  ;;  %15649 = vst [vmem:[#allocation340_spill] sm:$0xff] %v10856_v56  ;;  %2863 = vperm.xlu1 %8979, %v502_v62   ;;  %4411 = vperm.xlu0 %8981, %v504_v50   ;;  %v510_v62 = vld [vmem:[%s15293_s1 + $0x620] sm:$0xff] }
 0x393   : > { %v10861_v58 = vpop.permute.xlu1 %2615  ;;  %v10863_v9 = vpop.permute.xlu0 %4163 }
 0x394   : > { %15650 = vst [vmem:[#allocation341_spill] sm:$0xff] %v10861_v58  ;;  %15651 = vst [vmem:[#allocation342_spill] sm:$0xff] %v10863_v9  ;;  %2871 = vperm.xlu1 %8979, %v504_v50   ;;  %4419 = vperm.xlu0 %8981, %v506_v2   ;;  %v512_v50 = vld [vmem:[%s15293_s1 + $0x630] sm:$0xff] }
 0x397   : > { %v10868_v32 = vpop.permute.xlu1 %2623  ;;  %v10870_v38 = vpop.permute.xlu0 %4171 }
 0x398   : > { %15652 = vst [vmem:[#allocation343_spill] sm:$0xff] %v10868_v32  ;;  %15653 = vst [vmem:[#allocation344_spill] sm:$0xff] %v10870_v38  ;;  %2879 = vperm.xlu1 %8979, %v506_v2   ;;  %4427 = vperm.xlu0 %8981, %v508_v59   ;;  %v514_v2 = vld [vmem:[%s15293_s1 + $0x640] sm:$0xff] }
 0x39b   : > { %v10875_v56 = vpop.permute.xlu1 %2631  ;;  %v10877_v58 = vpop.permute.xlu0 %4179 }
 0x39c   : > { %15654 = vst [vmem:[#allocation345_spill] sm:$0xff] %v10875_v56  ;;  %15655 = vst [vmem:[#allocation346_spill] sm:$0xff] %v10877_v58  ;;  %2887 = vperm.xlu1 %8979, %v508_v59   ;;  %4435 = vperm.xlu0 %8981, %v510_v62   ;;  %v516_v59 = vld [vmem:[%s15293_s1 + $0x650] sm:$0xff] }
 0x39f   : > { %v10882_v9 = vpop.permute.xlu1 %2639  ;;  %v10884_v32 = vpop.permute.xlu0 %4187 }
 0x3a0   : > { %15656 = vst [vmem:[#allocation347_spill] sm:$0xff] %v10882_v9  ;;  %15657 = vst [vmem:[#allocation348_spill] sm:$0xff] %v10884_v32  ;;  %2895 = vperm.xlu1 %8979, %v510_v62   ;;  %4443 = vperm.xlu0 %8981, %v512_v50   ;;  %v518_v62 = vld [vmem:[%s15293_s1 + $0x660] sm:$0xff] }
 0x3a3   : > { %v10889_v38 = vpop.permute.xlu1 %2647  ;;  %v10891_v56 = vpop.permute.xlu0 %4195 }
 0x3a4   : > { %15658 = vst [vmem:[#allocation349_spill] sm:$0xff] %v10889_v38  ;;  %15659 = vst [vmem:[#allocation350_spill] sm:$0xff] %v10891_v56  ;;  %2903 = vperm.xlu1 %8979, %v512_v50   ;;  %4451 = vperm.xlu0 %8981, %v514_v2   ;;  %v520_v50 = vld [vmem:[%s15293_s1 + $0x670] sm:$0xff] }
 0x3a7   : > { %v10896_v58 = vpop.permute.xlu1 %2655  ;;  %v10898_v9 = vpop.permute.xlu0 %4203 }
 0x3a8   : > { %15660 = vst [vmem:[#allocation351_spill] sm:$0xff] %v10896_v58  ;;  %15661 = vst [vmem:[#allocation352_spill] sm:$0xff] %v10898_v9  ;;  %2911 = vperm.xlu1 %8979, %v514_v2   ;;  %4459 = vperm.xlu0 %8981, %v516_v59   ;;  %v522_v2 = vld [vmem:[%s15293_s1 + $0x680] sm:$0xff] }
 0x3ab   : > { %v10903_v32 = vpop.permute.xlu1 %2663  ;;  %v10905_v38 = vpop.permute.xlu0 %4211 }
 0x3ac   : > { %15662 = vst [vmem:[#allocation353_spill] sm:$0xff] %v10903_v32  ;;  %15663 = vst [vmem:[#allocation354_spill] sm:$0xff] %v10905_v38  ;;  %2919 = vperm.xlu1 %8979, %v516_v59   ;;  %4467 = vperm.xlu0 %8981, %v518_v62   ;;  %v524_v59 = vld [vmem:[%s15293_s1 + $0x690] sm:$0xff] }
 0x3af   : > { %v10910_v56 = vpop.permute.xlu1 %2671  ;;  %v10912_v58 = vpop.permute.xlu0 %4219 }
 0x3b0   : > { %15664 = vst [vmem:[#allocation355_spill] sm:$0xff] %v10910_v56  ;;  %15665 = vst [vmem:[#allocation356_spill] sm:$0xff] %v10912_v58  ;;  %2927 = vperm.xlu1 %8979, %v518_v62   ;;  %4475 = vperm.xlu0 %8981, %v520_v50   ;;  %v526_v62 = vld [vmem:[%s15293_s1 + $0x6a0] sm:$0xff] }
 0x3b3   : > { %v10917_v9 = vpop.permute.xlu1 %2679  ;;  %v10919_v32 = vpop.permute.xlu0 %4227 }
 0x3b4   : > { %15666 = vst [vmem:[#allocation357_spill] sm:$0xff] %v10917_v9  ;;  %15667 = vst [vmem:[#allocation358_spill] sm:$0xff] %v10919_v32  ;;  %2935 = vperm.xlu1 %8979, %v520_v50   ;;  %4483 = vperm.xlu0 %8981, %v522_v2   ;;  %v528_v50 = vld [vmem:[%s15293_s1 + $0x6b0] sm:$0xff] }
 0x3b7   : > { %v10924_v38 = vpop.permute.xlu1 %2687  ;;  %v10926_v56 = vpop.permute.xlu0 %4235 }
 0x3b8   : > { %15668 = vst [vmem:[#allocation359_spill] sm:$0xff] %v10924_v38  ;;  %15669 = vst [vmem:[#allocation360_spill] sm:$0xff] %v10926_v56  ;;  %2943 = vperm.xlu1 %8979, %v522_v2   ;;  %4491 = vperm.xlu0 %8981, %v524_v59   ;;  %v530_v2 = vld [vmem:[%s15293_s1 + $0x6c0] sm:$0xff] }
 0x3bb   : > { %v10931_v58 = vpop.permute.xlu1 %2695  ;;  %v10933_v9 = vpop.permute.xlu0 %4243 }
 0x3bc   : > { %15670 = vst [vmem:[#allocation361_spill] sm:$0xff] %v10931_v58  ;;  %15671 = vst [vmem:[#allocation362_spill] sm:$0xff] %v10933_v9  ;;  %2951 = vperm.xlu1 %8979, %v524_v59   ;;  %4499 = vperm.xlu0 %8981, %v526_v62   ;;  %v532_v59 = vld [vmem:[%s15293_s1 + $0x6d0] sm:$0xff] }
 0x3bf   : > { %v10938_v32 = vpop.permute.xlu1 %2703  ;;  %v10940_v38 = vpop.permute.xlu0 %4251 }
 0x3c0   : > { %15672 = vst [vmem:[#allocation363_spill] sm:$0xff] %v10938_v32  ;;  %15673 = vst [vmem:[#allocation364_spill] sm:$0xff] %v10940_v38  ;;  %2959 = vperm.xlu1 %8979, %v526_v62   ;;  %4507 = vperm.xlu0 %8981, %v528_v50   ;;  %v534_v62 = vld [vmem:[%s15293_s1 + $0x6e0] sm:$0xff] }
 0x3c3   : > { %v10945_v56 = vpop.permute.xlu1 %2711  ;;  %v10947_v58 = vpop.permute.xlu0 %4259 }
 0x3c4   : > { %15674 = vst [vmem:[#allocation365_spill] sm:$0xff] %v10945_v56  ;;  %15675 = vst [vmem:[#allocation366_spill] sm:$0xff] %v10947_v58  ;;  %2967 = vperm.xlu1 %8979, %v528_v50   ;;  %4515 = vperm.xlu0 %8981, %v530_v2   ;;  %v536_v50 = vld [vmem:[%s15293_s1 + $0x6f0] sm:$0xff] }
 0x3c7   : > { %v10952_v9 = vpop.permute.xlu1 %2719  ;;  %v10954_v32 = vpop.permute.xlu0 %4267 }
 0x3c8   : > { %15676 = vst [vmem:[#allocation367_spill] sm:$0xff] %v10952_v9  ;;  %15677 = vst [vmem:[#allocation368_spill] sm:$0xff] %v10954_v32  ;;  %2975 = vperm.xlu1 %8979, %v530_v2   ;;  %4523 = vperm.xlu0 %8981, %v532_v59   ;;  %v538_v2 = vld [vmem:[%s15293_s1 + $0x700] sm:$0xff] }
 0x3cb   : > { %v10959_v38 = vpop.permute.xlu1 %2727  ;;  %v10961_v56 = vpop.permute.xlu0 %4275 }
 0x3cc   : > { %15678 = vst [vmem:[#allocation369_spill] sm:$0xff] %v10959_v38  ;;  %15679 = vst [vmem:[#allocation370_spill] sm:$0xff] %v10961_v56  ;;  %2983 = vperm.xlu1 %8979, %v532_v59   ;;  %4531 = vperm.xlu0 %8981, %v534_v62   ;;  %v540_v59 = vld [vmem:[%s15293_s1 + $0x710] sm:$0xff] }
 0x3cf   : > { %v10966_v58 = vpop.permute.xlu1 %2735  ;;  %v10968_v9 = vpop.permute.xlu0 %4283 }
 0x3d0   : > { %15680 = vst [vmem:[#allocation371_spill] sm:$0xff] %v10966_v58  ;;  %15681 = vst [vmem:[#allocation372_spill] sm:$0xff] %v10968_v9  ;;  %2991 = vperm.xlu1 %8979, %v534_v62   ;;  %4539 = vperm.xlu0 %8981, %v536_v50   ;;  %v542_v62 = vld [vmem:[%s15293_s1 + $0x720] sm:$0xff] }
 0x3d3   : > { %v10973_v32 = vpop.permute.xlu1 %2743  ;;  %v10975_v38 = vpop.permute.xlu0 %4291 }
 0x3d4   : > { %15682 = vst [vmem:[#allocation373_spill] sm:$0xff] %v10973_v32  ;;  %15683 = vst [vmem:[#allocation374_spill] sm:$0xff] %v10975_v38  ;;  %2999 = vperm.xlu1 %8979, %v536_v50   ;;  %4547 = vperm.xlu0 %8981, %v538_v2   ;;  %v544_v50 = vld [vmem:[%s15293_s1 + $0x730] sm:$0xff] }
 0x3d7   : > { %v10980_v56 = vpop.permute.xlu1 %2751  ;;  %v10982_v58 = vpop.permute.xlu0 %4299 }
 0x3d8   : > { %15684 = vst [vmem:[#allocation375_spill] sm:$0xff] %v10980_v56  ;;  %15685 = vst [vmem:[#allocation376_spill] sm:$0xff] %v10982_v58  ;;  %3007 = vperm.xlu1 %8979, %v538_v2   ;;  %4555 = vperm.xlu0 %8981, %v540_v59   ;;  %v546_v2 = vld [vmem:[%s15293_s1 + $0x740] sm:$0xff] }
 0x3db   : > { %v10987_v9 = vpop.permute.xlu1 %2759  ;;  %v10989_v32 = vpop.permute.xlu0 %4307 }
 0x3dc   : > { %15686 = vst [vmem:[#allocation377_spill] sm:$0xff] %v10987_v9  ;;  %15687 = vst [vmem:[#allocation378_spill] sm:$0xff] %v10989_v32  ;;  %3015 = vperm.xlu1 %8979, %v540_v59   ;;  %4563 = vperm.xlu0 %8981, %v542_v62   ;;  %v548_v59 = vld [vmem:[%s15293_s1 + $0x750] sm:$0xff] }
 0x3df   : > { %v10994_v38 = vpop.permute.xlu1 %2767  ;;  %v10996_v56 = vpop.permute.xlu0 %4315 }
 0x3e0   : > { %15688 = vst [vmem:[#allocation379_spill] sm:$0xff] %v10994_v38  ;;  %15689 = vst [vmem:[#allocation380_spill] sm:$0xff] %v10996_v56  ;;  %3023 = vperm.xlu1 %8979, %v542_v62   ;;  %4571 = vperm.xlu0 %8981, %v544_v50   ;;  %v550_v62 = vld [vmem:[%s15293_s1 + $0x760] sm:$0xff] }
 0x3e3   : > { %v11001_v58 = vpop.permute.xlu1 %2775  ;;  %v11003_v9 = vpop.permute.xlu0 %4323 }
 0x3e4   : > { %15690 = vst [vmem:[#allocation381_spill] sm:$0xff] %v11001_v58  ;;  %15691 = vst [vmem:[#allocation382_spill] sm:$0xff] %v11003_v9  ;;  %3031 = vperm.xlu1 %8979, %v544_v50   ;;  %4579 = vperm.xlu0 %8981, %v546_v2   ;;  %v552_v50 = vld [vmem:[%s15293_s1 + $0x770] sm:$0xff] }
 0x3e7   : > { %v11008_v32 = vpop.permute.xlu1 %2783  ;;  %v11010_v38 = vpop.permute.xlu0 %4331 }
 0x3e8   : > { %15692 = vst [vmem:[#allocation383_spill] sm:$0xff] %v11008_v32  ;;  %15693 = vst [vmem:[#allocation384_spill] sm:$0xff] %v11010_v38  ;;  %3039 = vperm.xlu1 %8979, %v546_v2   ;;  %4587 = vperm.xlu0 %8981, %v548_v59   ;;  %v554_v2 = vld [vmem:[%s15293_s1 + $0x780] sm:$0xff] }
 0x3eb   : > { %v11015_v56 = vpop.permute.xlu1 %2791  ;;  %v11017_v58 = vpop.permute.xlu0 %4339 }
 0x3ec   : > { %15694 = vst [vmem:[#allocation385_spill] sm:$0xff] %v11015_v56  ;;  %15695 = vst [vmem:[#allocation386_spill] sm:$0xff] %v11017_v58  ;;  %3047 = vperm.xlu1 %8979, %v548_v59   ;;  %4595 = vperm.xlu0 %8981, %v550_v62   ;;  %v556_v59 = vld [vmem:[%s15293_s1 + $0x790] sm:$0xff] }
 0x3ef   : > { %v11022_v9 = vpop.permute.xlu1 %2799  ;;  %v11024_v32 = vpop.permute.xlu0 %4347 }
 0x3f0   : > { %15696 = vst [vmem:[#allocation387_spill] sm:$0xff] %v11022_v9  ;;  %15697 = vst [vmem:[#allocation388_spill] sm:$0xff] %v11024_v32  ;;  %3055 = vperm.xlu1 %8979, %v550_v62   ;;  %4603 = vperm.xlu0 %8981, %v552_v50   ;;  %v558_v62 = vld [vmem:[%s15293_s1 + $0x7a0] sm:$0xff] }
 0x3f3   : > { %v11029_v38 = vpop.permute.xlu1 %2807  ;;  %v11031_v56 = vpop.permute.xlu0 %4355 }
 0x3f4   : > { %15698 = vst [vmem:[#allocation389_spill] sm:$0xff] %v11029_v38  ;;  %15699 = vst [vmem:[#allocation390_spill] sm:$0xff] %v11031_v56  ;;  %3063 = vperm.xlu1 %8979, %v552_v50   ;;  %4611 = vperm.xlu0 %8981, %v554_v2   ;;  %v560_v50 = vld [vmem:[%s15293_s1 + $0x7b0] sm:$0xff] }
 0x3f7   : > { %v11036_v58 = vpop.permute.xlu1 %2815  ;;  %v11038_v9 = vpop.permute.xlu0 %4363 }
 0x3f8   : > { %15700 = vst [vmem:[#allocation391_spill] sm:$0xff] %v11036_v58  ;;  %15701 = vst [vmem:[#allocation392_spill] sm:$0xff] %v11038_v9  ;;  %3071 = vperm.xlu1 %8979, %v554_v2   ;;  %4619 = vperm.xlu0 %8981, %v556_v59   ;;  %v562_v2 = vld [vmem:[%s15293_s1 + $0x7c0] sm:$0xff] }
 0x3fb   : > { %v11043_v32 = vpop.permute.xlu1 %2823  ;;  %v11045_v38 = vpop.permute.xlu0 %4371 }
 0x3fc   : > { %15702 = vst [vmem:[#allocation393_spill] sm:$0xff] %v11043_v32  ;;  %15703 = vst [vmem:[#allocation394_spill] sm:$0xff] %v11045_v38  ;;  %3079 = vperm.xlu1 %8979, %v556_v59   ;;  %4627 = vperm.xlu0 %8981, %v558_v62   ;;  %v564_v59 = vld [vmem:[%s15293_s1 + $0x7d0] sm:$0xff] }
 0x3ff   : > { %v11050_v56 = vpop.permute.xlu1 %2831  ;;  %v11052_v58 = vpop.permute.xlu0 %4379 }
 0x400   : > { %15704 = vst [vmem:[#allocation395_spill] sm:$0xff] %v11050_v56  ;;  %15705 = vst [vmem:[#allocation396_spill] sm:$0xff] %v11052_v58  ;;  %3087 = vperm.xlu1 %8979, %v558_v62   ;;  %4635 = vperm.xlu0 %8981, %v560_v50   ;;  %v566_v62 = vld [vmem:[%s15293_s1 + $0x7e0] sm:$0xff] }
 0x403   : > { %v11057_v9 = vpop.permute.xlu1 %2839  ;;  %v11059_v32 = vpop.permute.xlu0 %4387 }
 0x404   : > { %15706 = vst [vmem:[#allocation397_spill] sm:$0xff] %v11057_v9  ;;  %15707 = vst [vmem:[#allocation398_spill] sm:$0xff] %v11059_v32  ;;  %3095 = vperm.xlu1 %8979, %v560_v50   ;;  %4643 = vperm.xlu0 %8981, %v562_v2   ;;  %v568_v50 = vld [vmem:[%s15293_s1 + $0x7f0] sm:$0xff] }
 0x407   : > { %v11064_v38 = vpop.permute.xlu1 %2847  ;;  %v11066_v56 = vpop.permute.xlu0 %4395 }
 0x408   : > { %15708 = vst [vmem:[#allocation399_spill] sm:$0xff] %v11064_v38  ;;  %15709 = vst [vmem:[#allocation400_spill] sm:$0xff] %v11066_v56  ;;  %3103 = vperm.xlu1 %8979, %v562_v2   ;;  %4651 = vperm.xlu0 %8981, %v564_v59  }
 0x40b   : > { %v11071_v58 = vpop.permute.xlu1 %2855  ;;  %v11073_v9 = vpop.permute.xlu0 %4403 }
 0x40c   : > { %15710 = vst [vmem:[#allocation401_spill] sm:$0xff] %v11071_v58  ;;  %15711 = vst [vmem:[#allocation402_spill] sm:$0xff] %v11073_v9  ;;  %3111 = vperm.xlu1 %8979, %v564_v59   ;;  %4659 = vperm.xlu0 %8981, %v566_v62   ;;  %v15716_v58 = vmov 0   ;;  %v8993_v59 = vld [vmem:[%s15293_s1] sm:$0xff] }
 0x40f   : > { %v11078_v32 = vpop.permute.xlu1 %2863  ;;  %v11080_v38 = vpop.permute.xlu0 %4411 }
 0x410   : > { %15712 = vst [vmem:[#allocation403_spill] sm:$0xff] %v11078_v32  ;;  %15713 = vst [vmem:[#allocation404_spill] sm:$0xff] %v11080_v38  ;;  %3119 = vperm.xlu1 %8979, %v566_v62   ;;  %4667 = vperm.xlu0 %8981, %v568_v50   ;;  %v15719_v32 = vmov 2   ;;  %v8994_v62 = vld [vmem:[%s15293_s1 + $0x8] sm:$0xff]  ;;  %v8995_v38 = vld [vmem:[%s15293_s1 + $0x10] sm:$0xff] }
 0x413   : > { %v11082_v2 = vpop.permute.xlu1 %2871  ;;  %v11084_v56 = vpop.permute.xlu0 %4419 }
 0x414   : > { %15714 = vst [vmem:[#allocation405_spill] sm:$0xff] %v11082_v2  ;;  %15715 = vst [vmem:[#allocation406_spill] sm:$0xff] %v11084_v56  ;;  %3127 = vperm.xlu1 %8979, %v568_v50   ;;  %8982 = vset.pattern.permute.xlu0 %v15716_v58  ;;  %v9060_v2 = vld [vmem:[%s15293_s1 + $0x220] sm:$0xff] }
 0x415   : > { %572 = vperm.xlu0 %8982, %v8993_v59  }
 0x417   : > { %v11090_v9 = vpop.permute.xlu1 %2879  ;;  %v11092_v6 = vpop.permute.xlu0 %4427 }
 0x418   : > { %15717 = vst [vmem:[#allocation407_spill] sm:$0xff] %v11090_v9  ;;  %15718 = vst [vmem:[#allocation408_spill] sm:$0xff] %v11092_v6  ;;  %8980 = vset.pattern.permute.xlu1 %v15719_v32  ;;  %v8996_v6 = vld [vmem:[%s15293_s1 + $0x20] sm:$0xff] }
 0x419   : > { %3651 = vperm.xlu1 %8980, %v8993_v59   ;;  %577 = vperm.xlu0 %8982, %v8994_v62   ;;  %v8997_v62 = vld [vmem:[%s15293_s1 + $0x18] sm:$0xff] }
 0x41b   : > { %v11098_v50 = vpop.permute.xlu1 %2887  ;;  %v11100_v56 = vpop.permute.xlu0 %4435 }
 0x41c   : > { %15720 = vst [vmem:[#allocation409_spill] sm:$0xff] %v11098_v50  ;;  %15721 = vst [vmem:[#allocation410_spill] sm:$0xff] %v11100_v56  ;;  %v8998_v56 = vld [vmem:[%s15293_s1 + $0x30] sm:$0xff] }
 0x41d   : > { %3659 = vperm.xlu1 %8980, %v8995_v38   ;;  %592 = vperm.xlu0 %8982, %v8996_v6   ;;  %v8999_v6 = vld [vmem:[%s15293_s1 + $0x28] sm:$0xff] }
 0x41f   : > { %v11108_v32 = vpop.permute.xlu1 %2895  ;;  %v11110_v59 = vpop.permute.xlu0 %4443 }
 0x420   : > { %15722 = vst [vmem:[#allocation411_spill] sm:$0xff] %v11108_v32  ;;  %15723 = vst [vmem:[#allocation412_spill] sm:$0xff] %v11110_v59  ;;  %v9000_v59 = vld [vmem:[%s15293_s1 + $0x40] sm:$0xff] }
 0x421   : > { %3663 = vperm.xlu1 %8980, %v8997_v62   ;;  %602 = vperm.xlu0 %8982, %v8998_v56   ;;  %v9001_v56 = vld [vmem:[%s15293_s1 + $0x38] sm:$0xff] }
 0x423   : > { %v11118_v38 = vpop.permute.xlu1 %2903  ;;  %v11120_v50 = vpop.permute.xlu0 %4451 }
 0x424   : > { %15724 = vst [vmem:[#allocation413_spill] sm:$0xff] %v11118_v38  ;;  %15725 = vst [vmem:[#allocation414_spill] sm:$0xff] %v11120_v50  ;;  %v9002_v50 = vld [vmem:[%s15293_s1 + $0x50] sm:$0xff] }
 0x425   : > { %3671 = vperm.xlu1 %8980, %v8999_v6   ;;  %612 = vperm.xlu0 %8982, %v9000_v59   ;;  %v9003_v59 = vld [vmem:[%s15293_s1 + $0x48] sm:$0xff] }
 0x427   : > { %v11128_v62 = vpop.permute.xlu1 %2911  ;;  %v11130_v32 = vpop.permute.xlu0 %4459 }
 0x428   : > { %15726 = vst [vmem:[#allocation415_spill] sm:$0xff] %v11128_v62  ;;  %15727 = vst [vmem:[#allocation416_spill] sm:$0xff] %v11130_v32  ;;  %v9004_v32 = vld [vmem:[%s15293_s1 + $0x60] sm:$0xff] }
 0x429   : > { %3679 = vperm.xlu1 %8980, %v9001_v56   ;;  %622 = vperm.xlu0 %8982, %v9002_v50   ;;  %v9005_v50 = vld [vmem:[%s15293_s1 + $0x58] sm:$0xff] }
 0x42b   : > { %v11138_v6 = vpop.permute.xlu1 %2919  ;;  %v11140_v38 = vpop.permute.xlu0 %4467 }
 0x42c   : > { %15728 = vst [vmem:[#allocation417_spill] sm:$0xff] %v11138_v6  ;;  %15729 = vst [vmem:[#allocation418_spill] sm:$0xff] %v11140_v38  ;;  %v9006_v38 = vld [vmem:[%s15293_s1 + $0x70] sm:$0xff] }
 0x42d   : > { %3687 = vperm.xlu1 %8980, %v9003_v59   ;;  %632 = vperm.xlu0 %8982, %v9004_v32   ;;  %v9007_v32 = vld [vmem:[%s15293_s1 + $0x68] sm:$0xff] }
 0x42f   : > { %v11148_v56 = vpop.permute.xlu1 %2927  ;;  %v11150_v62 = vpop.permute.xlu0 %4475 }
 0x430   : > { %15730 = vst [vmem:[#allocation419_spill] sm:$0xff] %v11148_v56  ;;  %15731 = vst [vmem:[#allocation420_spill] sm:$0xff] %v11150_v62  ;;  %v9008_v62 = vld [vmem:[%s15293_s1 + $0x80] sm:$0xff] }
 0x431   : > { %3695 = vperm.xlu1 %8980, %v9005_v50   ;;  %642 = vperm.xlu0 %8982, %v9006_v38   ;;  %v9009_v38 = vld [vmem:[%s15293_s1 + $0x78] sm:$0xff] }
 0x433   : > { %v11158_v59 = vpop.permute.xlu1 %2935  ;;  %v11160_v6 = vpop.permute.xlu0 %4483 }
 0x434   : > { %15732 = vst [vmem:[#allocation421_spill] sm:$0xff] %v11158_v59  ;;  %15733 = vst [vmem:[#allocation422_spill] sm:$0xff] %v11160_v6  ;;  %v9010_v59 = vld [vmem:[%s15293_s1 + $0x90] sm:$0xff] }
 0x435   : > { %3703 = vperm.xlu1 %8980, %v9007_v32   ;;  %652 = vperm.xlu0 %8982, %v9008_v62   ;;  %v9011_v62 = vld [vmem:[%s15293_s1 + $0x88] sm:$0xff] }
 0x437   : > { %v11168_v50 = vpop.permute.xlu1 %2943  ;;  %v11170_v56 = vpop.permute.xlu0 %4491 }
 0x438   : > { %15734 = vst [vmem:[#allocation423_spill] sm:$0xff] %v11168_v50  ;;  %15735 = vst [vmem:[#allocation424_spill] sm:$0xff] %v11170_v56  ;;  %v9012_v56 = vld [vmem:[%s15293_s1 + $0xa0] sm:$0xff] }
 0x439   : > { %3711 = vperm.xlu1 %8980, %v9009_v38   ;;  %662 = vperm.xlu0 %8982, %v9010_v59   ;;  %v9013_v59 = vld [vmem:[%s15293_s1 + $0x98] sm:$0xff] }
 0x43b   : > { %v11178_v32 = vpop.permute.xlu1 %2951  ;;  %v11180_v6 = vpop.permute.xlu0 %4499 }
 0x43c   : > { %15736 = vst [vmem:[#allocation425_spill] sm:$0xff] %v11178_v32  ;;  %15737 = vst [vmem:[#allocation426_spill] sm:$0xff] %v11180_v6  ;;  %v9014_v6 = vld [vmem:[%s15293_s1 + $0xb0] sm:$0xff] }
 0x43d   : > { %3719 = vperm.xlu1 %8980, %v9011_v62   ;;  %672 = vperm.xlu0 %8982, %v9012_v56   ;;  %v9015_v56 = vld [vmem:[%s15293_s1 + $0xa8] sm:$0xff] }
 0x43f   : > { %v11188_v38 = vpop.permute.xlu1 %2959  ;;  %v11190_v9 = vpop.permute.xlu0 %4507 }
 0x440   : > { %15738 = vst [vmem:[#allocation427_spill] sm:$0xff] %v11188_v38  ;;  %15739 = vst [vmem:[#allocation428_spill] sm:$0xff] %v11190_v9  ;;  %v9016_v9 = vld [vmem:[%s15293_s1 + $0xc0] sm:$0xff] }
 0x441   : > { %3727 = vperm.xlu1 %8980, %v9013_v59   ;;  %682 = vperm.xlu0 %8982, %v9014_v6   ;;  %v9017_v6 = vld [vmem:[%s15293_s1 + $0xb8] sm:$0xff] }
 0x443   : > { %v11198_v62 = vpop.permute.xlu1 %2967  ;;  %v11200_v32 = vpop.permute.xlu0 %4515 }
 0x444   : > { %15740 = vst [vmem:[#allocation429_spill] sm:$0xff] %v11198_v62  ;;  %15741 = vst [vmem:[#allocation430_spill] sm:$0xff] %v11200_v32  ;;  %v9018_v32 = vld [vmem:[%s15293_s1 + $0xd0] sm:$0xff] }
 0x445   : > { %3735 = vperm.xlu1 %8980, %v9015_v56   ;;  %692 = vperm.xlu0 %8982, %v9016_v9   ;;  %v9019_v9 = vld [vmem:[%s15293_s1 + $0xc8] sm:$0xff] }
 0x447   : > { %v11208_v59 = vpop.permute.xlu1 %2975  ;;  %v11210_v38 = vpop.permute.xlu0 %4523 }
 0x448   : > { %15742 = vst [vmem:[#allocation431_spill] sm:$0xff] %v11208_v59  ;;  %15743 = vst [vmem:[#allocation432_spill] sm:$0xff] %v11210_v38  ;;  %v9020_v38 = vld [vmem:[%s15293_s1 + $0xe0] sm:$0xff] }
 0x449   : > { %3743 = vperm.xlu1 %8980, %v9017_v6   ;;  %702 = vperm.xlu0 %8982, %v9018_v32   ;;  %v9021_v32 = vld [vmem:[%s15293_s1 + $0xd8] sm:$0xff] }
 0x44b   : > { %v11218_v56 = vpop.permute.xlu1 %2983  ;;  %v11220_v62 = vpop.permute.xlu0 %4531 }
 0x44c   : > { %15744 = vst [vmem:[#allocation433_spill] sm:$0xff] %v11218_v56  ;;  %15745 = vst [vmem:[#allocation434_spill] sm:$0xff] %v11220_v62  ;;  %v9022_v62 = vld [vmem:[%s15293_s1 + $0xf0] sm:$0xff] }
 0x44d   : > { %3751 = vperm.xlu1 %8980, %v9019_v9   ;;  %712 = vperm.xlu0 %8982, %v9020_v38   ;;  %v9023_v38 = vld [vmem:[%s15293_s1 + $0xe8] sm:$0xff] }
 0x44f   : > { %v11228_v6 = vpop.permute.xlu1 %2991  ;;  %v11230_v59 = vpop.permute.xlu0 %4539 }
 0x450   : > { %15746 = vst [vmem:[#allocation435_spill] sm:$0xff] %v11228_v6  ;;  %15747 = vst [vmem:[#allocation436_spill] sm:$0xff] %v11230_v59  ;;  %v9024_v59 = vld [vmem:[%s15293_s1 + $0x100] sm:$0xff] }
 0x451   : > { %3759 = vperm.xlu1 %8980, %v9021_v32   ;;  %722 = vperm.xlu0 %8982, %v9022_v62   ;;  %v9025_v62 = vld [vmem:[%s15293_s1 + $0xf8] sm:$0xff] }
 0x453   : > { %v11238_v9 = vpop.permute.xlu1 %2999  ;;  %v11240_v56 = vpop.permute.xlu0 %4547 }
 0x454   : > { %15748 = vst [vmem:[#allocation437_spill] sm:$0xff] %v11238_v9  ;;  %15749 = vst [vmem:[#allocation438_spill] sm:$0xff] %v11240_v56  ;;  %v9026_v9 = vld [vmem:[%s15293_s1 + $0x110] sm:$0xff] }
 0x455   : > { %3767 = vperm.xlu1 %8980, %v9023_v38   ;;  %732 = vperm.xlu0 %8982, %v9024_v59   ;;  %v9027_v59 = vld [vmem:[%s15293_s1 + $0x108] sm:$0xff] }
 0x457   : > { %v11248_v32 = vpop.permute.xlu1 %3007  ;;  %v11250_v6 = vpop.permute.xlu0 %4555 }
 0x458   : > { %15750 = vst [vmem:[#allocation439_spill] sm:$0xff] %v11248_v32  ;;  %15751 = vst [vmem:[#allocation440_spill] sm:$0xff] %v11250_v6  ;;  %v9028_v6 = vld [vmem:[%s15293_s1 + $0x120] sm:$0xff] }
 0x459   : > { %3775 = vperm.xlu1 %8980, %v9025_v62   ;;  %742 = vperm.xlu0 %8982, %v9026_v9   ;;  %v9029_v9 = vld [vmem:[%s15293_s1 + $0x118] sm:$0xff] }
 0x45b   : > { %v11258_v38 = vpop.permute.xlu1 %3015  ;;  %v11260_v56 = vpop.permute.xlu0 %4563 }
 0x45c   : > { %15752 = vst [vmem:[#allocation441_spill] sm:$0xff] %v11258_v38  ;;  %15753 = vst [vmem:[#allocation442_spill] sm:$0xff] %v11260_v56  ;;  %v9030_v56 = vld [vmem:[%s15293_s1 + $0x130] sm:$0xff] }
 0x45d   : > { %3783 = vperm.xlu1 %8980, %v9027_v59   ;;  %752 = vperm.xlu0 %8982, %v9028_v6   ;;  %v9031_v6 = vld [vmem:[%s15293_s1 + $0x128] sm:$0xff] }
 0x45f   : > { %v11268_v62 = vpop.permute.xlu1 %3023  ;;  %v11270_v32 = vpop.permute.xlu0 %4571 }
 0x460   : > { %15754 = vst [vmem:[#allocation443_spill] sm:$0xff] %v11268_v62  ;;  %15755 = vst [vmem:[#allocation444_spill] sm:$0xff] %v11270_v32  ;;  %v9032_v32 = vld [vmem:[%s15293_s1 + $0x140] sm:$0xff] }
 0x461   : > { %3791 = vperm.xlu1 %8980, %v9029_v9   ;;  %762 = vperm.xlu0 %8982, %v9030_v56   ;;  %v9033_v56 = vld [vmem:[%s15293_s1 + $0x138] sm:$0xff] }
 0x463   : > { %v11278_v59 = vpop.permute.xlu1 %3031  ;;  %v11280_v38 = vpop.permute.xlu0 %4579 }
 0x464   : > { %15756 = vst [vmem:[#allocation445_spill] sm:$0xff] %v11278_v59  ;;  %15757 = vst [vmem:[#allocation446_spill] sm:$0xff] %v11280_v38  ;;  %v9034_v38 = vld [vmem:[%s15293_s1 + $0x150] sm:$0xff] }
 0x465   : > { %3799 = vperm.xlu1 %8980, %v9031_v6   ;;  %772 = vperm.xlu0 %8982, %v9032_v32   ;;  %v9035_v32 = vld [vmem:[%s15293_s1 + $0x148] sm:$0xff] }
 0x467   : > { %v11288_v9 = vpop.permute.xlu1 %3039  ;;  %v11290_v62 = vpop.permute.xlu0 %4587 }
 0x468   : > { %15758 = vst [vmem:[#allocation447_spill] sm:$0xff] %v11288_v9  ;;  %15759 = vst [vmem:[#allocation448_spill] sm:$0xff] %v11290_v62  ;;  %v9036_v62 = vld [vmem:[%s15293_s1 + $0x160] sm:$0xff] }
 0x469   : > { %3807 = vperm.xlu1 %8980, %v9033_v56   ;;  %782 = vperm.xlu0 %8982, %v9034_v38   ;;  %v9037_v38 = vld [vmem:[%s15293_s1 + $0x158] sm:$0xff] }
 0x46b   : > { %v11298_v6 = vpop.permute.xlu1 %3047  ;;  %v11300_v59 = vpop.permute.xlu0 %4595 }
 0x46c   : > { %15760 = vst [vmem:[#allocation449_spill] sm:$0xff] %v11298_v6  ;;  %15761 = vst [vmem:[#allocation450_spill] sm:$0xff] %v11300_v59  ;;  %v9038_v59 = vld [vmem:[%s15293_s1 + $0x170] sm:$0xff] }
 0x46d   : > { %3815 = vperm.xlu1 %8980, %v9035_v32   ;;  %792 = vperm.xlu0 %8982, %v9036_v62   ;;  %v9039_v62 = vld [vmem:[%s15293_s1 + $0x168] sm:$0xff] }
 0x46f   : > { %v11308_v56 = vpop.permute.xlu1 %3055  ;;  %v11310_v9 = vpop.permute.xlu0 %4603 }
 0x470   : > { %15762 = vst [vmem:[#allocation451_spill] sm:$0xff] %v11308_v56  ;;  %15763 = vst [vmem:[#allocation452_spill] sm:$0xff] %v11310_v9  ;;  %v9040_v9 = vld [vmem:[%s15293_s1 + $0x180] sm:$0xff] }
 0x471   : > { %3823 = vperm.xlu1 %8980, %v9037_v38   ;;  %802 = vperm.xlu0 %8982, %v9038_v59   ;;  %v9041_v59 = vld [vmem:[%s15293_s1 + $0x178] sm:$0xff] }
 0x473   : > { %v11318_v32 = vpop.permute.xlu1 %3063  ;;  %v11320_v6 = vpop.permute.xlu0 %4611 }
 0x474   : > { %15764 = vst [vmem:[#allocation453_spill] sm:$0xff] %v11318_v32  ;;  %15765 = vst [vmem:[#allocation454_spill] sm:$0xff] %v11320_v6  ;;  %v9042_v32 = vld [vmem:[%s15293_s1 + $0x190] sm:$0xff] }
 0x475   : > { %3831 = vperm.xlu1 %8980, %v9039_v62   ;;  %812 = vperm.xlu0 %8982, %v9040_v9   ;;  %v9043_v9 = vld [vmem:[%s15293_s1 + $0x188] sm:$0xff] }
 0x477   : > { %v11328_v38 = vpop.permute.xlu1 %3071  ;;  %v11330_v56 = vpop.permute.xlu0 %4619 }
 0x478   : > { %15766 = vst [vmem:[#allocation455_spill] sm:$0xff] %v11328_v38  ;;  %15767 = vst [vmem:[#allocation456_spill] sm:$0xff] %v11330_v56  ;;  %v9044_v56 = vld [vmem:[%s15293_s1 + $0x1a0] sm:$0xff] }
 0x479   : > { %3839 = vperm.xlu1 %8980, %v9041_v59   ;;  %822 = vperm.xlu0 %8982, %v9042_v32   ;;  %v9045_v32 = vld [vmem:[%s15293_s1 + $0x198] sm:$0xff] }
 0x47b   : > { %v11338_v62 = vpop.permute.xlu1 %3079  ;;  %v11340_v6 = vpop.permute.xlu0 %4627 }
 0x47c   : > { %15768 = vst [vmem:[#allocation457_spill] sm:$0xff] %v11338_v62  ;;  %15769 = vst [vmem:[#allocation458_spill] sm:$0xff] %v11340_v6  ;;  %v9046_v6 = vld [vmem:[%s15293_s1 + $0x1b0] sm:$0xff] }
 0x47d   : > { %3847 = vperm.xlu1 %8980, %v9043_v9   ;;  %832 = vperm.xlu0 %8982, %v9044_v56   ;;  %v9047_v56 = vld [vmem:[%s15293_s1 + $0x1a8] sm:$0xff] }
 0x47f   : > { %v11348_v59 = vpop.permute.xlu1 %3087  ;;  %v11350_v38 = vpop.permute.xlu0 %4635 }
 0x480   : > { %15770 = vst [vmem:[#allocation459_spill] sm:$0xff] %v11348_v59  ;;  %15771 = vst [vmem:[#allocation460_spill] sm:$0xff] %v11350_v38  ;;  %v9048_v38 = vld [vmem:[%s15293_s1 + $0x1c0] sm:$0xff] }
 0x481   : > { %3855 = vperm.xlu1 %8980, %v9045_v32   ;;  %842 = vperm.xlu0 %8982, %v9046_v6   ;;  %v9049_v6 = vld [vmem:[%s15293_s1 + $0x1b8] sm:$0xff] }
 0x483   : > { %v11358_v9 = vpop.permute.xlu1 %3095  ;;  %v11360_v62 = vpop.permute.xlu0 %4643 }
 0x484   : > { %15772 = vst [vmem:[#allocation461_spill] sm:$0xff] %v11358_v9  ;;  %15773 = vst [vmem:[#allocation462_spill] sm:$0xff] %v11360_v62  ;;  %v9050_v62 = vld [vmem:[%s15293_s1 + $0x1d0] sm:$0xff] }
 0x485   : > { %3863 = vperm.xlu1 %8980, %v9047_v56   ;;  %852 = vperm.xlu0 %8982, %v9048_v38   ;;  %v9051_v38 = vld [vmem:[%s15293_s1 + $0x1c8] sm:$0xff] }
 0x487   : > { %v11368_v32 = vpop.permute.xlu1 %3103  ;;  %v11370_v59 = vpop.permute.xlu0 %4651 }
 0x488   : > { %15774 = vst [vmem:[#allocation463_spill] sm:$0xff] %v11368_v32  ;;  %15775 = vst [vmem:[#allocation464_spill] sm:$0xff] %v11370_v59  ;;  %v9052_v59 = vld [vmem:[%s15293_s1 + $0x1e0] sm:$0xff] }
 0x489   : > { %3871 = vperm.xlu1 %8980, %v9049_v6   ;;  %862 = vperm.xlu0 %8982, %v9050_v62   ;;  %v9053_v62 = vld [vmem:[%s15293_s1 + $0x1d8] sm:$0xff] }
 0x48b   : > { %v11378_v56 = vpop.permute.xlu1 %3111  ;;  %v11380_v9 = vpop.permute.xlu0 %4659 }
 0x48c   : > { %15776 = vst [vmem:[#allocation465_spill] sm:$0xff] %v11378_v56  ;;  %15777 = vst [vmem:[#allocation466_spill] sm:$0xff] %v11380_v9  ;;  %v9054_v9 = vld [vmem:[%s15293_s1 + $0x1f0] sm:$0xff] }
 0x48d   : > { %3879 = vperm.xlu1 %8980, %v9051_v38   ;;  %872 = vperm.xlu0 %8982, %v9052_v59   ;;  %v9055_v59 = vld [vmem:[%s15293_s1 + $0x1e8] sm:$0xff] }
 0x48f   : > { %v11388_v6 = vpop.permute.xlu1 %3119  ;;  %v11390_v32 = vpop.permute.xlu0 %4667 }
 0x490   : > { %15778 = vst [vmem:[#allocation467_spill] sm:$0xff] %v11388_v6  ;;  %15779 = vst [vmem:[#allocation468_spill] sm:$0xff] %v11390_v32  ;;  %v9056_v32 = vld [vmem:[%s15293_s1 + $0x200] sm:$0xff] }
 0x491   : > { %3887 = vperm.xlu1 %8980, %v9053_v62   ;;  %882 = vperm.xlu0 %8982, %v9054_v9   ;;  %v9057_v9 = vld [vmem:[%s15293_s1 + $0x1f8] sm:$0xff] }
 0x493   : > { %v11398_v38 = vpop.permute.xlu1 %3127 }
 0x494   : > { %15780 = vst [vmem:[#allocation469_spill] sm:$0xff] %v11398_v38  ;;  %v11400_v56 = vpop.permute.xlu0 %572  ;;  %v9058_v38 = vld [vmem:[%s15293_s1 + $0x210] sm:$0xff] }
 0x495   : > { %3895 = vperm.xlu1 %8980, %v9055_v59   ;;  %892 = vperm.xlu0 %8982, %v9056_v32   ;;  %v9059_v32 = vld [vmem:[%s15293_s1 + $0x208] sm:$0xff] }
 0x498   : > { %v11408_v62 = vpop.permute.xlu1 %3651  ;;  %v11410_v6 = vpop.permute.xlu0 %577 }
 0x499   : > { %15781 = vst [vmem:[#allocation470_spill] sm:$0xff] %v11408_v62  ;;  %3903 = vperm.xlu1 %8980, %v9057_v9   ;;  %902 = vperm.xlu0 %8982, %v9058_v38   ;;  %v9061_v38 = vld [vmem:[%s15293_s1 + $0x218] sm:$0xff] }
 0x49c   : > { %v11418_v59 = vpop.permute.xlu1 %3659  ;;  %v11420_v50 = vpop.permute.xlu0 %592 }
 0x49d   : > { %15782 = vst [vmem:[#allocation471_spill] sm:$0xff] %v11418_v59  ;;  %15783 = vst [vmem:[#allocation472_spill] sm:$0xff] %v11420_v50  ;;  %3911 = vperm.xlu1 %8980, %v9059_v32   ;;  %912 = vperm.xlu0 %8982, %v9060_v2   ;;  %v9062_v59 = vld [vmem:[%s15293_s1 + $0x230] sm:$0xff]  ;;  %v9063_v2 = vld [vmem:[%s15293_s1 + $0x228] sm:$0xff] }
 0x4a0   : > { %v11428_v9 = vpop.permute.xlu1 %3663  ;;  %v11430_v22 = vpop.permute.xlu0 %602 }
 0x4a1   : > { %15784 = vst [vmem:[#allocation473_spill] sm:$0xff] %v11428_v9  ;;  %15785 = vst [vmem:[#allocation474_spill] sm:$0xff] %v11430_v22  ;;  %3919 = vperm.xlu1 %8980, %v9061_v38   ;;  %922 = vperm.xlu0 %8982, %v9062_v59   ;;  %v9064_v9 = vld [vmem:[%s15293_s1 + $0x240] sm:$0xff]  ;;  %v9065_v59 = vld [vmem:[%s15293_s1 + $0x238] sm:$0xff] }
 0x4a4   : > { %v11438_v32 = vpop.permute.xlu1 %3671  ;;  %v11440_v23 = vpop.permute.xlu0 %612 }
 0x4a5   : > { %15786 = vst [vmem:[#allocation475_spill] sm:$0xff] %v11438_v32  ;;  %15787 = vst [vmem:[#allocation476_spill] sm:$0xff] %v11440_v23  ;;  %3927 = vperm.xlu1 %8980, %v9063_v2   ;;  %932 = vperm.xlu0 %8982, %v9064_v9   ;;  %v9066_v32 = vld [vmem:[%s15293_s1 + $0x250] sm:$0xff]  ;;  %v9067_v9 = vld [vmem:[%s15293_s1 + $0x248] sm:$0xff] }
 0x4a8   : > { %v11448_v38 = vpop.permute.xlu1 %3679  ;;  %v11450_v31 = vpop.permute.xlu0 %622 }
 0x4a9   : > { %15788 = vst [vmem:[#allocation477_spill] sm:$0xff] %v11448_v38  ;;  %15789 = vst [vmem:[#allocation478_spill] sm:$0xff] %v11450_v31  ;;  %3935 = vperm.xlu1 %8980, %v9065_v59   ;;  %942 = vperm.xlu0 %8982, %v9066_v32   ;;  %v9068_v31 = vld [vmem:[%s15293_s1 + $0x260] sm:$0xff]  ;;  %v9069_v32 = vld [vmem:[%s15293_s1 + $0x258] sm:$0xff] }
 0x4ac   : > { %v11458_v2 = vpop.permute.xlu1 %3687  ;;  %v11460_v23 = vpop.permute.xlu0 %632 }
 0x4ad   : > { %15790 = vst [vmem:[#allocation479_spill] sm:$0xff] %v11458_v2  ;;  %15791 = vst [vmem:[#allocation480_spill] sm:$0xff] %v11460_v23  ;;  %3943 = vperm.xlu1 %8980, %v9067_v9   ;;  %952 = vperm.xlu0 %8982, %v9068_v31   ;;  %v9070_v23 = vld [vmem:[%s15293_s1 + $0x270] sm:$0xff]  ;;  %v9071_v31 = vld [vmem:[%s15293_s1 + $0x268] sm:$0xff] }
 0x4b0   : > { %v11468_v59 = vpop.permute.xlu1 %3695  ;;  %v11470_v38 = vpop.permute.xlu0 %642 }
 0x4b1   : > { %15792 = vst [vmem:[#allocation481_spill] sm:$0xff] %v11468_v59  ;;  %15793 = vst [vmem:[#allocation482_spill] sm:$0xff] %v11470_v38  ;;  %3951 = vperm.xlu1 %8980, %v9069_v32   ;;  %962 = vperm.xlu0 %8982, %v9070_v23   ;;  %v9072_v38 = vld [vmem:[%s15293_s1 + $0x280] sm:$0xff]  ;;  %v9073_v23 = vld [vmem:[%s15293_s1 + $0x278] sm:$0xff] }
 0x4b4   : > { %v11478_v9 = vpop.permute.xlu1 %3703  ;;  %v11480_v2 = vpop.permute.xlu0 %652 }
 0x4b5   : > { %15794 = vst [vmem:[#allocation483_spill] sm:$0xff] %v11478_v9  ;;  %3959 = vperm.xlu1 %8980, %v9071_v31   ;;  %972 = vperm.xlu0 %8982, %v9072_v38   ;;  %v9074_v9 = vld [vmem:[%s15293_s1 + $0x290] sm:$0xff]  ;;  %v9075_v38 = vld [vmem:[%s15293_s1 + $0x288] sm:$0xff] }
 0x4b8   : > { %v11488_v32 = vpop.permute.xlu1 %3711  ;;  %v11490_v59 = vpop.permute.xlu0 %662 }
 0x4b9   : > { %15795 = vst [vmem:[#allocation484_spill] sm:$0xff] %v11488_v32  ;;  %15796 = vst [vmem:[#allocation485_spill] sm:$0xff] %v11490_v59  ;;  %3967 = vperm.xlu1 %8980, %v9073_v23   ;;  %982 = vperm.xlu0 %8982, %v9074_v9   ;;  %v9076_v32 = vld [vmem:[%s15293_s1 + $0x2a0] sm:$0xff]  ;;  %v9077_v9 = vld [vmem:[%s15293_s1 + $0x298] sm:$0xff] }
 0x4bc   : > { %v11498_v31 = vpop.permute.xlu1 %3719  ;;  %v11500_v62 = vpop.permute.xlu0 %672 }
 0x4bd   : > { %15797 = vst [vmem:[#allocation486_spill] sm:$0xff] %v11498_v31  ;;  %15798 = vst [vmem:[#allocation487_spill] sm:$0xff] %v11500_v62  ;;  %3975 = vperm.xlu1 %8980, %v9075_v38   ;;  %992 = vperm.xlu0 %8982, %v9076_v32   ;;  %v9078_v62 = vld [vmem:[%s15293_s1 + $0x2b0] sm:$0xff]  ;;  %v9079_v32 = vld [vmem:[%s15293_s1 + $0x2a8] sm:$0xff] }
 0x4c0   : > { %v11508_v23 = vpop.permute.xlu1 %3727  ;;  %v11510_v59 = vpop.permute.xlu0 %682 }
 0x4c1   : > { %15799 = vst [vmem:[#allocation488_spill] sm:$0xff] %v11508_v23  ;;  %15800 = vst [vmem:[#allocation489_spill] sm:$0xff] %v11510_v59  ;;  %3983 = vperm.xlu1 %8980, %v9077_v9   ;;  %1002 = vperm.xlu0 %8982, %v9078_v62   ;;  %v9080_v59 = vld [vmem:[%s15293_s1 + $0x2c0] sm:$0xff]  ;;  %v9081_v62 = vld [vmem:[%s15293_s1 + $0x2b8] sm:$0xff] }
 0x4c4   : > { %v11518_v38 = vpop.permute.xlu1 %3735  ;;  %v11520_v31 = vpop.permute.xlu0 %692 }
 0x4c5   : > { %15801 = vst [vmem:[#allocation490_spill] sm:$0xff] %v11518_v38  ;;  %15802 = vst [vmem:[#allocation491_spill] sm:$0xff] %v11520_v31  ;;  %3991 = vperm.xlu1 %8980, %v9079_v32   ;;  %1012 = vperm.xlu0 %8982, %v9080_v59   ;;  %v9082_v31 = vld [vmem:[%s15293_s1 + $0x2d0] sm:$0xff]  ;;  %v9083_v59 = vld [vmem:[%s15293_s1 + $0x2c8] sm:$0xff] }
 0x4c8   : > { %v11528_v9 = vpop.permute.xlu1 %3743  ;;  %v11530_v23 = vpop.permute.xlu0 %702 }
 0x4c9   : > { %15803 = vst [vmem:[#allocation492_spill] sm:$0xff] %v11528_v9  ;;  %15804 = vst [vmem:[#allocation493_spill] sm:$0xff] %v11530_v23  ;;  %3999 = vperm.xlu1 %8980, %v9081_v62   ;;  %1022 = vperm.xlu0 %8982, %v9082_v31   ;;  %v9084_v23 = vld [vmem:[%s15293_s1 + $0x2e0] sm:$0xff]  ;;  %v9085_v31 = vld [vmem:[%s15293_s1 + $0x2d8] sm:$0xff] }
 0x4cc   : > { %v11538_v32 = vpop.permute.xlu1 %3751  ;;  %v11540_v38 = vpop.permute.xlu0 %712 }
 0x4cd   : > { %15805 = vst [vmem:[#allocation494_spill] sm:$0xff] %v11538_v32  ;;  %15806 = vst [vmem:[#allocation495_spill] sm:$0xff] %v11540_v38  ;;  %4007 = vperm.xlu1 %8980, %v9083_v59   ;;  %1032 = vperm.xlu0 %8982, %v9084_v23   ;;  %v9086_v38 = vld [vmem:[%s15293_s1 + $0x2f0] sm:$0xff]  ;;  %v9087_v23 = vld [vmem:[%s15293_s1 + $0x2e8] sm:$0xff] }
 0x4d0   : > { %v11548_v62 = vpop.permute.xlu1 %3759  ;;  %v11550_v9 = vpop.permute.xlu0 %722 }
 0x4d1   : > { %15807 = vst [vmem:[#allocation496_spill] sm:$0xff] %v11548_v62  ;;  %15808 = vst [vmem:[#allocation497_spill] sm:$0xff] %v11550_v9  ;;  %4015 = vperm.xlu1 %8980, %v9085_v31   ;;  %1042 = vperm.xlu0 %8982, %v9086_v38   ;;  %v9088_v9 = vld [vmem:[%s15293_s1 + $0x300] sm:$0xff]  ;;  %v9089_v38 = vld [vmem:[%s15293_s1 + $0x2f8] sm:$0xff] }
 0x4d4   : > { %v11558_v59 = vpop.permute.xlu1 %3767  ;;  %v11560_v32 = vpop.permute.xlu0 %732 }
 0x4d5   : > { %15809 = vst [vmem:[#allocation498_spill] sm:$0xff] %v11558_v59  ;;  %15810 = vst [vmem:[#allocation499_spill] sm:$0xff] %v11560_v32  ;;  %4023 = vperm.xlu1 %8980, %v9087_v23   ;;  %1052 = vperm.xlu0 %8982, %v9088_v9   ;;  %v9090_v32 = vld [vmem:[%s15293_s1 + $0x310] sm:$0xff]  ;;  %v9091_v9 = vld [vmem:[%s15293_s1 + $0x308] sm:$0xff] }
 0x4d8   : > { %v11568_v31 = vpop.permute.xlu1 %3775  ;;  %v11570_v62 = vpop.permute.xlu0 %742 }
 0x4d9   : > { %15811 = vst [vmem:[#allocation500_spill] sm:$0xff] %v11568_v31  ;;  %15812 = vst [vmem:[#allocation501_spill] sm:$0xff] %v11570_v62  ;;  %4031 = vperm.xlu1 %8980, %v9089_v38   ;;  %1062 = vperm.xlu0 %8982, %v9090_v32   ;;  %v9092_v62 = vld [vmem:[%s15293_s1 + $0x320] sm:$0xff]  ;;  %v9093_v32 = vld [vmem:[%s15293_s1 + $0x318] sm:$0xff] }
 0x4dc   : > { %v11578_v23 = vpop.permute.xlu1 %3783  ;;  %v11580_v59 = vpop.permute.xlu0 %752 }
 0x4dd   : > { %15813 = vst [vmem:[#allocation502_spill] sm:$0xff] %v11578_v23  ;;  %15814 = vst [vmem:[#allocation503_spill] sm:$0xff] %v11580_v59  ;;  %4039 = vperm.xlu1 %8980, %v9091_v9   ;;  %1072 = vperm.xlu0 %8982, %v9092_v62   ;;  %v9094_v59 = vld [vmem:[%s15293_s1 + $0x330] sm:$0xff]  ;;  %v9095_v62 = vld [vmem:[%s15293_s1 + $0x328] sm:$0xff] }
 0x4e0   : > { %v11588_v38 = vpop.permute.xlu1 %3791  ;;  %v11590_v31 = vpop.permute.xlu0 %762 }
 0x4e1   : > { %15815 = vst [vmem:[#allocation504_spill] sm:$0xff] %v11588_v38  ;;  %15816 = vst [vmem:[#allocation505_spill] sm:$0xff] %v11590_v31  ;;  %4047 = vperm.xlu1 %8980, %v9093_v32   ;;  %1082 = vperm.xlu0 %8982, %v9094_v59   ;;  %v9096_v31 = vld [vmem:[%s15293_s1 + $0x340] sm:$0xff]  ;;  %v9097_v59 = vld [vmem:[%s15293_s1 + $0x338] sm:$0xff] }
 0x4e4   : > { %v11598_v9 = vpop.permute.xlu1 %3799  ;;  %v11600_v23 = vpop.permute.xlu0 %772 }
 0x4e5   : > { %15817 = vst [vmem:[#allocation506_spill] sm:$0xff] %v11598_v9  ;;  %15818 = vst [vmem:[#allocation507_spill] sm:$0xff] %v11600_v23  ;;  %4055 = vperm.xlu1 %8980, %v9095_v62   ;;  %1092 = vperm.xlu0 %8982, %v9096_v31   ;;  %v9098_v23 = vld [vmem:[%s15293_s1 + $0x350] sm:$0xff]  ;;  %v9099_v31 = vld [vmem:[%s15293_s1 + $0x348] sm:$0xff] }
 0x4e8   : > { %v11608_v32 = vpop.permute.xlu1 %3807  ;;  %v11610_v38 = vpop.permute.xlu0 %782 }
 0x4e9   : > { %15819 = vst [vmem:[#allocation508_spill] sm:$0xff] %v11608_v32  ;;  %15820 = vst [vmem:[#allocation509_spill] sm:$0xff] %v11610_v38  ;;  %4063 = vperm.xlu1 %8980, %v9097_v59   ;;  %1102 = vperm.xlu0 %8982, %v9098_v23   ;;  %v9100_v38 = vld [vmem:[%s15293_s1 + $0x360] sm:$0xff]  ;;  %v9101_v23 = vld [vmem:[%s15293_s1 + $0x358] sm:$0xff] }
 0x4ec   : > { %v11618_v62 = vpop.permute.xlu1 %3815  ;;  %v11620_v9 = vpop.permute.xlu0 %792 }
 0x4ed   : > { %15821 = vst [vmem:[#allocation510_spill] sm:$0xff] %v11618_v62  ;;  %15822 = vst [vmem:[#allocation511_spill] sm:$0xff] %v11620_v9  ;;  %4071 = vperm.xlu1 %8980, %v9099_v31   ;;  %1112 = vperm.xlu0 %8982, %v9100_v38   ;;  %v9102_v9 = vld [vmem:[%s15293_s1 + $0x370] sm:$0xff]  ;;  %v9103_v38 = vld [vmem:[%s15293_s1 + $0x368] sm:$0xff] }
 0x4f0   : > { %v11628_v59 = vpop.permute.xlu1 %3823  ;;  %v11630_v32 = vpop.permute.xlu0 %802 }
 0x4f1   : > { %15823 = vst [vmem:[#allocation512_spill] sm:$0xff] %v11628_v59  ;;  %15824 = vst [vmem:[#allocation513_spill] sm:$0xff] %v11630_v32  ;;  %4079 = vperm.xlu1 %8980, %v9101_v23   ;;  %1122 = vperm.xlu0 %8982, %v9102_v9   ;;  %v9104_v32 = vld [vmem:[%s15293_s1 + $0x380] sm:$0xff]  ;;  %v9105_v9 = vld [vmem:[%s15293_s1 + $0x378] sm:$0xff] }
 0x4f4   : > { %v11638_v31 = vpop.permute.xlu1 %3831  ;;  %v11640_v62 = vpop.permute.xlu0 %812 }
 0x4f5   : > { %15825 = vst [vmem:[#allocation514_spill] sm:$0xff] %v11638_v31  ;;  %15826 = vst [vmem:[#allocation515_spill] sm:$0xff] %v11640_v62  ;;  %4087 = vperm.xlu1 %8980, %v9103_v38   ;;  %1132 = vperm.xlu0 %8982, %v9104_v32   ;;  %v9106_v31 = vld [vmem:[%s15293_s1 + $0x390] sm:$0xff]  ;;  %v9107_v32 = vld [vmem:[%s15293_s1 + $0x388] sm:$0xff] }
 0x4f8   : > { %v11648_v23 = vpop.permute.xlu1 %3839  ;;  %v11650_v59 = vpop.permute.xlu0 %822 }
 0x4f9   : > { %15827 = vst [vmem:[#allocation516_spill] sm:$0xff] %v11648_v23  ;;  %15828 = vst [vmem:[#allocation517_spill] sm:$0xff] %v11650_v59  ;;  %4095 = vperm.xlu1 %8980, %v9105_v9   ;;  %1142 = vperm.xlu0 %8982, %v9106_v31   ;;  %v9108_v23 = vld [vmem:[%s15293_s1 + $0x3a0] sm:$0xff]  ;;  %v9109_v31 = vld [vmem:[%s15293_s1 + $0x398] sm:$0xff] }
 0x4fc   : > { %v11658_v38 = vpop.permute.xlu1 %3847  ;;  %v11660_v62 = vpop.permute.xlu0 %832 }
 0x4fd   : > { %15829 = vst [vmem:[#allocation518_spill] sm:$0xff] %v11658_v38  ;;  %15830 = vst [vmem:[#allocation519_spill] sm:$0xff] %v11660_v62  ;;  %4103 = vperm.xlu1 %8980, %v9107_v32   ;;  %1152 = vperm.xlu0 %8982, %v9108_v23   ;;  %v9110_v62 = vld [vmem:[%s15293_s1 + $0x3b0] sm:$0xff]  ;;  %v9111_v23 = vld [vmem:[%s15293_s1 + $0x3a8] sm:$0xff] }
 0x500   : > { %v11668_v9 = vpop.permute.xlu1 %3855  ;;  %v11670_v59 = vpop.permute.xlu0 %842 }
 0x501   : > { %15831 = vst [vmem:[#allocation520_spill] sm:$0xff] %v11668_v9  ;;  %15832 = vst [vmem:[#allocation521_spill] sm:$0xff] %v11670_v59  ;;  %4111 = vperm.xlu1 %8980, %v9109_v31   ;;  %1162 = vperm.xlu0 %8982, %v9110_v62   ;;  %v9112_v59 = vld [vmem:[%s15293_s1 + $0x3c0] sm:$0xff]  ;;  %v9113_v62 = vld [vmem:[%s15293_s1 + $0x3b8] sm:$0xff] }
 0x504   : > { %v11678_v32 = vpop.permute.xlu1 %3863  ;;  %v11680_v38 = vpop.permute.xlu0 %852 }
 0x505   : > { %15833 = vst [vmem:[#allocation522_spill] sm:$0xff] %v11678_v32  ;;  %15834 = vst [vmem:[#allocation523_spill] sm:$0xff] %v11680_v38  ;;  %4119 = vperm.xlu1 %8980, %v9111_v23   ;;  %1172 = vperm.xlu0 %8982, %v9112_v59   ;;  %v9114_v38 = vld [vmem:[%s15293_s1 + $0x3d0] sm:$0xff]  ;;  %v9115_v59 = vld [vmem:[%s15293_s1 + $0x3c8] sm:$0xff] }
 0x508   : > { %v11688_v31 = vpop.permute.xlu1 %3871  ;;  %v11690_v9 = vpop.permute.xlu0 %862 }
 0x509   : > { %15835 = vst [vmem:[#allocation524_spill] sm:$0xff] %v11688_v31  ;;  %15836 = vst [vmem:[#allocation525_spill] sm:$0xff] %v11690_v9  ;;  %4127 = vperm.xlu1 %8980, %v9113_v62   ;;  %1182 = vperm.xlu0 %8982, %v9114_v38   ;;  %v9116_v9 = vld [vmem:[%s15293_s1 + $0x3e0] sm:$0xff]  ;;  %v9117_v38 = vld [vmem:[%s15293_s1 + $0x3d8] sm:$0xff] }
 0x50c   : > { %v11698_v23 = vpop.permute.xlu1 %3879  ;;  %v11700_v32 = vpop.permute.xlu0 %872 }
 0x50d   : > { %15837 = vst [vmem:[#allocation526_spill] sm:$0xff] %v11698_v23  ;;  %15838 = vst [vmem:[#allocation527_spill] sm:$0xff] %v11700_v32  ;;  %4135 = vperm.xlu1 %8980, %v9115_v59   ;;  %1192 = vperm.xlu0 %8982, %v9116_v9   ;;  %v9118_v32 = vld [vmem:[%s15293_s1 + $0x3f0] sm:$0xff]  ;;  %v9119_v9 = vld [vmem:[%s15293_s1 + $0x3e8] sm:$0xff] }
 0x510   : > { %v11708_v62 = vpop.permute.xlu1 %3887  ;;  %v11710_v31 = vpop.permute.xlu0 %882 }
 0x511   : > { %15839 = vst [vmem:[#allocation528_spill] sm:$0xff] %v11708_v62  ;;  %15840 = vst [vmem:[#allocation529_spill] sm:$0xff] %v11710_v31  ;;  %4143 = vperm.xlu1 %8980, %v9117_v38   ;;  %1202 = vperm.xlu0 %8982, %v9118_v32   ;;  %v9120_v31 = vld [vmem:[%s15293_s1 + $0x400] sm:$0xff]  ;;  %v9121_v32 = vld [vmem:[%s15293_s1 + $0x3f8] sm:$0xff] }
 0x514   : > { %v11718_v59 = vpop.permute.xlu1 %3895  ;;  %v11720_v23 = vpop.permute.xlu0 %892 }
 0x515   : > { %15841 = vst [vmem:[#allocation530_spill] sm:$0xff] %v11718_v59  ;;  %15842 = vst [vmem:[#allocation531_spill] sm:$0xff] %v11720_v23  ;;  %4151 = vperm.xlu1 %8980, %v9119_v9   ;;  %1212 = vperm.xlu0 %8982, %v9120_v31   ;;  %v9122_v23 = vld [vmem:[%s15293_s1 + $0x410] sm:$0xff]  ;;  %v9123_v31 = vld [vmem:[%s15293_s1 + $0x408] sm:$0xff] }
 0x518   : > { %v11728_v38 = vpop.permute.xlu1 %3903  ;;  %v11730_v62 = vpop.permute.xlu0 %902 }
 0x519   : > { %15843 = vst [vmem:[#allocation532_spill] sm:$0xff] %v11728_v38  ;;  %15844 = vst [vmem:[#allocation533_spill] sm:$0xff] %v11730_v62  ;;  %4159 = vperm.xlu1 %8980, %v9121_v32   ;;  %1222 = vperm.xlu0 %8982, %v9122_v23   ;;  %v9124_v62 = vld [vmem:[%s15293_s1 + $0x420] sm:$0xff]  ;;  %v9125_v23 = vld [vmem:[%s15293_s1 + $0x418] sm:$0xff] }
 0x51c   : > { %v11738_v9 = vpop.permute.xlu1 %3911  ;;  %v11740_v59 = vpop.permute.xlu0 %912 }
 0x51d   : > { %15845 = vst [vmem:[#allocation534_spill] sm:$0xff] %v11738_v9  ;;  %15846 = vst [vmem:[#allocation535_spill] sm:$0xff] %v11740_v59  ;;  %4167 = vperm.xlu1 %8980, %v9123_v31   ;;  %1232 = vperm.xlu0 %8982, %v9124_v62   ;;  %v9126_v59 = vld [vmem:[%s15293_s1 + $0x430] sm:$0xff]  ;;  %v9127_v62 = vld [vmem:[%s15293_s1 + $0x428] sm:$0xff] }
 0x520   : > { %v11748_v32 = vpop.permute.xlu1 %3919  ;;  %v11750_v38 = vpop.permute.xlu0 %922 }
 0x521   : > { %15847 = vst [vmem:[#allocation536_spill] sm:$0xff] %v11748_v32  ;;  %15848 = vst [vmem:[#allocation537_spill] sm:$0xff] %v11750_v38  ;;  %4175 = vperm.xlu1 %8980, %v9125_v23   ;;  %1242 = vperm.xlu0 %8982, %v9126_v59   ;;  %v9128_v38 = vld [vmem:[%s15293_s1 + $0x440] sm:$0xff]  ;;  %v9129_v59 = vld [vmem:[%s15293_s1 + $0x438] sm:$0xff] }
 0x524   : > { %v11758_v31 = vpop.permute.xlu1 %3927  ;;  %v11760_v9 = vpop.permute.xlu0 %932 }
 0x525   : > { %15849 = vst [vmem:[#allocation538_spill] sm:$0xff] %v11758_v31  ;;  %15850 = vst [vmem:[#allocation539_spill] sm:$0xff] %v11760_v9  ;;  %4183 = vperm.xlu1 %8980, %v9127_v62   ;;  %1252 = vperm.xlu0 %8982, %v9128_v38   ;;  %v9130_v9 = vld [vmem:[%s15293_s1 + $0x450] sm:$0xff]  ;;  %v9131_v38 = vld [vmem:[%s15293_s1 + $0x448] sm:$0xff] }
 0x528   : > { %v11768_v23 = vpop.permute.xlu1 %3935  ;;  %v11770_v32 = vpop.permute.xlu0 %942 }
 0x529   : > { %15851 = vst [vmem:[#allocation540_spill] sm:$0xff] %v11768_v23  ;;  %15852 = vst [vmem:[#allocation541_spill] sm:$0xff] %v11770_v32  ;;  %4191 = vperm.xlu1 %8980, %v9129_v59   ;;  %1262 = vperm.xlu0 %8982, %v9130_v9   ;;  %v9132_v32 = vld [vmem:[%s15293_s1 + $0x460] sm:$0xff]  ;;  %v9133_v9 = vld [vmem:[%s15293_s1 + $0x458] sm:$0xff] }
 0x52c   : > { %v11778_v62 = vpop.permute.xlu1 %3943  ;;  %v11780_v31 = vpop.permute.xlu0 %952 }
 0x52d   : > { %15853 = vst [vmem:[#allocation542_spill] sm:$0xff] %v11778_v62  ;;  %15854 = vst [vmem:[#allocation543_spill] sm:$0xff] %v11780_v31  ;;  %4199 = vperm.xlu1 %8980, %v9131_v38   ;;  %1272 = vperm.xlu0 %8982, %v9132_v32   ;;  %v9134_v31 = vld [vmem:[%s15293_s1 + $0x470] sm:$0xff]  ;;  %v9135_v32 = vld [vmem:[%s15293_s1 + $0x468] sm:$0xff] }
 0x530   : > { %v11788_v59 = vpop.permute.xlu1 %3951  ;;  %v11790_v23 = vpop.permute.xlu0 %962 }
 0x531   : > { %15855 = vst [vmem:[#allocation544_spill] sm:$0xff] %v11788_v59  ;;  %15856 = vst [vmem:[#allocation545_spill] sm:$0xff] %v11790_v23  ;;  %4207 = vperm.xlu1 %8980, %v9133_v9   ;;  %1282 = vperm.xlu0 %8982, %v9134_v31   ;;  %v9136_v23 = vld [vmem:[%s15293_s1 + $0x480] sm:$0xff]  ;;  %v9137_v31 = vld [vmem:[%s15293_s1 + $0x478] sm:$0xff] }
 0x534   : > { %v11798_v38 = vpop.permute.xlu1 %3959  ;;  %v11800_v62 = vpop.permute.xlu0 %972 }
 0x535   : > { %15857 = vst [vmem:[#allocation546_spill] sm:$0xff] %v11798_v38  ;;  %15858 = vst [vmem:[#allocation547_spill] sm:$0xff] %v11800_v62  ;;  %4215 = vperm.xlu1 %8980, %v9135_v32   ;;  %1292 = vperm.xlu0 %8982, %v9136_v23   ;;  %v9138_v38 = vld [vmem:[%s15293_s1 + $0x490] sm:$0xff]  ;;  %v9139_v23 = vld [vmem:[%s15293_s1 + $0x488] sm:$0xff] }
 0x538   : > { %v11808_v9 = vpop.permute.xlu1 %3967  ;;  %v11810_v59 = vpop.permute.xlu0 %982 }
 0x539   : > { %15859 = vst [vmem:[#allocation548_spill] sm:$0xff] %v11808_v9  ;;  %15860 = vst [vmem:[#allocation549_spill] sm:$0xff] %v11810_v59  ;;  %4223 = vperm.xlu1 %8980, %v9137_v31   ;;  %1302 = vperm.xlu0 %8982, %v9138_v38   ;;  %v9140_v9 = vld [vmem:[%s15293_s1 + $0x4a0] sm:$0xff]  ;;  %v9141_v38 = vld [vmem:[%s15293_s1 + $0x498] sm:$0xff] }
 0x53c   : > { %v11818_v32 = vpop.permute.xlu1 %3975  ;;  %v11820_v62 = vpop.permute.xlu0 %992 }
 0x53d   : > { %15861 = vst [vmem:[#allocation550_spill] sm:$0xff] %v11818_v32  ;;  %15862 = vst [vmem:[#allocation551_spill] sm:$0xff] %v11820_v62  ;;  %4231 = vperm.xlu1 %8980, %v9139_v23   ;;  %1312 = vperm.xlu0 %8982, %v9140_v9   ;;  %v9142_v62 = vld [vmem:[%s15293_s1 + $0x4b0] sm:$0xff]  ;;  %v9143_v9 = vld [vmem:[%s15293_s1 + $0x4a8] sm:$0xff] }
 0x540   : > { %v11828_v31 = vpop.permute.xlu1 %3983  ;;  %v11830_v59 = vpop.permute.xlu0 %1002 }
 0x541   : > { %15863 = vst [vmem:[#allocation552_spill] sm:$0xff] %v11828_v31  ;;  %15864 = vst [vmem:[#allocation553_spill] sm:$0xff] %v11830_v59  ;;  %4239 = vperm.xlu1 %8980, %v9141_v38   ;;  %1322 = vperm.xlu0 %8982, %v9142_v62   ;;  %v9144_v59 = vld [vmem:[%s15293_s1 + $0x4c0] sm:$0xff]  ;;  %v9145_v62 = vld [vmem:[%s15293_s1 + $0x4b8] sm:$0xff] }
 0x544   : > { %v11838_v23 = vpop.permute.xlu1 %3991  ;;  %v11840_v32 = vpop.permute.xlu0 %1012 }
 0x545   : > { %15865 = vst [vmem:[#allocation554_spill] sm:$0xff] %v11838_v23  ;;  %15866 = vst [vmem:[#allocation555_spill] sm:$0xff] %v11840_v32  ;;  %4247 = vperm.xlu1 %8980, %v9143_v9   ;;  %1332 = vperm.xlu0 %8982, %v9144_v59   ;;  %v9146_v32 = vld [vmem:[%s15293_s1 + $0x4d0] sm:$0xff]  ;;  %v9147_v59 = vld [vmem:[%s15293_s1 + $0x4c8] sm:$0xff] }
 0x548   : > { %v11848_v38 = vpop.permute.xlu1 %3999  ;;  %v11850_v31 = vpop.permute.xlu0 %1022 }
 0x549   : > { %15867 = vst [vmem:[#allocation556_spill] sm:$0xff] %v11848_v38  ;;  %15868 = vst [vmem:[#allocation557_spill] sm:$0xff] %v11850_v31  ;;  %4255 = vperm.xlu1 %8980, %v9145_v62   ;;  %1342 = vperm.xlu0 %8982, %v9146_v32   ;;  %v9148_v31 = vld [vmem:[%s15293_s1 + $0x4e0] sm:$0xff]  ;;  %v9149_v32 = vld [vmem:[%s15293_s1 + $0x4d8] sm:$0xff] }
 0x54c   : > { %v11858_v9 = vpop.permute.xlu1 %4007  ;;  %v11860_v23 = vpop.permute.xlu0 %1032 }
 0x54d   : > { %15869 = vst [vmem:[#allocation558_spill] sm:$0xff] %v11858_v9  ;;  %15870 = vst [vmem:[#allocation559_spill] sm:$0xff] %v11860_v23  ;;  %4263 = vperm.xlu1 %8980, %v9147_v59   ;;  %1352 = vperm.xlu0 %8982, %v9148_v31   ;;  %v9150_v23 = vld [vmem:[%s15293_s1 + $0x4f0] sm:$0xff]  ;;  %v9151_v31 = vld [vmem:[%s15293_s1 + $0x4e8] sm:$0xff] }
 0x550   : > { %v11868_v62 = vpop.permute.xlu1 %4015  ;;  %v11870_v38 = vpop.permute.xlu0 %1042 }
 0x551   : > { %15871 = vst [vmem:[#allocation560_spill] sm:$0xff] %v11868_v62  ;;  %15872 = vst [vmem:[#allocation561_spill] sm:$0xff] %v11870_v38  ;;  %4271 = vperm.xlu1 %8980, %v9149_v32   ;;  %1362 = vperm.xlu0 %8982, %v9150_v23   ;;  %v9152_v38 = vld [vmem:[%s15293_s1 + $0x500] sm:$0xff]  ;;  %v9153_v23 = vld [vmem:[%s15293_s1 + $0x4f8] sm:$0xff] }
 0x554   : > { %v11878_v59 = vpop.permute.xlu1 %4023  ;;  %v11880_v9 = vpop.permute.xlu0 %1052 }
 0x555   : > { %15873 = vst [vmem:[#allocation562_spill] sm:$0xff] %v11878_v59  ;;  %15874 = vst [vmem:[#allocation563_spill] sm:$0xff] %v11880_v9  ;;  %4279 = vperm.xlu1 %8980, %v9151_v31   ;;  %1372 = vperm.xlu0 %8982, %v9152_v38   ;;  %v9154_v59 = vld [vmem:[%s15293_s1 + $0x510] sm:$0xff]  ;;  %v9155_v38 = vld [vmem:[%s15293_s1 + $0x508] sm:$0xff] }
 0x558   : > { %v11888_v32 = vpop.permute.xlu1 %4031  ;;  %v11890_v62 = vpop.permute.xlu0 %1062 }
 0x559   : > { %15875 = vst [vmem:[#allocation564_spill] sm:$0xff] %v11888_v32  ;;  %15876 = vst [vmem:[#allocation565_spill] sm:$0xff] %v11890_v62  ;;  %4287 = vperm.xlu1 %8980, %v9153_v23   ;;  %1382 = vperm.xlu0 %8982, %v9154_v59   ;;  %v9156_v32 = vld [vmem:[%s15293_s1 + $0x520] sm:$0xff]  ;;  %v9157_v59 = vld [vmem:[%s15293_s1 + $0x518] sm:$0xff] }
 0x55c   : > { %v11898_v31 = vpop.permute.xlu1 %4039  ;;  %v11900_v9 = vpop.permute.xlu0 %1072 }
 0x55d   : > { %15877 = vst [vmem:[#allocation566_spill] sm:$0xff] %v11898_v31  ;;  %15878 = vst [vmem:[#allocation567_spill] sm:$0xff] %v11900_v9  ;;  %4295 = vperm.xlu1 %8980, %v9155_v38   ;;  %1392 = vperm.xlu0 %8982, %v9156_v32   ;;  %v9158_v9 = vld [vmem:[%s15293_s1 + $0x530] sm:$0xff]  ;;  %v9159_v32 = vld [vmem:[%s15293_s1 + $0x528] sm:$0xff] }
 0x560   : > { %v11908_v23 = vpop.permute.xlu1 %4047  ;;  %v11910_v62 = vpop.permute.xlu0 %1082 }
 0x561   : > { %15879 = vst [vmem:[#allocation568_spill] sm:$0xff] %v11908_v23  ;;  %15880 = vst [vmem:[#allocation569_spill] sm:$0xff] %v11910_v62  ;;  %4303 = vperm.xlu1 %8980, %v9157_v59   ;;  %1402 = vperm.xlu0 %8982, %v9158_v9   ;;  %v9160_v62 = vld [vmem:[%s15293_s1 + $0x540] sm:$0xff]  ;;  %v9161_v9 = vld [vmem:[%s15293_s1 + $0x538] sm:$0xff] }
 0x564   : > { %v11918_v38 = vpop.permute.xlu1 %4055  ;;  %v11920_v31 = vpop.permute.xlu0 %1092 }
 0x565   : > { %15881 = vst [vmem:[#allocation570_spill] sm:$0xff] %v11918_v38  ;;  %15882 = vst [vmem:[#allocation571_spill] sm:$0xff] %v11920_v31  ;;  %4311 = vperm.xlu1 %8980, %v9159_v32   ;;  %1412 = vperm.xlu0 %8982, %v9160_v62   ;;  %v9162_v31 = vld [vmem:[%s15293_s1 + $0x550] sm:$0xff]  ;;  %v9163_v62 = vld [vmem:[%s15293_s1 + $0x548] sm:$0xff] }
 0x568   : > { %v11928_v59 = vpop.permute.xlu1 %4063  ;;  %v11930_v23 = vpop.permute.xlu0 %1102 }
 0x569   : > { %15883 = vst [vmem:[#allocation572_spill] sm:$0xff] %v11928_v59  ;;  %15884 = vst [vmem:[#allocation573_spill] sm:$0xff] %v11930_v23  ;;  %4319 = vperm.xlu1 %8980, %v9161_v9   ;;  %1422 = vperm.xlu0 %8982, %v9162_v31   ;;  %v9164_v23 = vld [vmem:[%s15293_s1 + $0x560] sm:$0xff]  ;;  %v9165_v31 = vld [vmem:[%s15293_s1 + $0x558] sm:$0xff] }
 0x56c   : > { %v11938_v32 = vpop.permute.xlu1 %4071  ;;  %v11940_v38 = vpop.permute.xlu0 %1112 }
 0x56d   : > { %15885 = vst [vmem:[#allocation574_spill] sm:$0xff] %v11938_v32  ;;  %15886 = vst [vmem:[#allocation575_spill] sm:$0xff] %v11940_v38  ;;  %4327 = vperm.xlu1 %8980, %v9163_v62   ;;  %1432 = vperm.xlu0 %8982, %v9164_v23   ;;  %v9166_v38 = vld [vmem:[%s15293_s1 + $0x570] sm:$0xff]  ;;  %v9167_v23 = vld [vmem:[%s15293_s1 + $0x568] sm:$0xff] }
 0x570   : > { %v11948_v9 = vpop.permute.xlu1 %4079  ;;  %v11950_v59 = vpop.permute.xlu0 %1122 }
 0x571   : > { %15887 = vst [vmem:[#allocation576_spill] sm:$0xff] %v11948_v9  ;;  %15888 = vst [vmem:[#allocation577_spill] sm:$0xff] %v11950_v59  ;;  %4335 = vperm.xlu1 %8980, %v9165_v31   ;;  %1442 = vperm.xlu0 %8982, %v9166_v38   ;;  %v9168_v59 = vld [vmem:[%s15293_s1 + $0x580] sm:$0xff]  ;;  %v9169_v38 = vld [vmem:[%s15293_s1 + $0x578] sm:$0xff] }
 0x574   : > { %v11958_v62 = vpop.permute.xlu1 %4087  ;;  %v11960_v32 = vpop.permute.xlu0 %1132 }
 0x575   : > { %15889 = vst [vmem:[#allocation578_spill] sm:$0xff] %v11958_v62  ;;  %15890 = vst [vmem:[#allocation579_spill] sm:$0xff] %v11960_v32  ;;  %4343 = vperm.xlu1 %8980, %v9167_v23   ;;  %1452 = vperm.xlu0 %8982, %v9168_v59   ;;  %v9170_v62 = vld [vmem:[%s15293_s1 + $0x590] sm:$0xff]  ;;  %v9171_v59 = vld [vmem:[%s15293_s1 + $0x588] sm:$0xff] }
 0x578   : > { %v11968_v31 = vpop.permute.xlu1 %4095  ;;  %v11970_v9 = vpop.permute.xlu0 %1142 }
 0x579   : > { %15891 = vst [vmem:[#allocation580_spill] sm:$0xff] %v11968_v31  ;;  %15892 = vst [vmem:[#allocation581_spill] sm:$0xff] %v11970_v9  ;;  %4351 = vperm.xlu1 %8980, %v9169_v38   ;;  %1462 = vperm.xlu0 %8982, %v9170_v62   ;;  %v9172_v31 = vld [vmem:[%s15293_s1 + $0x5a0] sm:$0xff]  ;;  %v9173_v62 = vld [vmem:[%s15293_s1 + $0x598] sm:$0xff] }
 0x57c   : > { %v11978_v23 = vpop.permute.xlu1 %4103  ;;  %v11980_v32 = vpop.permute.xlu0 %1152 }
 0x57d   : > { %15893 = vst [vmem:[#allocation582_spill] sm:$0xff] %v11978_v23  ;;  %15894 = vst [vmem:[#allocation583_spill] sm:$0xff] %v11980_v32  ;;  %4359 = vperm.xlu1 %8980, %v9171_v59   ;;  %1472 = vperm.xlu0 %8982, %v9172_v31   ;;  %v9174_v32 = vld [vmem:[%s15293_s1 + $0x5b0] sm:$0xff]  ;;  %v9175_v31 = vld [vmem:[%s15293_s1 + $0x5a8] sm:$0xff] }
 0x580   : > { %v11988_v38 = vpop.permute.xlu1 %4111  ;;  %v11990_v9 = vpop.permute.xlu0 %1162 }
 0x581   : > { %15895 = vst [vmem:[#allocation584_spill] sm:$0xff] %v11988_v38  ;;  %15896 = vst [vmem:[#allocation585_spill] sm:$0xff] %v11990_v9  ;;  %4367 = vperm.xlu1 %8980, %v9173_v62   ;;  %1482 = vperm.xlu0 %8982, %v9174_v32   ;;  %v9176_v9 = vld [vmem:[%s15293_s1 + $0x5c0] sm:$0xff]  ;;  %v9177_v32 = vld [vmem:[%s15293_s1 + $0x5b8] sm:$0xff] }
 0x584   : > { %v11998_v59 = vpop.permute.xlu1 %4119  ;;  %v12000_v23 = vpop.permute.xlu0 %1172 }
 0x585   : > { %15897 = vst [vmem:[#allocation586_spill] sm:$0xff] %v11998_v59  ;;  %15898 = vst [vmem:[#allocation587_spill] sm:$0xff] %v12000_v23  ;;  %4375 = vperm.xlu1 %8980, %v9175_v31   ;;  %1492 = vperm.xlu0 %8982, %v9176_v9   ;;  %v9178_v23 = vld [vmem:[%s15293_s1 + $0x5d0] sm:$0xff]  ;;  %v9179_v9 = vld [vmem:[%s15293_s1 + $0x5c8] sm:$0xff] }
 0x588   : > { %v12008_v62 = vpop.permute.xlu1 %4127  ;;  %v12010_v38 = vpop.permute.xlu0 %1182 }
 0x589   : > { %15899 = vst [vmem:[#allocation588_spill] sm:$0xff] %v12008_v62  ;;  %15900 = vst [vmem:[#allocation589_spill] sm:$0xff] %v12010_v38  ;;  %4383 = vperm.xlu1 %8980, %v9177_v32   ;;  %1502 = vperm.xlu0 %8982, %v9178_v23   ;;  %v9180_v38 = vld [vmem:[%s15293_s1 + $0x5e0] sm:$0xff]  ;;  %v9181_v23 = vld [vmem:[%s15293_s1 + $0x5d8] sm:$0xff] }
 0x58c   : > { %v12018_v31 = vpop.permute.xlu1 %4135  ;;  %v12020_v59 = vpop.permute.xlu0 %1192 }
 0x58d   : > { %15901 = vst [vmem:[#allocation590_spill] sm:$0xff] %v12018_v31  ;;  %15902 = vst [vmem:[#allocation591_spill] sm:$0xff] %v12020_v59  ;;  %4391 = vperm.xlu1 %8980, %v9179_v9   ;;  %1512 = vperm.xlu0 %8982, %v9180_v38   ;;  %v9182_v59 = vld [vmem:[%s15293_s1 + $0x5f0] sm:$0xff]  ;;  %v9183_v38 = vld [vmem:[%s15293_s1 + $0x5e8] sm:$0xff] }
 0x590   : > { %v12028_v32 = vpop.permute.xlu1 %4143  ;;  %v12030_v62 = vpop.permute.xlu0 %1202 }
 0x591   : > { %15903 = vst [vmem:[#allocation592_spill] sm:$0xff] %v12028_v32  ;;  %15904 = vst [vmem:[#allocation593_spill] sm:$0xff] %v12030_v62  ;;  %4399 = vperm.xlu1 %8980, %v9181_v23   ;;  %1522 = vperm.xlu0 %8982, %v9182_v59   ;;  %v9184_v62 = vld [vmem:[%s15293_s1 + $0x600] sm:$0xff]  ;;  %v9185_v59 = vld [vmem:[%s15293_s1 + $0x5f8] sm:$0xff] }
 0x594   : > { %v12038_v9 = vpop.permute.xlu1 %4151  ;;  %v12040_v31 = vpop.permute.xlu0 %1212 }
 0x595   : > { %15905 = vst [vmem:[#allocation594_spill] sm:$0xff] %v12038_v9  ;;  %15906 = vst [vmem:[#allocation595_spill] sm:$0xff] %v12040_v31  ;;  %4407 = vperm.xlu1 %8980, %v9183_v38   ;;  %1532 = vperm.xlu0 %8982, %v9184_v62   ;;  %v9186_v31 = vld [vmem:[%s15293_s1 + $0x610] sm:$0xff]  ;;  %v9187_v62 = vld [vmem:[%s15293_s1 + $0x608] sm:$0xff] }
 0x598   : > { %v12048_v23 = vpop.permute.xlu1 %4159  ;;  %v12050_v32 = vpop.permute.xlu0 %1222 }
 0x599   : > { %15907 = vst [vmem:[#allocation596_spill] sm:$0xff] %v12048_v23  ;;  %15908 = vst [vmem:[#allocation597_spill] sm:$0xff] %v12050_v32  ;;  %4415 = vperm.xlu1 %8980, %v9185_v59   ;;  %1542 = vperm.xlu0 %8982, %v9186_v31   ;;  %v9188_v32 = vld [vmem:[%s15293_s1 + $0x620] sm:$0xff]  ;;  %v9189_v31 = vld [vmem:[%s15293_s1 + $0x618] sm:$0xff] }
 0x59c   : > { %v12058_v38 = vpop.permute.xlu1 %4167  ;;  %v12060_v9 = vpop.permute.xlu0 %1232 }
 0x59d   : > { %15909 = vst [vmem:[#allocation598_spill] sm:$0xff] %v12058_v38  ;;  %15910 = vst [vmem:[#allocation599_spill] sm:$0xff] %v12060_v9  ;;  %4423 = vperm.xlu1 %8980, %v9187_v62   ;;  %1552 = vperm.xlu0 %8982, %v9188_v32   ;;  %v9190_v9 = vld [vmem:[%s15293_s1 + $0x630] sm:$0xff]  ;;  %v9191_v32 = vld [vmem:[%s15293_s1 + $0x628] sm:$0xff] }
 0x5a0   : > { %v12068_v59 = vpop.permute.xlu1 %4175  ;;  %v12070_v23 = vpop.permute.xlu0 %1242 }
 0x5a1   : > { %15911 = vst [vmem:[#allocation600_spill] sm:$0xff] %v12068_v59  ;;  %15912 = vst [vmem:[#allocation601_spill] sm:$0xff] %v12070_v23  ;;  %4431 = vperm.xlu1 %8980, %v9189_v31   ;;  %1562 = vperm.xlu0 %8982, %v9190_v9   ;;  %v9192_v23 = vld [vmem:[%s15293_s1 + $0x640] sm:$0xff]  ;;  %v9193_v9 = vld [vmem:[%s15293_s1 + $0x638] sm:$0xff] }
 0x5a4   : > { %v12078_v62 = vpop.permute.xlu1 %4183  ;;  %v12080_v38 = vpop.permute.xlu0 %1252 }
 0x5a5   : > { %15913 = vst [vmem:[#allocation602_spill] sm:$0xff] %v12078_v62  ;;  %15914 = vst [vmem:[#allocation603_spill] sm:$0xff] %v12080_v38  ;;  %4439 = vperm.xlu1 %8980, %v9191_v32   ;;  %1572 = vperm.xlu0 %8982, %v9192_v23   ;;  %v9194_v38 = vld [vmem:[%s15293_s1 + $0x650] sm:$0xff]  ;;  %v9195_v23 = vld [vmem:[%s15293_s1 + $0x648] sm:$0xff] }
 0x5a8   : > { %v12088_v31 = vpop.permute.xlu1 %4191  ;;  %v12090_v59 = vpop.permute.xlu0 %1262 }
 0x5a9   : > { %15915 = vst [vmem:[#allocation604_spill] sm:$0xff] %v12088_v31  ;;  %15916 = vst [vmem:[#allocation605_spill] sm:$0xff] %v12090_v59  ;;  %4447 = vperm.xlu1 %8980, %v9193_v9   ;;  %1582 = vperm.xlu0 %8982, %v9194_v38   ;;  %v9196_v59 = vld [vmem:[%s15293_s1 + $0x660] sm:$0xff]  ;;  %v9197_v38 = vld [vmem:[%s15293_s1 + $0x658] sm:$0xff] }
 0x5ac   : > { %v12098_v32 = vpop.permute.xlu1 %4199  ;;  %v12100_v62 = vpop.permute.xlu0 %1272 }
 0x5ad   : > { %15917 = vst [vmem:[#allocation606_spill] sm:$0xff] %v12098_v32  ;;  %15918 = vst [vmem:[#allocation607_spill] sm:$0xff] %v12100_v62  ;;  %4455 = vperm.xlu1 %8980, %v9195_v23   ;;  %1592 = vperm.xlu0 %8982, %v9196_v59   ;;  %v9198_v62 = vld [vmem:[%s15293_s1 + $0x670] sm:$0xff]  ;;  %v9199_v59 = vld [vmem:[%s15293_s1 + $0x668] sm:$0xff] }
 0x5b0   : > { %v12108_v9 = vpop.permute.xlu1 %4207  ;;  %v12110_v31 = vpop.permute.xlu0 %1282 }
 0x5b1   : > { %15919 = vst [vmem:[#allocation608_spill] sm:$0xff] %v12108_v9  ;;  %15920 = vst [vmem:[#allocation609_spill] sm:$0xff] %v12110_v31  ;;  %4463 = vperm.xlu1 %8980, %v9197_v38   ;;  %1602 = vperm.xlu0 %8982, %v9198_v62   ;;  %v9200_v31 = vld [vmem:[%s15293_s1 + $0x680] sm:$0xff]  ;;  %v9201_v62 = vld [vmem:[%s15293_s1 + $0x678] sm:$0xff] }
 0x5b4   : > { %v12118_v23 = vpop.permute.xlu1 %4215  ;;  %v12120_v32 = vpop.permute.xlu0 %1292 }
 0x5b5   : > { %15921 = vst [vmem:[#allocation610_spill] sm:$0xff] %v12118_v23  ;;  %15922 = vst [vmem:[#allocation611_spill] sm:$0xff] %v12120_v32  ;;  %4471 = vperm.xlu1 %8980, %v9199_v59   ;;  %1612 = vperm.xlu0 %8982, %v9200_v31   ;;  %v9202_v23 = vld [vmem:[%s15293_s1 + $0x690] sm:$0xff]  ;;  %v9203_v31 = vld [vmem:[%s15293_s1 + $0x688] sm:$0xff] }
 0x5b8   : > { %v12128_v38 = vpop.permute.xlu1 %4223  ;;  %v12130_v9 = vpop.permute.xlu0 %1302 }
 0x5b9   : > { %15923 = vst [vmem:[#allocation612_spill] sm:$0xff] %v12128_v38  ;;  %15924 = vst [vmem:[#allocation613_spill] sm:$0xff] %v12130_v9  ;;  %4479 = vperm.xlu1 %8980, %v9201_v62   ;;  %1622 = vperm.xlu0 %8982, %v9202_v23   ;;  %v9204_v38 = vld [vmem:[%s15293_s1 + $0x6a0] sm:$0xff]  ;;  %v9205_v23 = vld [vmem:[%s15293_s1 + $0x698] sm:$0xff] }
 0x5bc   : > { %v12138_v59 = vpop.permute.xlu1 %4231  ;;  %v12140_v32 = vpop.permute.xlu0 %1312 }
 0x5bd   : > { %15925 = vst [vmem:[#allocation614_spill] sm:$0xff] %v12138_v59  ;;  %15926 = vst [vmem:[#allocation615_spill] sm:$0xff] %v12140_v32  ;;  %4487 = vperm.xlu1 %8980, %v9203_v31   ;;  %1632 = vperm.xlu0 %8982, %v9204_v38   ;;  %v9206_v32 = vld [vmem:[%s15293_s1 + $0x6b0] sm:$0xff]  ;;  %v9207_v38 = vld [vmem:[%s15293_s1 + $0x6a8] sm:$0xff] }
 0x5c0   : > { %v12148_v62 = vpop.permute.xlu1 %4239  ;;  %v12150_v9 = vpop.permute.xlu0 %1322 }
 0x5c1   : > { %15927 = vst [vmem:[#allocation616_spill] sm:$0xff] %v12148_v62  ;;  %15928 = vst [vmem:[#allocation617_spill] sm:$0xff] %v12150_v9  ;;  %4495 = vperm.xlu1 %8980, %v9205_v23   ;;  %1642 = vperm.xlu0 %8982, %v9206_v32   ;;  %v9208_v9 = vld [vmem:[%s15293_s1 + $0x6c0] sm:$0xff]  ;;  %v9209_v32 = vld [vmem:[%s15293_s1 + $0x6b8] sm:$0xff] }
 0x5c4   : > { %v12158_v31 = vpop.permute.xlu1 %4247  ;;  %v12160_v59 = vpop.permute.xlu0 %1332 }
 0x5c5   : > { %15929 = vst [vmem:[#allocation618_spill] sm:$0xff] %v12158_v31  ;;  %15930 = vst [vmem:[#allocation619_spill] sm:$0xff] %v12160_v59  ;;  %4503 = vperm.xlu1 %8980, %v9207_v38   ;;  %1652 = vperm.xlu0 %8982, %v9208_v9   ;;  %v9210_v59 = vld [vmem:[%s15293_s1 + $0x6d0] sm:$0xff]  ;;  %v9211_v9 = vld [vmem:[%s15293_s1 + $0x6c8] sm:$0xff] }
 0x5c8   : > { %v12168_v23 = vpop.permute.xlu1 %4255  ;;  %v12170_v62 = vpop.permute.xlu0 %1342 }
 0x5c9   : > { %15931 = vst [vmem:[#allocation620_spill] sm:$0xff] %v12168_v23  ;;  %15932 = vst [vmem:[#allocation621_spill] sm:$0xff] %v12170_v62  ;;  %4511 = vperm.xlu1 %8980, %v9209_v32   ;;  %1662 = vperm.xlu0 %8982, %v9210_v59   ;;  %v9212_v62 = vld [vmem:[%s15293_s1 + $0x6e0] sm:$0xff]  ;;  %v9213_v59 = vld [vmem:[%s15293_s1 + $0x6d8] sm:$0xff] }
 0x5cc   : > { %v12178_v38 = vpop.permute.xlu1 %4263  ;;  %v12180_v31 = vpop.permute.xlu0 %1352 }
 0x5cd   : > { %15933 = vst [vmem:[#allocation622_spill] sm:$0xff] %v12178_v38  ;;  %15934 = vst [vmem:[#allocation623_spill] sm:$0xff] %v12180_v31  ;;  %4519 = vperm.xlu1 %8980, %v9211_v9   ;;  %1672 = vperm.xlu0 %8982, %v9212_v62   ;;  %v9214_v31 = vld [vmem:[%s15293_s1 + $0x6f0] sm:$0xff]  ;;  %v9215_v62 = vld [vmem:[%s15293_s1 + $0x6e8] sm:$0xff] }
 0x5d0   : > { %v12188_v32 = vpop.permute.xlu1 %4271  ;;  %v12190_v23 = vpop.permute.xlu0 %1362 }
 0x5d1   : > { %15935 = vst [vmem:[#allocation624_spill] sm:$0xff] %v12188_v32  ;;  %15936 = vst [vmem:[#allocation625_spill] sm:$0xff] %v12190_v23  ;;  %4527 = vperm.xlu1 %8980, %v9213_v59   ;;  %1682 = vperm.xlu0 %8982, %v9214_v31   ;;  %v9216_v23 = vld [vmem:[%s15293_s1 + $0x700] sm:$0xff]  ;;  %v9217_v31 = vld [vmem:[%s15293_s1 + $0x6f8] sm:$0xff] }
 0x5d4   : > { %v12198_v9 = vpop.permute.xlu1 %4279  ;;  %v12200_v38 = vpop.permute.xlu0 %1372 }
 0x5d5   : > { %15937 = vst [vmem:[#allocation626_spill] sm:$0xff] %v12198_v9  ;;  %15938 = vst [vmem:[#allocation627_spill] sm:$0xff] %v12200_v38  ;;  %4535 = vperm.xlu1 %8980, %v9215_v62   ;;  %1692 = vperm.xlu0 %8982, %v9216_v23   ;;  %v9218_v9 = vld [vmem:[%s15293_s1 + $0x710] sm:$0xff]  ;;  %v9219_v23 = vld [vmem:[%s15293_s1 + $0x708] sm:$0xff] }
 0x5d8   : > { %v12208_v59 = vpop.permute.xlu1 %4287  ;;  %v12210_v32 = vpop.permute.xlu0 %1382 }
 0x5d9   : > { %15939 = vst [vmem:[#allocation628_spill] sm:$0xff] %v12208_v59  ;;  %15940 = vst [vmem:[#allocation629_spill] sm:$0xff] %v12210_v32  ;;  %4543 = vperm.xlu1 %8980, %v9217_v31   ;;  %1702 = vperm.xlu0 %8982, %v9218_v9   ;;  %v9220_v59 = vld [vmem:[%s15293_s1 + $0x720] sm:$0xff]  ;;  %v9221_v9 = vld [vmem:[%s15293_s1 + $0x718] sm:$0xff] }
 0x5dc   : > { %v12218_v62 = vpop.permute.xlu1 %4295  ;;  %v12220_v38 = vpop.permute.xlu0 %1392 }
 0x5dd   : > { %15941 = vst [vmem:[#allocation630_spill] sm:$0xff] %v12218_v62  ;;  %15942 = vst [vmem:[#allocation631_spill] sm:$0xff] %v12220_v38  ;;  %4551 = vperm.xlu1 %8980, %v9219_v23   ;;  %1712 = vperm.xlu0 %8982, %v9220_v59   ;;  %v9222_v38 = vld [vmem:[%s15293_s1 + $0x730] sm:$0xff]  ;;  %v9223_v59 = vld [vmem:[%s15293_s1 + $0x728] sm:$0xff] }
 0x5e0   : > { %v12228_v31 = vpop.permute.xlu1 %4303  ;;  %v12230_v32 = vpop.permute.xlu0 %1402 }
 0x5e1   : > { %15943 = vst [vmem:[#allocation632_spill] sm:$0xff] %v12228_v31  ;;  %15944 = vst [vmem:[#allocation633_spill] sm:$0xff] %v12230_v32  ;;  %4559 = vperm.xlu1 %8980, %v9221_v9   ;;  %1722 = vperm.xlu0 %8982, %v9222_v38   ;;  %v9224_v32 = vld [vmem:[%s15293_s1 + $0x740] sm:$0xff]  ;;  %v9225_v38 = vld [vmem:[%s15293_s1 + $0x738] sm:$0xff] }
 0x5e4   : > { %v12238_v23 = vpop.permute.xlu1 %4311  ;;  %v12240_v62 = vpop.permute.xlu0 %1412 }
 0x5e5   : > { %15945 = vst [vmem:[#allocation634_spill] sm:$0xff] %v12238_v23  ;;  %15946 = vst [vmem:[#allocation635_spill] sm:$0xff] %v12240_v62  ;;  %4567 = vperm.xlu1 %8980, %v9223_v59   ;;  %1732 = vperm.xlu0 %8982, %v9224_v32   ;;  %v9226_v62 = vld [vmem:[%s15293_s1 + $0x750] sm:$0xff]  ;;  %v9227_v32 = vld [vmem:[%s15293_s1 + $0x748] sm:$0xff] }
 0x5e8   : > { %v12248_v9 = vpop.permute.xlu1 %4319  ;;  %v12250_v31 = vpop.permute.xlu0 %1422 }
 0x5e9   : > { %15947 = vst [vmem:[#allocation636_spill] sm:$0xff] %v12248_v9  ;;  %15948 = vst [vmem:[#allocation637_spill] sm:$0xff] %v12250_v31  ;;  %4575 = vperm.xlu1 %8980, %v9225_v38   ;;  %1742 = vperm.xlu0 %8982, %v9226_v62   ;;  %v9228_v31 = vld [vmem:[%s15293_s1 + $0x760] sm:$0xff]  ;;  %v9229_v62 = vld [vmem:[%s15293_s1 + $0x758] sm:$0xff] }
 0x5ec   : > { %v12258_v59 = vpop.permute.xlu1 %4327  ;;  %v12260_v23 = vpop.permute.xlu0 %1432 }
 0x5ed   : > { %15949 = vst [vmem:[#allocation638_spill] sm:$0xff] %v12258_v59  ;;  %15950 = vst [vmem:[#allocation639_spill] sm:$0xff] %v12260_v23  ;;  %4583 = vperm.xlu1 %8980, %v9227_v32   ;;  %1752 = vperm.xlu0 %8982, %v9228_v31   ;;  %v9230_v23 = vld [vmem:[%s15293_s1 + $0x770] sm:$0xff]  ;;  %v9231_v31 = vld [vmem:[%s15293_s1 + $0x768] sm:$0xff] }
 0x5f0   : > { %v12268_v38 = vpop.permute.xlu1 %4335  ;;  %v12270_v9 = vpop.permute.xlu0 %1442 }
 0x5f1   : > { %15951 = vst [vmem:[#allocation640_spill] sm:$0xff] %v12268_v38  ;;  %15952 = vst [vmem:[#allocation641_spill] sm:$0xff] %v12270_v9  ;;  %4591 = vperm.xlu1 %8980, %v9229_v62   ;;  %1762 = vperm.xlu0 %8982, %v9230_v23   ;;  %v9232_v9 = vld [vmem:[%s15293_s1 + $0x780] sm:$0xff]  ;;  %v9233_v23 = vld [vmem:[%s15293_s1 + $0x778] sm:$0xff] }
 0x5f4   : > { %v12278_v32 = vpop.permute.xlu1 %4343  ;;  %v12280_v59 = vpop.permute.xlu0 %1452 }
 0x5f5   : > { %15953 = vst [vmem:[#allocation642_spill] sm:$0xff] %v12278_v32  ;;  %15954 = vst [vmem:[#allocation643_spill] sm:$0xff] %v12280_v59  ;;  %4599 = vperm.xlu1 %8980, %v9231_v31   ;;  %1772 = vperm.xlu0 %8982, %v9232_v9   ;;  %v9234_v32 = vld [vmem:[%s15293_s1 + $0x790] sm:$0xff]  ;;  %v9235_v9 = vld [vmem:[%s15293_s1 + $0x788] sm:$0xff] }
 0x5f8   : > { %v12288_v62 = vpop.permute.xlu1 %4351  ;;  %v12290_v38 = vpop.permute.xlu0 %1462 }
 0x5f9   : > { %15955 = vst [vmem:[#allocation644_spill] sm:$0xff] %v12288_v62  ;;  %15956 = vst [vmem:[#allocation645_spill] sm:$0xff] %v12290_v38  ;;  %4607 = vperm.xlu1 %8980, %v9233_v23   ;;  %1782 = vperm.xlu0 %8982, %v9234_v32   ;;  %v9236_v62 = vld [vmem:[%s15293_s1 + $0x7a0] sm:$0xff]  ;;  %v9237_v32 = vld [vmem:[%s15293_s1 + $0x798] sm:$0xff] }
 0x5fc   : > { %v12298_v31 = vpop.permute.xlu1 %4359  ;;  %v12300_v59 = vpop.permute.xlu0 %1472 }
 0x5fd   : > { %15957 = vst [vmem:[#allocation646_spill] sm:$0xff] %v12298_v31  ;;  %15958 = vst [vmem:[#allocation647_spill] sm:$0xff] %v12300_v59  ;;  %4615 = vperm.xlu1 %8980, %v9235_v9   ;;  %1792 = vperm.xlu0 %8982, %v9236_v62   ;;  %v9238_v59 = vld [vmem:[%s15293_s1 + $0x7b0] sm:$0xff]  ;;  %v9239_v62 = vld [vmem:[%s15293_s1 + $0x7a8] sm:$0xff] }
 0x600   : > { %v12308_v23 = vpop.permute.xlu1 %4367  ;;  %v12310_v38 = vpop.permute.xlu0 %1482 }
 0x601   : > { %15959 = vst [vmem:[#allocation648_spill] sm:$0xff] %v12308_v23  ;;  %15960 = vst [vmem:[#allocation649_spill] sm:$0xff] %v12310_v38  ;;  %4623 = vperm.xlu1 %8980, %v9237_v32   ;;  %1802 = vperm.xlu0 %8982, %v9238_v59   ;;  %v9240_v38 = vld [vmem:[%s15293_s1 + $0x7c0] sm:$0xff]  ;;  %v9241_v59 = vld [vmem:[%s15293_s1 + $0x7b8] sm:$0xff] }
 0x604   : > { %v12318_v9 = vpop.permute.xlu1 %4375  ;;  %v12320_v31 = vpop.permute.xlu0 %1492 }
 0x605   : > { %15961 = vst [vmem:[#allocation650_spill] sm:$0xff] %v12318_v9  ;;  %15962 = vst [vmem:[#allocation651_spill] sm:$0xff] %v12320_v31  ;;  %4631 = vperm.xlu1 %8980, %v9239_v62   ;;  %1812 = vperm.xlu0 %8982, %v9240_v38   ;;  %v9242_v31 = vld [vmem:[%s15293_s1 + $0x7d0] sm:$0xff]  ;;  %v9243_v38 = vld [vmem:[%s15293_s1 + $0x7c8] sm:$0xff] }
 0x608   : > { %v12328_v32 = vpop.permute.xlu1 %4383  ;;  %v12330_v23 = vpop.permute.xlu0 %1502 }
 0x609   : > { %15963 = vst [vmem:[#allocation652_spill] sm:$0xff] %v12328_v32  ;;  %15964 = vst [vmem:[#allocation653_spill] sm:$0xff] %v12330_v23  ;;  %4639 = vperm.xlu1 %8980, %v9241_v59   ;;  %1822 = vperm.xlu0 %8982, %v9242_v31   ;;  %v9244_v23 = vld [vmem:[%s15293_s1 + $0x7e0] sm:$0xff]  ;;  %v9245_v31 = vld [vmem:[%s15293_s1 + $0x7d8] sm:$0xff] }
 0x60c   : > { %v12338_v62 = vpop.permute.xlu1 %4391  ;;  %v12340_v9 = vpop.permute.xlu0 %1512 }
 0x60d   : > { %15965 = vst [vmem:[#allocation654_spill] sm:$0xff] %v12338_v62  ;;  %15966 = vst [vmem:[#allocation655_spill] sm:$0xff] %v12340_v9  ;;  %4647 = vperm.xlu1 %8980, %v9243_v38   ;;  %1832 = vperm.xlu0 %8982, %v9244_v23   ;;  %v9246_v9 = vld [vmem:[%s15293_s1 + $0x7f0] sm:$0xff]  ;;  %v5190_v38 = vld [vmem:[%s15294_s2] sm:$0xff] }
 0x610   : > { %v12348_v59 = vpop.permute.xlu1 %4399  ;;  %v12350_v32 = vpop.permute.xlu0 %1522 }
 0x611   : > { %15967 = vst [vmem:[#allocation656_spill] sm:$0xff] %v12348_v59  ;;  %15968 = vst [vmem:[#allocation657_spill] sm:$0xff] %v12350_v32  ;;  %4655 = vperm.xlu1 %8980, %v9245_v31   ;;  %1842 = vperm.xlu0 %8982, %v9246_v9   ;;  %v9247_v32 = vld [vmem:[%s15293_s1 + $0x7e8] sm:$0xff]  ;;  %v5193_v31 = vld [vmem:[%s15294_s2 + $0x18] sm:$0xff] }
 0x614   : > { %v12361_v62 = vpop.permute.xlu1 %4407  ;;  %v12363_v23 = vpop.permute.xlu0 %1532 }
 0x615   : > { %15969 = vst [vmem:[#allocation658_spill] sm:$0xff] %v12361_v62  ;;  %15970 = vst [vmem:[#allocation659_spill] sm:$0xff] %v12363_v23  ;;  %4663 = vperm.xlu1 %8980, %v9247_v32   ;;  %5448 = vperm.xlu0 %8982, %v5190_v38   ;;  %v9248_v62 = vld [vmem:[%s15293_s1 + $0x7f8] sm:$0xff]  ;;  %v5195_v23 = vld [vmem:[%s15294_s2 + $0x28] sm:$0xff] }
 0x616   : > { %v5191_v32 = vld [vmem:[%s15294_s2 + $0x8] sm:$0xff] }
 0x618   : > { %v12371_v59 = vpop.permute.xlu1 %4415  ;;  %v12373_v9 = vpop.permute.xlu0 %1542 }
 0x619   : > { %15971 = vst [vmem:[#allocation660_spill] sm:$0xff] %v12371_v59  ;;  %15972 = vst [vmem:[#allocation661_spill] sm:$0xff] %v12373_v9  ;;  %4671 = vperm.xlu1 %8980, %v9248_v62   ;;  %5463 = vperm.xlu0 %8982, %v5193_v31   ;;  %v5197_v62 = vld [vmem:[%s15294_s2 + $0x38] sm:$0xff]  ;;  %v5192_v31 = vld [vmem:[%s15294_s2 + $0x10] sm:$0xff] }
 0x61c   : > { %v12384_v38 = vpop.permute.xlu1 %4423  ;;  %v12386_v15 = vpop.permute.xlu0 %1552 }
 0x61d   : > { %15973 = vst [vmem:[#allocation662_spill] sm:$0xff] %v12384_v38  ;;  %15974 = vst [vmem:[#allocation663_spill] sm:$0xff] %v12386_v15  ;;  %8983 = vset.pattern.permute.xlu1 %v15716_v58  ;;  %5473 = vperm.xlu0 %8982, %v5195_v23   ;;  %v5199_v58 = vld [vmem:[%s15294_s2 + $0x48] sm:$0xff]  ;;  %v5194_v23 = vld [vmem:[%s15294_s2 + $0x20] sm:$0xff] }
 0x61e   : > { %5453 = vperm.xlu1 %8983, %v5191_v32  }
 0x620   : > { %v12395_v9 = vpop.permute.xlu1 %4431  ;;  %v12397_v59 = vpop.permute.xlu0 %1562 }
 0x621   : > { %15975 = vst [vmem:[#allocation664_spill] sm:$0xff] %v12395_v9  ;;  %15976 = vst [vmem:[#allocation665_spill] sm:$0xff] %v12397_v59  ;;  %5483 = vperm.xlu0 %8982, %v5197_v62   ;;  %v5206_v59 = vld [vmem:[%s15294_s2 + $0x80] sm:$0xff]  ;;  %v5196_v62 = vld [vmem:[%s15294_s2 + $0x30] sm:$0xff] }
 0x622   : > { %5458 = vperm.xlu1 %8983, %v5192_v31  }
 0x624   : > { %v12405_v32 = vpop.permute.xlu1 %4439  ;;  %v12407_v15 = vpop.permute.xlu0 %1572 }
 0x625   : > { %15977 = vst [vmem:[#allocation666_spill] sm:$0xff] %v12405_v32  ;;  %15978 = vst [vmem:[#allocation667_spill] sm:$0xff] %v12407_v15  ;;  %5493 = vperm.xlu0 %8982, %v5199_v58   ;;  %v5208_v15 = vld [vmem:[%s15294_s2 + $0x90] sm:$0xff]  ;;  %v5198_v58 = vld [vmem:[%s15294_s2 + $0x40] sm:$0xff] }
 0x626   : > { %5468 = vperm.xlu1 %8983, %v5194_v23  }
 0x628   : > { %v12415_v31 = vpop.permute.xlu1 %4447  ;;  %v12417_v9 = vpop.permute.xlu0 %1582 }
 0x629   : > { %15979 = vst [vmem:[#allocation668_spill] sm:$0xff] %v12415_v31  ;;  %15980 = vst [vmem:[#allocation669_spill] sm:$0xff] %v12417_v9  ;;  %5528 = vperm.xlu0 %8982, %v5206_v59   ;;  %v5210_v9 = vld [vmem:[%s15294_s2 + $0xa0] sm:$0xff]  ;;  %v5200_v59 = vld [vmem:[%s15294_s2 + $0x50] sm:$0xff] }
 0x62a   : > { %5478 = vperm.xlu1 %8983, %v5196_v62  }
 0x62c   : > { %v12425_v23 = vpop.permute.xlu1 %4455  ;;  %v12427_v32 = vpop.permute.xlu0 %1592 }
 0x62d   : > { %15981 = vst [vmem:[#allocation670_spill] sm:$0xff] %v12425_v23  ;;  %15982 = vst [vmem:[#allocation671_spill] sm:$0xff] %v12427_v32  ;;  %5538 = vperm.xlu0 %8982, %v5208_v15   ;;  %v5212_v32 = vld [vmem:[%s15294_s2 + $0xb0] sm:$0xff]  ;;  %v5207_v15 = vld [vmem:[%s15294_s2 + $0x88] sm:$0xff] }
 0x62e   : > { %5488 = vperm.xlu1 %8983, %v5198_v58  }
 0x630   : > { %v12435_v62 = vpop.permute.xlu1 %4463  ;;  %v12437_v31 = vpop.permute.xlu0 %1602 }
 0x631   : > { %15983 = vst [vmem:[#allocation672_spill] sm:$0xff] %v12435_v62  ;;  %15984 = vst [vmem:[#allocation673_spill] sm:$0xff] %v12437_v31  ;;  %5548 = vperm.xlu0 %8982, %v5210_v9   ;;  %v5214_v31 = vld [vmem:[%s15294_s2 + $0xc0] sm:$0xff]  ;;  %v5209_v9 = vld [vmem:[%s15294_s2 + $0x98] sm:$0xff] }
 0x632   : > { %5498 = vperm.xlu1 %8983, %v5200_v59  }
 0x634   : > { %v12445_v58 = vpop.permute.xlu1 %4471  ;;  %v12447_v23 = vpop.permute.xlu0 %1612 }
 0x635   : > { %15985 = vst [vmem:[#allocation674_spill] sm:$0xff] %v12445_v58  ;;  %15986 = vst [vmem:[#allocation675_spill] sm:$0xff] %v12447_v23  ;;  %5558 = vperm.xlu0 %8982, %v5212_v32   ;;  %v5216_v58 = vld [vmem:[%s15294_s2 + $0xd0] sm:$0xff]  ;;  %v5211_v32 = vld [vmem:[%s15294_s2 + $0xa8] sm:$0xff] }
 0x636   : > { %5533 = vperm.xlu1 %8983, %v5207_v15  }
 0x638   : > { %v12455_v59 = vpop.permute.xlu1 %4479  ;;  %v12457_v62 = vpop.permute.xlu0 %1622 }
 0x639   : > { %15987 = vst [vmem:[#allocation676_spill] sm:$0xff] %v12455_v59  ;;  %15988 = vst [vmem:[#allocation677_spill] sm:$0xff] %v12457_v62  ;;  %5568 = vperm.xlu0 %8982, %v5214_v31   ;;  %v5201_v59 = vld [vmem:[%s15294_s2 + $0x58] sm:$0xff] }
 0x63a   : > { %5543 = vperm.xlu1 %8983, %v5209_v9   ;;  %v5213_v31 = vld [vmem:[%s15294_s2 + $0xb8] sm:$0xff] }
 0x63c   : > { %v12465_v15 = vpop.permute.xlu1 %4487  ;;  %v12467_v38 = vpop.permute.xlu0 %1632 }
 0x63d   : > { %15989 = vst [vmem:[#allocation678_spill] sm:$0xff] %v12465_v15  ;;  %15990 = vst [vmem:[#allocation679_spill] sm:$0xff] %v12467_v38  ;;  %5578 = vperm.xlu0 %8982, %v5216_v58   ;;  %v5219_v38 = vld [vmem:[%s15294_s2 + $0xe8] sm:$0xff] }
 0x63e   : > { %5553 = vperm.xlu1 %8983, %v5211_v32   ;;  %v5215_v58 = vld [vmem:[%s15294_s2 + $0xc8] sm:$0xff] }
 0x640   : > { %v12475_v9 = vpop.permute.xlu1 %4495  ;;  %v12477_v62 = vpop.permute.xlu0 %1642 }
 0x641   : > { %15991 = vst [vmem:[#allocation680_spill] sm:$0xff] %v12475_v9  ;;  %15992 = vst [vmem:[#allocation681_spill] sm:$0xff] %v12477_v62  ;;  %5503 = vperm.xlu0 %8982, %v5201_v59   ;;  %v5203_v62 = vld [vmem:[%s15294_s2 + $0x68] sm:$0xff]  ;;  %v5217_v59 = vld [vmem:[%s15294_s2 + $0xd8] sm:$0xff] }
 0x642   : > { %5563 = vperm.xlu1 %8983, %v5213_v31  }
 0x644   : > { %v12485_v32 = vpop.permute.xlu1 %4503  ;;  %v12487_v15 = vpop.permute.xlu0 %1652 }
 0x645   : > { %15993 = vst [vmem:[#allocation682_spill] sm:$0xff] %v12485_v32  ;;  %15994 = vst [vmem:[#allocation683_spill] sm:$0xff] %v12487_v15  ;;  %5593 = vperm.xlu0 %8982, %v5219_v38   ;;  %v5221_v15 = vld [vmem:[%s15294_s2 + $0xf8] sm:$0xff]  ;;  %v5218_v38 = vld [vmem:[%s15294_s2 + $0xe0] sm:$0xff] }
 0x646   : > { %5573 = vperm.xlu1 %8983, %v5215_v58  }
 0x648   : > { %v12495_v31 = vpop.permute.xlu1 %4511  ;;  %v12497_v9 = vpop.permute.xlu0 %1662 }
 0x649   : > { %15995 = vst [vmem:[#allocation684_spill] sm:$0xff] %v12495_v31  ;;  %15996 = vst [vmem:[#allocation685_spill] sm:$0xff] %v12497_v9  ;;  %5513 = vperm.xlu0 %8982, %v5203_v62   ;;  %v5205_v9 = vld [vmem:[%s15294_s2 + $0x78] sm:$0xff]  ;;  %v5202_v62 = vld [vmem:[%s15294_s2 + $0x60] sm:$0xff] }
 0x64a   : > { %5583 = vperm.xlu1 %8983, %v5217_v59  }
 0x64c   : > { %v12505_v58 = vpop.permute.xlu1 %4519  ;;  %v12507_v32 = vpop.permute.xlu0 %1672 }
 0x64d   : > { %15997 = vst [vmem:[#allocation686_spill] sm:$0xff] %v12505_v58  ;;  %15998 = vst [vmem:[#allocation687_spill] sm:$0xff] %v12507_v32  ;;  %5603 = vperm.xlu0 %8982, %v5221_v15   ;;  %v5239_v32 = vld [vmem:[%s15294_s2 + $0x188] sm:$0xff]  ;;  %v5220_v15 = vld [vmem:[%s15294_s2 + $0xf0] sm:$0xff] }
 0x64e   : > { %5588 = vperm.xlu1 %8983, %v5218_v38  }
 0x650   : > { %v12515_v59 = vpop.permute.xlu1 %4527  ;;  %v12517_v31 = vpop.permute.xlu0 %1682 }
 0x651   : > { %15999 = vst [vmem:[#allocation688_spill] sm:$0xff] %v12515_v59  ;;  %16000 = vst [vmem:[#allocation689_spill] sm:$0xff] %v12517_v31  ;;  %5523 = vperm.xlu0 %8982, %v5205_v9   ;;  %v5223_v31 = vld [vmem:[%s15294_s2 + $0x108] sm:$0xff]  ;;  %v5204_v9 = vld [vmem:[%s15294_s2 + $0x70] sm:$0xff] }
 0x652   : > { %5508 = vperm.xlu1 %8983, %v5202_v62  }
 0x654   : > { %v12525_v38 = vpop.permute.xlu1 %4535  ;;  %v12527_v58 = vpop.permute.xlu0 %1692 }
 0x655   : > { %16001 = vst [vmem:[#allocation690_spill] sm:$0xff] %v12525_v38  ;;  %16002 = vst [vmem:[#allocation691_spill] sm:$0xff] %v12527_v58  ;;  %5693 = vperm.xlu0 %8982, %v5239_v32   ;;  %v5241_v38 = vld [vmem:[%s15294_s2 + $0x198] sm:$0xff]  ;;  %v1850_v32 = vlaneseq }
 0x656   : > { %5598 = vperm.xlu1 %8983, %v5220_v15   ;;  %v5238_v15 = vld [vmem:[%s15294_s2 + $0x180] sm:$0xff] }
 0x658   : > { %v12535_v62 = vpop.permute.xlu1 %4543  ;;  %v12537_v59 = vpop.permute.xlu0 %1702 }
 0x659   : > { %16003 = vst [vmem:[#allocation692_spill] sm:$0xff] %v12535_v62  ;;  %16004 = vst [vmem:[#allocation693_spill] sm:$0xff] %v12537_v59  ;;  %5613 = vperm.xlu0 %8982, %v5223_v31   ;;  %v7382_v62 = vunpack.c.l.s4 %v9316_v18  ;;  %v5225_v31 = vld [vmem:[%s15294_s2 + $0x118] sm:$0xff]  ;;  %v5222_v59 = vld [vmem:[%s15294_s2 + $0x100] sm:$0xff] }
 0x65a   : > { %5518 = vperm.xlu1 %8983, %v5204_v9   ;;  %v12552_v9 = vshrl.u32 %v1850_v32, 7  ;;  %v5243_v18 = vld [vmem:[%s15294_s2 + $0x1a8] sm:$0xff]  ;;  %v12570_v32 = vld [vmem:[%s15295_s3] sm:$0xff] }
 0x65b   : > { %v7383_v25 = vunpack.c.0.s8 %v7382_v62  ;;  %16011 = vst [vmem:[#allocation700_spill] sm:$0xff] %v12570_v32  ;;  %v5240_v62 = vld [vmem:[%s15294_s2 + $0x190] sm:$0xff] }
 0x65c   : > { %v12545_v58 = vpop.permute.xlu1 %4551  ;;  %v12547_v23 = vpop.permute.xlu0 %1712  ;;  %16007 = vst [vmem:[#allocation696_spill] sm:$0xff] %v12552_v9 }
 0x65d   : > { %16005 = vst [vmem:[#allocation694_spill] sm:$0xff] %v12545_v58  ;;  %16006 = vst [vmem:[#allocation695_spill] sm:$0xff] %v12547_v23  ;;  %5703 = vperm.xlu0 %8982, %v5241_v38   ;;  %v12562_v38 = vsub.s32 %v7383_v25, %v12552_v9  ;;  %v5224_v23 = vld [vmem:[%s15294_s2 + $0x110] sm:$0xff] }
 0x65e   : > { %5688 = vperm.xlu1 %8983, %v5238_v15  }
 0x65f   : > { %16010 = vst [vmem:[#allocation699_spill] sm:$0xff] %v12562_v38  ;;  %v12577_v15 = vrot.slane %v12570_v32, %v12562_v38  ;;  %v5236_v32 = vld [vmem:[%s15294_s2 + $0x170] sm:$0xff] }
 0x660   : > { %v12557_v22 = vpop.permute.xlu1 %4559  ;;  %v12559_v58 = vpop.permute.xlu0 %1722 }
 0x661   : > { %16008 = vst [vmem:[#allocation697_spill] sm:$0xff] %v12557_v22  ;;  %16009 = vst [vmem:[#allocation698_spill] sm:$0xff] %v12559_v58  ;;  %5623 = vperm.xlu0 %8982, %v5225_v31   ;;  %v7395_v31 = vcombine.high %v12577_v15, %v12577_v15  ;;  %v5227_v58 = vld [vmem:[%s15294_s2 + $0x128] sm:$0xff] }
 0x662   : > { %5608 = vperm.xlu1 %8983, %v5222_v59   ;;  %16012 = vst [vmem:[#allocation701_spill] sm:$0xff] %v12577_v15 }
 0x663   : > { %7496 = vmatprep.mubr.bf16.mxu1 %v7395_v31  ;;  %v5229_v31 = vld [vmem:[%s15294_s2 + $0x138] sm:$0xff] }
 0x664   : > { %v12579_v25 = vpop.permute.xlu1 %4567  ;;  %v12581_v59 = vpop.permute.xlu0 %1732 }
 0x665   : > { %16013 = vst [vmem:[#allocation702_spill] sm:$0xff] %v12579_v25  ;;  %16014 = vst [vmem:[#allocation703_spill] sm:$0xff] %v12581_v59  ;;  %5713 = vperm.xlu0 %8982, %v5243_v18   ;;  %v5245_v18 = vld [vmem:[%s15294_s2 + $0x1b8] sm:$0xff] }
 0x666   : > { %5698 = vperm.xlu1 %8983, %v5240_v62   ;;  %v5242_v62 = vld [vmem:[%s15294_s2 + $0x1a0] sm:$0xff] }
 0x668   : > { %v12591_v22 = vpop.permute.xlu1 %4575  ;;  %v12593_v38 = vpop.permute.xlu0 %1742 }
 0x669   : > { %16015 = vst [vmem:[#allocation704_spill] sm:$0xff] %v12591_v22  ;;  %16016 = vst [vmem:[#allocation705_spill] sm:$0xff] %v12593_v38  ;;  %5633 = vperm.xlu0 %8982, %v5227_v58  }
 0x66a   : > { %5618 = vperm.xlu1 %8983, %v5224_v23   ;;  %v5226_v23 = vld [vmem:[%s15294_s2 + $0x120] sm:$0xff] }
 0x66c   : > { %v12601_v59 = vpop.permute.xlu1 %4583  ;;  %v12603_v25 = vpop.permute.xlu0 %1752 }
 0x66d   : > { %16017 = vst [vmem:[#allocation706_spill] sm:$0xff] %v12601_v59  ;;  %16018 = vst [vmem:[#allocation707_spill] sm:$0xff] %v12603_v25  ;;  %5723 = vperm.xlu0 %8982, %v5245_v18   ;;  %v5247_v25 = vld [vmem:[%s15294_s2 + $0x1c8] sm:$0xff]  ;;  %v5244_v18 = vld [vmem:[%s15294_s2 + $0x1b0] sm:$0xff] }
 0x66e   : > { %5708 = vperm.xlu1 %8983, %v5242_v62  }
 0x670   : > { %v12611_v58 = vpop.permute.xlu1 %4591  ;;  %v12613_v38 = vpop.permute.xlu0 %1762 }
 0x671   : > { %16019 = vst [vmem:[#allocation708_spill] sm:$0xff] %v12611_v58  ;;  %16020 = vst [vmem:[#allocation709_spill] sm:$0xff] %v12613_v38  ;;  %5643 = vperm.xlu0 %8982, %v5229_v31   ;;  %v5231_v38 = vld [vmem:[%s15294_s2 + $0x148] sm:$0xff]  ;;  %v5228_v31 = vld [vmem:[%s15294_s2 + $0x130] sm:$0xff] }
 0x672   : > { %5628 = vperm.xlu1 %8983, %v5226_v23  }
 0x674   : > { %v12621_v62 = vpop.permute.xlu1 %4599  ;;  %v12623_v59 = vpop.permute.xlu0 %1772 }
 0x675   : > { %16021 = vst [vmem:[#allocation710_spill] sm:$0xff] %v12621_v62  ;;  %16022 = vst [vmem:[#allocation711_spill] sm:$0xff] %v12623_v59  ;;  %5733 = vperm.xlu0 %8982, %v5247_v25   ;;  %v5249_v62 = vld [vmem:[%s15294_s2 + $0x1d8] sm:$0xff]  ;;  %v5246_v25 = vld [vmem:[%s15294_s2 + $0x1c0] sm:$0xff] }
 0x676   : > { %5718 = vperm.xlu1 %8983, %v5244_v18   ;;  %v5252_v59 = vld [vmem:[%s15294_s2 + $0x1f0] sm:$0xff] }
 0x678   : > { %v12631_v23 = vpop.permute.xlu1 %4607  ;;  %v12633_v58 = vpop.permute.xlu0 %1782 }
 0x679   : > { %16023 = vst [vmem:[#allocation712_spill] sm:$0xff] %v12631_v23  ;;  %16024 = vst [vmem:[#allocation713_spill] sm:$0xff] %v12633_v58  ;;  %5653 = vperm.xlu0 %8982, %v5231_v38   ;;  %v5233_v38 = vld [vmem:[%s15294_s2 + $0x158] sm:$0xff] }
 0x67a   : > { %5638 = vperm.xlu1 %8983, %v5228_v31   ;;  %v5230_v31 = vld [vmem:[%s15294_s2 + $0x140] sm:$0xff] }
 0x67c   : > { %v12641_v18 = vpop.permute.xlu1 %4615  ;;  %v12643_v22 = vpop.permute.xlu0 %1792 }
 0x67d   : > { %16025 = vst [vmem:[#allocation714_spill] sm:$0xff] %v12641_v18  ;;  %16026 = vst [vmem:[#allocation715_spill] sm:$0xff] %v12643_v22  ;;  %5743 = vperm.xlu0 %8982, %v5249_v62   ;;  %v5251_v62 = vld [vmem:[%s15294_s2 + $0x1e8] sm:$0xff] }
 0x67e   : > { %5728 = vperm.xlu1 %8983, %v5246_v25   ;;  %v5248_v25 = vld [vmem:[%s15294_s2 + $0x1d0] sm:$0xff] }
 0x680   : > { %v12651_v23 = vpop.permute.xlu1 %4623  ;;  %v12653_v58 = vpop.permute.xlu0 %1802 }
 0x681   : > { %16027 = vst [vmem:[#allocation716_spill] sm:$0xff] %v12651_v23  ;;  %16028 = vst [vmem:[#allocation717_spill] sm:$0xff] %v12653_v58  ;;  %5663 = vperm.xlu0 %8982, %v5233_v38   ;;  %v5235_v38 = vld [vmem:[%s15294_s2 + $0x168] sm:$0xff] }
 0x682   : > { %5648 = vperm.xlu1 %8983, %v5230_v31   ;;  %v5232_v31 = vld [vmem:[%s15294_s2 + $0x150] sm:$0xff] }
 0x684   : > { %v12661_v22 = vpop.permute.xlu1 %4631  ;;  %v12663_v18 = vpop.permute.xlu0 %1812 }
 0x685   : > { %16029 = vst [vmem:[#allocation718_spill] sm:$0xff] %v12661_v22  ;;  %16030 = vst [vmem:[#allocation719_spill] sm:$0xff] %v12663_v18  ;;  %5753 = vperm.xlu0 %8982, %v5251_v62   ;;  %v5253_v62 = vld [vmem:[%s15294_s2 + $0x1f8] sm:$0xff] }
 0x686   : > { %5738 = vperm.xlu1 %8983, %v5248_v25   ;;  %v5250_v25 = vld [vmem:[%s15294_s2 + $0x1e0] sm:$0xff] }
 0x688   : > { %v12672_v58 = vpop.permute.xlu1 %4639  ;;  %v12674_v23 = vpop.permute.xlu0 %1822 }
 0x689   : > { %16031 = vst [vmem:[#allocation720_spill] sm:$0xff] %v12672_v58  ;;  %16032 = vst [vmem:[#allocation721_spill] sm:$0xff] %v12674_v23  ;;  %5673 = vperm.xlu0 %8982, %v5235_v38   ;;  %v5237_v38 = vld [vmem:[%s15294_s2 + $0x178] sm:$0xff]  ;;  %v3136_v58 = vsub.s32 1, %v12552_v9 }
 0x68a   : > { %5658 = vperm.xlu1 %8983, %v5232_v31   ;;  %v5234_v31 = vld [vmem:[%s15294_s2 + $0x160] sm:$0xff] }
 0x68c   : > { %v12685_v18 = vpop.permute.xlu1 %4647  ;;  %v12687_v22 = vpop.permute.xlu0 %1832 }
 0x68d   : > { %16033 = vst [vmem:[#allocation722_spill] sm:$0xff] %v12685_v18  ;;  %16034 = vst [vmem:[#allocation723_spill] sm:$0xff] %v12687_v22  ;;  %5763 = vperm.xlu0 %8982, %v5253_v62   ;;  %v1852_v62 = vsub.s32 0, %v12552_v9  ;;  %v313_v22 = vld [vmem:[%s307_s13] sm:$0x7]  ;;  %s9319_s13 = smov [#allocation3]  }
 0x68e   : > { %5748 = vperm.xlu1 %8983, %v5250_v25   ;;  %v5271_v25 = vld [vmem:[%s15294_s2 + $0x288] sm:$0xff]  ;;  %s9253_s18 = sshll.u32 %s9319_s13, 4  ;;  %s9254_s18 = int_to_ptr.vmem [resolvable:$false] %s9253_s18 }
 0x68f   : > { %s9255_s19 = scalar_lea.vmem %s9254_s18, 8192 }
 0x690   : > { %v12701_v23 = vpop.permute.xlu1 %4655  ;;  %v12703_v18 = vpop.permute.xlu0 %1842 }
 0x691   : > { %16035 = vst [vmem:[#allocation724_spill] sm:$0xff] %v12701_v23  ;;  %16036 = vst [vmem:[#allocation725_spill] sm:$0xff] %v12703_v18  ;;  %5683 = vperm.xlu0 %8982, %v5237_v38   ;;  %v12717_v38 = vrot.slane %v313_v22, %v1852_v62  ;;  %v12722_v18 = vrot.slane %v313_v22, %v3136_v58 }
 0x692   : > { %5668 = vperm.xlu1 %8983, %v5234_v31   ;;  %v5255_v31 = vld [vmem:[%s15294_s2 + $0x208] sm:$0xff] }
 0x693   : > { %16039 = vst [vmem:[#allocation728_spill] sm:$0xff] %v12722_v18  ;;  %v12733_v62 = vmul.f32 %v12717_v38, %v9519_v36  ;;  %v12740_v58 = vmul.f32 %v12722_v18, %v9521_v37  ;;  %v5270_v36 = vld [vmem:[%s15294_s2 + $0x280] sm:$0xff]  ;;  %v1861_v37 = vmul.f32 %v12717_v38, %v9540_v45  ;;  %v1867_v45 = vmul.f32 %v12717_v38, %v9561_v54 }
 0x694   : > { %v12713_v15 = vpop.permute.xlu1 %4663  ;;  %v12715_v23 = vpop.permute.xlu0 %5448  ;;  %v1873_v54 = vmul.f32 %v12717_v38, %v9582_v63  ;;  %v1879_v63 = vmul.f32 %v12717_v38, %v9603_v10 }
 0x695   : > { %16037 = vst [vmem:[#allocation726_spill] sm:$0xff] %v12713_v15  ;;  %16038 = vst [vmem:[#allocation727_spill] sm:$0xff] %v12715_v23  ;;  %5853 = vperm.xlu0 %8982, %v5271_v25   ;;  %v1857_v25 = vmul.f32 %v12717_v38, %v9526_v39  ;;  %v3145_v15 = vmul.f32 %v12722_v18, %v9542_v46  ;;  %v1863_v39 = vmul.f32 %v12717_v38, %v9547_v48 }
 0x696   : > { %5758 = vperm.xlu1 %8983, %v5252_v59   ;;  %v5303_v59 = vld [vmem:[%s15294_s2 + $0x388] sm:$0xff]  ;;  %16042 = vst [vmem:[#allocation731_spill] sm:$0xff] %v12740_v58  ;;  %v3151_v46 = vmul.f32 %v12722_v18, %v9563_v55  ;;  %v1871_v48 = vmul.f32 %v12717_v38, %v9575_v60  ;;  %v1875_v55 = vmul.f32 %v12717_v38, %v9589_v4 }
 0x697   : > { %v3159_v60 = vmul.f32 %v12722_v18, %v9591_v5  ;;  %v1881_v5 = vmul.f32 %v12717_v38, %v9610_v13  ;;  %v5273_v13 = vld [vmem:[%s15294_s2 + $0x298] sm:$0xff] }
 0x698   : > { %v12727_v50 = vpop.permute.xlu1 %4671  ;;  %v12729_v26 = vpop.permute.xlu0 %5463 }
 0x699   : > { %16040 = vst [vmem:[#allocation729_spill] sm:$0xff] %v12727_v50  ;;  %16041 = vst [vmem:[#allocation730_spill] sm:$0xff] %v12729_v26  ;;  %5773 = vperm.xlu0 %8982, %v5255_v31   ;;  %v3141_v50 = vmul.f32 %v12722_v18, %v9528_v40  ;;  %v1859_v31 = vmul.f32 %v12717_v38, %v9533_v42  ;;  %v3147_v42 = vmul.f32 %v12722_v18, %v9549_v49 }
 0x69a   : > { %5678 = vperm.xlu1 %8983, %v5236_v32   ;;  %v3143_v32 = vmul.f32 %v12722_v18, %v9535_v43  ;;  %v1865_v26 = vmul.f32 %v12717_v38, %v9554_v51  ;;  %v3149_v43 = vmul.f32 %v12722_v18, %v9556_v52  ;;  %v3155_v49 = vmul.f32 %v12722_v18, %v9577_v61  ;;  %v5287_v52 = vld [vmem:[%s15294_s2 + $0x308] sm:$0xff]  ;;  %v5254_v61 = vld [vmem:[%s15294_s2 + $0x200] sm:$0xff] }
 0x69b   : > { %v4676_v51 = vsub.s32 2, %v12552_v9  ;;  %v3161_v9 = vmul.f32 %v12722_v18, %v9598_v8  ;;  %v3167_v8 = vmul.f32 %v12722_v18, %v9619_v17  ;;  %v12812_v10 = vadd.f32 %v3141_v50, %v1857_v25 }
 0x69c   : > { %v12759_v40 = vpop.permute.xlu0 %5473  ;;  %v12827_v17 = vadd.f32 %v3151_v46, %v1867_v45  ;;  %v3140_v50 = vmul.f32 %v12722_v18, %v10427_v12  ;;  %v12838_v25 = vadd.f32 %v3155_v49, %v1871_v48  ;;  %v12862_v45 = vmul.f32 %v12722_v18, %v9626_v20  ;;  %v5257_v46 = vld [vmem:[%s15294_s2 + $0x218] sm:$0xff] }
 0x69d   : > { %16043 = vst [vmem:[#allocation732_spill] sm:$0xff] %v12759_v40  ;;  %v12769_v23 = vpop.permute.xlu1 %5453  ;;  %6013 = vperm.xlu0 %8982, %v5303_v59   ;;  %v3157_v59 = vmul.f32 %v12722_v18, %v9584_v0  ;;  %v3163_v0 = vmul.f32 %v12722_v18, %v9605_v11  ;;  %v3165_v40 = vmul.f32 %v12722_v18, %v9612_v14 }
 0x69e   : > { %16044 = vst [vmem:[#allocation733_spill] sm:$0xff] %v12769_v23  ;;  %5848 = vperm.xlu1 %8983, %v5270_v36   ;;  %v1877_v36 = vmul.f32 %v12717_v38, %v9596_v7  ;;  %v1883_v7 = vmul.f32 %v12717_v38, %v9617_v16  ;;  %v12814_v11 = vadd.f32 %v3143_v32, %v1859_v31  ;;  %16047 = vst [vmem:[#allocation736_spill] sm:$0xff] %v12827_v17  ;;  %v16072_v17 = vld [vmem:[#allocation486_spill] sm:$0xff] }
 0x69f   : > { %v12818_v58 = vrot.slane %v313_v22, %v4676_v51  ;;  %v12823_v14 = vadd.f32 %v3147_v42, %v1863_v39  ;;  %v12825_v16 = vadd.f32 %v3149_v43, %v1865_v26  ;;  %v12836_v22 = vmul.f32 %v12717_v38, %v9568_v57  ;;  %16052 = vst [vmem:[#allocation741_spill] sm:$0xff] %v12862_v45 }
 0x6a0   : > { %v12800_v4 = vpop.permute.xlu0 %5483  ;;  %v12840_v31 = vadd.f32 %v3157_v59, %v1873_v54  ;;  %v12842_v32 = vadd.f32 %v3159_v60, %v1875_v55  ;;  %v12848_v39 = vadd.f32 %v3163_v0, %v1879_v63  ;;  %v12850_v12 = vadd.f32 %v3165_v40, %v1881_v5  ;;  %v16054_v55 = vld [vmem:[#allocation472_spill] sm:$0xff]  ;;  %v16055_v60 = vld [vmem:[#allocation474_spill] sm:$0xff]  ;;  %v16057_v63 = vld [vmem:[#allocation237_spill] sm:$0xff] }
 0x6a1   : > { %16045 = vst [vmem:[#allocation734_spill] sm:$0xff] %v12800_v4  ;;  %v12810_v23 = vpop.permute.xlu1 %5458  ;;  %5933 = vperm.xlu0 %8982, %v5287_v52   ;;  %v12816_v4 = vadd.f32 %v3145_v15, %v1861_v37  ;;  %16046 = vst [vmem:[#allocation735_spill] sm:$0xff] %v12825_v16  ;;  %v5302_v15 = vld [vmem:[%s15294_s2 + $0x380] sm:$0xff]  ;;  %v12846_v37 = vadd.f32 %v3161_v9, %v1877_v36  ;;  %v12852_v42 = vadd.f32 %v3167_v8, %v1883_v7 }
 0x6a2   : > { %5768 = vperm.xlu1 %8983, %v5254_v61   ;;  %16048 = vst [vmem:[#allocation737_spill] sm:$0xff] %v12836_v22  ;;  %16049 = vst [vmem:[#allocation738_spill] sm:$0xff] %v12850_v12  ;;  %v12858_v57 = vmul.f32 %v12717_v38, %v9624_v19  ;;  %v3139_v9 = vmul.f32 %v12722_v18, %v10420_v47  ;;  %v4679_v40 = vmul.f32 %v12818_v58, %v10422_v30  ;;  %v5286_v30 = vld [vmem:[%s15294_s2 + $0x300] sm:$0xff]  ;;  %v16056_v61 = vld [vmem:[#allocation236_spill] sm:$0xff] }
 0x6a3   : > { %16050 = vst [vmem:[#allocation739_spill] sm:$0xff] %v12852_v42  ;;  %v3396_v48 = vadd.f32 %v3140_v50, %v12733_v62  ;;  %v12874_v19 = vmul.f32 %v12818_v58, %v10429_v53  ;;  %v3142_v20 = vmul.f32 %v12722_v18, %v10434_v44  ;;  %v12880_v47 = vmul.f32 %v12818_v58, %v10436_v41  ;;  %v16058_v0 = vld [vmem:[#allocation238_spill] sm:$0xff]  ;;  %v16060_v50 = vld [vmem:[#allocation239_spill] sm:$0xff] }
 0x6a4   : > { %v12844_v26 = vpop.permute.xlu0 %5493  ;;  %16051 = vst [vmem:[#allocation740_spill] sm:$0xff] %v12858_v57  ;;  %v3144_v49 = vmul.f32 %v12722_v18, %v10441_v3  ;;  %v12889_v62 = vmul.f32 %v12818_v58, %v10443_v21  ;;  %v3146_v53 = vmul.f32 %v12722_v18, %v10448_v35  ;;  %v12895_v44 = vmul.f32 %v12818_v58, %v10450_v34  ;;  %v16059_v7 = vld [vmem:[#allocation470_spill] sm:$0xff]  ;;  %v16065_v22 = vld [vmem:[#allocation471_spill] sm:$0xff]  ;;  %v16066_v57 = vld [vmem:[#allocation485_spill] sm:$0xff] }
 0x6a5   : > { %v12854_v43 = vpop.permute.xlu1 %5468  ;;  %5863 = vperm.xlu0 %8982, %v5273_v13   ;;  %v12901_v51 = vmul.f32 %v12722_v18, %v10455_v1  ;;  %v4694_v3 = vmul.f32 %v12818_v58, %v10471_v33  ;;  %v3154_v21 = vmul.f32 %v12722_v18, %v10476_v29  ;;  %v1855_v52 = vmul.f32 %v12717_v38, %v11410_v6  ;;  %v5305_v29 = vld [vmem:[%s15294_s2 + $0x398] sm:$0xff] }
 0x6a6   : > { %6008 = vperm.xlu1 %8983, %v5302_v15   ;;  %v12913_v34 = vmul.f32 %v12818_v58, %v10478_v28  ;;  %v3156_v1 = vmul.f32 %v12722_v18, %v10483_v27  ;;  %v1854_v54 = vmul.f32 %v12717_v38, %v11400_v56  ;;  %v1870_v33 = vmul.f32 %v12717_v38, %v11480_v2  ;;  %v16053_v28 = vld [vmem:[#allocation235_spill] sm:$0xff] }
 0x6a7   : > { %v12926_v6 = vmul.f32 %v12818_v58, %v10485_v24  ;;  %v3158_v59 = vmul.f32 %v12722_v18, %v16053_v28  ;;  %v1858_v27 = vmul.f32 %v12717_v38, %v16054_v55  ;;  %v1860_v56 = vmul.f32 %v12717_v38, %v16055_v60  ;;  %v5272_v2 = vld [vmem:[%s15294_s2 + $0x290] sm:$0xff] }
 0x6a8   : > { %v12897_v41 = vpop.permute.xlu0 %5528  ;;  %v12939_v36 = vmul.f32 %v12818_v58, %v16056_v61  ;;  %v12943_v24 = vmul.f32 %v12722_v18, %v16057_v63  ;;  %v12947_v5 = vmul.f32 %v12818_v58, %v16058_v0  ;;  %v4678_v8 = vmul.f32 %v12818_v58, %v16059_v7  ;;  %v16063_v55 = vld [vmem:[#allocation476_spill] sm:$0xff]  ;;  %v16064_v63 = vld [vmem:[#allocation731_spill] sm:$0xff] }
 0x6a9   : > { %v12909_v35 = vpop.permute.xlu1 %5478  ;;  %5783 = vperm.xlu0 %8982, %v5257_v46   ;;  %v12953_v15 = vmul.f32 %v12722_v18, %v16060_v50  ;;  %v16061_v46 = vld [vmem:[#allocation240_spill] sm:$0xff]  ;;  %v3395_v28 = vadd.f32 %v3139_v9, %v1855_v52  ;;  %v1862_v60 = vmul.f32 %v12717_v38, %v16063_v55  ;;  %v3394_v0 = vadd.f32 %v16064_v63, %v1854_v54  ;;  %v16067_v52 = vld [vmem:[#allocation241_spill] sm:$0xff] }
 0x6aa   : > { %5928 = vperm.xlu1 %8983, %v5286_v30   ;;  %v12957_v30 = vmul.f32 %v12818_v58, %v16061_v46  ;;  %v4680_v7 = vmul.f32 %v12818_v58, %v16065_v22  ;;  %v3410_v45 = vadd.f32 %v3154_v21, %v1870_v33  ;;  %v1872_v50 = vmul.f32 %v12717_v38, %v16066_v57  ;;  %v5289_v9 = vld [vmem:[%s15294_s2 + $0x318] sm:$0xff]  ;;  %v5256_v22 = vld [vmem:[%s15294_s2 + $0x210] sm:$0xff] }
 0x6ab   : > { %v12973_v46 = vmul.f32 %v12722_v18, %v16067_v52  ;;  %v3398_v55 = vadd.f32 %v3142_v20, %v1858_v27  ;;  %v3400_v63 = vadd.f32 %v3144_v49, %v1860_v56  ;;  %v16069_v21 = vld [vmem:[#allocation243_spill] sm:$0xff]  ;;  %v4695_v52 = vmul.f32 %v12818_v58, %v16072_v17  ;;  %v16074_v56 = vld [vmem:[#allocation478_spill] sm:$0xff] }
 0x6ac   : > { %v5539_v13 = vpop.permute.xlu0 %5538  ;;  %16062 = vst [vmem:[#allocation235_spill] sm:$0xff] %v12957_v30  ;;  %v12982_v57 = vmul.f32 %v12722_v18, %v16069_v21  ;;  %v16071_v33 = vld [vmem:[#allocation475_spill] sm:$0xff]  ;;  %v4934_v42 = vadd.f32 %v4678_v8, %v3394_v0  ;;  %v3402_v27 = vadd.f32 %v3146_v53, %v1862_v60  ;;  %v1864_v12 = vmul.f32 %v12717_v38, %v16074_v56  ;;  %v16076_v60 = vld [vmem:[#allocation733_spill] sm:$0xff]  ;;  %v16082_v56 = vld [vmem:[#allocation480_spill] sm:$0xff] }
 0x6ad   : > { %v12961_v61 = vpop.permute.xlu1 %5488  ;;  %6023 = vperm.xlu0 %8982, %v5305_v29   ;;  %v16068_v29 = vld [vmem:[#allocation473_spill] sm:$0xff]  ;;  %v4935_v30 = vadd.f32 %v4679_v40, %v3395_v28  ;;  %v3412_v21 = vadd.f32 %v3156_v1, %v1872_v50  ;;  %v16075_v18 = vld [vmem:[#allocation487_spill] sm:$0xff]  ;;  %v4950_v17 = vadd.f32 %v4694_v3, %v3410_v45  ;;  %v4938_v40 = vadd.f32 %v12874_v19, %v3398_v55 }
 0x6ae   : > { %5858 = vperm.xlu1 %8983, %v5272_v2   ;;  %v4681_v54 = vmul.f32 %v12818_v58, %v16068_v29  ;;  %16070 = vst [vmem:[#allocation472_spill] sm:$0xff] %v12982_v57  ;;  %v4683_v2 = vmul.f32 %v12818_v58, %v16071_v33  ;;  %v16073_v29 = vld [vmem:[#allocation477_spill] sm:$0xff]  ;;  %v1874_v33 = vmul.f32 %v12717_v38, %v16075_v18  ;;  %v5275_v53 = vld [vmem:[%s15294_s2 + $0x2a8] sm:$0xff]  ;;  %v5304_v18 = vld [vmem:[%s15294_s2 + $0x390] sm:$0xff] }
 0x6af   : > { %v4685_v49 = vmul.f32 %v12818_v58, %v16073_v29  ;;  %v4936_v57 = vadd.f32 %v4680_v7, %v3396_v48  ;;  %v6727_v0 = vadd.f32 %v16076_v60, %v4935_v30  ;;  %v13005_v28 = vadd.f32 %v12880_v47, %v3400_v63  ;;  %v16077_v48 = vld [vmem:[#allocation488_spill] sm:$0xff]  ;;  %v16078_v47 = vld [vmem:[#allocation727_spill] sm:$0xff] }
 0x6b0   : > { %v12988_v20 = vpop.permute.xlu0 %5548  ;;  %v4937_v8 = vadd.f32 %v4681_v54, %v12812_v10  ;;  %v4697_v45 = vmul.f32 %v12818_v58, %v16077_v48  ;;  %v4939_v3 = vadd.f32 %v4683_v2, %v12814_v11  ;;  %v6742_v1 = vadd.f32 %v12897_v41, %v4950_v17  ;;  %v16079_v54 = vld [vmem:[#allocation489_spill] sm:$0xff]  ;;  %v5288_v2 = vld [vmem:[%s15294_s2 + $0x310] sm:$0xff]  ;;  %v5307_v48 = vld [vmem:[%s15294_s2 + $0x3a8] sm:$0xff] }
 0x6b1   : > { %v12994_v16 = vpop.permute.xlu1 %5498  ;;  %5943 = vperm.xlu0 %8982, %v5289_v9   ;;  %v4951_v10 = vadd.f32 %v4695_v52, %v12838_v25  ;;  %v13018_v19 = vadd.f32 %v12901_v51, %v1864_v12  ;;  %v6726_v30 = vadd.f32 %v16078_v47, %v4934_v42  ;;  %v13022_v50 = vadd.f32 %v4685_v49, %v12816_v4  ;;  %v5259_v12 = vld [vmem:[%s15294_s2 + $0x228] sm:$0xff] }
 0x6b2   : > { %5778 = vperm.xlu1 %8983, %v5256_v22   ;;  %v13025_v9 = vadd.f32 %v12889_v62, %v3402_v27  ;;  %v3414_v11 = vadd.f32 %v3158_v59, %v1874_v33  ;;  %v1876_v41 = vmul.f32 %v12717_v38, %v16079_v54  ;;  %v4952_v63 = vadd.f32 %v12913_v34, %v3412_v21  ;;  %v16080_v42 = vld [vmem:[#allocation479_spill] sm:$0xff]  ;;  %v16081_v51 = vld [vmem:[#allocation490_spill] sm:$0xff] }
 0x6b3   : > { %v4687_v4 = vmul.f32 %v12818_v58, %v16080_v42  ;;  %v4699_v62 = vmul.f32 %v12818_v58, %v16081_v51  ;;  %v6983_v22 = vmax.f32 %v6727_v0, 0.0  ;;  %v6728_v59 = vadd.f32 %v12810_v23, %v4936_v57  ;;  %v16083_v33 = vld [vmem:[#allocation491_spill] sm:$0xff]  ;;  %v16084_v23 = vld [vmem:[#allocation730_spill] sm:$0xff] }
 0x6b4   : > { %v13014_v7 = vpop.permute.xlu0 %5558  ;;  %v6744_v34 = vadd.f32 %v5539_v13, %v4952_v63  ;;  %v4953_v27 = vadd.f32 %v4697_v45, %v12840_v31  ;;  %v6998_v29 = vmax.f32 %v6742_v1, 0.0  ;;  %v13046_v21 = vmul.f32 %v12717_v38, %v16082_v56  ;;  %v16089_v56 = vld [vmem:[#allocation481_spill] sm:$0xff] }
 0x6b5   : > { %v5534_v55 = vpop.permute.xlu1 %5533  ;;  %5873 = vperm.xlu0 %8982, %v5275_v53   ;;  %v1878_v17 = vmul.f32 %v12717_v38, %v16083_v33  ;;  %v6982_v53 = vmax.f32 %v6726_v30, 0.0  ;;  %v6729_v57 = vadd.f32 %v16084_v23, %v4937_v8  ;;  %v3416_v13 = vadd.f32 %v12943_v24, %v1876_v41  ;;  %v5274_v8 = vld [vmem:[%s15294_s2 + $0x2a0] sm:$0xff]  ;;  %v16085_v24 = vld [vmem:[#allocation492_spill] sm:$0xff] }
 0x6b6   : > { %v6743_v25 = vadd.f32 %v5534_v55, %v4951_v10  ;;  %6018 = vperm.xlu1 %8983, %v5304_v18   ;;  %v4954_v0 = vadd.f32 %v12926_v6, %v3414_v11  ;;  %v6984_v45 = vmax.f32 %v6728_v59, 0.0  ;;  %v6730_v1 = vadd.f32 %v12854_v43, %v4938_v40  ;;  %v16086_v40 = vld [vmem:[#allocation732_spill] sm:$0xff] }
 0x6b7   : > { %v4955_v10 = vadd.f32 %v4699_v62, %v12842_v32  ;;  %v7242_v47 = vpack.c.bf16 %v6983_v22, %v6982_v53  ;;  %v4701_v6 = vmul.f32 %v12818_v58, %v16085_v24  ;;  %v7000_v30 = vmax.f32 %v6744_v34, 0.0  ;;  %v16088_v22 = vld [vmem:[#allocation494_spill] sm:$0xff] }
 0x6b8   : > { %v13041_v52 = vpop.permute.xlu0 %5568  ;;  %v6999_v49 = vmax.f32 %v6743_v25, 0.0  ;;  %v6746_v55 = vadd.f32 %v12988_v20, %v4954_v0  ;;  %v3418_v41 = vadd.f32 %v12953_v15, %v1878_v17  ;;  %v6985_v43 = vmax.f32 %v6729_v57, 0.0  ;;  %v5291_v15 = vld [vmem:[%s15294_s2 + $0x328] sm:$0xff]  ;;  %v5277_v0 = vld [vmem:[%s15294_s2 + $0x2b8] sm:$0xff] }
 0x6b9   : > { %v5544_v60 = vpop.permute.xlu1 %5543  ;;  %5793 = vperm.xlu0 %8982, %v5259_v12   ;;  %v6731_v32 = vadd.f32 %v16086_v40, %v4939_v3  ;;  %v4943_v63 = vadd.f32 %v4687_v4, %v12823_v14  ;;  %v16087_v12 = vld [vmem:[#allocation493_spill] sm:$0xff]  ;;  %v4956_v51 = vadd.f32 %v12939_v36, %v3416_v13  ;;  %v4703_v3 = vmul.f32 %v12818_v58, %v16088_v22  ;;  %v16090_v53 = vld [vmem:[#allocation734_spill] sm:$0xff] }
 0x6ba   : > { %v6745_v18 = vadd.f32 %v5544_v60, %v4953_v27  ;;  %5938 = vperm.xlu1 %8983, %v5288_v2   ;;  %v7250_v31 = vpack.c.bf16 %v6999_v49, %v6998_v29  ;;  %v1880_v42 = vmul.f32 %v12717_v38, %v16087_v12  ;;  %v6986_v59 = vmax.f32 %v6730_v1, 0.0  ;;  %v5258_v2 = vld [vmem:[%s15294_s2 + $0x220] sm:$0xff] }
 0x6bb   : > { %v6732_v14 = vadd.f32 %v12909_v35, %v13005_v28  ;;  %v7243_v4 = vpack.c.bf16 %v6985_v43, %v6984_v45  ;;  %v7002_v36 = vmax.f32 %v6746_v55, 0.0  ;;  %v6748_v34 = vadd.f32 %v13014_v7, %v4956_v51  ;;  %v16091_v7 = vld [vmem:[#allocation495_spill] sm:$0xff]  ;;  %v16094_v55 = vld [vmem:[#allocation498_spill] sm:$0xff] }
 0x6bc   : > { %v7001_v11 = vmax.f32 %v6745_v18, 0.0  ;;  %v13064_v54 = vpop.permute.xlu0 %5578  ;;  %8638 = vmatprep.subr.bf16.mxu1 %v7250_v31  ;;  %v4957_v49 = vadd.f32 %v4701_v6, %v12846_v37  ;;  %v4689_v33 = vmul.f32 %v12818_v58, %v16089_v56  ;;  %v6987_v17 = vmax.f32 %v6731_v32, 0.0  ;;  %v16096_v32 = vld [vmem:[#allocation472_spill] sm:$0xff]  ;;  %v5290_v12 = vld [vmem:[%s15294_s2 + $0x320] sm:$0xff] }
 0x6bd   : > { %v5554_v25 = vpop.permute.xlu1 %5553  ;;  %6033 = vperm.xlu0 %8982, %v5307_v48   ;;  %8639 = vmatpush3.bf16.msra.mxu1 %v7242_v47  ;;  %v6733_v35 = vadd.f32 %v16090_v53, %v13022_v50  ;;  %v4958_v28 = vadd.f32 %v12947_v5, %v3418_v41  ;;  %v3420_v57 = vadd.f32 %v12973_v46, %v1880_v42  ;;  %v6988_v18 = vmax.f32 %v6732_v14, 0.0  ;;  %v5306_v46 = vld [vmem:[%s15294_s2 + $0x3a0] sm:$0xff]  ;;  %v16092_v48 = vld [vmem:[#allocation496_spill] sm:$0xff]  ;;  %v16095_v41 = vld [vmem:[#allocation235_spill] sm:$0xff] }
 0x6be   : > { %v6747_v20 = vadd.f32 %v5554_v25, %v4955_v10  ;;  %5868 = vperm.xlu1 %8983, %v5274_v8   ;;  %v7251_v62 = vpack.c.bf16 %v7001_v11, %v7000_v30  ;;  %v1882_v60 = vmul.f32 %v12717_v38, %v16091_v7  ;;  %v6734_v50 = vadd.f32 %v12961_v61, %v13025_v9  ;;  %v16093_v61 = vld [vmem:[#allocation735_spill] sm:$0xff]  ;;  %v5309_v53 = vld [vmem:[%s15294_s2 + $0x3b8] sm:$0xff] }
 0x6bf   : > { %v4959_v5 = vadd.f32 %v4703_v3, %v12848_v39  ;;  %v7244_v31 = vpack.c.bf16 %v6987_v17, %v6986_v59  ;;  %v4705_v45 = vmul.f32 %v12818_v58, %v16092_v48  ;;  %v7004_v1 = vmax.f32 %v6748_v34, 0.0  ;;  %v16098_v3 = vld [vmem:[#allocation232_spill] sm:$0xff] }
 0x6c0   : > { %v7003_v27 = vmax.f32 %v6747_v20, 0.0  ;;  %v5504_v29 = vpop.permute.xlu0 %5503  ;;  %8640 = vmatprep.subr.bf16.mxu1 %v7251_v62  ;;  %v6750_v10 = vadd.f32 %v13041_v52, %v4958_v28  ;;  %v6989_v24 = vmax.f32 %v6733_v35, 0.0  ;;  %v6735_v6 = vadd.f32 %v12844_v26, %v4943_v63  ;;  %v5261_v26 = vld [vmem:[%s15294_s2 + $0x238] sm:$0xff]  ;;  %v5276_v7 = vld [vmem:[%s15294_s2 + $0x2b0] sm:$0xff] }
 0x6c1   : > { %v5564_v23 = vpop.permute.xlu1 %5563  ;;  %5953 = vperm.xlu0 %8982, %v5291_v15   ;;  %8641 = vmatpush3.bf16.msra.mxu1 %v7243_v4  ;;  %v4944_v39 = vadd.f32 %v12895_v44, %v13018_v19  ;;  %v4945_v9 = vadd.f32 %v4689_v33, %v16093_v61  ;;  %v4707_v11 = vmul.f32 %v12818_v58, %v16094_v55  ;;  %v6990_v44 = vmax.f32 %v6734_v50, 0.0  ;;  %v16097_v15 = vld [vmem:[#allocation738_spill] sm:$0xff]  ;;  %v16099_v59 = vld [vmem:[#allocation728_spill] sm:$0xff]  ;;  %v16103_v28 = vld [vmem:[#allocation497_spill] sm:$0xff] }
 0x6c2   : > { %v6749_v13 = vadd.f32 %v5564_v23, %v4957_v49  ;;  %5788 = vperm.xlu1 %8983, %v5258_v2   ;;  %v7252_v37 = vpack.c.bf16 %v7003_v27, %v7002_v36  ;;  %v4960_v43 = vadd.f32 %v16095_v41, %v3420_v57  ;;  %v3422_v63 = vadd.f32 %v16096_v32, %v1882_v60  ;;  %v16100_v4 = vld [vmem:[#allocation242_spill] sm:$0xff]  ;;  %v16102_v49 = vld [vmem:[#allocation739_spill] sm:$0xff]  ;;  %v5293_v61 = vld [vmem:[%s15294_s2 + $0x338] sm:$0xff] }
 0x6c3   : > { %v6737_v19 = vadd.f32 %v5504_v29, %v4945_v9  ;;  %v7245_v25 = vpack.c.bf16 %v6989_v24, %v6988_v18  ;;  %v7006_v42 = vmax.f32 %v6750_v10, 0.0  ;;  %v4961_v22 = vadd.f32 %v4705_v45, %v16097_v15  ;;  %v16101_v29 = vld [vmem:[#allocation483_spill] sm:$0xff]  ;;  %v16104_v50 = vld [vmem:[#allocation6_spill] sm:$0xff]  ;;  %v16107_v10 = vld [vmem:[#allocation500_spill] sm:$0xff] }
 0x6c4   : > { %v7005_v47 = vmax.f32 %v6749_v13, 0.0  ;;  %v5594_v8 = vpop.permute.xlu0 %5593  ;;  %8642 = vmatprep.subr.bf16.mxu1 %v7252_v37  ;;  %v6752_v51 = vadd.f32 %v13064_v54, %v4960_v43  ;;  %v3150_v14 = vmul.f32 %v16099_v59, %v16098_v3  ;;  %v4706_v2 = vmul.f32 %v12818_v58, %v16100_v4  ;;  %v16109_v9 = vld [vmem:[#allocation740_spill] sm:$0xff] }
 0x6c5   : > { %v5574_v30 = vpop.permute.xlu1 %5573  ;;  %5883 = vperm.xlu0 %8982, %v5277_v0   ;;  %8643 = vmatpush3.bf16.msra.mxu1 %v7244_v31  ;;  %v6991_v36 = vmax.f32 %v6735_v6, 0.0  ;;  %v6736_v34 = vadd.f32 %v12994_v16, %v4944_v39  ;;  %v4691_v54 = vmul.f32 %v12818_v58, %v16101_v29  ;;  %v4963_v56 = vadd.f32 %v4707_v11, %v16102_v49  ;;  %v16105_v31 = vld [vmem:[#allocation231_spill] sm:$0xff]  ;;  %v16111_v11 = vld [vmem:[#allocation482_spill] sm:$0xff]  ;;  %v16115_v3 = vld [vmem:[#allocation484_spill] sm:$0xff] }
 0x6c6   : > { %v6751_v52 = vadd.f32 %v5574_v30, %v4959_v5  ;;  %6028 = vperm.xlu1 %8983, %v5306_v46   ;;  %v7253_v40 = vpack.c.bf16 %v7005_v47, %v7004_v1  ;;  %v3406_v35 = vadd.f32 %v3150_v14, %v13046_v21  ;;  %v1884_v16 = vmul.f32 %v12717_v38, %v16103_v28  ;;  %v16106_v46 = vld [vmem:[#allocation245_spill] sm:$0xff]  ;;  %v16117_v29 = vld [vmem:[#allocation24_spill] sm:$0xff] }
 0x6c7   : > { %v6993_v23 = vmax.f32 %v6737_v19, 0.0  ;;  %v7246_v57 = vpack.c.bf16 %v6991_v36, %v6990_v44  ;;  %v7008_v60 = vmax.f32 %v6752_v51, 0.0  ;;  %v6755_v13 = vadd.f32 %v5594_v8, %v4963_v56  ;;  %v16108_v8 = vld [vmem:[#allocation736_spill] sm:$0xff]  ;;  %v16110_v30 = vld [vmem:[#allocation741_spill] sm:$0xff]  ;;  %v5279_v36 = vld [vmem:[%s15294_s2 + $0x2c8] sm:$0xff] }
 0x6c8   : > { %v7007_v20 = vmax.f32 %v6751_v52, 0.0  ;;  %v5514_v62 = vpop.permute.xlu0 %5513  ;;  %8644 = vmatprep.subr.bf16.mxu1 %v7253_v40  ;;  %v4962_v18 = vadd.f32 %v4706_v2, %v3422_v63  ;;  %v3153_v5 = vmul.f32 %v16099_v59, %v16104_v50  ;;  %v4690_v21 = vmul.f32 %v12818_v58, %v16105_v31  ;;  %v5260_v40 = vld [vmem:[%s15294_s2 + $0x230] sm:$0xff] }
 0x6c9   : > { %v5584_v27 = vpop.permute.xlu1 %5583  ;;  %5803 = vperm.xlu0 %8982, %v5261_v26   ;;  %8645 = vmatpush3.bf16.msra.mxu1 %v7245_v25  ;;  %v3168_v48 = vmul.f32 %v16099_v59, %v16106_v46  ;;  %v6992_v45 = vmax.f32 %v6736_v34, 0.0  ;;  %v4709_v47 = vmul.f32 %v12818_v58, %v16107_v10  ;;  %v4947_v24 = vadd.f32 %v4691_v54, %v16108_v8  ;;  %v16112_v25 = vld [vmem:[#allocation737_spill] sm:$0xff]  ;;  %v16116_v34 = vld [vmem:[#allocation23_spill] sm:$0xff] }
 0x6ca   : > { %v6753_v33 = vadd.f32 %v5584_v27, %v4961_v22  ;;  %5948 = vperm.xlu1 %8983, %v5290_v12   ;;  %v7254_v17 = vpack.c.bf16 %v7007_v20, %v7006_v42  ;;  %v3425_v55 = vadd.f32 %v16110_v30, %v16109_v9  ;;  %v1868_v41 = vmul.f32 %v12717_v38, %v16111_v11  ;;  %v16113_v42 = vld [vmem:[#allocation234_spill] sm:$0xff]  ;;  %v16114_v20 = vld [vmem:[#allocation244_spill] sm:$0xff]  ;;  %v16118_v56 = vld [vmem:[#allocation515_spill] sm:$0xff] }
 0x6cb   : > { %v4946_v43 = vadd.f32 %v4690_v21, %v3406_v35  ;;  %v7247_v52 = vpack.c.bf16 %v6993_v23, %v6992_v45  ;;  %v3424_v26 = vadd.f32 %v3168_v48, %v1884_v16  ;;  %v7011_v32 = vmax.f32 %v6755_v13, 0.0  ;;  %v16122_v50 = vld [vmem:[#allocation263_spill] sm:$0xff]  ;;  %v16123_v21 = vld [vmem:[#allocation518_spill] sm:$0xff]  ;;  %v16125_v11 = vld [vmem:[#allocation700_spill] sm:$0xff] }
 0x6cc   : > { %v7009_v37 = vmax.f32 %v6753_v33, 0.0  ;;  %v5604_v0 = vpop.permute.xlu0 %5603  ;;  %8646 = vmatprep.subr.bf16.mxu1 %v7254_v17  ;;  %v6739_v63 = vadd.f32 %v5514_v62, %v4947_v24  ;;  %v3409_v12 = vadd.f32 %v3153_v5, %v16112_v25  ;;  %v3152_v51 = vmul.f32 %v16099_v59, %v16113_v42  ;;  %v5308_v17 = vld [vmem:[%s15294_s2 + $0x3b0] sm:$0xff] }
 0x6cd   : > { %v5589_v1 = vpop.permute.xlu1 %5588  ;;  %6043 = vperm.xlu0 %8982, %v5309_v53   ;;  %8647 = vmatpush3.bf16.msra.mxu1 %v7246_v57  ;;  %v4708_v15 = vmul.f32 %v12818_v58, %v16114_v20  ;;  %v4693_v14 = vmul.f32 %v12818_v58, %v16115_v3  ;;  %v4965_v4 = vadd.f32 %v4709_v47, %v3425_v55  ;;  %v16119_v57 = vld [vmem:[#allocation7_spill] sm:$0xff] }
 0x6ce   : > { %v6754_v6 = vadd.f32 %v5589_v1, %v4962_v18  ;;  %5878 = vperm.xlu1 %8983, %v5276_v7   ;;  %v7255_v39 = vpack.c.bf16 %v7009_v37, %v7008_v60  ;;  %v1903_v27 = vmul.f32 %v12717_v38, %v16116_v34  ;;  %v3187_v54 = vmul.f32 %v16099_v59, %v16117_v29  ;;  %v16120_v60 = vld [vmem:[#allocation8_spill] sm:$0xff]  ;;  %v16121_v37 = vld [vmem:[#allocation233_spill] sm:$0xff]  ;;  %v5263_v1 = vld [vmem:[%s15294_s2 + $0x248] sm:$0xff] }
 0x6cf   : > { %v3408_v49 = vadd.f32 %v3152_v51, %v1868_v41  ;;  %v1902_v33 = vmul.f32 %v12717_v38, %v16118_v56  ;;  %v6995_v53 = vmax.f32 %v6739_v63, 0.0  ;;  %v6757_v35 = vadd.f32 %v5604_v0, %v4965_v4  ;;  %v16124_v47 = vld [vmem:[#allocation499_spill] sm:$0xff]  ;;  %v16128_v63 = vld [vmem:[#allocation262_spill] sm:$0xff]  ;;  %v16131_v4 = vld [vmem:[#allocation517_spill] sm:$0xff] }
 0x6d0   : > { %v7010_v44 = vmax.f32 %v6754_v6, 0.0  ;;  %v5524_v19 = vpop.permute.xlu0 %5523  ;;  %8648 = vmatprep.subr.bf16.mxu1 %v7255_v39  ;;  %v4964_v23 = vadd.f32 %v4708_v15, %v3424_v26  ;;  %v1887_v7 = vmul.f32 %v12717_v38, %v16119_v57  ;;  %v3171_v13 = vmul.f32 %v16099_v59, %v16120_v60  ;;  %v5292_v39 = vld [vmem:[%s15294_s2 + $0x330] sm:$0xff]  ;;  %v5311_v15 = vld [vmem:[%s15294_s2 + $0x3c8] sm:$0xff]  ;;  %v16136_v57 = vld [vmem:[#allocation265_spill] sm:$0xff] }
 0x6d1   : > { %v5509_v22 = vpop.permute.xlu1 %5508  ;;  %5963 = vperm.xlu0 %8982, %v5293_v61   ;;  %8649 = vmatpush3.bf16.msra.mxu1 %v7247_v52  ;;  %v4692_v18 = vmul.f32 %v12818_v58, %v16121_v37  ;;  %v3186_v5 = vmul.f32 %v16099_v59, %v16122_v50  ;;  %v4727_v0 = vmul.f32 %v12818_v58, %v16123_v21  ;;  %v7013_v61 = vmax.f32 %v6757_v35, 0.0  ;;  %v16126_v52 = vld [vmem:[#allocation25_spill] sm:$0xff]  ;;  %v16127_v26 = vld [vmem:[#allocation247_spill] sm:$0xff] }
 0x6d2   : > { %v6738_v2 = vadd.f32 %v5509_v22, %v4946_v43  ;;  %5798 = vperm.xlu1 %8983, %v5260_v40   ;;  %v7256_v62 = vpack.c.bf16 %v7011_v32, %v7010_v44  ;;  %v4949_v46 = vadd.f32 %v4693_v14, %v3409_v12  ;;  %v3443_v10 = vadd.f32 %v3187_v54, %v1903_v27  ;;  %v16129_v12 = vld [vmem:[#allocation502_spill] sm:$0xff]  ;;  %v16138_v21 = vld [vmem:[#allocation501_spill] sm:$0xff] }
 0x6d3   : > { %v1886_v8 = vmul.f32 %v12717_v38, %v16124_v47  ;;  %v3442_v24 = vadd.f32 %v3186_v5, %v1902_v33  ;;  %v4948_v6 = vadd.f32 %v4692_v18, %v3408_v49  ;;  %v7380_v41 = vcombine.high %v16125_v11, %v16125_v11  ;;  %v16130_v22 = vld [vmem:[#allocation26_spill] sm:$0xff]  ;;  %v16132_v49 = vld [vmem:[#allocation699_spill] sm:$0xff]  ;;  %v16133_v33 = vld [vmem:[#allocation9_spill] sm:$0xff] }
 0x6d4   : > { %v6994_v28 = vmax.f32 %v6738_v2, 0.0  ;;  %v5694_v16 = vpop.permute.xlu0 %5693  ;;  %8650 = vmatprep.subr.bf16.mxu1 %v7256_v62  ;;  %v6741_v9 = vadd.f32 %v5524_v19, %v4949_v46  ;;  %v3427_v43 = vadd.f32 %v3171_v13, %v1887_v7  ;;  %v1905_v40 = vmul.f32 %v12717_v38, %v16126_v52  ;;  %v5295_v5 = vld [vmem:[%s15294_s2 + $0x348] sm:$0xff] }
 0x6d5   : > { %v5599_v31 = vpop.permute.xlu1 %5598  ;;  %5893 = vperm.xlu0 %8982, %v5279_v36   ;;  %v3170_v32 = vmul.f32 %v16099_v59, %v16127_v26  ;;  %v4726_v44 = vmul.f32 %v12818_v58, %v16128_v63  ;;  %v4711_v19 = vmul.f32 %v12818_v58, %v16129_v12  ;;  %v4983_v42 = vadd.f32 %v4727_v0, %v3443_v10  ;;  %v5278_v36 = vld [vmem:[%s15294_s2 + $0x2c0] sm:$0xff]  ;;  %v5281_v26 = vld [vmem:[%s15294_s2 + $0x2d8] sm:$0xff] }
 0x6d6   : > { %v6756_v48 = vadd.f32 %v5599_v31, %v4964_v23  ;;  %6038 = vperm.xlu1 %8983, %v5308_v17   ;;  %v7248_v45 = vpack.c.bf16 %v6995_v53, %v6994_v28  ;;  %v3189_v3 = vmul.f32 %v16099_v59, %v16130_v22  ;;  %v1904_v2 = vmul.f32 %v12717_v38, %v16131_v4  ;;  %v16134_v53 = vld [vmem:[#allocation10_spill] sm:$0xff] }
 0x6d7   : > { %v3426_v14 = vadd.f32 %v3170_v32, %v1886_v8  ;;  %v4982_v62 = vadd.f32 %v4726_v44, %v3442_v24  ;;  %v6997_v34 = vmax.f32 %v6741_v9, 0.0  ;;  %v6775_v27 = vadd.f32 %v5694_v16, %v4983_v42  ;;  %v16135_v28 = vld [vmem:[#allocation246_spill] sm:$0xff]  ;;  %v16137_v16 = vld [vmem:[#allocation520_spill] sm:$0xff]  ;;  %v16142_v32 = vld [vmem:[#allocation27_spill] sm:$0xff] }
 0x6d8   : > { %v7012_v30 = vmax.f32 %v6756_v48, 0.0  ;;  %v5614_v55 = vpop.permute.xlu0 %5613  ;;  %8651 = vmatpush3.bf16.msra.mxu1 %v7248_v45  ;;  %v13214_v56 = vrot.slane %v7380_v41, %v16132_v49  ;;  %v1889_v17 = vmul.f32 %v12717_v38, %v16133_v33  ;;  %v3173_v35 = vmul.f32 %v16099_v59, %v16134_v53  ;;  %v5262_v45 = vld [vmem:[%s15294_s2 + $0x240] sm:$0xff]  ;;  %v16140_v9 = vld [vmem:[#allocation264_spill] sm:$0xff]  ;;  %v16149_v33 = vld [vmem:[#allocation267_spill] sm:$0xff] }
 0x6d9   : > { %v5519_v25 = vpop.permute.xlu1 %5518  ;;  %5813 = vperm.xlu0 %8982, %v5263_v1   ;;  %v4710_v23 = vmul.f32 %v12818_v58, %v16135_v28  ;;  %v3188_v7 = vmul.f32 %v16099_v59, %v16136_v57  ;;  %v4729_v13 = vmul.f32 %v12818_v58, %v16137_v16  ;;  %v4967_v37 = vadd.f32 %v4711_v19, %v3427_v43  ;;  %v16141_v41 = vld [vmem:[#allocation504_spill] sm:$0xff]  ;;  %v16144_v19 = vld [vmem:[#allocation519_spill] sm:$0xff] }
 0x6da   : > { %v6740_v51 = vadd.f32 %v5519_v25, %v4948_v6  ;;  %5958 = vperm.xlu1 %8983, %v5292_v39   ;;  %v7257_v20 = vpack.c.bf16 %v7013_v61, %v7012_v30  ;;  %v3445_v31 = vadd.f32 %v3189_v3, %v1905_v40  ;;  %v1888_v0 = vmul.f32 %v12717_v38, %v16138_v21  ;;  %v16139_v39 = vld [vmem:[#allocation249_spill] sm:$0xff]  ;;  %v16143_v44 = vld [vmem:[#allocation28_spill] sm:$0xff]  ;;  %v16151_v16 = vld [vmem:[#allocation503_spill] sm:$0xff] }
 0x6db   : > { %v3444_v46 = vadd.f32 %v3188_v7, %v1904_v2  ;;  %v4966_v48 = vadd.f32 %v4710_v23, %v3426_v14  ;;  %v7031_v1 = vmax.f32 %v6775_v27, 0.0  ;;  %v6759_v10 = vadd.f32 %v5614_v55, %v4967_v37  ;;  %v16146_v2 = vld [vmem:[#allocation11_spill] sm:$0xff]  ;;  %v16148_v27 = vld [vmem:[#allocation248_spill] sm:$0xff] }
 0x6dc   : > { %v6996_v29 = vmax.f32 %v6740_v51, 0.0  ;;  %v5704_v54 = vpop.permute.xlu0 %5703  ;;  %8652 = vmatprep.subr.bf16.mxu1 %v7257_v20  ;;  %v7396_v24 = vcombine.high %v13214_v56, %v13214_v56  ;;  %v3429_v6 = vadd.f32 %v3173_v35, %v1889_v17  ;;  %v3172_v61 = vmul.f32 %v16099_v59, %v16139_v39  ;;  %v5310_v51 = vld [vmem:[%s15294_s2 + $0x3c0] sm:$0xff]  ;;  %v5265_v7 = vld [vmem:[%s15294_s2 + $0x258] sm:$0xff] }
 0x6dd   : > { %v5689_v60 = vpop.permute.xlu1 %5688  ;;  %6053 = vperm.xlu0 %8982, %v5311_v15   ;;  %v4728_v30 = vmul.f32 %v12818_v58, %v16140_v9  ;;  %v4713_v43 = vmul.f32 %v12818_v58, %v16141_v41  ;;  %v4985_v52 = vadd.f32 %v4729_v13, %v3445_v31  ;;  %v1907_v63 = vmul.f32 %v12717_v38, %v16142_v32  ;;  %v16145_v20 = vld [vmem:[#allocation701_spill] sm:$0xff]  ;;  %v16156_v41 = vld [vmem:[#allocation30_spill] sm:$0xff] }
 0x6de   : > { %v6774_v18 = vadd.f32 %v5689_v60, %v4982_v62  ;;  %5888 = vperm.xlu1 %8983, %v5278_v36   ;;  %v7249_v50 = vpack.c.bf16 %v6997_v34, %v6996_v29  ;;  %v3191_v25 = vmul.f32 %v16099_v59, %v16143_v44  ;;  %v3428_v12 = vadd.f32 %v3172_v61, %v1888_v0  ;;  %v16147_v36 = vld [vmem:[#allocation12_spill] sm:$0xff] }
 0x6df   : > { %v1906_v42 = vmul.f32 %v12717_v38, %v16144_v19  ;;  %v7015_v15 = vmax.f32 %v6759_v10, 0.0  ;;  %v6777_v22 = vadd.f32 %v5704_v54, %v4985_v52  ;;  %v4984_v4 = vadd.f32 %v4728_v30, %v3444_v46  ;;  %v16150_v54 = vld [vmem:[#allocation522_spill] sm:$0xff]  ;;  %v16155_v30 = vld [vmem:[#allocation29_spill] sm:$0xff] }
 0x6e0   : > { %v7030_v47 = vmax.f32 %v6774_v18, 0.0  ;;  %v5624_v8 = vpop.permute.xlu0 %5623  ;;  %8653 = vmatpush3.bf16.msra.mxu1 %v7249_v50  ;;  %v1891_v62 = vmul.f32 %v12717_v38, %v16146_v2  ;;  %v3175_v34 = vmul.f32 %v16099_v59, %v16147_v36  ;;  %v4712_v29 = vmul.f32 %v12818_v58, %v16148_v27  ;;  %v5294_v18 = vld [vmem:[%s15294_s2 + $0x340] sm:$0xff] }
 0x6e1   : > { %v5609_v11 = vpop.permute.xlu1 %5608  ;;  %5973 = vperm.xlu0 %8982, %v5295_v5   ;;  %v3190_v17 = vmul.f32 %v16099_v59, %v16149_v33  ;;  %v4731_v35 = vmul.f32 %v12818_v58, %v16150_v54  ;;  %v4969_v28 = vadd.f32 %v4713_v43, %v3429_v6  ;;  %v3447_v60 = vadd.f32 %v3191_v25, %v1907_v63  ;;  %v16158_v19 = vld [vmem:[#allocation13_spill] sm:$0xff] }
 0x6e2   : > { %v6758_v55 = vadd.f32 %v5609_v11, %v4966_v48  ;;  %5808 = vperm.xlu1 %8983, %v5262_v45   ;;  %v7266_v40 = vpack.c.bf16 %v7031_v1, %v7030_v47  ;;  %v1890_v13 = vmul.f32 %v12717_v38, %v16151_v16  ;;  %v4968_v37 = vadd.f32 %v4712_v29, %v3428_v12  ;;  %v16152_v48 = vld [vmem:[#allocation251_spill] sm:$0xff]  ;;  %v16153_v1 = vld [vmem:[#allocation266_spill] sm:$0xff]  ;;  %v5297_v29 = vld [vmem:[%s15294_s2 + $0x358] sm:$0xff] }
 0x6e3   : > { %7497 = vmatmul.mubr.bf16.vlgmr.msra.gmra.mrb[0].mxu1 %v16145_v20  ;;  %v3446_v50 = vadd.f32 %v3190_v17, %v1906_v42  ;;  %v7033_v5 = vmax.f32 %v6777_v22, 0.0  ;;  %v6761_v31 = vadd.f32 %v5624_v8, %v4969_v28  ;;  %v3431_v46 = vadd.f32 %v3175_v34, %v1891_v62  ;;  %v5313_v8 = vld [vmem:[%s15294_s2 + $0x3d8] sm:$0xff] }
 0x6e4   : > { %v7014_v3 = vmax.f32 %v6758_v55, 0.0  ;;  %v5714_v14 = vpop.permute.xlu0 %5713  ;;  %8660 = vmatprep.subr.bf16.mxu1 %v7266_v40  ;;  %7536 = vmatprep.mubr.bf16.mxu1 %v7396_v24  ;;  %v3174_v45 = vmul.f32 %v16099_v59, %v16152_v48  ;;  %v4730_v10 = vmul.f32 %v12818_v58, %v16153_v1  ;;  %v16154_v24 = vld [vmem:[#allocation506_spill] sm:$0xff]  ;;  %v4987_v39 = vadd.f32 %v4731_v35, %v3447_v60  ;;  %v16157_v55 = vld [vmem:[#allocation521_spill] sm:$0xff]  ;;  %v16162_v62 = vld [vmem:[#allocation524_spill] sm:$0xff] }
 0x6e5   : > { %v5699_v53 = vpop.permute.xlu1 %5698  ;;  %5903 = vperm.xlu0 %8982, %v5281_v26   ;;  %v4715_v6 = vmul.f32 %v12818_v58, %v16154_v24  ;;  %v1909_v11 = vmul.f32 %v12717_v38, %v16155_v30  ;;  %v3193_v43 = vmul.f32 %v16099_v59, %v16156_v41  ;;  %v1908_v40 = vmul.f32 %v12717_v38, %v16157_v55  ;;  %v5280_v26 = vld [vmem:[%s15294_s2 + $0x2d0] sm:$0xff]  ;;  %v16163_v17 = vld [vmem:[#allocation505_spill] sm:$0xff] }
 0x6e6   : > { %v7258_v23 = vpack.c.bf16 %v7015_v15, %v7014_v3  ;;  %v6776_v57 = vadd.f32 %v5699_v53, %v4984_v4  ;;  %6048 = vperm.xlu1 %8983, %v5310_v51   ;;  %v3430_v52 = vadd.f32 %v3174_v45, %v1890_v13  ;;  %v7017_v32 = vmax.f32 %v6761_v31, 0.0  ;;  %v16159_v51 = vld [vmem:[#allocation14_spill] sm:$0xff]  ;;  %v16161_v3 = vld [vmem:[#allocation269_spill] sm:$0xff]  ;;  %v5264_v35 = vld [vmem:[%s15294_s2 + $0x250] sm:$0xff] }
 0x6e7   : > { %v6779_v63 = vadd.f32 %v5714_v14, %v4987_v39  ;;  %v4986_v12 = vadd.f32 %v4730_v10, %v3446_v50  ;;  %v1893_v42 = vmul.f32 %v12717_v38, %v16158_v19  ;;  %v3177_v20 = vmul.f32 %v16099_v59, %v16159_v51  ;;  %v16160_v15 = vld [vmem:[#allocation250_spill] sm:$0xff]  ;;  %v16164_v13 = vld [vmem:[#allocation253_spill] sm:$0xff]  ;;  %v16166_v31 = vld [vmem:[#allocation508_spill] sm:$0xff] }
 0x6e8   : > { %v7032_v21 = vmax.f32 %v6776_v57, 0.0  ;;  %v5634_v0 = vpop.permute.xlu0 %5633  ;;  %8661 = vmatpush3.bf16.msra.mxu1 %v7258_v23  ;;  %v4714_v22 = vmul.f32 %v12818_v58, %v16160_v15  ;;  %v3192_v4 = vmul.f32 %v16099_v59, %v16161_v3  ;;  %v4733_v14 = vmul.f32 %v12818_v58, %v16162_v62  ;;  %v16167_v1 = vld [vmem:[#allocation31_spill] sm:$0xff] }
 0x6e9   : > { %v5619_v47 = vpop.permute.xlu1 %5618  ;;  %5823 = vperm.xlu0 %8982, %v5265_v7   ;;  %v4971_v36 = vadd.f32 %v4715_v6, %v3431_v46  ;;  %v3449_v33 = vadd.f32 %v3193_v43, %v1909_v11  ;;  %v1892_v53 = vmul.f32 %v12717_v38, %v16163_v17  ;;  %v7035_v23 = vmax.f32 %v6779_v63, 0.0  ;;  %v16169_v39 = vld [vmem:[#allocation523_spill] sm:$0xff] }
 0x6ea   : > { %v6760_v61 = vadd.f32 %v5619_v47, %v4968_v37  ;;  %5968 = vperm.xlu1 %8983, %v5294_v18   ;;  %v7267_v9 = vpack.c.bf16 %v7033_v5, %v7032_v21  ;;  %v4970_v54 = vadd.f32 %v4714_v22, %v3430_v52  ;;  %v3448_v28 = vadd.f32 %v3192_v4, %v1908_v40  ;;  %v16165_v18 = vld [vmem:[#allocation268_spill] sm:$0xff]  ;;  %v16170_v52 = vld [vmem:[#allocation15_spill] sm:$0xff] }
 0x6eb   : > { %v6763_v57 = vadd.f32 %v5634_v0, %v4971_v36  ;;  %v3433_v16 = vadd.f32 %v3177_v20, %v1893_v42  ;;  %v3176_v37 = vmul.f32 %v16099_v59, %v16164_v13  ;;  %v4732_v50 = vmul.f32 %v12818_v58, %v16165_v18  ;;  %v5283_v0 = vld [vmem:[%s15294_s2 + $0x2e8] sm:$0xff]  ;;  %v16168_v47 = vld [vmem:[#allocation32_spill] sm:$0xff]  ;;  %v16179_v18 = vld [vmem:[#allocation33_spill] sm:$0xff] }
 0x6ec   : > { %v7016_v44 = vmax.f32 %v6760_v61, 0.0  ;;  %v5724_v25 = vpop.permute.xlu0 %5723  ;;  %8662 = vmatprep.subr.bf16.mxu1 %v7267_v9  ;;  %v4717_v21 = vmul.f32 %v12818_v58, %v16166_v31  ;;  %v4989_v46 = vadd.f32 %v4733_v14, %v3449_v33  ;;  %v1911_v10 = vmul.f32 %v12717_v38, %v16167_v1  ;;  %v5312_v9 = vld [vmem:[%s15294_s2 + $0x3d0] sm:$0xff]  ;;  %v16174_v42 = vld [vmem:[#allocation526_spill] sm:$0xff] }
 0x6ed   : > { %v5709_v2 = vpop.permute.xlu1 %5708  ;;  %6063 = vperm.xlu0 %8982, %v5313_v8   ;;  %v3195_v24 = vmul.f32 %v16099_v59, %v16168_v47  ;;  %v3432_v6 = vadd.f32 %v3176_v37, %v1892_v53  ;;  %v1910_v61 = vmul.f32 %v12717_v38, %v16169_v39  ;;  %v7019_v8 = vmax.f32 %v6763_v57, 0.0  ;;  %v16171_v40 = vld [vmem:[#allocation16_spill] sm:$0xff]  ;;  %v5267_v22 = vld [vmem:[%s15294_s2 + $0x268] sm:$0xff] }
 0x6ee   : > { %v7259_v34 = vpack.c.bf16 %v7017_v32, %v7016_v44  ;;  %v6778_v27 = vadd.f32 %v5709_v2, %v4986_v12  ;;  %5898 = vperm.xlu1 %8983, %v5280_v26   ;;  %v6781_v30 = vadd.f32 %v5724_v25, %v4989_v46  ;;  %v4988_v43 = vadd.f32 %v4732_v50, %v3448_v28  ;;  %v16172_v32 = vld [vmem:[#allocation252_spill] sm:$0xff]  ;;  %v16173_v44 = vld [vmem:[#allocation271_spill] sm:$0xff]  ;;  %v16178_v57 = vld [vmem:[#allocation510_spill] sm:$0xff] }
 0x6ef   : > { %v1895_v55 = vmul.f32 %v12717_v38, %v16170_v52  ;;  %v3179_v26 = vmul.f32 %v16099_v59, %v16171_v40  ;;  %v4716_v63 = vmul.f32 %v12818_v58, %v16172_v32  ;;  %v3194_v12 = vmul.f32 %v16099_v59, %v16173_v44  ;;  %v16175_v4 = vld [vmem:[#allocation507_spill] sm:$0xff]  ;;  %v16181_v46 = vld [vmem:[#allocation525_spill] sm:$0xff] }
 0x6f0   : > { %v7034_v7 = vmax.f32 %v6778_v27, 0.0  ;;  %v5644_v60 = vpop.permute.xlu0 %5643  ;;  %8663 = vmatpush3.bf16.msra.mxu1 %v7259_v34  ;;  %v4735_v25 = vmul.f32 %v12818_v58, %v16174_v42  ;;  %v4973_v51 = vadd.f32 %v4717_v21, %v3433_v16  ;;  %v3451_v3 = vadd.f32 %v3195_v24, %v1911_v10  ;;  %v5296_v14 = vld [vmem:[%s15294_s2 + $0x350] sm:$0xff] }
 0x6f1   : > { %v5629_v5 = vpop.permute.xlu1 %5628  ;;  %5983 = vperm.xlu0 %8982, %v5297_v29   ;;  %v1894_v2 = vmul.f32 %v12717_v38, %v16175_v4  ;;  %v4972_v62 = vadd.f32 %v4716_v63, %v3432_v6  ;;  %v3450_v36 = vadd.f32 %v3194_v12, %v1910_v61  ;;  %v7037_v34 = vmax.f32 %v6781_v30, 0.0  ;;  %v16176_v53 = vld [vmem:[#allocation255_spill] sm:$0xff]  ;;  %v16182_v6 = vld [vmem:[#allocation17_spill] sm:$0xff]  ;;  %v16183_v61 = vld [vmem:[#allocation18_spill] sm:$0xff] }
 0x6f2   : > { %v6762_v48 = vadd.f32 %v5629_v5, %v4970_v54  ;;  %5818 = vperm.xlu1 %8983, %v5264_v35   ;;  %v7268_v45 = vpack.c.bf16 %v7035_v23, %v7034_v7  ;;  %v6765_v27 = vadd.f32 %v5644_v60, %v4973_v51  ;;  %v3435_v17 = vadd.f32 %v3179_v26, %v1895_v55  ;;  %v16177_v35 = vld [vmem:[#allocation270_spill] sm:$0xff]  ;;  %v16186_v55 = vld [vmem:[#allocation528_spill] sm:$0xff]  ;;  %v16187_v12 = vld [vmem:[#allocation509_spill] sm:$0xff] }
 0x6f3   : > { %v3178_v54 = vmul.f32 %v16099_v59, %v16176_v53  ;;  %v4734_v28 = vmul.f32 %v12818_v58, %v16177_v35  ;;  %v4719_v7 = vmul.f32 %v12818_v58, %v16178_v57  ;;  %v4991_v16 = vadd.f32 %v4735_v25, %v3451_v3  ;;  %v5315_v60 = vld [vmem:[%s15294_s2 + $0x3e8] sm:$0xff]  ;;  %v5266_v25 = vld [vmem:[%s15294_s2 + $0x260] sm:$0xff] }
 0x6f4   : > { %v7018_v11 = vmax.f32 %v6762_v48, 0.0  ;;  %v5734_v41 = vpop.permute.xlu0 %5733  ;;  %8664 = vmatprep.subr.bf16.mxu1 %v7268_v45  ;;  %v1913_v50 = vmul.f32 %v12717_v38, %v16179_v18  ;;  %v16180_v5 = vld [vmem:[#allocation34_spill] sm:$0xff]  ;;  %v1912_v48 = vmul.f32 %v12717_v38, %v16181_v46  ;;  %v1897_v39 = vmul.f32 %v12717_v38, %v16182_v6  ;;  %v16191_v35 = vld [vmem:[#allocation35_spill] sm:$0xff] }
 0x6f5   : > { %v5719_v19 = vpop.permute.xlu1 %5718  ;;  %5913 = vperm.xlu0 %8982, %v5283_v0   ;;  %v3197_v31 = vmul.f32 %v16099_v59, %v16180_v5  ;;  %v3434_v21 = vadd.f32 %v3178_v54, %v1894_v2  ;;  %v5282_v45 = vld [vmem:[%s15294_s2 + $0x2e0] sm:$0xff]  ;;  %v7021_v0 = vmax.f32 %v6765_v27, 0.0  ;;  %v6783_v1 = vadd.f32 %v5734_v41, %v4991_v16  ;;  %v5299_v63 = vld [vmem:[%s15294_s2 + $0x368] sm:$0xff]  ;;  %v16190_v27 = vld [vmem:[#allocation512_spill] sm:$0xff] }
 0x6f6   : > { %v7260_v20 = vpack.c.bf16 %v7019_v8, %v7018_v11  ;;  %v6780_v15 = vadd.f32 %v5719_v19, %v4988_v43  ;;  %6058 = vperm.xlu1 %8983, %v5312_v9   ;;  %v4990_v24 = vadd.f32 %v4734_v28, %v3450_v36  ;;  %v3181_v9 = vmul.f32 %v16099_v59, %v16183_v61  ;;  %v16184_v8 = vld [vmem:[#allocation254_spill] sm:$0xff]  ;;  %v16185_v11 = vld [vmem:[#allocation273_spill] sm:$0xff]  ;;  %v16193_v16 = vld [vmem:[#allocation527_spill] sm:$0xff] }
 0x6f7   : > { %v4718_v30 = vmul.f32 %v12818_v58, %v16184_v8  ;;  %v3196_v43 = vmul.f32 %v16099_v59, %v16185_v11  ;;  %v4737_v41 = vmul.f32 %v12818_v58, %v16186_v55  ;;  %v4975_v40 = vadd.f32 %v4719_v7, %v3435_v17  ;;  %v16188_v2 = vld [vmem:[#allocation257_spill] sm:$0xff] }
 0x6f8   : > { %v7036_v29 = vmax.f32 %v6780_v15, 0.0  ;;  %v5654_v33 = vpop.permute.xlu0 %5653  ;;  %8665 = vmatpush3.bf16.msra.mxu1 %v7260_v20  ;;  %v3453_v44 = vadd.f32 %v3197_v31, %v1913_v50  ;;  %v1896_v19 = vmul.f32 %v12717_v38, %v16187_v12  ;;  %v7039_v20 = vmax.f32 %v6783_v1, 0.0 }
 0x6f9   : > { %v5639_v23 = vpop.permute.xlu1 %5638  ;;  %5833 = vperm.xlu0 %8982, %v5267_v22   ;;  %v4974_v42 = vadd.f32 %v4718_v30, %v3434_v21  ;;  %v3452_v51 = vadd.f32 %v3196_v43, %v1912_v48  ;;  %v6767_v15 = vadd.f32 %v5654_v33, %v4975_v40  ;;  %v3437_v4 = vadd.f32 %v3181_v9, %v1897_v39  ;;  %v5285_v33 = vld [vmem:[%s15294_s2 + $0x2f8] sm:$0xff]  ;;  %v16194_v21 = vld [vmem:[#allocation19_spill] sm:$0xff]  ;;  %v16198_v39 = vld [vmem:[#allocation530_spill] sm:$0xff] }
 0x6fa   : > { %v6764_v13 = vadd.f32 %v5639_v23, %v4972_v62  ;;  %5978 = vperm.xlu1 %8983, %v5296_v14   ;;  %v7269_v37 = vpack.c.bf16 %v7037_v34, %v7036_v29  ;;  %v3180_v62 = vmul.f32 %v16099_v59, %v16188_v2  ;;  %v16189_v14 = vld [vmem:[#allocation272_spill] sm:$0xff]  ;;  %v4721_v29 = vmul.f32 %v12818_v58, %v16190_v27  ;;  %v16199_v43 = vld [vmem:[#allocation511_spill] sm:$0xff] }
 0x6fb   : > { %v4736_v36 = vmul.f32 %v12818_v58, %v16189_v14  ;;  %v4993_v17 = vadd.f32 %v4737_v41, %v3453_v44  ;;  %v1915_v28 = vmul.f32 %v12717_v38, %v16191_v35  ;;  %v16192_v23 = vld [vmem:[#allocation36_spill] sm:$0xff]  ;;  %v1899_v46 = vmul.f32 %v12717_v38, %v16194_v21  ;;  %v5298_v41 = vld [vmem:[%s15294_s2 + $0x360] sm:$0xff] }
 0x6fc   : > { %v7020_v10 = vmax.f32 %v6764_v13, 0.0  ;;  %v5744_v47 = vpop.permute.xlu0 %5743  ;;  %8666 = vmatprep.subr.bf16.mxu1 %v7269_v37  ;;  %v3199_v57 = vmul.f32 %v16099_v59, %v16192_v23  ;;  %v3436_v7 = vadd.f32 %v3180_v62, %v1896_v19  ;;  %v1914_v13 = vmul.f32 %v12717_v38, %v16193_v16  ;;  %v5314_v37 = vld [vmem:[%s15294_s2 + $0x3e0] sm:$0xff]  ;;  %v16195_v48 = vld [vmem:[#allocation20_spill] sm:$0xff]  ;;  %v16200_v19 = vld [vmem:[#allocation259_spill] sm:$0xff] }
 0x6fd   : > { %v5729_v52 = vpop.permute.xlu1 %5728  ;;  %6073 = vperm.xlu0 %8982, %v5315_v60   ;;  %v7023_v60 = vmax.f32 %v6767_v15, 0.0  ;;  %v6785_v18 = vadd.f32 %v5744_v47, %v4993_v17  ;;  %v4992_v31 = vadd.f32 %v4736_v36, %v3452_v51  ;;  %v4739_v47 = vmul.f32 %v12818_v58, %v16198_v39  ;;  %v5269_v30 = vld [vmem:[%s15294_s2 + $0x278] sm:$0xff]  ;;  %v16202_v15 = vld [vmem:[#allocation514_spill] sm:$0xff] }
 0x6fe   : > { %v7261_v26 = vpack.c.bf16 %v7021_v0, %v7020_v10  ;;  %v6782_v32 = vadd.f32 %v5729_v52, %v4990_v24  ;;  %5908 = vperm.xlu1 %8983, %v5282_v45   ;;  %v3183_v45 = vmul.f32 %v16099_v59, %v16195_v48  ;;  %v16196_v0 = vld [vmem:[#allocation256_spill] sm:$0xff]  ;;  %v16197_v10 = vld [vmem:[#allocation275_spill] sm:$0xff]  ;;  %v4977_v61 = vadd.f32 %v4721_v29, %v3437_v4  ;;  %v16203_v14 = vld [vmem:[#allocation37_spill] sm:$0xff] }
 0x6ff   : > { %v4720_v1 = vmul.f32 %v12818_v58, %v16196_v0  ;;  %v3198_v24 = vmul.f32 %v16099_v59, %v16197_v10  ;;  %v3455_v11 = vadd.f32 %v3199_v57, %v1915_v28  ;;  %v1898_v52 = vmul.f32 %v12717_v38, %v16199_v43  ;;  %v16205_v17 = vld [vmem:[#allocation529_spill] sm:$0xff] }
 0x700   : > { %v7038_v22 = vmax.f32 %v6782_v32, 0.0  ;;  %v5664_v3 = vpop.permute.xlu0 %5663  ;;  %8667 = vmatpush3.bf16.msra.mxu1 %v7261_v26  ;;  %v7041_v26 = vmax.f32 %v6785_v18, 0.0  ;;  %v3439_v12 = vadd.f32 %v3183_v45, %v1899_v46  ;;  %v1917_v36 = vmul.f32 %v12717_v38, %v16203_v14  ;;  %v16210_v46 = vld [vmem:[#allocation532_spill] sm:$0xff] }
 0x701   : > { %v5649_v34 = vpop.permute.xlu1 %5648  ;;  %5993 = vperm.xlu0 %8982, %v5299_v63   ;;  %v4976_v55 = vadd.f32 %v4720_v1, %v3436_v7  ;;  %v3454_v40 = vadd.f32 %v3198_v24, %v1914_v13  ;;  %v6769_v32 = vadd.f32 %v5664_v3, %v4977_v61  ;;  %v4995_v4 = vadd.f32 %v4739_v47, %v3455_v11  ;;  %v5317_v3 = vld [vmem:[%s15294_s2 + $0x3f8] sm:$0xff]  ;;  %v16207_v13 = vld [vmem:[#allocation22_spill] sm:$0xff]  ;;  %v5268_v47 = vld [vmem:[%s15294_s2 + $0x270] sm:$0xff] }
 0x702   : > { %v6766_v53 = vadd.f32 %v5649_v34, %v4974_v42  ;;  %5828 = vperm.xlu1 %8983, %v5266_v25   ;;  %v7270_v54 = vpack.c.bf16 %v7039_v20, %v7038_v22  ;;  %v3182_v42 = vmul.f32 %v16099_v59, %v16200_v19  ;;  %v16201_v25 = vld [vmem:[#allocation274_spill] sm:$0xff]  ;;  %v4723_v22 = vmul.f32 %v12818_v58, %v16202_v15  ;;  %v16206_v7 = vld [vmem:[#allocation21_spill] sm:$0xff] }
 0x703   : > { %v4738_v51 = vmul.f32 %v12818_v58, %v16201_v25  ;;  %v16204_v34 = vld [vmem:[#allocation38_spill] sm:$0xff]  ;;  %v1901_v16 = vmul.f32 %v12717_v38, %v16206_v7  ;;  %v5301_v1 = vld [vmem:[%s15294_s2 + $0x378] sm:$0xff]  ;;  %v16215_v25 = vld [vmem:[#allocation55_spill] sm:$0xff] }
 0x704   : > { %v7022_v50 = vmax.f32 %v6766_v53, 0.0  ;;  %v5754_v5 = vpop.permute.xlu0 %5753  ;;  %8668 = vmatprep.subr.bf16.mxu1 %v7270_v54  ;;  %v3201_v27 = vmul.f32 %v16099_v59, %v16204_v34  ;;  %v3438_v29 = vadd.f32 %v3182_v42, %v1898_v52  ;;  %v1916_v53 = vmul.f32 %v12717_v38, %v16205_v17  ;;  %v5284_v54 = vld [vmem:[%s15294_s2 + $0x2f0] sm:$0xff]  ;;  %v16211_v24 = vld [vmem:[#allocation513_spill] sm:$0xff] }
 0x705   : > { %v5739_v6 = vpop.permute.xlu1 %5738  ;;  %5923 = vperm.xlu0 %8982, %v5285_v33   ;;  %v7025_v33 = vmax.f32 %v6769_v32, 0.0  ;;  %v6787_v35 = vadd.f32 %v5754_v5, %v4995_v4  ;;  %v4994_v57 = vadd.f32 %v4738_v51, %v3454_v40  ;;  %v4741_v5 = vmul.f32 %v12818_v58, %v16210_v46  ;;  %v16212_v52 = vld [vmem:[#allocation261_spill] sm:$0xff]  ;;  %v16214_v32 = vld [vmem:[#allocation516_spill] sm:$0xff]  ;;  %v16217_v4 = vld [vmem:[#allocation547_spill] sm:$0xff] }
 0x706   : > { %v7262_v9 = vpack.c.bf16 %v7023_v60, %v7022_v50  ;;  %v6784_v8 = vadd.f32 %v5739_v6, %v4992_v31  ;;  %6068 = vperm.xlu1 %8983, %v5314_v37   ;;  %v3185_v37 = vmul.f32 %v16099_v59, %v16207_v13  ;;  %v16208_v60 = vld [vmem:[#allocation258_spill] sm:$0xff]  ;;  %v16209_v50 = vld [vmem:[#allocation277_spill] sm:$0xff]  ;;  %v4979_v48 = vadd.f32 %v4723_v22, %v3439_v12 }
 0x707   : > { %v4722_v18 = vmul.f32 %v12818_v58, %v16208_v60  ;;  %v3200_v31 = vmul.f32 %v16099_v59, %v16209_v50  ;;  %v3457_v10 = vadd.f32 %v3201_v27, %v1917_v36  ;;  %v1900_v6 = vmul.f32 %v12717_v38, %v16211_v24 }
 0x708   : > { %v7040_v63 = vmax.f32 %v6784_v8, 0.0  ;;  %v5674_v44 = vpop.permute.xlu0 %5673  ;;  %8669 = vmatpush3.bf16.msra.mxu1 %v7262_v9  ;;  %v7043_v9 = vmax.f32 %v6787_v35, 0.0  ;;  %v3441_v43 = vadd.f32 %v3185_v37, %v1901_v16  ;;  %v1935_v51 = vmul.f32 %v12717_v38, %v16215_v25  ;;  %v16222_v16 = vld [vmem:[#allocation550_spill] sm:$0xff] }
 0x709   : > { %v5659_v20 = vpop.permute.xlu1 %5658  ;;  %5843 = vperm.xlu0 %8982, %v5269_v30   ;;  %v4978_v39 = vadd.f32 %v4722_v18, %v3438_v29  ;;  %v3456_v61 = vadd.f32 %v3200_v31, %v1916_v53  ;;  %v6771_v8 = vadd.f32 %v5674_v44, %v4979_v48  ;;  %v4997_v12 = vadd.f32 %v4741_v5, %v3457_v10  ;;  %v5335_v44 = vld [vmem:[%s15294_s2 + $0x488] sm:$0xff]  ;;  %v16219_v53 = vld [vmem:[#allocation40_spill] sm:$0xff] }
 0x70a   : > { %v6768_v2 = vadd.f32 %v5659_v20, %v4976_v55  ;;  %5988 = vperm.xlu1 %8983, %v5298_v41   ;;  %v7271_v62 = vpack.c.bf16 %v7041_v26, %v7040_v63  ;;  %v3184_v55 = vmul.f32 %v16099_v59, %v16212_v52  ;;  %v16213_v41 = vld [vmem:[#allocation276_spill] sm:$0xff]  ;;  %v4725_v63 = vmul.f32 %v12818_v58, %v16214_v32  ;;  %v16218_v29 = vld [vmem:[#allocation39_spill] sm:$0xff] }
 0x70b   : > { %v4740_v40 = vmul.f32 %v12818_v58, %v16213_v41  ;;  %v16216_v20 = vld [vmem:[#allocation56_spill] sm:$0xff]  ;;  %v1919_v17 = vmul.f32 %v12717_v38, %v16218_v29  ;;  %v5319_v18 = vld [vmem:[%s15294_s2 + $0x408] sm:$0xff] }
 0x70c   : > { %v7024_v28 = vmax.f32 %v6768_v2, 0.0  ;;  %v5764_v23 = vpop.permute.xlu0 %5763  ;;  %8670 = vmatprep.subr.bf16.mxu1 %v7271_v62  ;;  %v3219_v15 = vmul.f32 %v16099_v59, %v16216_v20  ;;  %v3440_v22 = vadd.f32 %v3184_v55, %v1900_v6  ;;  %v1934_v2 = vmul.f32 %v12717_v38, %v16217_v4  ;;  %v5316_v62 = vld [vmem:[%s15294_s2 + $0x3f0] sm:$0xff]  ;;  %v5367_v55 = vld [vmem:[%s15294_s2 + $0x588] sm:$0xff] }
 0x70d   : > { %v5749_v21 = vpop.permute.xlu1 %5748  ;;  %6083 = vperm.xlu0 %8982, %v5317_v3   ;;  %v7027_v3 = vmax.f32 %v6771_v8, 0.0  ;;  %v6789_v14 = vadd.f32 %v5764_v23, %v4997_v12  ;;  %v4996_v27 = vadd.f32 %v4740_v40, %v3456_v61  ;;  %v4759_v23 = vmul.f32 %v12818_v58, %v16222_v16  ;;  %v16223_v31 = vld [vmem:[#allocation531_spill] sm:$0xff]  ;;  %v16226_v8 = vld [vmem:[#allocation534_spill] sm:$0xff] }
 0x70e   : > { %v7263_v45 = vpack.c.bf16 %v7025_v33, %v7024_v28  ;;  %v6786_v0 = vadd.f32 %v5749_v21, %v4994_v57  ;;  %5918 = vperm.xlu1 %8983, %v5284_v54   ;;  %v3203_v54 = vmul.f32 %v16099_v59, %v16219_v53  ;;  %v16220_v33 = vld [vmem:[#allocation260_spill] sm:$0xff]  ;;  %v16221_v28 = vld [vmem:[#allocation295_spill] sm:$0xff]  ;;  %v4981_v13 = vadd.f32 %v4725_v63, %v3441_v43 }
 0x70f   : > { %v4724_v35 = vmul.f32 %v12818_v58, %v16220_v33  ;;  %v3218_v57 = vmul.f32 %v16099_v59, %v16221_v28  ;;  %v3475_v50 = vadd.f32 %v3219_v15, %v1935_v51  ;;  %v1918_v21 = vmul.f32 %v12717_v38, %v16223_v31  ;;  %v5300_v5 = vld [vmem:[%s15294_s2 + $0x370] sm:$0xff] }
 0x710   : > { %v7042_v30 = vmax.f32 %v6786_v0, 0.0  ;;  %v5684_v11 = vpop.permute.xlu0 %5683  ;;  %8671 = vmatpush3.bf16.msra.mxu1 %v7263_v45  ;;  %v7045_v48 = vmax.f32 %v6789_v14, 0.0  ;;  %v3459_v24 = vadd.f32 %v3203_v54, %v1919_v17  ;;  %v16224_v6 = vld [vmem:[#allocation279_spill] sm:$0xff]  ;;  %v16234_v17 = vld [vmem:[#allocation582_spill] sm:$0xff]  ;;  %v16235_v28 = vld [vmem:[#allocation72_spill] sm:$0xff] }
 0x711   : > { %v5669_v26 = vpop.permute.xlu1 %5668  ;;  %6003 = vperm.xlu0 %8982, %v5301_v1   ;;  %v3474_v46 = vadd.f32 %v3218_v57, %v1934_v2  ;;  %v6773_v45 = vadd.f32 %v5684_v11, %v4981_v13  ;;  %v4980_v10 = vadd.f32 %v4724_v35, %v3440_v22  ;;  %v5015_v43 = vadd.f32 %v4759_v23, %v3475_v50  ;;  %v16227_v41 = vld [vmem:[#allocation87_spill] sm:$0xff]  ;;  %v16230_v22 = vld [vmem:[#allocation41_spill] sm:$0xff] }
 0x712   : > { %v6770_v19 = vadd.f32 %v5669_v26, %v4978_v39  ;;  %5838 = vperm.xlu1 %8983, %v5268_v47   ;;  %v7272_v42 = vpack.c.bf16 %v7043_v9, %v7042_v30  ;;  %v3202_v39 = vmul.f32 %v16099_v59, %v16224_v6  ;;  %v16225_v47 = vld [vmem:[#allocation294_spill] sm:$0xff]  ;;  %v4743_v30 = vmul.f32 %v12818_v58, %v16226_v8  ;;  %v16228_v26 = vld [vmem:[#allocation88_spill] sm:$0xff]  ;;  %v16231_v2 = vld [vmem:[#allocation71_spill] sm:$0xff] }
 0x713   : > { %v4758_v61 = vmul.f32 %v12818_v58, %v16225_v47  ;;  %v1967_v40 = vmul.f32 %v12717_v38, %v16227_v41  ;;  %v3251_v32 = vmul.f32 %v16099_v59, %v16228_v26  ;;  %v7029_v25 = vmax.f32 %v6773_v45, 0.0  ;;  %v5351_v35 = vld [vmem:[%s15294_s2 + $0x508] sm:$0xff] }
 0x714   : > { %v7026_v36 = vmax.f32 %v6770_v19, 0.0  ;;  %v5854_v34 = vpop.permute.xlu0 %5853  ;;  %8672 = vmatprep.subr.bf16.mxu1 %v7272_v42  ;;  %v3458_v63 = vadd.f32 %v3202_v39, %v1918_v21  ;;  %v5334_v19 = vld [vmem:[%s15294_s2 + $0x480] sm:$0xff]  ;;  %v16229_v42 = vld [vmem:[#allocation579_spill] sm:$0xff]  ;;  %v13509_v4 = vmul.f32 %v12717_v38, %v16230_v22  ;;  %v4999_v53 = vadd.f32 %v4743_v30, %v3459_v24  ;;  %v5337_v30 = vld [vmem:[%s15294_s2 + $0x498] sm:$0xff] }
 0x715   : > { %v5759_v7 = vpop.permute.xlu1 %5758  ;;  %6173 = vperm.xlu0 %8982, %v5335_v44   ;;  %v5014_v12 = vadd.f32 %v4758_v61, %v3474_v46  ;;  %v1966_v44 = vmul.f32 %v12717_v38, %v16229_v42  ;;  %v6807_v51 = vadd.f32 %v5854_v34, %v5015_v43  ;;  %v4791_v34 = vmul.f32 %v12818_v58, %v16234_v17  ;;  %v16236_v16 = vld [vmem:[#allocation563_spill] sm:$0xff]  ;;  %v16237_v46 = vld [vmem:[#allocation57_spill] sm:$0xff]  ;;  %v16240_v24 = vld [vmem:[#allocation326_spill] sm:$0xff] }
 0x716   : > { %v7264_v37 = vpack.c.bf16 %v7027_v3, %v7026_v36  ;;  %v6788_v60 = vadd.f32 %v5759_v7, %v4996_v27  ;;  %6078 = vperm.xlu1 %8983, %v5316_v62   ;;  %v1951_v62 = vmul.f32 %v12717_v38, %v16231_v2  ;;  %v16232_v3 = vld [vmem:[#allocation278_spill] sm:$0xff]  ;;  %v16233_v36 = vld [vmem:[#allocation327_spill] sm:$0xff]  ;;  %v3235_v57 = vmul.f32 %v16099_v59, %v16235_v28 }
 0x717   : > { %v4742_v14 = vmul.f32 %v12818_v58, %v16232_v3  ;;  %v3250_v27 = vmul.f32 %v16099_v59, %v16233_v36  ;;  %v3507_v7 = vadd.f32 %v3251_v32, %v1967_v40  ;;  %v1950_v23 = vmul.f32 %v12717_v38, %v16236_v16  ;;  %v16241_v47 = vld [vmem:[#allocation566_spill] sm:$0xff]  ;;  %v16246_v3 = vld [vmem:[#allocation552_spill] sm:$0xff] }
 0x718   : > { %v7044_v0 = vmax.f32 %v6788_v60, 0.0  ;;  %v5774_v1 = vpop.permute.xlu0 %5773  ;;  %8673 = vmatpush3.bf16.msra.mxu1 %v7264_v37  ;;  %v5318_v37 = vld [vmem:[%s15294_s2 + $0x400] sm:$0xff]  ;;  %v7063_v21 = vmax.f32 %v6807_v51, 0.0  ;;  %v4790_v6 = vmul.f32 %v12818_v58, %v16240_v24  ;;  %v7239_v43 = vld [vmem:[%s15295_s3 + $0x8] sm:$0xff] }
 0x719   : > { %v5679_v9 = vpop.permute.xlu1 %5678  ;;  %6093 = vperm.xlu0 %8982, %v5319_v18   ;;  %v4998_v13 = vadd.f32 %v4742_v14, %v3458_v63  ;;  %v3506_v60 = vadd.f32 %v3250_v27, %v1966_v44  ;;  %v6791_v18 = vadd.f32 %v5774_v1, %v4999_v53  ;;  %v4775_v1 = vmul.f32 %v12818_v58, %v16241_v47  ;;  %v5366_v40 = vld [vmem:[%s15294_s2 + $0x580] sm:$0xff] }
 0x71a   : > { %v6772_v52 = vadd.f32 %v5679_v9, %v4980_v10  ;;  %5998 = vperm.xlu1 %8983, %v5300_v5   ;;  %v7273_v11 = vpack.c.bf16 %v7045_v48, %v7044_v0  ;;  %v1937_v5 = vmul.f32 %v12717_v38, %v16237_v46  ;;  %v16238_v48 = vld [vmem:[#allocation58_spill] sm:$0xff]  ;;  %v16239_v0 = vld [vmem:[#allocation311_spill] sm:$0xff]  ;;  %v5047_v61 = vadd.f32 %v4791_v34, %v3507_v7  ;;  %v16244_v51 = vld [vmem:[#allocation297_spill] sm:$0xff] }
 0x71b   : > { %v3221_v45 = vmul.f32 %v16099_v59, %v16238_v48  ;;  %v3234_v10 = vmul.f32 %v16099_v59, %v16239_v0  ;;  %v13552_v26 = vrot.slane %v7239_v43, %v16132_v49  ;;  %v7047_v32 = vmax.f32 %v6791_v18, 0.0  ;;  %v16243_v44 = vld [vmem:[#allocation42_spill] sm:$0xff]  ;;  %v16247_v34 = vld [vmem:[#allocation533_spill] sm:$0xff]  ;;  %v16251_v48 = vld [vmem:[#allocation536_spill] sm:$0xff] }
 0x71c   : > { %v7028_v20 = vmax.f32 %v6772_v52, 0.0  ;;  %v6014_v15 = vpop.permute.xlu0 %6013  ;;  %8674 = vmatprep.subr.bf16.mxu1 %v7273_v11  ;;  %v3491_v52 = vadd.f32 %v3235_v57, %v1951_v62  ;;  %v16242_v11 = vld [vmem:[#allocation549_spill] sm:$0xff]  ;;  %v5046_v42 = vadd.f32 %v4790_v6, %v3506_v60  ;;  %v16245_v22 = vld [vmem:[#allocation310_spill] sm:$0xff]  ;;  %v1920_v53 = vmul.f32 %v12717_v38, %v16247_v34 }
 0x71d   : > { %v5849_v29 = vpop.permute.xlu1 %5848  ;;  %6333 = vperm.xlu0 %8982, %v5367_v55   ;;  %v1936_v55 = vmul.f32 %v12717_v38, %v16242_v11  ;;  %v3490_v41 = vadd.f32 %v3234_v10, %v1950_v23  ;;  %v6839_v63 = vadd.f32 %v6014_v15, %v5047_v61  ;;  %v4774_v2 = vmul.f32 %v12818_v58, %v16245_v22  ;;  %v16249_v18 = vld [vmem:[#allocation281_spill] sm:$0xff]  ;;  %v16252_v24 = vld [vmem:[#allocation90_spill] sm:$0xff] }
 0x71e   : > { %v7265_v54 = vpack.c.bf16 %v7029_v25, %v7028_v20  ;;  %v6806_v33 = vadd.f32 %v5849_v29, %v5014_v12  ;;  %6168 = vperm.xlu1 %8983, %v5334_v19   ;;  %v3205_v25 = vmul.f32 %v16099_v59, %v16243_v44  ;;  %v3220_v20 = vmul.f32 %v16099_v59, %v16244_v51  ;;  %v5321_v29 = vld [vmem:[%s15294_s2 + $0x418] sm:$0xff] }
 0x71f   : > { %v4761_v15 = vmul.f32 %v12818_v58, %v16246_v3  ;;  %v5031_v14 = vadd.f32 %v4775_v1, %v3491_v52  ;;  %v3477_v17 = vadd.f32 %v3221_v45, %v1937_v5  ;;  %v7095_v28 = vmax.f32 %v6839_v63, 0.0  ;;  %v5336_v1 = vld [vmem:[%s15294_s2 + $0x490] sm:$0xff]  ;;  %v16256_v63 = vld [vmem:[#allocation329_spill] sm:$0xff] }
 0x720   : > { %v5934_v50 = vpop.permute.xlu0 %5933  ;;  %8675 = vmatpush3.bf16.msra.mxu1 %v7265_v54  ;;  %v7062_v31 = vmax.f32 %v6806_v33, 0.0  ;;  %v3476_v54 = vadd.f32 %v3220_v20, %v1936_v55  ;;  %v5030_v33 = vadd.f32 %v4774_v2, %v3490_v41  ;;  %v7397_v23 = vcombine.high %v7239_v43, %v7239_v43  ;;  %v16254_v55 = vld [vmem:[#allocation73_spill] sm:$0xff] }
 0x721   : > { %v5769_v39 = vpop.permute.xlu1 %5768  ;;  %6253 = vperm.xlu0 %8982, %v5351_v35   ;;  %v5350_v35 = vld [vmem:[%s15294_s2 + $0x500] sm:$0xff]  ;;  %v6823_v57 = vadd.f32 %v5934_v50, %v5031_v14  ;;  %v4745_v50 = vmul.f32 %v12818_v58, %v16251_v48  ;;  %v5017_v45 = vadd.f32 %v4761_v15, %v3477_v17  ;;  %v3253_v6 = vmul.f32 %v16099_v59, %v16252_v24  ;;  %v5353_v2 = vld [vmem:[%s15294_s2 + $0x518] sm:$0xff] }
 0x722   : > { %v6790_v9 = vadd.f32 %v5769_v39, %v4998_v13  ;;  %6088 = vperm.xlu1 %8983, %v5318_v37   ;;  %v7282_v8 = vpack.c.bf16 %v7063_v21, %v7062_v31  ;;  %v3461_v13 = vadd.f32 %v3205_v25, %v13509_v4  ;;  %v16248_v37 = vld [vmem:[#allocation89_spill] sm:$0xff]  ;;  %v3204_v31 = vmul.f32 %v16099_v59, %v16249_v18  ;;  %v16250_v21 = vld [vmem:[#allocation296_spill] sm:$0xff] }
 0x723   : > { %7537 = vmatmul.mubr.bf16.vlgmr.msra.gmra.mrb[4].mxu1 %v13214_v56  ;;  %v7412_v56 = vcombine.high %v13552_v26, %v13552_v26  ;;  %v1969_v60 = vmul.f32 %v12717_v38, %v16248_v37  ;;  %v4760_v46 = vmul.f32 %v12818_v58, %v16250_v21  ;;  %v5369_v4 = vld [vmem:[%s15294_s2 + $0x598] sm:$0xff]  ;;  %v13590_v61 = vrot.slane %v7397_v23, %v16132_v49  ;;  %v5339_v21 = vld [vmem:[%s15294_s2 + $0x4a8] sm:$0xff] }
 0x724   : > { %v7046_v12 = vmax.f32 %v6790_v9, 0.0  ;;  %v5864_v19 = vpop.permute.xlu0 %5863  ;;  %8682 = vmatprep.subr.bf16.mxu0 %v7282_v8  ;;  %v3460_v39 = vadd.f32 %v3204_v31, %v1920_v53  ;;  %v16253_v9 = vld [vmem:[#allocation581_spill] sm:$0xff]  ;;  %v1953_v41 = vmul.f32 %v12717_v38, %v16254_v55  ;;  %v16257_v25 = vld [vmem:[#allocation584_spill] sm:$0xff]  ;;  %v5001_v51 = vadd.f32 %v4745_v50, %v3461_v13  ;;  %v16265_v50 = vld [vmem:[#allocation551_spill] sm:$0xff] }
 0x725   : > { %v6009_v62 = vpop.permute.xlu1 %6008  ;;  %6183 = vperm.xlu0 %8982, %v5337_v30   ;;  %7576 = vmatprep.mubr.bf16.mxu0 %v7412_v56  ;;  %v5016_v47 = vadd.f32 %v4760_v46, %v3476_v54  ;;  %v1968_v8 = vmul.f32 %v12717_v38, %v16253_v9  ;;  %v7079_v30 = vmax.f32 %v6823_v57, 0.0  ;;  %v6809_v43 = vadd.f32 %v5864_v19, %v5017_v45  ;;  %v16259_v15 = vld [vmem:[#allocation565_spill] sm:$0xff]  ;;  %v16263_v37 = vld [vmem:[#allocation568_spill] sm:$0xff] }
 0x726   : > { %v6838_v36 = vadd.f32 %v6009_v62, %v5046_v42  ;;  %6328 = vperm.xlu1 %8983, %v5366_v40   ;;  %v7274_v27 = vpack.c.bf16 %v7047_v32, %v7046_v12  ;;  %v16255_v40 = vld [vmem:[#allocation280_spill] sm:$0xff]  ;;  %v3252_v12 = vmul.f32 %v16099_v59, %v16256_v63  ;;  %v7413_v44 = vcombine.high %v13590_v61, %v13590_v61  ;;  %v16258_v62 = vld [vmem:[#allocation74_spill] sm:$0xff] }
 0x727   : > { %v4744_v32 = vmul.f32 %v12818_v58, %v16255_v40  ;;  %v4793_v19 = vmul.f32 %v12818_v58, %v16257_v25  ;;  %v3237_v56 = vmul.f32 %v16099_v59, %v16258_v62  ;;  %v3509_v3 = vadd.f32 %v3253_v6, %v1969_v60  ;;  %v16264_v46 = vld [vmem:[#allocation60_spill] sm:$0xff] }
 0x728   : > { %v7094_v7 = vmax.f32 %v6838_v36, 0.0  ;;  %v5784_v16 = vpop.permute.xlu0 %5783  ;;  %8683 = vmatpush3.bf16.msra.mxu0 %v7274_v27  ;;  %v1952_v14 = vmul.f32 %v12717_v38, %v16259_v15  ;;  %v5320_v27 = vld [vmem:[%s15294_s2 + $0x410] sm:$0xff]  ;;  %7616 = vmatprep.mubr.bf16.mxu1 %v7413_v44  ;;  %v7065_v17 = vmax.f32 %v6809_v43, 0.0  ;;  %v4777_v60 = vmul.f32 %v12818_v58, %v16263_v37  ;;  %v5323_v44 = vld [vmem:[%s15294_s2 + $0x428] sm:$0xff] }
 0x729   : > { %v5929_v5 = vpop.permute.xlu1 %5928  ;;  %6103 = vperm.xlu0 %8982, %v5321_v29   ;;  %v5000_v36 = vadd.f32 %v4744_v32, %v3460_v39  ;;  %v3508_v29 = vadd.f32 %v3252_v12, %v1968_v8  ;;  %v6793_v34 = vadd.f32 %v5784_v16, %v5001_v51  ;;  %v5049_v18 = vadd.f32 %v4793_v19, %v3509_v3  ;;  %v16267_v8 = vld [vmem:[#allocation44_spill] sm:$0xff]  ;;  %v16268_v43 = vld [vmem:[#allocation299_spill] sm:$0xff]  ;;  %v16270_v32 = vld [vmem:[#allocation554_spill] sm:$0xff] }
 0x72a   : > { %v6822_v0 = vadd.f32 %v5929_v5, %v5030_v33  ;;  %6248 = vperm.xlu1 %8983, %v5350_v35   ;;  %v7298_v10 = vpack.c.bf16 %v7095_v28, %v7094_v7  ;;  %v16260_v33 = vld [vmem:[#allocation59_spill] sm:$0xff]  ;;  %v16261_v28 = vld [vmem:[#allocation313_spill] sm:$0xff]  ;;  %v16262_v7 = vld [vmem:[#allocation328_spill] sm:$0xff]  ;;  %v3223_v5 = vmul.f32 %v16099_v59, %v16264_v46  ;;  %v3493_v48 = vadd.f32 %v3237_v56, %v1953_v41 }
 0x72b   : > { %v1939_v35 = vmul.f32 %v12717_v38, %v16260_v33  ;;  %v3236_v57 = vmul.f32 %v16099_v59, %v16261_v28  ;;  %v4792_v23 = vmul.f32 %v12818_v58, %v16262_v7  ;;  %v1938_v45 = vmul.f32 %v12717_v38, %v16265_v50  ;;  %v16269_v55 = vld [vmem:[#allocation312_spill] sm:$0xff]  ;;  %v16271_v19 = vld [vmem:[#allocation535_spill] sm:$0xff] }
 0x72c   : > { %v7078_v52 = vmax.f32 %v6822_v0, 0.0  ;;  %v6024_v11 = vpop.permute.xlu0 %6023  ;;  %8704 = vmatprep.subr.bf16.mxu1 %v7298_v10  ;;  %v5368_v10 = vld [vmem:[%s15294_s2 + $0x590] sm:$0xff]  ;;  %v4776_v41 = vmul.f32 %v12818_v58, %v16269_v55  ;;  %v5033_v63 = vadd.f32 %v4777_v60, %v3493_v48  ;;  %v1922_v51 = vmul.f32 %v12717_v38, %v16271_v19 }
 0x72d   : > { %v5859_v42 = vpop.permute.xlu1 %5858  ;;  %6343 = vperm.xlu0 %8982, %v5369_v4   ;;  %v3492_v0 = vadd.f32 %v3236_v57, %v1952_v14  ;;  %v7049_v4 = vmax.f32 %v6793_v34, 0.0  ;;  %v6841_v24 = vadd.f32 %v6024_v11, %v5049_v18  ;;  %v4763_v11 = vmul.f32 %v12818_v58, %v16270_v32  ;;  %v5371_v57 = vld [vmem:[%s15294_s2 + $0x5a8] sm:$0xff] }
 0x72e   : > { %v7290_v20 = vpack.c.bf16 %v7079_v30, %v7078_v52  ;;  %v6808_v22 = vadd.f32 %v5859_v42, %v5016_v47  ;;  %6178 = vperm.xlu1 %8983, %v5336_v1   ;;  %v5048_v47 = vadd.f32 %v4792_v23, %v3508_v29  ;;  %v16266_v1 = vld [vmem:[#allocation43_spill] sm:$0xff]  ;;  %v3207_v30 = vmul.f32 %v16099_v59, %v16267_v8  ;;  %v16273_v29 = vld [vmem:[#allocation298_spill] sm:$0xff] }
 0x72f   : > { %v1923_v9 = vmul.f32 %v12717_v38, %v16266_v1  ;;  %v3222_v52 = vmul.f32 %v16099_v59, %v16268_v43  ;;  %v3479_v25 = vadd.f32 %v3223_v5, %v1939_v35  ;;  %v5032_v15 = vadd.f32 %v4776_v41, %v3492_v0  ;;  %v16275_v7 = vld [vmem:[#allocation91_spill] sm:$0xff]  ;;  %v16281_v1 = vld [vmem:[#allocation586_spill] sm:$0xff] }
 0x730   : > { %v7064_v53 = vmax.f32 %v6808_v22, 0.0  ;;  %v5944_v54 = vpop.permute.xlu0 %5943  ;;  %8705 = vmatpush3.bf16.msra.mxu1 %v7290_v20  ;;  %v5352_v22 = vld [vmem:[%s15294_s2 + $0x510] sm:$0xff]  ;;  %v1971_v23 = vmul.f32 %v12717_v38, %v16275_v7  ;;  %v5355_v43 = vld [vmem:[%s15294_s2 + $0x528] sm:$0xff] }
 0x731   : > { %v5779_v13 = vpop.permute.xlu1 %5778  ;;  %6263 = vperm.xlu0 %8982, %v5353_v2   ;;  %v3478_v20 = vadd.f32 %v3222_v52, %v1938_v45  ;;  %v7097_v2 = vmax.f32 %v6841_v24, 0.0  ;;  %v6825_v62 = vadd.f32 %v5944_v54, %v5033_v63  ;;  %v3463_v14 = vadd.f32 %v3207_v30, %v1923_v9  ;;  %v16278_v45 = vld [vmem:[#allocation75_spill] sm:$0xff]  ;;  %v16282_v52 = vld [vmem:[#allocation76_spill] sm:$0xff]  ;;  %v5322_v63 = vld [vmem:[%s15294_s2 + $0x420] sm:$0xff] }
 0x732   : > { %v6792_v31 = vadd.f32 %v5779_v13, %v5000_v36  ;;  %6098 = vperm.xlu1 %8983, %v5320_v27   ;;  %v7283_v16 = vpack.c.bf16 %v7065_v17, %v7064_v53  ;;  %v16272_v36 = vld [vmem:[#allocation283_spill] sm:$0xff]  ;;  %v4762_v17 = vmul.f32 %v12818_v58, %v16273_v29  ;;  %v16274_v53 = vld [vmem:[#allocation538_spill] sm:$0xff]  ;;  %v5019_v35 = vadd.f32 %v4763_v11, %v3479_v25  ;;  %v16276_v13 = vld [vmem:[#allocation92_spill] sm:$0xff] }
 0x733   : > { %v3206_v27 = vmul.f32 %v16099_v59, %v16272_v36  ;;  %v4747_v33 = vmul.f32 %v12818_v58, %v16274_v53  ;;  %v3255_v37 = vmul.f32 %v16099_v59, %v16276_v13  ;;  %v7081_v46 = vmax.f32 %v6825_v62, 0.0  ;;  %v16280_v24 = vld [vmem:[#allocation331_spill] sm:$0xff]  ;;  %v16286_v62 = vld [vmem:[#allocation330_spill] sm:$0xff] }
 0x734   : > { %v7048_v6 = vmax.f32 %v6792_v31, 0.0  ;;  %v5874_v39 = vpop.permute.xlu0 %5873  ;;  %8684 = vmatprep.subr.bf16.mxu0 %v7283_v16  ;;  %v5018_v18 = vadd.f32 %v4762_v17, %v3478_v20  ;;  %v5338_v31 = vld [vmem:[%s15294_s2 + $0x4a0] sm:$0xff]  ;;  %v16277_v16 = vld [vmem:[#allocation583_spill] sm:$0xff]  ;;  %v1955_v0 = vmul.f32 %v12717_v38, %v16278_v45  ;;  %v4795_v9 = vmul.f32 %v12818_v58, %v16281_v1  ;;  %v5341_v17 = vld [vmem:[%s15294_s2 + $0x4b8] sm:$0xff] }
 0x735   : > { %v6019_v40 = vpop.permute.xlu1 %6018  ;;  %6193 = vperm.xlu0 %8982, %v5339_v21   ;;  %v3462_v60 = vadd.f32 %v3206_v27, %v1922_v51  ;;  %v1970_v21 = vmul.f32 %v12717_v38, %v16277_v16  ;;  %v6811_v5 = vadd.f32 %v5874_v39, %v5019_v35  ;;  %v5003_v8 = vadd.f32 %v4747_v33, %v3463_v14  ;;  %v16284_v51 = vld [vmem:[#allocation61_spill] sm:$0xff]  ;;  %v16287_v14 = vld [vmem:[#allocation570_spill] sm:$0xff] }
 0x736   : > { %v6840_v12 = vadd.f32 %v6019_v40, %v5048_v47  ;;  %6338 = vperm.xlu1 %8983, %v5368_v10   ;;  %v7275_v42 = vpack.c.bf16 %v7049_v4, %v7048_v6  ;;  %v16279_v10 = vld [vmem:[#allocation282_spill] sm:$0xff]  ;;  %v3254_v6 = vmul.f32 %v16099_v59, %v16280_v24  ;;  %v3239_v55 = vmul.f32 %v16099_v59, %v16282_v52  ;;  %v16283_v40 = vld [vmem:[#allocation567_spill] sm:$0xff]  ;;  %v16289_v35 = vld [vmem:[#allocation553_spill] sm:$0xff] }
 0x737   : > { %v4746_v4 = vmul.f32 %v12818_v58, %v16279_v10  ;;  %v3511_v41 = vadd.f32 %v3255_v37, %v1971_v23  ;;  %v1954_v32 = vmul.f32 %v12717_v38, %v16283_v40  ;;  %v1941_v20 = vmul.f32 %v12717_v38, %v16284_v51  ;;  %v16291_v16 = vld [vmem:[#allocation46_spill] sm:$0xff]  ;;  %v16294_v10 = vld [vmem:[#allocation556_spill] sm:$0xff] }
 0x738   : > { %v7096_v56 = vmax.f32 %v6840_v12, 0.0  ;;  %v5794_v3 = vpop.permute.xlu0 %5793  ;;  %8685 = vmatpush3.bf16.msra.mxu0 %v7275_v42  ;;  %v3510_v12 = vadd.f32 %v3254_v6, %v1970_v21  ;;  %v7067_v42 = vmax.f32 %v6811_v5, 0.0  ;;  %v4779_v36 = vmul.f32 %v12818_v58, %v16287_v14 }
 0x739   : > { %v5939_v34 = vpop.permute.xlu1 %5938  ;;  %6113 = vperm.xlu0 %8982, %v5323_v44   ;;  %v5002_v11 = vadd.f32 %v4746_v4, %v3462_v60  ;;  %v6795_v44 = vadd.f32 %v5794_v3, %v5003_v8  ;;  %v5051_v27 = vadd.f32 %v4795_v9, %v3511_v41  ;;  %v3495_v33 = vadd.f32 %v3239_v55, %v1955_v0  ;;  %v16295_v9 = vld [vmem:[#allocation537_spill] sm:$0xff] }
 0x73a   : > { %v6824_v28 = vadd.f32 %v5939_v34, %v5032_v15  ;;  %6258 = vperm.xlu1 %8983, %v5352_v22   ;;  %v7299_v54 = vpack.c.bf16 %v7097_v2, %v7096_v56  ;;  %v16285_v22 = vld [vmem:[#allocation315_spill] sm:$0xff]  ;;  %v4794_v56 = vmul.f32 %v12818_v58, %v16286_v62  ;;  %v16288_v34 = vld [vmem:[#allocation62_spill] sm:$0xff]  ;;  %v3209_v21 = vmul.f32 %v16099_v59, %v16291_v16  ;;  %v16299_v62 = vld [vmem:[#allocation93_spill] sm:$0xff] }
 0x73b   : > { %v3238_v2 = vmul.f32 %v16099_v59, %v16285_v22  ;;  %v3225_v53 = vmul.f32 %v16099_v59, %v16288_v34  ;;  %v7051_v7 = vmax.f32 %v6795_v44, 0.0  ;;  %v5035_v4 = vadd.f32 %v4779_v36, %v3495_v33 }
 0x73c   : > { %v7080_v48 = vmax.f32 %v6824_v28, 0.0  ;;  %v6034_v50 = vpop.permute.xlu0 %6033  ;;  %8706 = vmatprep.subr.bf16.mxu1 %v7299_v54  ;;  %v1940_v28 = vmul.f32 %v12717_v38, %v16289_v35  ;;  %v5050_v60 = vadd.f32 %v4794_v56, %v3510_v12  ;;  %v1924_v8 = vmul.f32 %v12717_v38, %v16295_v9  ;;  %v16297_v12 = vld [vmem:[#allocation300_spill] sm:$0xff] }
 0x73d   : > { %v5869_v47 = vpop.permute.xlu1 %5868  ;;  %6353 = vperm.xlu0 %8982, %v5371_v57   ;;  %v3494_v54 = vadd.f32 %v3238_v2, %v1954_v32  ;;  %v5370_v57 = vld [vmem:[%s15294_s2 + $0x5a0] sm:$0xff]  ;;  %v6843_v23 = vadd.f32 %v6034_v50, %v5051_v27  ;;  %v4765_v50 = vmul.f32 %v12818_v58, %v16294_v10  ;;  %v3481_v1 = vadd.f32 %v3225_v53, %v1941_v20  ;;  %v5373_v2 = vld [vmem:[%s15294_s2 + $0x5b8] sm:$0xff] }
 0x73e   : > { %v7291_v30 = vpack.c.bf16 %v7081_v46, %v7080_v48  ;;  %v6810_v39 = vadd.f32 %v5869_v47, %v5018_v18  ;;  %6188 = vperm.xlu1 %8983, %v5338_v31   ;;  %v16290_v18 = vld [vmem:[#allocation45_spill] sm:$0xff]  ;;  %v16293_v48 = vld [vmem:[#allocation314_spill] sm:$0xff]  ;;  %v1973_v56 = vmul.f32 %v12717_v38, %v16299_v62 }
 0x73f   : > { %v1925_v31 = vmul.f32 %v12717_v38, %v16290_v18  ;;  %v16292_v46 = vld [vmem:[#allocation301_spill] sm:$0xff]  ;;  %v4778_v45 = vmul.f32 %v12818_v58, %v16293_v48  ;;  %v5021_v20 = vadd.f32 %v4765_v50, %v3481_v1  ;;  %v16305_v18 = vld [vmem:[#allocation588_spill] sm:$0xff] }
 0x740   : > { %v7066_v25 = vmax.f32 %v6810_v39, 0.0  ;;  %v5954_v19 = vpop.permute.xlu0 %5953  ;;  %8707 = vmatpush3.bf16.msra.mxu1 %v7291_v30  ;;  %v3224_v5 = vmul.f32 %v16099_v59, %v16292_v46  ;;  %v5325_v47 = vld [vmem:[%s15294_s2 + $0x438] sm:$0xff]  ;;  %v5354_v39 = vld [vmem:[%s15294_s2 + $0x520] sm:$0xff] }
 0x741   : > { %v5789_v15 = vpop.permute.xlu1 %5788  ;;  %6273 = vperm.xlu0 %8982, %v5355_v43   ;;  %v7099_v43 = vmax.f32 %v6843_v23, 0.0  ;;  %v6827_v52 = vadd.f32 %v5954_v19, %v5035_v4  ;;  %v5034_v40 = vadd.f32 %v4778_v45, %v3494_v54  ;;  %v3465_v32 = vadd.f32 %v3209_v21, %v1925_v31  ;;  %v16304_v23 = vld [vmem:[#allocation333_spill] sm:$0xff]  ;;  %v5324_v4 = vld [vmem:[%s15294_s2 + $0x430] sm:$0xff] }
 0x742   : > { %v6794_v29 = vadd.f32 %v5789_v15, %v5002_v11  ;;  %6108 = vperm.xlu1 %8983, %v5322_v63   ;;  %v7284_v3 = vpack.c.bf16 %v7067_v42, %v7066_v25  ;;  %v3480_v30 = vadd.f32 %v3224_v5, %v1940_v28  ;;  %v16296_v11 = vld [vmem:[#allocation285_spill] sm:$0xff]  ;;  %v4764_v42 = vmul.f32 %v12818_v58, %v16297_v12  ;;  %v16298_v25 = vld [vmem:[#allocation540_spill] sm:$0xff]  ;;  %v16300_v15 = vld [vmem:[#allocation94_spill] sm:$0xff] }
 0x743   : > { %v3208_v63 = vmul.f32 %v16099_v59, %v16296_v11  ;;  %v4749_v51 = vmul.f32 %v12818_v58, %v16298_v25  ;;  %v3257_v14 = vmul.f32 %v16099_v59, %v16300_v15  ;;  %v7083_v34 = vmax.f32 %v6827_v52, 0.0  ;;  %v16302_v28 = vld [vmem:[#allocation77_spill] sm:$0xff]  ;;  %v16306_v5 = vld [vmem:[#allocation78_spill] sm:$0xff]  ;;  %v16310_v52 = vld [vmem:[#allocation332_spill] sm:$0xff] }
 0x744   : > { %v7050_v13 = vmax.f32 %v6794_v29, 0.0  ;;  %v5884_v37 = vpop.permute.xlu0 %5883  ;;  %8686 = vmatprep.subr.bf16.mxu0 %v7284_v3  ;;  %v5020_v27 = vadd.f32 %v4764_v42, %v3480_v30  ;;  %v5340_v29 = vld [vmem:[%s15294_s2 + $0x4b0] sm:$0xff]  ;;  %v16301_v3 = vld [vmem:[#allocation585_spill] sm:$0xff]  ;;  %v1957_v54 = vmul.f32 %v12717_v38, %v16302_v28  ;;  %v4797_v31 = vmul.f32 %v12818_v58, %v16305_v18  ;;  %v5343_v42 = vld [vmem:[%s15294_s2 + $0x4c8] sm:$0xff] }
 0x745   : > { %v6029_v0 = vpop.permute.xlu1 %6028  ;;  %6203 = vperm.xlu0 %8982, %v5341_v17   ;;  %v3464_v36 = vadd.f32 %v3208_v63, %v1924_v8  ;;  %v1972_v17 = vmul.f32 %v12717_v38, %v16301_v3  ;;  %v6813_v53 = vadd.f32 %v5884_v37, %v5021_v20  ;;  %v5005_v16 = vadd.f32 %v4749_v51, %v3465_v32  ;;  %v5357_v46 = vld [vmem:[%s15294_s2 + $0x538] sm:$0xff]  ;;  %v16308_v8 = vld [vmem:[#allocation63_spill] sm:$0xff] }
 0x746   : > { %v6842_v24 = vadd.f32 %v6029_v0, %v5050_v60  ;;  %6348 = vperm.xlu1 %8983, %v5370_v57   ;;  %v7276_v6 = vpack.c.bf16 %v7051_v7, %v7050_v13  ;;  %v16303_v57 = vld [vmem:[#allocation284_spill] sm:$0xff]  ;;  %v3256_v13 = vmul.f32 %v16099_v59, %v16304_v23  ;;  %v3241_v48 = vmul.f32 %v16099_v59, %v16306_v5  ;;  %v16307_v0 = vld [vmem:[#allocation569_spill] sm:$0xff]  ;;  %v16313_v20 = vld [vmem:[#allocation555_spill] sm:$0xff] }
 0x747   : > { %v4748_v7 = vmul.f32 %v12818_v58, %v16303_v57  ;;  %v3513_v45 = vadd.f32 %v3257_v14, %v1973_v56  ;;  %v1956_v10 = vmul.f32 %v12717_v38, %v16307_v0  ;;  %v1943_v30 = vmul.f32 %v12717_v38, %v16308_v8  ;;  %v16311_v32 = vld [vmem:[#allocation572_spill] sm:$0xff]  ;;  %v16318_v57 = vld [vmem:[#allocation558_spill] sm:$0xff] }
 0x748   : > { %v7098_v55 = vmax.f32 %v6842_v24, 0.0  ;;  %v5804_v41 = vpop.permute.xlu0 %5803  ;;  %8687 = vmatpush3.bf16.msra.mxu0 %v7276_v6  ;;  %v3512_v24 = vadd.f32 %v3256_v13, %v1972_v17  ;;  %v7069_v6 = vmax.f32 %v6813_v53, 0.0  ;;  %v4781_v11 = vmul.f32 %v12818_v58, %v16311_v32  ;;  %v16315_v3 = vld [vmem:[#allocation48_spill] sm:$0xff] }
 0x749   : > { %v5949_v44 = vpop.permute.xlu1 %5948  ;;  %6123 = vperm.xlu0 %8982, %v5325_v47   ;;  %v5004_v50 = vadd.f32 %v4748_v7, %v3464_v36  ;;  %v6797_v47 = vadd.f32 %v5804_v41, %v5005_v16  ;;  %v5053_v63 = vadd.f32 %v4797_v31, %v3513_v45  ;;  %v3497_v51 = vadd.f32 %v3241_v48, %v1957_v54  ;;  %v16319_v31 = vld [vmem:[#allocation539_spill] sm:$0xff] }
 0x74a   : > { %v6826_v22 = vadd.f32 %v5949_v44, %v5034_v40  ;;  %6268 = vperm.xlu1 %8983, %v5354_v39   ;;  %v7300_v19 = vpack.c.bf16 %v7099_v43, %v7098_v55  ;;  %v16309_v39 = vld [vmem:[#allocation317_spill] sm:$0xff]  ;;  %v4796_v55 = vmul.f32 %v12818_v58, %v16310_v52  ;;  %v16312_v44 = vld [vmem:[#allocation64_spill] sm:$0xff]  ;;  %v3211_v17 = vmul.f32 %v16099_v59, %v16315_v3  ;;  %v16323_v52 = vld [vmem:[#allocation95_spill] sm:$0xff] }
 0x74b   : > { %v3240_v43 = vmul.f32 %v16099_v59, %v16309_v39  ;;  %v3227_v25 = vmul.f32 %v16099_v59, %v16312_v44  ;;  %v7053_v62 = vmax.f32 %v6797_v47, 0.0  ;;  %v5037_v7 = vadd.f32 %v4781_v11, %v3497_v51 }
 0x74c   : > { %v7082_v33 = vmax.f32 %v6826_v22, 0.0  ;;  %v6044_v35 = vpop.permute.xlu0 %6043  ;;  %8708 = vmatprep.subr.bf16.mxu1 %v7300_v19  ;;  %v1942_v22 = vmul.f32 %v12717_v38, %v16313_v20  ;;  %v5052_v36 = vadd.f32 %v4796_v55, %v3512_v24  ;;  %v1926_v16 = vmul.f32 %v12717_v38, %v16319_v31  ;;  %v16321_v24 = vld [vmem:[#allocation302_spill] sm:$0xff] }
 0x74d   : > { %v5879_v60 = vpop.permute.xlu1 %5878  ;;  %6363 = vperm.xlu0 %8982, %v5373_v2   ;;  %v3496_v19 = vadd.f32 %v3240_v43, %v1956_v10  ;;  %v5372_v2 = vld [vmem:[%s15294_s2 + $0x5b0] sm:$0xff]  ;;  %v6845_v56 = vadd.f32 %v6044_v35, %v5053_v63  ;;  %v4767_v35 = vmul.f32 %v12818_v58, %v16318_v57  ;;  %v3483_v18 = vadd.f32 %v3227_v25, %v1943_v30  ;;  %v5375_v43 = vld [vmem:[%s15294_s2 + $0x5c8] sm:$0xff] }
 0x74e   : > { %v7292_v21 = vpack.c.bf16 %v7083_v34, %v7082_v33  ;;  %v6812_v37 = vadd.f32 %v5879_v60, %v5020_v27  ;;  %6198 = vperm.xlu1 %8983, %v5340_v29   ;;  %v16314_v27 = vld [vmem:[#allocation47_spill] sm:$0xff]  ;;  %v16317_v33 = vld [vmem:[#allocation316_spill] sm:$0xff]  ;;  %v1975_v55 = vmul.f32 %v12717_v38, %v16323_v52 }
 0x74f   : > { %v1927_v29 = vmul.f32 %v12717_v38, %v16314_v27  ;;  %v16316_v34 = vld [vmem:[#allocation303_spill] sm:$0xff]  ;;  %v4780_v28 = vmul.f32 %v12818_v58, %v16317_v33  ;;  %v5023_v30 = vadd.f32 %v4767_v35, %v3483_v18  ;;  %v16329_v27 = vld [vmem:[#allocation590_spill] sm:$0xff] }
 0x750   : > { %v7068_v1 = vmax.f32 %v6812_v37, 0.0  ;;  %v5964_v9 = vpop.permute.xlu0 %5963  ;;  %8709 = vmatpush3.bf16.msra.mxu1 %v7292_v21  ;;  %v3226_v53 = vmul.f32 %v16099_v59, %v16316_v34  ;;  %v5327_v60 = vld [vmem:[%s15294_s2 + $0x448] sm:$0xff]  ;;  %v5356_v37 = vld [vmem:[%s15294_s2 + $0x530] sm:$0xff] }
 0x751   : > { %v5799_v40 = vpop.permute.xlu1 %5798  ;;  %6283 = vperm.xlu0 %8982, %v5357_v46   ;;  %v7101_v46 = vmax.f32 %v6845_v56, 0.0  ;;  %v6829_v5 = vadd.f32 %v5964_v9, %v5037_v7  ;;  %v5036_v0 = vadd.f32 %v4780_v28, %v3496_v19  ;;  %v3467_v10 = vadd.f32 %v3211_v17, %v1927_v29  ;;  %v16328_v56 = vld [vmem:[#allocation335_spill] sm:$0xff]  ;;  %v5326_v7 = vld [vmem:[%s15294_s2 + $0x440] sm:$0xff] }
 0x752   : > { %v6796_v12 = vadd.f32 %v5799_v40, %v5004_v50  ;;  %6118 = vperm.xlu1 %8983, %v5324_v4   ;;  %v7285_v41 = vpack.c.bf16 %v7069_v6, %v7068_v1  ;;  %v3482_v21 = vadd.f32 %v3226_v53, %v1942_v22  ;;  %v16320_v50 = vld [vmem:[#allocation287_spill] sm:$0xff]  ;;  %v4766_v6 = vmul.f32 %v12818_v58, %v16321_v24  ;;  %v16322_v1 = vld [vmem:[#allocation542_spill] sm:$0xff]  ;;  %v16324_v40 = vld [vmem:[#allocation96_spill] sm:$0xff] }
 0x753   : > { %v3210_v4 = vmul.f32 %v16099_v59, %v16320_v50  ;;  %v4751_v8 = vmul.f32 %v12818_v58, %v16322_v1  ;;  %v3259_v32 = vmul.f32 %v16099_v59, %v16324_v40  ;;  %v7085_v44 = vmax.f32 %v6829_v5, 0.0  ;;  %v16326_v22 = vld [vmem:[#allocation79_spill] sm:$0xff]  ;;  %v16330_v53 = vld [vmem:[#allocation80_spill] sm:$0xff]  ;;  %v16334_v5 = vld [vmem:[#allocation334_spill] sm:$0xff] }
 0x754   : > { %v7052_v15 = vmax.f32 %v6796_v12, 0.0  ;;  %v5894_v14 = vpop.permute.xlu0 %5893  ;;  %8688 = vmatprep.subr.bf16.mxu0 %v7285_v41  ;;  %v5022_v63 = vadd.f32 %v4766_v6, %v3482_v21  ;;  %v5342_v12 = vld [vmem:[%s15294_s2 + $0x4c0] sm:$0xff]  ;;  %v16325_v41 = vld [vmem:[#allocation587_spill] sm:$0xff]  ;;  %v1959_v19 = vmul.f32 %v12717_v38, %v16326_v22  ;;  %v4799_v29 = vmul.f32 %v12818_v58, %v16329_v27  ;;  %v5345_v6 = vld [vmem:[%s15294_s2 + $0x4d8] sm:$0xff] }
 0x755   : > { %v6039_v54 = vpop.permute.xlu1 %6038  ;;  %6213 = vperm.xlu0 %8982, %v5343_v42   ;;  %v3466_v11 = vadd.f32 %v3210_v4, %v1926_v16  ;;  %v1974_v42 = vmul.f32 %v12717_v38, %v16325_v41  ;;  %v6815_v25 = vadd.f32 %v5894_v14, %v5023_v30  ;;  %v5007_v3 = vadd.f32 %v4751_v8, %v3467_v10  ;;  %v5359_v34 = vld [vmem:[%s15294_s2 + $0x548] sm:$0xff]  ;;  %v16332_v16 = vld [vmem:[#allocation65_spill] sm:$0xff] }
 0x756   : > { %v6844_v23 = vadd.f32 %v6039_v54, %v5052_v36  ;;  %6358 = vperm.xlu1 %8983, %v5372_v2   ;;  %v7277_v13 = vpack.c.bf16 %v7053_v62, %v7052_v15  ;;  %v16327_v2 = vld [vmem:[#allocation286_spill] sm:$0xff]  ;;  %v3258_v15 = vmul.f32 %v16099_v59, %v16328_v56  ;;  %v3243_v33 = vmul.f32 %v16099_v59, %v16330_v53  ;;  %v16331_v54 = vld [vmem:[#allocation571_spill] sm:$0xff]  ;;  %v16337_v30 = vld [vmem:[#allocation557_spill] sm:$0xff] }
 0x757   : > { %v4750_v62 = vmul.f32 %v12818_v58, %v16327_v2  ;;  %v3515_v28 = vadd.f32 %v3259_v32, %v1975_v55  ;;  %v1958_v57 = vmul.f32 %v12717_v38, %v16331_v54  ;;  %v1945_v21 = vmul.f32 %v12717_v38, %v16332_v16  ;;  %v16335_v10 = vld [vmem:[#allocation574_spill] sm:$0xff]  ;;  %v16342_v2 = vld [vmem:[#allocation560_spill] sm:$0xff] }
 0x758   : > { %v7100_v48 = vmax.f32 %v6844_v23, 0.0  ;;  %v5814_v45 = vpop.permute.xlu0 %5813  ;;  %8689 = vmatpush3.bf16.msra.mxu0 %v7277_v13  ;;  %v3514_v23 = vadd.f32 %v3258_v15, %v1974_v42  ;;  %v7071_v13 = vmax.f32 %v6815_v25, 0.0  ;;  %v4783_v50 = vmul.f32 %v12818_v58, %v16335_v10  ;;  %v16339_v41 = vld [vmem:[#allocation50_spill] sm:$0xff] }
 0x759   : > { %v5959_v47 = vpop.permute.xlu1 %5958  ;;  %6133 = vperm.xlu0 %8982, %v5327_v60   ;;  %v5006_v35 = vadd.f32 %v4750_v62, %v3466_v11  ;;  %v6799_v60 = vadd.f32 %v5814_v45, %v5007_v3  ;;  %v5055_v4 = vadd.f32 %v4799_v29, %v3515_v28  ;;  %v3499_v8 = vadd.f32 %v3243_v33, %v1959_v19  ;;  %v16343_v29 = vld [vmem:[#allocation541_spill] sm:$0xff] }
 0x75a   : > { %v6828_v39 = vadd.f32 %v5959_v47, %v5036_v0  ;;  %6278 = vperm.xlu1 %8983, %v5356_v37   ;;  %v7301_v9 = vpack.c.bf16 %v7101_v46, %v7100_v48  ;;  %v16333_v37 = vld [vmem:[#allocation319_spill] sm:$0xff]  ;;  %v4798_v48 = vmul.f32 %v12818_v58, %v16334_v5  ;;  %v16336_v47 = vld [vmem:[#allocation66_spill] sm:$0xff]  ;;  %v3213_v42 = vmul.f32 %v16099_v59, %v16339_v41  ;;  %v16347_v5 = vld [vmem:[#allocation97_spill] sm:$0xff] }
 0x75b   : > { %v3242_v46 = vmul.f32 %v16099_v59, %v16333_v37  ;;  %v3229_v1 = vmul.f32 %v16099_v59, %v16336_v47  ;;  %v7055_v52 = vmax.f32 %v6799_v60, 0.0  ;;  %v5039_v62 = vadd.f32 %v4783_v50, %v3499_v8 }
 0x75c   : > { %v7084_v51 = vmax.f32 %v6828_v39, 0.0  ;;  %v6054_v20 = vpop.permute.xlu0 %6053  ;;  %8710 = vmatprep.subr.bf16.mxu1 %v7301_v9  ;;  %v1944_v39 = vmul.f32 %v12717_v38, %v16337_v30  ;;  %v5054_v11 = vadd.f32 %v4798_v48, %v3514_v23  ;;  %v1928_v3 = vmul.f32 %v12717_v38, %v16343_v29  ;;  %v16345_v23 = vld [vmem:[#allocation304_spill] sm:$0xff] }
 0x75d   : > { %v5889_v36 = vpop.permute.xlu1 %5888  ;;  %6373 = vperm.xlu0 %8982, %v5375_v43   ;;  %v3498_v9 = vadd.f32 %v3242_v46, %v1958_v57  ;;  %v5374_v43 = vld [vmem:[%s15294_s2 + $0x5c0] sm:$0xff]  ;;  %v6847_v55 = vadd.f32 %v6054_v20, %v5055_v4  ;;  %v4769_v20 = vmul.f32 %v12818_v58, %v16342_v2  ;;  %v3485_v27 = vadd.f32 %v3229_v1, %v1945_v21  ;;  %v5377_v46 = vld [vmem:[%s15294_s2 + $0x5d8] sm:$0xff] }
 0x75e   : > { %v7293_v17 = vpack.c.bf16 %v7085_v44, %v7084_v51  ;;  %v6814_v14 = vadd.f32 %v5889_v36, %v5022_v63  ;;  %6208 = vperm.xlu1 %8983, %v5342_v12   ;;  %v16338_v63 = vld [vmem:[#allocation49_spill] sm:$0xff]  ;;  %v16341_v51 = vld [vmem:[#allocation318_spill] sm:$0xff]  ;;  %v1977_v48 = vmul.f32 %v12717_v38, %v16347_v5 }
 0x75f   : > { %v1929_v12 = vmul.f32 %v12717_v38, %v16338_v63  ;;  %v16340_v44 = vld [vmem:[#allocation305_spill] sm:$0xff]  ;;  %v4782_v22 = vmul.f32 %v12818_v58, %v16341_v51  ;;  %v5025_v21 = vadd.f32 %v4769_v20, %v3485_v27  ;;  %v16353_v63 = vld [vmem:[#allocation592_spill] sm:$0xff] }
 0x760   : > { %v7070_v18 = vmax.f32 %v6814_v14, 0.0  ;;  %v5974_v31 = vpop.permute.xlu0 %5973  ;;  %8711 = vmatpush3.bf16.msra.mxu1 %v7293_v17  ;;  %v3228_v25 = vmul.f32 %v16099_v59, %v16340_v44  ;;  %v5329_v36 = vld [vmem:[%s15294_s2 + $0x458] sm:$0xff]  ;;  %v5358_v14 = vld [vmem:[%s15294_s2 + $0x540] sm:$0xff] }
 0x761   : > { %v5809_v0 = vpop.permute.xlu1 %5808  ;;  %6293 = vperm.xlu0 %8982, %v5359_v34   ;;  %v7103_v34 = vmax.f32 %v6847_v55, 0.0  ;;  %v6831_v53 = vadd.f32 %v5974_v31, %v5039_v62  ;;  %v5038_v54 = vadd.f32 %v4782_v22, %v3498_v9  ;;  %v3469_v57 = vadd.f32 %v3213_v42, %v1929_v12  ;;  %v16352_v55 = vld [vmem:[#allocation337_spill] sm:$0xff]  ;;  %v5328_v62 = vld [vmem:[%s15294_s2 + $0x450] sm:$0xff] }
 0x762   : > { %v6798_v24 = vadd.f32 %v5809_v0, %v5006_v35  ;;  %6128 = vperm.xlu1 %8983, %v5326_v7   ;;  %v7286_v45 = vpack.c.bf16 %v7071_v13, %v7070_v18  ;;  %v3484_v17 = vadd.f32 %v3228_v25, %v1944_v39  ;;  %v16344_v35 = vld [vmem:[#allocation289_spill] sm:$0xff]  ;;  %v4768_v13 = vmul.f32 %v12818_v58, %v16345_v23  ;;  %v16346_v18 = vld [vmem:[#allocation544_spill] sm:$0xff]  ;;  %v16348_v0 = vld [vmem:[#allocation98_spill] sm:$0xff] }
 0x763   : > { %v3212_v7 = vmul.f32 %v16099_v59, %v16344_v35  ;;  %v4753_v16 = vmul.f32 %v12818_v58, %v16346_v18  ;;  %v3261_v10 = vmul.f32 %v16099_v59, %v16348_v0  ;;  %v7087_v47 = vmax.f32 %v6831_v53, 0.0  ;;  %v16350_v39 = vld [vmem:[#allocation81_spill] sm:$0xff]  ;;  %v16354_v25 = vld [vmem:[#allocation82_spill] sm:$0xff]  ;;  %v16358_v53 = vld [vmem:[#allocation336_spill] sm:$0xff] }
 0x764   : > { %v7054_v40 = vmax.f32 %v6798_v24, 0.0  ;;  %v5904_v32 = vpop.permute.xlu0 %5903  ;;  %8690 = vmatprep.subr.bf16.mxu0 %v7286_v45  ;;  %v5024_v4 = vadd.f32 %v4768_v13, %v3484_v17  ;;  %v5344_v24 = vld [vmem:[%s15294_s2 + $0x4d0] sm:$0xff]  ;;  %v16349_v45 = vld [vmem:[#allocation589_spill] sm:$0xff]  ;;  %v1961_v9 = vmul.f32 %v12717_v38, %v16350_v39  ;;  %v4801_v12 = vmul.f32 %v12818_v58, %v16353_v63  ;;  %v5347_v13 = vld [vmem:[%s15294_s2 + $0x4e8] sm:$0xff] }
 0x765   : > { %v6049_v19 = vpop.permute.xlu1 %6048  ;;  %6223 = vperm.xlu0 %8982, %v5345_v6   ;;  %v3468_v50 = vadd.f32 %v3212_v7, %v1928_v3  ;;  %v1976_v6 = vmul.f32 %v12717_v38, %v16349_v45  ;;  %v6817_v1 = vadd.f32 %v5904_v32, %v5025_v21  ;;  %v5009_v41 = vadd.f32 %v4753_v16, %v3469_v57  ;;  %v5361_v44 = vld [vmem:[%s15294_s2 + $0x558] sm:$0xff]  ;;  %v16356_v3 = vld [vmem:[#allocation67_spill] sm:$0xff] }
 0x766   : > { %v6846_v56 = vadd.f32 %v6049_v19, %v5054_v11  ;;  %6368 = vperm.xlu1 %8983, %v5374_v43   ;;  %v7278_v15 = vpack.c.bf16 %v7055_v52, %v7054_v40  ;;  %v16351_v43 = vld [vmem:[#allocation288_spill] sm:$0xff]  ;;  %v3260_v40 = vmul.f32 %v16099_v59, %v16352_v55  ;;  %v3245_v51 = vmul.f32 %v16099_v59, %v16354_v25  ;;  %v16355_v19 = vld [vmem:[#allocation573_spill] sm:$0xff]  ;;  %v16361_v21 = vld [vmem:[#allocation559_spill] sm:$0xff] }
 0x767   : > { %v4752_v52 = vmul.f32 %v12818_v58, %v16351_v43  ;;  %v3517_v22 = vadd.f32 %v3261_v10, %v1977_v48  ;;  %v1960_v2 = vmul.f32 %v12717_v38, %v16355_v19  ;;  %v1947_v17 = vmul.f32 %v12717_v38, %v16356_v3  ;;  %v16359_v57 = vld [vmem:[#allocation576_spill] sm:$0xff]  ;;  %v16366_v43 = vld [vmem:[#allocation562_spill] sm:$0xff] }
 0x768   : > { %v7102_v33 = vmax.f32 %v6846_v56, 0.0  ;;  %v5824_v28 = vpop.permute.xlu0 %5823  ;;  %8691 = vmatpush3.bf16.msra.mxu0 %v7278_v15  ;;  %v3516_v56 = vadd.f32 %v3260_v40, %v1976_v6  ;;  %v7073_v15 = vmax.f32 %v6817_v1, 0.0  ;;  %v4785_v35 = vmul.f32 %v12818_v58, %v16359_v57  ;;  %v16363_v45 = vld [vmem:[#allocation52_spill] sm:$0xff] }
 0x769   : > { %v5969_v60 = vpop.permute.xlu1 %5968  ;;  %6143 = vperm.xlu0 %8982, %v5329_v36   ;;  %v5008_v20 = vadd.f32 %v4752_v52, %v3468_v50  ;;  %v6801_v36 = vadd.f32 %v5824_v28, %v5009_v41  ;;  %v5057_v7 = vadd.f32 %v4801_v12, %v3517_v22  ;;  %v3501_v16 = vadd.f32 %v3245_v51, %v1961_v9  ;;  %v16367_v12 = vld [vmem:[#allocation543_spill] sm:$0xff] }
 0x76a   : > { %v6830_v37 = vadd.f32 %v5969_v60, %v5038_v54  ;;  %6288 = vperm.xlu1 %8983, %v5358_v14   ;;  %v7302_v31 = vpack.c.bf16 %v7103_v34, %v7102_v33  ;;  %v16357_v14 = vld [vmem:[#allocation321_spill] sm:$0xff]  ;;  %v4800_v33 = vmul.f32 %v12818_v58, %v16358_v53  ;;  %v16360_v60 = vld [vmem:[#allocation68_spill] sm:$0xff]  ;;  %v3215_v6 = vmul.f32 %v16099_v59, %v16363_v45  ;;  %v16371_v53 = vld [vmem:[#allocation99_spill] sm:$0xff] }
 0x76b   : > { %v3244_v34 = vmul.f32 %v16099_v59, %v16357_v14  ;;  %v3231_v18 = vmul.f32 %v16099_v59, %v16360_v60  ;;  %v7057_v5 = vmax.f32 %v6801_v36, 0.0  ;;  %v5041_v52 = vadd.f32 %v4785_v35, %v3501_v16  ;;  %v16378_v45 = vld [vmem:[#allocation594_spill] sm:$0xff] }
 0x76c   : > { %v7086_v8 = vmax.f32 %v6830_v37, 0.0  ;;  %v6064_v30 = vpop.permute.xlu0 %6063  ;;  %8712 = vmatprep.subr.bf16.mxu1 %v7302_v31  ;;  %v1946_v37 = vmul.f32 %v12717_v38, %v16361_v21  ;;  %v5056_v50 = vadd.f32 %v4800_v33, %v3516_v56  ;;  %v1930_v41 = vmul.f32 %v12717_v38, %v16367_v12  ;;  %v16369_v56 = vld [vmem:[#allocation306_spill] sm:$0xff] }
 0x76d   : > { %v5899_v11 = vpop.permute.xlu1 %5898  ;;  %6383 = vperm.xlu0 %8982, %v5377_v46   ;;  %v3500_v31 = vadd.f32 %v3244_v34, %v1960_v2  ;;  %v5376_v46 = vld [vmem:[%s15294_s2 + $0x5d0] sm:$0xff]  ;;  %v6849_v48 = vadd.f32 %v6064_v30, %v5057_v7  ;;  %v4771_v30 = vmul.f32 %v12818_v58, %v16366_v43  ;;  %v3487_v63 = vadd.f32 %v3231_v18, %v1947_v17  ;;  %v5379_v34 = vld [vmem:[%s15294_s2 + $0x5e8] sm:$0xff] }
 0x76e   : > { %v7294_v42 = vpack.c.bf16 %v7087_v47, %v7086_v8  ;;  %v6816_v32 = vadd.f32 %v5899_v11, %v5024_v4  ;;  %6218 = vperm.xlu1 %8983, %v5344_v24   ;;  %v16362_v4 = vld [vmem:[#allocation51_spill] sm:$0xff]  ;;  %v16365_v8 = vld [vmem:[#allocation320_spill] sm:$0xff]  ;;  %v1979_v33 = vmul.f32 %v12717_v38, %v16371_v53  ;;  %v16387_v53 = vld [vmem:[#allocation561_spill] sm:$0xff] }
 0x76f   : > { %v1931_v24 = vmul.f32 %v12717_v38, %v16362_v4  ;;  %v16364_v47 = vld [vmem:[#allocation307_spill] sm:$0xff]  ;;  %v4784_v39 = vmul.f32 %v12818_v58, %v16365_v8  ;;  %v5027_v17 = vadd.f32 %v4771_v30, %v3487_v63 }
 0x770   : > { %v7072_v27 = vmax.f32 %v6816_v32, 0.0  ;;  %v5984_v29 = vpop.permute.xlu0 %5983  ;;  %8713 = vmatpush3.bf16.msra.mxu1 %v7294_v42  ;;  %v3230_v1 = vmul.f32 %v16099_v59, %v16364_v47  ;;  %v5331_v11 = vld [vmem:[%s15294_s2 + $0x468] sm:$0xff]  ;;  %v5360_v32 = vld [vmem:[%s15294_s2 + $0x550] sm:$0xff] }
 0x771   : > { %v5819_v54 = vpop.permute.xlu1 %5818  ;;  %6303 = vperm.xlu0 %8982, %v5361_v44   ;;  %v7105_v44 = vmax.f32 %v6849_v48, 0.0  ;;  %v6833_v25 = vadd.f32 %v5984_v29, %v5041_v52  ;;  %v5040_v19 = vadd.f32 %v4784_v39, %v3500_v31  ;;  %v3471_v2 = vadd.f32 %v3215_v6, %v1931_v24  ;;  %v16376_v48 = vld [vmem:[#allocation290_spill] sm:$0xff]  ;;  %v16379_v39 = vld [vmem:[#allocation84_spill] sm:$0xff]  ;;  %v16380_v30 = vld [vmem:[#allocation575_spill] sm:$0xff] }
 0x772   : > { %v6800_v23 = vadd.f32 %v5819_v54, %v5008_v20  ;;  %6138 = vperm.xlu1 %8983, %v5328_v62   ;;  %v7287_v28 = vpack.c.bf16 %v7073_v15, %v7072_v27  ;;  %v3486_v42 = vadd.f32 %v3230_v1, %v1946_v37  ;;  %v16368_v20 = vld [vmem:[#allocation291_spill] sm:$0xff]  ;;  %v4770_v15 = vmul.f32 %v12818_v58, %v16369_v56  ;;  %v16370_v27 = vld [vmem:[#allocation546_spill] sm:$0xff]  ;;  %v16372_v54 = vld [vmem:[#allocation100_spill] sm:$0xff] }
 0x773   : > { %v3214_v62 = vmul.f32 %v16099_v59, %v16368_v20  ;;  %v4755_v3 = vmul.f32 %v12818_v58, %v16370_v27  ;;  %v3263_v57 = vmul.f32 %v16099_v59, %v16372_v54  ;;  %v7089_v60 = vmax.f32 %v6833_v25, 0.0  ;;  %v16374_v37 = vld [vmem:[#allocation53_spill] sm:$0xff]  ;;  %v5363_v8 = vld [vmem:[%s15294_s2 + $0x568] sm:$0xff] }
 0x774   : > { %v7056_v0 = vmax.f32 %v6800_v23, 0.0  ;;  %v5914_v10 = vpop.permute.xlu0 %5913  ;;  %8692 = vmatprep.subr.bf16.mxu0 %v7287_v28  ;;  %v5026_v7 = vadd.f32 %v4770_v15, %v3486_v42  ;;  %v5346_v23 = vld [vmem:[%s15294_s2 + $0x4e0] sm:$0xff]  ;;  %v16373_v28 = vld [vmem:[#allocation591_spill] sm:$0xff]  ;;  %v1933_v31 = vmul.f32 %v12717_v38, %v16374_v37  ;;  %v1962_v52 = vmul.f32 %v12717_v38, %v16380_v30 }
 0x775   : > { %v6059_v9 = vpop.permute.xlu1 %6058  ;;  %6233 = vperm.xlu0 %8982, %v5347_v13   ;;  %v3470_v35 = vadd.f32 %v3214_v62, %v1930_v41  ;;  %v1978_v13 = vmul.f32 %v12717_v38, %v16373_v28  ;;  %v6819_v18 = vadd.f32 %v5914_v10, %v5027_v17  ;;  %v4803_v10 = vmul.f32 %v12818_v58, %v16378_v45  ;;  %v16382_v25 = vld [vmem:[#allocation69_spill] sm:$0xff]  ;;  %v16384_v20 = vld [vmem:[#allocation338_spill] sm:$0xff] }
 0x776   : > { %v6848_v55 = vadd.f32 %v6059_v9, %v5056_v50  ;;  %6378 = vperm.xlu1 %8983, %v5376_v46   ;;  %v7279_v40 = vpack.c.bf16 %v7057_v5, %v7056_v0  ;;  %v16375_v46 = vld [vmem:[#allocation83_spill] sm:$0xff]  ;;  %v4754_v0 = vmul.f32 %v12818_v58, %v16376_v48  ;;  %v5011_v6 = vadd.f32 %v4755_v3, %v3471_v2  ;;  %v16385_v15 = vld [vmem:[#allocation578_spill] sm:$0xff]  ;;  %v5349_v17 = vld [vmem:[%s15294_s2 + $0x4f8] sm:$0xff] }
 0x777   : > { %v1963_v5 = vmul.f32 %v12717_v38, %v16375_v46  ;;  %v16377_v50 = vld [vmem:[#allocation339_spill] sm:$0xff]  ;;  %v3247_v9 = vmul.f32 %v16099_v59, %v16379_v39  ;;  %v3519_v43 = vadd.f32 %v3263_v57, %v1979_v33  ;;  %v7075_v63 = vmax.f32 %v6819_v18, 0.0  ;;  %v5378_v57 = vld [vmem:[%s15294_s2 + $0x5e0] sm:$0xff] }
 0x778   : > { %v7104_v51 = vmax.f32 %v6848_v55, 0.0  ;;  %v5834_v22 = vpop.permute.xlu0 %5833  ;;  %8693 = vmatpush3.bf16.msra.mxu0 %v7279_v40  ;;  %v3262_v4 = vmul.f32 %v16099_v59, %v16377_v50  ;;  %v5010_v55 = vadd.f32 %v4754_v0, %v3470_v35  ;;  %v5330_v40 = vld [vmem:[%s15294_s2 + $0x460] sm:$0xff]  ;;  %v4802_v62 = vmul.f32 %v12818_v58, %v16384_v20 }
 0x779   : > { %v5979_v36 = vpop.permute.xlu1 %5978  ;;  %6153 = vperm.xlu0 %8982, %v5331_v11   ;;  %v6803_v12 = vadd.f32 %v5834_v22, %v5011_v6  ;;  %v4787_v22 = vmul.f32 %v12818_v58, %v16385_v15  ;;  %v1948_v33 = vmul.f32 %v12717_v38, %v16387_v53  ;;  %v16397_v20 = vld [vmem:[#allocation101_spill] sm:$0xff] }
 0x77a   : > { %v6832_v14 = vadd.f32 %v5979_v36, %v5040_v19  ;;  %6298 = vperm.xlu1 %8983, %v5360_v32   ;;  %v7303_v29 = vpack.c.bf16 %v7105_v44, %v7104_v51  ;;  %v3518_v11 = vadd.f32 %v3262_v4, %v1978_v13  ;;  %v16381_v32 = vld [vmem:[#allocation54_spill] sm:$0xff]  ;;  %v1949_v51 = vmul.f32 %v12717_v38, %v16382_v25  ;;  %v16383_v19 = vld [vmem:[#allocation323_spill] sm:$0xff] }
 0x77b   : > { %v3217_v44 = vmul.f32 %v16099_v59, %v16381_v32  ;;  %v3246_v2 = vmul.f32 %v16099_v59, %v16383_v19  ;;  %v5059_v36 = vadd.f32 %v4803_v10, %v3519_v43  ;;  %v7059_v35 = vmax.f32 %v6803_v12, 0.0  ;;  %v16391_v10 = vld [vmem:[#allocation545_spill] sm:$0xff]  ;;  %v16395_v12 = vld [vmem:[#allocation308_spill] sm:$0xff] }
 0x77c   : > { %v7088_v16 = vmax.f32 %v6832_v14, 0.0  ;;  %v6074_v21 = vpop.permute.xlu0 %6073  ;;  %8714 = vmatprep.subr.bf16.mxu1 %v7303_v29  ;;  %v16386_v14 = vld [vmem:[#allocation70_spill] sm:$0xff]  ;;  %v5058_v13 = vadd.f32 %v4802_v62, %v3518_v11  ;;  %v1932_v6 = vmul.f32 %v12717_v38, %v16391_v10  ;;  %v16394_v11 = vld [vmem:[#allocation293_spill] sm:$0xff]  ;;  %v1981_v62 = vmul.f32 %v12717_v38, %v16397_v20 }
 0x77d   : > { %v5909_v24 = vpop.permute.xlu1 %5908  ;;  %6393 = vperm.xlu0 %8982, %v5379_v34   ;;  %v3233_v29 = vmul.f32 %v16099_v59, %v16386_v14  ;;  %v3503_v34 = vadd.f32 %v3247_v9, %v1963_v5  ;;  %v3502_v54 = vadd.f32 %v3246_v2, %v1962_v52  ;;  %v16390_v5 = vld [vmem:[#allocation564_spill] sm:$0xff]  ;;  %v16392_v52 = vld [vmem:[#allocation85_spill] sm:$0xff] }
 0x77e   : > { %v7295_v47 = vpack.c.bf16 %v7089_v60, %v7088_v16  ;;  %v6818_v1 = vadd.f32 %v5909_v24, %v5026_v7  ;;  %6228 = vperm.xlu1 %8983, %v5346_v23   ;;  %v6851_v7 = vadd.f32 %v6074_v21, %v5059_v36  ;;  %v16388_v60 = vld [vmem:[#allocation309_spill] sm:$0xff]  ;;  %v16389_v16 = vld [vmem:[#allocation322_spill] sm:$0xff]  ;;  %v4773_v48 = vmul.f32 %v12818_v58, %v16390_v5 }
 0x77f   : > { %v3232_v18 = vmul.f32 %v16099_v59, %v16388_v60  ;;  %v4786_v37 = vmul.f32 %v12818_v58, %v16389_v16  ;;  %v5043_v0 = vadd.f32 %v4787_v22, %v3503_v34  ;;  %v5333_v21 = vld [vmem:[%s15294_s2 + $0x478] sm:$0xff]  ;;  %v3473_v24 = vadd.f32 %v3217_v44, %v1933_v31 }
 0x780   : > { %v7074_v41 = vmax.f32 %v6818_v1, 0.0  ;;  %v5994_v42 = vpop.permute.xlu0 %5993  ;;  %8715 = vmatpush3.bf16.msra.mxu1 %v7295_v47  ;;  %v3489_v45 = vadd.f32 %v3233_v29, %v1949_v51  ;;  %v5362_v1 = vld [vmem:[%s15294_s2 + $0x560] sm:$0xff]  ;;  %v16396_v44 = vld [vmem:[#allocation548_spill] sm:$0xff] }
 0x781   : > { %v5829_v56 = vpop.permute.xlu1 %5828  ;;  %6313 = vperm.xlu0 %8982, %v5363_v8   ;;  %v3488_v47 = vadd.f32 %v3232_v18, %v1948_v33  ;;  %v7107_v8 = vmax.f32 %v6851_v7, 0.0  ;;  %v6835_v39 = vadd.f32 %v5994_v42, %v5043_v0  ;;  %v5042_v30 = vadd.f32 %v4786_v37, %v3502_v54  ;;  %v5381_v2 = vld [vmem:[%s15294_s2 + $0x5f8] sm:$0xff] }
 0x782   : > { %v6802_v27 = vadd.f32 %v5829_v56, %v5010_v55  ;;  %6148 = vperm.xlu1 %8983, %v5330_v40   ;;  %v7288_v3 = vpack.c.bf16 %v7075_v63, %v7074_v41  ;;  %v1965_v55 = vmul.f32 %v12717_v38, %v16392_v52  ;;  %v16393_v40 = vld [vmem:[#allocation86_spill] sm:$0xff]  ;;  %v3216_v63 = vmul.f32 %v16099_v59, %v16394_v11  ;;  %v16400_v33 = vld [vmem:[#allocation292_spill] sm:$0xff]  ;;  %v16403_v5 = vld [vmem:[#allocation577_spill] sm:$0xff] }
 0x783   : > { %v3249_v31 = vmul.f32 %v16099_v59, %v16393_v40  ;;  %v4772_v41 = vmul.f32 %v12818_v58, %v16395_v12  ;;  %v4757_v42 = vmul.f32 %v12818_v58, %v16396_v44  ;;  %v5029_v25 = vadd.f32 %v4773_v48, %v3489_v45  ;;  %v16398_v56 = vld [vmem:[#allocation102_spill] sm:$0xff]  ;;  %v16408_v40 = vld [vmem:[#allocation340_spill] sm:$0xff] }
 0x784   : > { %v7058_v23 = vmax.f32 %v6802_v27, 0.0  ;;  %v5924_v28 = vpop.permute.xlu0 %5923  ;;  %8694 = vmatprep.subr.bf16.mxu0 %v7288_v3  ;;  %v3265_v15 = vmul.f32 %v16099_v59, %v16398_v56  ;;  %v3472_v22 = vadd.f32 %v3216_v63, %v1932_v6  ;;  %v5348_v27 = vld [vmem:[%s15294_s2 + $0x4f0] sm:$0xff]  ;;  %v16399_v3 = vld [vmem:[#allocation593_spill] sm:$0xff]  ;;  %v7091_v14 = vmax.f32 %v6835_v39, 0.0  ;;  %v5399_v12 = vld [vmem:[%s15294_s2 + $0x688] sm:$0xff] }
 0x785   : > { %v6069_v46 = vpop.permute.xlu1 %6068  ;;  %6243 = vperm.xlu0 %8982, %v5349_v17   ;;  %v5028_v36 = vadd.f32 %v4772_v41, %v3488_v47  ;;  %v1980_v17 = vmul.f32 %v12717_v38, %v16399_v3  ;;  %v6821_v29 = vadd.f32 %v5924_v28, %v5029_v25  ;;  %v4756_v54 = vmul.f32 %v12818_v58, %v16400_v33  ;;  %v5365_v28 = vld [vmem:[%s15294_s2 + $0x578] sm:$0xff]  ;;  %v16404_v6 = vld [vmem:[#allocation103_spill] sm:$0xff] }
 0x786   : > { %v6850_v50 = vadd.f32 %v6069_v46, %v5058_v13  ;;  %6388 = vperm.xlu1 %8983, %v5378_v57   ;;  %v7280_v4 = vpack.c.bf16 %v7059_v35, %v7058_v23  ;;  %v16401_v57 = vld [vmem:[#allocation341_spill] sm:$0xff]  ;;  %v16402_v23 = vld [vmem:[#allocation596_spill] sm:$0xff]  ;;  %v5013_v60 = vadd.f32 %v4757_v42, %v3473_v24  ;;  %v3505_v37 = vadd.f32 %v3249_v31, %v1965_v55  ;;  %v16409_v41 = vld [vmem:[#allocation119_spill] sm:$0xff] }
 0x787   : > { %v3264_v35 = vmul.f32 %v16099_v59, %v16401_v57  ;;  %v4805_v13 = vmul.f32 %v12818_v58, %v16402_v23  ;;  %v3521_v46 = vadd.f32 %v3265_v15, %v1981_v62  ;;  %v1964_v48 = vmul.f32 %v12717_v38, %v16403_v5  ;;  %v16406_v39 = vld [vmem:[#allocation325_spill] sm:$0xff]  ;;  %v16410_v44 = vld [vmem:[#allocation120_spill] sm:$0xff] }
 0x788   : > { %v7106_v9 = vmax.f32 %v6850_v50, 0.0  ;;  %v5844_v43 = vpop.permute.xlu0 %5843  ;;  %8695 = vmatpush3.bf16.msra.mxu0 %v7280_v4  ;;  %v5012_v0 = vadd.f32 %v4756_v54, %v3472_v22  ;;  %v5332_v50 = vld [vmem:[%s15294_s2 + $0x470] sm:$0xff]  ;;  %v1983_v47 = vmul.f32 %v12717_v38, %v16404_v6  ;;  %v3283_v42 = vmul.f32 %v16099_v59, %v16410_v44  ;;  %v16414_v54 = vld [vmem:[#allocation614_spill] sm:$0xff] }
 0x789   : > { %v5989_v32 = vpop.permute.xlu1 %5988  ;;  %6163 = vperm.xlu0 %8982, %v5333_v21   ;;  %v3520_v4 = vadd.f32 %v3264_v35, %v1980_v17  ;;  %v7077_v21 = vmax.f32 %v6821_v29, 0.0  ;;  %v6805_v24 = vadd.f32 %v5844_v43, %v5013_v60  ;;  %v4804_v43 = vmul.f32 %v12818_v58, %v16408_v40  ;;  %v16413_v17 = vld [vmem:[#allocation359_spill] sm:$0xff]  ;;  %v16418_v6 = vld [vmem:[#allocation358_spill] sm:$0xff] }
 0x78a   : > { %v6834_v51 = vadd.f32 %v5989_v32, %v5042_v30  ;;  %6308 = vperm.xlu1 %8983, %v5362_v1   ;;  %v7304_v19 = vpack.c.bf16 %v7107_v8, %v7106_v9  ;;  %v16405_v1 = vld [vmem:[#allocation104_spill] sm:$0xff]  ;;  %v3248_v9 = vmul.f32 %v16099_v59, %v16406_v39  ;;  %v5061_v31 = vadd.f32 %v4805_v13, %v3521_v46  ;;  %v16415_v60 = vld [vmem:[#allocation595_spill] sm:$0xff] }
 0x78b   : > { %v3267_v8 = vmul.f32 %v16099_v59, %v16405_v1  ;;  %v16407_v30 = vld [vmem:[#allocation580_spill] sm:$0xff]  ;;  %v1999_v32 = vmul.f32 %v12717_v38, %v16409_v41  ;;  %v7061_v20 = vmax.f32 %v6805_v24, 0.0  ;;  %v5060_v22 = vadd.f32 %v4804_v43, %v3520_v4  ;;  %v16416_v4 = vld [vmem:[#allocation135_spill] sm:$0xff]  ;;  %v16419_v1 = vld [vmem:[#allocation598_spill] sm:$0xff] }
 0x78c   : > { %v7090_v34 = vmax.f32 %v6834_v51, 0.0  ;;  %v6084_v53 = vpop.permute.xlu0 %6083  ;;  %8716 = vmatprep.subr.bf16.mxu1 %v7304_v19  ;;  %v4789_v52 = vmul.f32 %v12818_v58, %v16407_v30  ;;  %v3504_v25 = vadd.f32 %v3248_v9, %v1964_v48  ;;  %v16411_v51 = vld [vmem:[#allocation611_spill] sm:$0xff]  ;;  %v16421_v43 = vld [vmem:[#allocation152_spill] sm:$0xff] }
 0x78d   : > { %v5919_v7 = vpop.permute.xlu1 %5918  ;;  %6403 = vperm.xlu0 %8982, %v5381_v2   ;;  %v1998_v19 = vmul.f32 %v12717_v38, %v16411_v51  ;;  %v5380_v2 = vld [vmem:[%s15294_s2 + $0x5f0] sm:$0xff]  ;;  %v6853_v62 = vadd.f32 %v6084_v53, %v5061_v31  ;;  %v4823_v53 = vmul.f32 %v12818_v58, %v16414_v54  ;;  %v3539_v13 = vadd.f32 %v3283_v42, %v1999_v32  ;;  %v5431_v40 = vld [vmem:[%s15294_s2 + $0x788] sm:$0xff]  ;;  %v5398_v32 = vld [vmem:[%s15294_s2 + $0x680] sm:$0xff] }
 0x78e   : > { %v7296_v18 = vpack.c.bf16 %v7091_v14, %v7090_v34  ;;  %v6820_v16 = vadd.f32 %v5919_v7, %v5028_v36  ;;  %6238 = vperm.xlu1 %8983, %v5348_v27   ;;  %v3523_v36 = vadd.f32 %v3267_v8, %v1983_v47  ;;  %v16412_v27 = vld [vmem:[#allocation324_spill] sm:$0xff]  ;;  %v3282_v14 = vmul.f32 %v16099_v59, %v16413_v17  ;;  %v5383_v7 = vld [vmem:[%s15294_s2 + $0x608] sm:$0xff] }
 0x78f   : > { %v4788_v3 = vmul.f32 %v12818_v58, %v16412_v27  ;;  %v5045_v29 = vadd.f32 %v4789_v52, %v3505_v37  ;;  %v7240_v33 = vld [vmem:[%s15295_s3 + $0x10] sm:$0xff]  ;;  %v7109_v46 = vmax.f32 %v6853_v62, 0.0  ;;  %v4822_v47 = vmul.f32 %v12818_v58, %v16418_v6  ;;  %v16424_v62 = vld [vmem:[#allocation342_spill] sm:$0xff] }
 0x790   : > { %v7076_v45 = vmax.f32 %v6820_v16, 0.0  ;;  %v6004_v10 = vpop.permute.xlu0 %6003  ;;  %8717 = vmatpush3.bf16.msra.mxu1 %v7296_v18  ;;  %v14081_v23 = vrot.slane %v7240_v33, %v16132_v49  ;;  %v1982_v18 = vmul.f32 %v12717_v38, %v16415_v60  ;;  %v3538_v16 = vadd.f32 %v3282_v14, %v1998_v19  ;;  %v5364_v37 = vld [vmem:[%s15294_s2 + $0x570] sm:$0xff] }
 0x791   : > { %v5839_v55 = vpop.permute.xlu1 %5838  ;;  %6323 = vperm.xlu0 %8982, %v5365_v28   ;;  %v5044_v28 = vadd.f32 %v4788_v3, %v3504_v25  ;;  %v6837_v5 = vadd.f32 %v6004_v10, %v5045_v29  ;;  %v16417_v24 = vld [vmem:[#allocation343_spill] sm:$0xff]  ;;  %v4807_v8 = vmul.f32 %v12818_v58, %v16419_v1  ;;  %v5079_v30 = vadd.f32 %v4823_v53, %v3539_v13 }
 0x792   : > { %v6804_v11 = vadd.f32 %v5839_v55, %v5012_v0  ;;  %6158 = vperm.xlu1 %8983, %v5332_v50   ;;  %v7289_v63 = vpack.c.bf16 %v7077_v21, %v7076_v45  ;;  %v7429_v50 = vcombine.high %v14081_v23, %v14081_v23  ;;  %v2015_v21 = vmul.f32 %v12717_v38, %v16416_v4  ;;  %v16420_v10 = vld [vmem:[#allocation151_spill] sm:$0xff] }
 0x793   : > { %v3266_v45 = vmul.f32 %v16099_v59, %v16417_v24  ;;  %v2031_v9 = vmul.f32 %v12717_v38, %v16420_v10  ;;  %v3315_v31 = vmul.f32 %v16099_v59, %v16421_v43  ;;  %v5078_v41 = vadd.f32 %v4822_v47, %v3538_v16  ;;  %v16427_v53 = vld [vmem:[#allocation627_spill] sm:$0xff] }
 0x794   : > { %v7060_v56 = vmax.f32 %v6804_v11, 0.0  ;;  %v6174_v15 = vpop.permute.xlu0 %6173  ;;  %8696 = vmatprep.subr.bf16.mxu0 %v7289_v63  ;;  %v16422_v63 = vld [vmem:[#allocation643_spill] sm:$0xff]  ;;  %v7093_v44 = vmax.f32 %v6837_v5, 0.0  ;;  %v7414_v19 = vcombine.high %v7240_v33, %v7240_v33  ;;  %v5063_v3 = vadd.f32 %v4807_v8, %v3523_v36  ;;  %v5401_v8 = vld [vmem:[%s15294_s2 + $0x698] sm:$0xff] }
 0x795   : > { %v6079_v34 = vpop.permute.xlu1 %6078  ;;  %6493 = vperm.xlu0 %8982, %v5399_v12   ;;  %v3522_v11 = vadd.f32 %v3266_v45, %v1982_v18  ;;  %v2030_v12 = vmul.f32 %v12717_v38, %v16422_v63  ;;  %v6871_v42 = vadd.f32 %v6174_v15, %v5079_v30  ;;  %v3571_v54 = vadd.f32 %v3315_v31, %v2031_v9  ;;  %v16429_v5 = vld [vmem:[#allocation375_spill] sm:$0xff]  ;;  %v16431_v45 = vld [vmem:[#allocation630_spill] sm:$0xff]  ;;  %v16433_v30 = vld [vmem:[#allocation613_spill] sm:$0xff] }
 0x796   : > { %v6852_v57 = vadd.f32 %v6079_v34, %v5060_v22  ;;  %6398 = vperm.xlu1 %8983, %v5380_v2   ;;  %v7281_v35 = vpack.c.bf16 %v7061_v20, %v7060_v56  ;;  %v16423_v2 = vld [vmem:[#allocation136_spill] sm:$0xff]  ;;  %v4806_v56 = vmul.f32 %v12818_v58, %v16424_v62  ;;  %v16425_v22 = vld [vmem:[#allocation391_spill] sm:$0xff]  ;;  %v14123_v33 = vrot.slane %v7414_v19, %v16132_v49  ;;  %v16437_v19 = vld [vmem:[#allocation374_spill] sm:$0xff] }
 0x797   : > { %v3299_v20 = vmul.f32 %v16099_v59, %v16423_v2  ;;  %v3314_v27 = vmul.f32 %v16099_v59, %v16425_v22  ;;  %v5415_v34 = vld [vmem:[%s15294_s2 + $0x708] sm:$0xff]  ;;  %v7127_v13 = vmax.f32 %v6871_v42, 0.0  ;;  %v16436_v42 = vld [vmem:[#allocation361_spill] sm:$0xff]  ;;  %v4838_v2 = vmul.f32 %v12818_v58, %v16437_v19 }
 0x798   : > { %v7108_v48 = vmax.f32 %v6852_v57, 0.0  ;;  %v6094_v0 = vpop.permute.xlu0 %6093  ;;  %8697 = vmatpush3.bf16.msra.mxu0 %v7281_v35  ;;  %v2014_v57 = vmul.f32 %v12717_v38, %v16427_v53  ;;  %v5062_v35 = vadd.f32 %v4806_v56, %v3522_v11 }
 0x799   : > { %v5999_v39 = vpop.permute.xlu1 %5998  ;;  %6413 = vperm.xlu0 %8982, %v5383_v7   ;;  %v3570_v36 = vadd.f32 %v3314_v27, %v2030_v12  ;;  %v5382_v7 = vld [vmem:[%s15294_s2 + $0x600] sm:$0xff]  ;;  %v6855_v60 = vadd.f32 %v6094_v0, %v5063_v3  ;;  %v4839_v0 = vmul.f32 %v12818_v58, %v16431_v45  ;;  %v3555_v9 = vadd.f32 %v3299_v20, %v2015_v21  ;;  %v5385_v27 = vld [vmem:[%s15294_s2 + $0x618] sm:$0xff] }
 0x79a   : > { %v6836_v52 = vadd.f32 %v5999_v39, %v5044_v28  ;;  %6318 = vperm.xlu1 %8983, %v5364_v37   ;;  %v7305_v55 = vpack.c.bf16 %v7109_v46, %v7108_v48  ;;  %v7430_v28 = vcombine.high %v14123_v33, %v14123_v33  ;;  %v16428_v37 = vld [vmem:[#allocation121_spill] sm:$0xff]  ;;  %v3298_v48 = vmul.f32 %v16099_v59, %v16429_v5  ;;  %v16432_v39 = vld [vmem:[#allocation122_spill] sm:$0xff] }
 0x79b   : > { %7577 = vmatmul.mubr.bf16.vlgmr.msra.gmra.mrb[0].mxu0 %v13552_v26  ;;  %v16426_v26 = vld [vmem:[#allocation646_spill] sm:$0xff]  ;;  %v2001_v46 = vmul.f32 %v12717_v38, %v16428_v37  ;;  %v3285_v10 = vmul.f32 %v16099_v59, %v16432_v39  ;;  %v7111_v43 = vmax.f32 %v6855_v60, 0.0  ;;  %v5095_v62 = vadd.f32 %v4839_v0, %v3555_v9 }
 0x79c   : > { %v7092_v25 = vmax.f32 %v6836_v52, 0.0  ;;  %v6334_v51 = vpop.permute.xlu0 %6333  ;;  %8718 = vmatprep.subr.bf16.mxu1 %v7305_v55  ;;  %7656 = vmatprep.mubr.bf16.mxu0 %v7429_v50  ;;  %v4855_v15 = vmul.f32 %v12818_v58, %v16426_v26  ;;  %v16430_v50 = vld [vmem:[#allocation390_spill] sm:$0xff]  ;;  %v2000_v52 = vmul.f32 %v12717_v38, %v16433_v30  ;;  %v3554_v55 = vadd.f32 %v3298_v48, %v2014_v57  ;;  %v5433_v48 = vld [vmem:[%s15294_s2 + $0x798] sm:$0xff] }
 0x79d   : > { %v6169_v17 = vpop.permute.xlu1 %6168  ;;  %6653 = vperm.xlu0 %8982, %v5431_v40   ;;  %v4854_v4 = vmul.f32 %v12818_v58, %v16430_v50  ;;  %v5430_v40 = vld [vmem:[%s15294_s2 + $0x780] sm:$0xff]  ;;  %v3541_v3 = vadd.f32 %v3285_v10, %v2001_v46 }
 0x79e   : > { %v7297_v14 = vpack.c.bf16 %v7093_v44, %v7092_v25  ;;  %v6870_v29 = vadd.f32 %v6169_v17, %v5078_v41  ;;  %6488 = vperm.xlu1 %8983, %v5398_v32   ;;  %v5111_v6 = vadd.f32 %v4855_v15, %v3571_v54  ;;  %v16434_v41 = vld [vmem:[#allocation105_spill] sm:$0xff]  ;;  %v16435_v32 = vld [vmem:[#allocation106_spill] sm:$0xff]  ;;  %v3284_v25 = vmul.f32 %v16099_v59, %v16436_v42 }
 0x79f   : > { %v5110_v12 = vadd.f32 %v4854_v4, %v3570_v36  ;;  %v1985_v21 = vmul.f32 %v12717_v38, %v16434_v41  ;;  %v3269_v44 = vmul.f32 %v16099_v59, %v16435_v32  ;;  %v16439_v17 = vld [vmem:[#allocation597_spill] sm:$0xff]  ;;  %v5094_v57 = vadd.f32 %v4838_v2, %v3554_v55  ;;  %v16449_v41 = vld [vmem:[#allocation648_spill] sm:$0xff] }
 0x7a0   : > { %v7126_v18 = vmax.f32 %v6870_v29, 0.0  ;;  %v6254_v16 = vpop.permute.xlu0 %6253  ;;  %8719 = vmatpush3.bf16.msra.mxu1 %v7297_v14  ;;  %v6903_v31 = vadd.f32 %v6334_v51, %v5111_v6  ;;  %v16438_v51 = vld [vmem:[#allocation616_spill] sm:$0xff]  ;;  %v1984_v26 = vmul.f32 %v12717_v38, %v16439_v17  ;;  %v3540_v15 = vadd.f32 %v3284_v25, %v2000_v52  ;;  %v5414_v14 = vld [vmem:[%s15294_s2 + $0x700] sm:$0xff] }
 0x7a1   : > { %v6089_v24 = vpop.permute.xlu1 %6088  ;;  %6573 = vperm.xlu0 %8982, %v5415_v34   ;;  %v4825_v20 = vmul.f32 %v12818_v58, %v16438_v51  ;;  %v6887_v34 = vadd.f32 %v6254_v16, %v5095_v62  ;;  %v3525_v36 = vadd.f32 %v3269_v44, %v1985_v21  ;;  %v16443_v50 = vld [vmem:[#allocation153_spill] sm:$0xff]  ;;  %v4857_v21 = vmul.f32 %v12818_v58, %v16449_v41  ;;  %v16450_v25 = vld [vmem:[#allocation138_spill] sm:$0xff]  ;;  %v5384_v62 = vld [vmem:[%s15294_s2 + $0x610] sm:$0xff] }
 0x7a2   : > { %v6854_v47 = vadd.f32 %v6089_v24, %v5062_v35  ;;  %6408 = vperm.xlu1 %8983, %v5382_v7   ;;  %v7314_v1 = vpack.c.bf16 %v7127_v13, %v7126_v18  ;;  %v7159_v29 = vmax.f32 %v6903_v31, 0.0  ;;  %v16440_v35 = vld [vmem:[#allocation345_spill] sm:$0xff]  ;;  %v16441_v13 = vld [vmem:[#allocation360_spill] sm:$0xff]  ;;  %v2033_v4 = vmul.f32 %v12717_v38, %v16443_v50  ;;  %v16444_v24 = vld [vmem:[#allocation154_spill] sm:$0xff] }
 0x7a3   : > { %7617 = vmatmul.mubr.bf16.vlgmr.msra.gmra.mrb[8].mxu1 %v13590_v61  ;;  %v3268_v7 = vmul.f32 %v16099_v59, %v16440_v35  ;;  %v4824_v60 = vmul.f32 %v12818_v58, %v16441_v13  ;;  %v5081_v46 = vadd.f32 %v4825_v20, %v3541_v3  ;;  %v3317_v45 = vmul.f32 %v16099_v59, %v16444_v24  ;;  %v16446_v52 = vld [vmem:[#allocation137_spill] sm:$0xff] }
 0x7a4   : > { %v7110_v11 = vmax.f32 %v6854_v47, 0.0  ;;  %v6184_v63 = vpop.permute.xlu0 %6183  ;;  %8726 = vmatprep.subr.bf16.mxu0 %v7314_v1  ;;  %7696 = vmatprep.mubr.bf16.mxu1 %v7430_v28  ;;  %v16442_v28 = vld [vmem:[#allocation600_spill] sm:$0xff]  ;;  %v16445_v1 = vld [vmem:[#allocation645_spill] sm:$0xff]  ;;  %v7143_v39 = vmax.f32 %v6887_v34, 0.0  ;;  %v2017_v55 = vmul.f32 %v12717_v38, %v16446_v52  ;;  %v3301_v19 = vmul.f32 %v16099_v59, %v16450_v25 }
 0x7a5   : > { %v6329_v61 = vpop.permute.xlu1 %6328  ;;  %6503 = vperm.xlu0 %8982, %v5401_v8   ;;  %v4809_v37 = vmul.f32 %v12818_v58, %v16442_v28  ;;  %v3524_v0 = vadd.f32 %v3268_v7, %v1984_v26  ;;  %v5080_v6 = vadd.f32 %v4824_v60, %v3540_v15  ;;  %v5400_v47 = vld [vmem:[%s15294_s2 + $0x690] sm:$0xff]  ;;  %v2032_v8 = vmul.f32 %v12717_v38, %v16445_v1  ;;  %v16448_v31 = vld [vmem:[#allocation393_spill] sm:$0xff]  ;;  %v5403_v60 = vld [vmem:[%s15294_s2 + $0x6a8] sm:$0xff] }
 0x7a6   : > { %v7306_v56 = vpack.c.bf16 %v7111_v43, %v7110_v11  ;;  %v6902_v22 = vadd.f32 %v6329_v61, %v5110_v12  ;;  %6648 = vperm.xlu1 %8983, %v5430_v40   ;;  %v6873_v10 = vadd.f32 %v6184_v63, %v5081_v46  ;;  %v16447_v40 = vld [vmem:[#allocation344_spill] sm:$0xff]  ;;  %v3316_v11 = vmul.f32 %v16099_v59, %v16448_v31  ;;  %v16451_v61 = vld [vmem:[#allocation629_spill] sm:$0xff]  ;;  %v16452_v26 = vld [vmem:[#allocation123_spill] sm:$0xff] }
 0x7a7   : > { %v4808_v43 = vmul.f32 %v12818_v58, %v16447_v40  ;;  %v5065_v32 = vadd.f32 %v4809_v37, %v3525_v36  ;;  %v5417_v42 = vld [vmem:[%s15294_s2 + $0x718] sm:$0xff]  ;;  %v3573_v2 = vadd.f32 %v3317_v45, %v2033_v4  ;;  %v2016_v51 = vmul.f32 %v12717_v38, %v16451_v61  ;;  %v16457_v46 = vld [vmem:[#allocation615_spill] sm:$0xff]  ;;  %v16462_v40 = vld [vmem:[#allocation618_spill] sm:$0xff] }
 0x7a8   : > { %v7158_v54 = vmax.f32 %v6902_v22, 0.0  ;;  %v6104_v53 = vpop.permute.xlu0 %6103  ;;  %8727 = vmatpush3.bf16.msra.mxu0 %v7306_v56  ;;  %v3572_v56 = vadd.f32 %v3316_v11, %v2032_v8  ;;  %v7129_v22 = vmax.f32 %v6873_v10, 0.0  ;;  %v2003_v15 = vmul.f32 %v12717_v38, %v16452_v26  ;;  %v16454_v34 = vld [vmem:[#allocation392_spill] sm:$0xff] }
 0x7a9   : > { %v6249_v18 = vpop.permute.xlu1 %6248  ;;  %6423 = vperm.xlu0 %8982, %v5385_v27   ;;  %v5064_v20 = vadd.f32 %v4808_v43, %v3524_v0  ;;  %v6857_v27 = vadd.f32 %v6104_v53, %v5065_v32  ;;  %v16455_v36 = vld [vmem:[#allocation632_spill] sm:$0xff]  ;;  %v5113_v7 = vadd.f32 %v4857_v21, %v3573_v2  ;;  %v3557_v37 = vadd.f32 %v3301_v19, %v2017_v55  ;;  %v16463_v21 = vld [vmem:[#allocation599_spill] sm:$0xff] }
 0x7aa   : > { %v6886_v5 = vadd.f32 %v6249_v18, %v5094_v57  ;;  %6568 = vperm.xlu1 %8983, %v5414_v14   ;;  %v7330_v16 = vpack.c.bf16 %v7159_v29, %v7158_v54  ;;  %v16453_v14 = vld [vmem:[#allocation377_spill] sm:$0xff]  ;;  %v4856_v54 = vmul.f32 %v12818_v58, %v16454_v34  ;;  %v4841_v35 = vmul.f32 %v12818_v58, %v16455_v36  ;;  %v16456_v18 = vld [vmem:[#allocation124_spill] sm:$0xff]  ;;  %v16467_v34 = vld [vmem:[#allocation155_spill] sm:$0xff] }
 0x7ab   : > { %v3300_v29 = vmul.f32 %v16099_v59, %v16453_v14  ;;  %v3287_v28 = vmul.f32 %v16099_v59, %v16456_v18  ;;  %v7113_v50 = vmax.f32 %v6857_v27, 0.0  ;;  %v16459_v1 = vld [vmem:[#allocation108_spill] sm:$0xff]  ;;  %v1986_v32 = vmul.f32 %v12717_v38, %v16463_v21 }
 0x7ac   : > { %v7142_v9 = vmax.f32 %v6886_v5, 0.0  ;;  %v6344_v30 = vpop.permute.xlu0 %6343  ;;  %8748 = vmatprep.subr.bf16.mxu1 %v7330_v16  ;;  %v2002_v5 = vmul.f32 %v12717_v38, %v16457_v46  ;;  %v5112_v0 = vadd.f32 %v4856_v54, %v3572_v56  ;;  %v3271_v8 = vmul.f32 %v16099_v59, %v16459_v1  ;;  %v16465_v56 = vld [vmem:[#allocation362_spill] sm:$0xff] }
 0x7ad   : > { %v6179_v12 = vpop.permute.xlu1 %6178  ;;  %6663 = vperm.xlu0 %8982, %v5433_v48   ;;  %v3556_v16 = vadd.f32 %v3300_v29, %v2016_v51  ;;  %v5432_v48 = vld [vmem:[%s15294_s2 + $0x790] sm:$0xff]  ;;  %v6905_v4 = vadd.f32 %v6344_v30, %v5113_v7  ;;  %v4827_v30 = vmul.f32 %v12818_v58, %v16462_v40  ;;  %v5097_v43 = vadd.f32 %v4841_v35, %v3557_v37  ;;  %v5435_v29 = vld [vmem:[%s15294_s2 + $0x7a8] sm:$0xff] }
 0x7ae   : > { %v7322_v44 = vpack.c.bf16 %v7143_v39, %v7142_v9  ;;  %v6872_v63 = vadd.f32 %v6179_v12, %v5080_v6  ;;  %6498 = vperm.xlu1 %8983, %v5400_v47   ;;  %v16458_v6 = vld [vmem:[#allocation107_spill] sm:$0xff]  ;;  %v16461_v9 = vld [vmem:[#allocation376_spill] sm:$0xff]  ;;  %v3543_v41 = vadd.f32 %v3287_v28, %v2003_v15  ;;  %v2035_v54 = vmul.f32 %v12717_v38, %v16467_v34 }
 0x7af   : > { %v1987_v47 = vmul.f32 %v12717_v38, %v16458_v6  ;;  %v16460_v39 = vld [vmem:[#allocation363_spill] sm:$0xff]  ;;  %v4840_v52 = vmul.f32 %v12818_v58, %v16461_v9  ;;  %v16473_v6 = vld [vmem:[#allocation650_spill] sm:$0xff] }
 0x7b0   : > { %v7128_v3 = vmax.f32 %v6872_v63, 0.0  ;;  %v6264_v17 = vpop.permute.xlu0 %6263  ;;  %8749 = vmatpush3.bf16.msra.mxu1 %v7322_v44  ;;  %v3286_v10 = vmul.f32 %v16099_v59, %v16460_v39  ;;  %v5387_v12 = vld [vmem:[%s15294_s2 + $0x628] sm:$0xff]  ;;  %v5416_v63 = vld [vmem:[%s15294_s2 + $0x710] sm:$0xff]  ;;  %v5083_v15 = vadd.f32 %v4827_v30, %v3543_v41 }
 0x7b1   : > { %v6099_v57 = vpop.permute.xlu1 %6098  ;;  %6583 = vperm.xlu0 %8982, %v5417_v42   ;;  %v7161_v42 = vmax.f32 %v6905_v4, 0.0  ;;  %v6889_v25 = vadd.f32 %v6264_v17, %v5097_v43  ;;  %v5096_v61 = vadd.f32 %v4840_v52, %v3556_v16  ;;  %v3527_v51 = vadd.f32 %v3271_v8, %v1987_v47  ;;  %v16472_v4 = vld [vmem:[#allocation395_spill] sm:$0xff]  ;;  %v5386_v43 = vld [vmem:[%s15294_s2 + $0x620] sm:$0xff] }
 0x7b2   : > { %v6856_v13 = vadd.f32 %v6099_v57, %v5064_v20  ;;  %6418 = vperm.xlu1 %8983, %v5384_v62   ;;  %v7315_v53 = vpack.c.bf16 %v7129_v22, %v7128_v3  ;;  %v3542_v44 = vadd.f32 %v3286_v10, %v2002_v5  ;;  %v16464_v20 = vld [vmem:[#allocation347_spill] sm:$0xff]  ;;  %v4826_v22 = vmul.f32 %v12818_v58, %v16465_v56  ;;  %v16466_v3 = vld [vmem:[#allocation602_spill] sm:$0xff]  ;;  %v16468_v57 = vld [vmem:[#allocation156_spill] sm:$0xff] }
 0x7b3   : > { %v3270_v62 = vmul.f32 %v16099_v59, %v16464_v20  ;;  %v4811_v26 = vmul.f32 %v12818_v58, %v16466_v3  ;;  %v3319_v36 = vmul.f32 %v16099_v59, %v16468_v57  ;;  %v7145_v18 = vmax.f32 %v6889_v25, 0.0  ;;  %v16470_v5 = vld [vmem:[#allocation139_spill] sm:$0xff]  ;;  %v16474_v10 = vld [vmem:[#allocation140_spill] sm:$0xff]  ;;  %v16478_v25 = vld [vmem:[#allocation394_spill] sm:$0xff] }
 0x7b4   : > { %v7112_v24 = vmax.f32 %v6856_v13, 0.0  ;;  %v6194_v45 = vpop.permute.xlu0 %6193  ;;  %8728 = vmatprep.subr.bf16.mxu0 %v7315_v53  ;;  %v5082_v7 = vadd.f32 %v4826_v22, %v3542_v44  ;;  %v5402_v13 = vld [vmem:[%s15294_s2 + $0x6a0] sm:$0xff]  ;;  %v16469_v53 = vld [vmem:[#allocation647_spill] sm:$0xff]  ;;  %v2019_v16 = vmul.f32 %v12717_v38, %v16470_v5  ;;  %v4859_v47 = vmul.f32 %v12818_v58, %v16473_v6  ;;  %v5405_v22 = vld [vmem:[%s15294_s2 + $0x6b8] sm:$0xff] }
 0x7b5   : > { %v6339_v55 = vpop.permute.xlu1 %6338  ;;  %6513 = vperm.xlu0 %8982, %v5403_v60   ;;  %v3526_v35 = vadd.f32 %v3270_v62, %v1986_v32  ;;  %v2034_v60 = vmul.f32 %v12717_v38, %v16469_v53  ;;  %v6875_v28 = vadd.f32 %v6194_v45, %v5083_v15  ;;  %v5067_v1 = vadd.f32 %v4811_v26, %v3527_v51  ;;  %v5419_v39 = vld [vmem:[%s15294_s2 + $0x728] sm:$0xff]  ;;  %v16476_v32 = vld [vmem:[#allocation125_spill] sm:$0xff] }
 0x7b6   : > { %v7307_v31 = vpack.c.bf16 %v7113_v50, %v7112_v24  ;;  %v6904_v11 = vadd.f32 %v6339_v55, %v5112_v0  ;;  %6658 = vperm.xlu1 %8983, %v5432_v48   ;;  %v16471_v48 = vld [vmem:[#allocation346_spill] sm:$0xff]  ;;  %v3318_v24 = vmul.f32 %v16099_v59, %v16472_v4  ;;  %v3303_v9 = vmul.f32 %v16099_v59, %v16474_v10  ;;  %v16475_v55 = vld [vmem:[#allocation631_spill] sm:$0xff]  ;;  %v16481_v15 = vld [vmem:[#allocation617_spill] sm:$0xff] }
 0x7b7   : > { %v4810_v50 = vmul.f32 %v12818_v58, %v16471_v48  ;;  %v3575_v52 = vadd.f32 %v3319_v36, %v2035_v54  ;;  %v2018_v40 = vmul.f32 %v12717_v38, %v16475_v55  ;;  %v2005_v44 = vmul.f32 %v12717_v38, %v16476_v32  ;;  %v16479_v51 = vld [vmem:[#allocation634_spill] sm:$0xff]  ;;  %v16486_v48 = vld [vmem:[#allocation620_spill] sm:$0xff] }
 0x7b8   : > { %v7160_v19 = vmax.f32 %v6904_v11, 0.0  ;;  %v6114_v2 = vpop.permute.xlu0 %6113  ;;  %8729 = vmatpush3.bf16.msra.mxu0 %v7307_v31  ;;  %v3574_v31 = vadd.f32 %v3318_v24, %v2034_v60  ;;  %v7131_v11 = vmax.f32 %v6875_v28, 0.0  ;;  %v4843_v20 = vmul.f32 %v12818_v58, %v16479_v51  ;;  %v16483_v53 = vld [vmem:[#allocation110_spill] sm:$0xff] }
 0x7b9   : > { %v6259_v27 = vpop.permute.xlu1 %6258  ;;  %6433 = vperm.xlu0 %8982, %v5387_v12   ;;  %v5066_v30 = vadd.f32 %v4810_v50, %v3526_v35  ;;  %v6859_v12 = vadd.f32 %v6114_v2, %v5067_v1  ;;  %v5115_v62 = vadd.f32 %v4859_v47, %v3575_v52  ;;  %v3559_v26 = vadd.f32 %v3303_v9, %v2019_v16  ;;  %v16487_v47 = vld [vmem:[#allocation601_spill] sm:$0xff] }
 0x7ba   : > { %v6888_v14 = vadd.f32 %v6259_v27, %v5096_v61  ;;  %6578 = vperm.xlu1 %8983, %v5416_v63   ;;  %v7331_v17 = vpack.c.bf16 %v7161_v42, %v7160_v19  ;;  %v16477_v63 = vld [vmem:[#allocation379_spill] sm:$0xff]  ;;  %v4858_v19 = vmul.f32 %v12818_v58, %v16478_v25  ;;  %v16480_v27 = vld [vmem:[#allocation126_spill] sm:$0xff]  ;;  %v3273_v60 = vmul.f32 %v16099_v59, %v16483_v53  ;;  %v16491_v25 = vld [vmem:[#allocation157_spill] sm:$0xff] }
 0x7bb   : > { %v3302_v42 = vmul.f32 %v16099_v59, %v16477_v63  ;;  %v3289_v3 = vmul.f32 %v16099_v59, %v16480_v27  ;;  %v7115_v34 = vmax.f32 %v6859_v12, 0.0  ;;  %v5099_v50 = vadd.f32 %v4843_v20, %v3559_v26 }
 0x7bc   : > { %v7144_v37 = vmax.f32 %v6888_v14, 0.0  ;;  %v6354_v46 = vpop.permute.xlu0 %6353  ;;  %8750 = vmatprep.subr.bf16.mxu1 %v7331_v17  ;;  %v2004_v14 = vmul.f32 %v12717_v38, %v16481_v15  ;;  %v5114_v35 = vadd.f32 %v4858_v19, %v3574_v31  ;;  %v1988_v1 = vmul.f32 %v12717_v38, %v16487_v47  ;;  %v16489_v31 = vld [vmem:[#allocation364_spill] sm:$0xff] }
 0x7bd   : > { %v6189_v0 = vpop.permute.xlu1 %6188  ;;  %6673 = vperm.xlu0 %8982, %v5435_v29   ;;  %v3558_v17 = vadd.f32 %v3302_v42, %v2018_v40  ;;  %v5434_v29 = vld [vmem:[%s15294_s2 + $0x7a0] sm:$0xff]  ;;  %v6907_v54 = vadd.f32 %v6354_v46, %v5115_v62  ;;  %v4829_v46 = vmul.f32 %v12818_v58, %v16486_v48  ;;  %v3545_v6 = vadd.f32 %v3289_v3, %v2005_v44  ;;  %v5437_v42 = vld [vmem:[%s15294_s2 + $0x7b8] sm:$0xff] }
 0x7be   : > { %v7323_v8 = vpack.c.bf16 %v7145_v18, %v7144_v37  ;;  %v6874_v45 = vadd.f32 %v6189_v0, %v5082_v7  ;;  %6508 = vperm.xlu1 %8983, %v5402_v13   ;;  %v16482_v7 = vld [vmem:[#allocation109_spill] sm:$0xff]  ;;  %v16485_v37 = vld [vmem:[#allocation378_spill] sm:$0xff]  ;;  %v2037_v19 = vmul.f32 %v12717_v38, %v16491_v25 }
 0x7bf   : > { %v1989_v13 = vmul.f32 %v12717_v38, %v16482_v7  ;;  %v16484_v18 = vld [vmem:[#allocation365_spill] sm:$0xff]  ;;  %v4842_v5 = vmul.f32 %v12818_v58, %v16485_v37  ;;  %v5085_v44 = vadd.f32 %v4829_v46, %v3545_v6  ;;  %v16497_v7 = vld [vmem:[#allocation652_spill] sm:$0xff] }
 0x7c0   : > { %v7130_v41 = vmax.f32 %v6874_v45, 0.0  ;;  %v6274_v21 = vpop.permute.xlu0 %6273  ;;  %8751 = vmatpush3.bf16.msra.mxu1 %v7323_v8  ;;  %v3288_v28 = vmul.f32 %v16099_v59, %v16484_v18  ;;  %v5389_v0 = vld [vmem:[%s15294_s2 + $0x638] sm:$0xff]  ;;  %v5418_v45 = vld [vmem:[%s15294_s2 + $0x720] sm:$0xff] }
 0x7c1   : > { %v6109_v61 = vpop.permute.xlu1 %6108  ;;  %6593 = vperm.xlu0 %8982, %v5419_v39   ;;  %v7163_v39 = vmax.f32 %v6907_v54, 0.0  ;;  %v6891_v10 = vadd.f32 %v6274_v21, %v5099_v50  ;;  %v5098_v55 = vadd.f32 %v4842_v5, %v3558_v17  ;;  %v3529_v40 = vadd.f32 %v3273_v60, %v1989_v13  ;;  %v16496_v54 = vld [vmem:[#allocation397_spill] sm:$0xff]  ;;  %v5388_v50 = vld [vmem:[%s15294_s2 + $0x630] sm:$0xff] }
 0x7c2   : > { %v6858_v56 = vadd.f32 %v6109_v61, %v5066_v30  ;;  %6428 = vperm.xlu1 %8983, %v5386_v43   ;;  %v7316_v2 = vpack.c.bf16 %v7131_v11, %v7130_v41  ;;  %v3544_v8 = vadd.f32 %v3288_v28, %v2004_v14  ;;  %v16488_v30 = vld [vmem:[#allocation349_spill] sm:$0xff]  ;;  %v4828_v11 = vmul.f32 %v12818_v58, %v16489_v31  ;;  %v16490_v41 = vld [vmem:[#allocation604_spill] sm:$0xff]  ;;  %v16492_v61 = vld [vmem:[#allocation158_spill] sm:$0xff] }
 0x7c3   : > { %v3272_v43 = vmul.f32 %v16099_v59, %v16488_v30  ;;  %v4813_v32 = vmul.f32 %v12818_v58, %v16490_v41  ;;  %v3321_v51 = vmul.f32 %v16099_v59, %v16492_v61  ;;  %v7147_v27 = vmax.f32 %v6891_v10, 0.0  ;;  %v16494_v14 = vld [vmem:[#allocation141_spill] sm:$0xff]  ;;  %v16498_v28 = vld [vmem:[#allocation142_spill] sm:$0xff]  ;;  %v16502_v10 = vld [vmem:[#allocation396_spill] sm:$0xff] }
 0x7c4   : > { %v7114_v57 = vmax.f32 %v6858_v56, 0.0  ;;  %v6204_v36 = vpop.permute.xlu0 %6203  ;;  %8730 = vmatprep.subr.bf16.mxu0 %v7316_v2  ;;  %v5084_v62 = vadd.f32 %v4828_v11, %v3544_v8  ;;  %v5404_v56 = vld [vmem:[%s15294_s2 + $0x6b0] sm:$0xff]  ;;  %v16493_v2 = vld [vmem:[#allocation649_spill] sm:$0xff]  ;;  %v2021_v17 = vmul.f32 %v12717_v38, %v16494_v14  ;;  %v4861_v13 = vmul.f32 %v12818_v58, %v16497_v7  ;;  %v5407_v11 = vld [vmem:[%s15294_s2 + $0x6c8] sm:$0xff] }
 0x7c5   : > { %v6349_v16 = vpop.permute.xlu1 %6348  ;;  %6523 = vperm.xlu0 %8982, %v5405_v22   ;;  %v3528_v20 = vadd.f32 %v3272_v43, %v1988_v1  ;;  %v2036_v22 = vmul.f32 %v12717_v38, %v16493_v2  ;;  %v6877_v3 = vadd.f32 %v6204_v36, %v5085_v44  ;;  %v5069_v53 = vadd.f32 %v4813_v32, %v3529_v40  ;;  %v5421_v18 = vld [vmem:[%s15294_s2 + $0x738] sm:$0xff]  ;;  %v16500_v1 = vld [vmem:[#allocation127_spill] sm:$0xff] }
 0x7c6   : > { %v7308_v4 = vpack.c.bf16 %v7115_v34, %v7114_v57  ;;  %v6906_v24 = vadd.f32 %v6349_v16, %v5114_v35  ;;  %6668 = vperm.xlu1 %8983, %v5434_v29   ;;  %v16495_v29 = vld [vmem:[#allocation348_spill] sm:$0xff]  ;;  %v3320_v57 = vmul.f32 %v16099_v59, %v16496_v54  ;;  %v3305_v37 = vmul.f32 %v16099_v59, %v16498_v28  ;;  %v16499_v16 = vld [vmem:[#allocation633_spill] sm:$0xff]  ;;  %v16505_v44 = vld [vmem:[#allocation619_spill] sm:$0xff] }
 0x7c7   : > { %v4812_v34 = vmul.f32 %v12818_v58, %v16495_v29  ;;  %v3577_v5 = vadd.f32 %v3321_v51, %v2037_v19  ;;  %v2020_v48 = vmul.f32 %v12717_v38, %v16499_v16  ;;  %v2007_v8 = vmul.f32 %v12717_v38, %v16500_v1  ;;  %v16503_v40 = vld [vmem:[#allocation636_spill] sm:$0xff]  ;;  %v16510_v29 = vld [vmem:[#allocation622_spill] sm:$0xff] }
 0x7c8   : > { %v7162_v9 = vmax.f32 %v6906_v24, 0.0  ;;  %v6124_v52 = vpop.permute.xlu0 %6123  ;;  %8731 = vmatpush3.bf16.msra.mxu0 %v7308_v4  ;;  %v3576_v4 = vadd.f32 %v3320_v57, %v2036_v22  ;;  %v7133_v24 = vmax.f32 %v6877_v3, 0.0  ;;  %v4845_v30 = vmul.f32 %v12818_v58, %v16503_v40  ;;  %v16507_v2 = vld [vmem:[#allocation112_spill] sm:$0xff] }
 0x7c9   : > { %v6269_v12 = vpop.permute.xlu1 %6268  ;;  %6443 = vperm.xlu0 %8982, %v5389_v0   ;;  %v5068_v46 = vadd.f32 %v4812_v34, %v3528_v20  ;;  %v6861_v0 = vadd.f32 %v6124_v52, %v5069_v53  ;;  %v5117_v43 = vadd.f32 %v4861_v13, %v3577_v5  ;;  %v3561_v32 = vadd.f32 %v3305_v37, %v2021_v17  ;;  %v16511_v13 = vld [vmem:[#allocation603_spill] sm:$0xff] }
 0x7ca   : > { %v6890_v63 = vadd.f32 %v6269_v12, %v5098_v55  ;;  %6588 = vperm.xlu1 %8983, %v5418_v45   ;;  %v7332_v21 = vpack.c.bf16 %v7163_v39, %v7162_v9  ;;  %v16501_v45 = vld [vmem:[#allocation381_spill] sm:$0xff]  ;;  %v4860_v9 = vmul.f32 %v12818_v58, %v16502_v10  ;;  %v16504_v12 = vld [vmem:[#allocation128_spill] sm:$0xff]  ;;  %v3275_v22 = vmul.f32 %v16099_v59, %v16507_v2  ;;  %v16515_v10 = vld [vmem:[#allocation159_spill] sm:$0xff] }
 0x7cb   : > { %v3304_v39 = vmul.f32 %v16099_v59, %v16501_v45  ;;  %v3291_v41 = vmul.f32 %v16099_v59, %v16504_v12  ;;  %v7117_v25 = vmax.f32 %v6861_v0, 0.0  ;;  %v5101_v34 = vadd.f32 %v4845_v30, %v3561_v32 }
 0x7cc   : > { %v7146_v26 = vmax.f32 %v6890_v63, 0.0  ;;  %v6364_v15 = vpop.permute.xlu0 %6363  ;;  %8752 = vmatprep.subr.bf16.mxu1 %v7332_v21  ;;  %v2006_v63 = vmul.f32 %v12717_v38, %v16505_v44  ;;  %v5116_v20 = vadd.f32 %v4860_v9, %v3576_v4  ;;  %v1990_v53 = vmul.f32 %v12717_v38, %v16511_v13  ;;  %v16513_v4 = vld [vmem:[#allocation366_spill] sm:$0xff] }
 0x7cd   : > { %v6199_v35 = vpop.permute.xlu1 %6198  ;;  %6683 = vperm.xlu0 %8982, %v5437_v42   ;;  %v3560_v21 = vadd.f32 %v3304_v39, %v2020_v48  ;;  %v5436_v42 = vld [vmem:[%s15294_s2 + $0x7b0] sm:$0xff]  ;;  %v6909_v19 = vadd.f32 %v6364_v15, %v5117_v43  ;;  %v4831_v15 = vmul.f32 %v12818_v58, %v16510_v29  ;;  %v3547_v7 = vadd.f32 %v3291_v41, %v2007_v8  ;;  %v5439_v39 = vld [vmem:[%s15294_s2 + $0x7c8] sm:$0xff] }
 0x7ce   : > { %v7324_v60 = vpack.c.bf16 %v7147_v27, %v7146_v26  ;;  %v6876_v36 = vadd.f32 %v6199_v35, %v5084_v62  ;;  %6518 = vperm.xlu1 %8983, %v5404_v56   ;;  %v16506_v62 = vld [vmem:[#allocation111_spill] sm:$0xff]  ;;  %v16509_v26 = vld [vmem:[#allocation380_spill] sm:$0xff]  ;;  %v2039_v9 = vmul.f32 %v12717_v38, %v16515_v10 }
 0x7cf   : > { %v1991_v56 = vmul.f32 %v12717_v38, %v16506_v62  ;;  %v16508_v27 = vld [vmem:[#allocation367_spill] sm:$0xff]  ;;  %v4844_v14 = vmul.f32 %v12818_v58, %v16509_v26  ;;  %v5087_v8 = vadd.f32 %v4831_v15, %v3547_v7  ;;  %v16521_v62 = vld [vmem:[#allocation654_spill] sm:$0xff] }
 0x7d0   : > { %v7132_v6 = vmax.f32 %v6876_v36, 0.0  ;;  %v6284_v47 = vpop.permute.xlu0 %6283  ;;  %8753 = vmatpush3.bf16.msra.mxu1 %v7324_v60  ;;  %v3290_v3 = vmul.f32 %v16099_v59, %v16508_v27  ;;  %v5391_v35 = vld [vmem:[%s15294_s2 + $0x648] sm:$0xff]  ;;  %v5420_v36 = vld [vmem:[%s15294_s2 + $0x730] sm:$0xff] }
 0x7d1   : > { %v6119_v55 = vpop.permute.xlu1 %6118  ;;  %6603 = vperm.xlu0 %8982, %v5421_v18   ;;  %v7165_v18 = vmax.f32 %v6909_v19, 0.0  ;;  %v6893_v28 = vadd.f32 %v6284_v47, %v5101_v34  ;;  %v5100_v16 = vadd.f32 %v4844_v14, %v3560_v21  ;;  %v3531_v48 = vadd.f32 %v3275_v22, %v1991_v56  ;;  %v16520_v19 = vld [vmem:[#allocation399_spill] sm:$0xff]  ;;  %v5390_v34 = vld [vmem:[%s15294_s2 + $0x640] sm:$0xff] }
 0x7d2   : > { %v6860_v31 = vadd.f32 %v6119_v55, %v5068_v46  ;;  %6438 = vperm.xlu1 %8983, %v5388_v50   ;;  %v7317_v52 = vpack.c.bf16 %v7133_v24, %v7132_v6  ;;  %v3546_v60 = vadd.f32 %v3290_v3, %v2006_v63  ;;  %v16512_v46 = vld [vmem:[#allocation351_spill] sm:$0xff]  ;;  %v4830_v24 = vmul.f32 %v12818_v58, %v16513_v4  ;;  %v16514_v6 = vld [vmem:[#allocation606_spill] sm:$0xff]  ;;  %v16516_v55 = vld [vmem:[#allocation160_spill] sm:$0xff] }
 0x7d3   : > { %v3274_v50 = vmul.f32 %v16099_v59, %v16512_v46  ;;  %v4815_v1 = vmul.f32 %v12818_v58, %v16514_v6  ;;  %v3323_v40 = vmul.f32 %v16099_v59, %v16516_v55  ;;  %v7149_v12 = vmax.f32 %v6893_v28, 0.0  ;;  %v16518_v63 = vld [vmem:[#allocation143_spill] sm:$0xff]  ;;  %v16522_v3 = vld [vmem:[#allocation144_spill] sm:$0xff]  ;;  %v16526_v28 = vld [vmem:[#allocation398_spill] sm:$0xff] }
 0x7d4   : > { %v7116_v61 = vmax.f32 %v6860_v31, 0.0  ;;  %v6214_v51 = vpop.permute.xlu0 %6213  ;;  %8732 = vmatprep.subr.bf16.mxu0 %v7317_v52  ;;  %v5086_v43 = vadd.f32 %v4830_v24, %v3546_v60  ;;  %v5406_v31 = vld [vmem:[%s15294_s2 + $0x6c0] sm:$0xff]  ;;  %v16517_v52 = vld [vmem:[#allocation651_spill] sm:$0xff]  ;;  %v2023_v21 = vmul.f32 %v12717_v38, %v16518_v63  ;;  %v4863_v56 = vmul.f32 %v12818_v58, %v16521_v62  ;;  %v5409_v24 = vld [vmem:[%s15294_s2 + $0x6d8] sm:$0xff] }
 0x7d5   : > { %v6359_v17 = vpop.permute.xlu1 %6358  ;;  %6533 = vperm.xlu0 %8982, %v5407_v11   ;;  %v3530_v30 = vadd.f32 %v3274_v50, %v1990_v53  ;;  %v2038_v11 = vmul.f32 %v12717_v38, %v16517_v52  ;;  %v6879_v41 = vadd.f32 %v6214_v51, %v5087_v8  ;;  %v5071_v2 = vadd.f32 %v4815_v1, %v3531_v48  ;;  %v5423_v27 = vld [vmem:[%s15294_s2 + $0x748] sm:$0xff]  ;;  %v16524_v53 = vld [vmem:[#allocation129_spill] sm:$0xff] }
 0x7d6   : > { %v7309_v54 = vpack.c.bf16 %v7117_v25, %v7116_v61  ;;  %v6908_v57 = vadd.f32 %v6359_v17, %v5116_v20  ;;  %6678 = vperm.xlu1 %8983, %v5436_v42   ;;  %v16519_v42 = vld [vmem:[#allocation350_spill] sm:$0xff]  ;;  %v3322_v61 = vmul.f32 %v16099_v59, %v16520_v19  ;;  %v3307_v26 = vmul.f32 %v16099_v59, %v16522_v3  ;;  %v16523_v17 = vld [vmem:[#allocation635_spill] sm:$0xff]  ;;  %v16529_v8 = vld [vmem:[#allocation621_spill] sm:$0xff] }
 0x7d7   : > { %v4814_v25 = vmul.f32 %v12818_v58, %v16519_v42  ;;  %v3579_v14 = vadd.f32 %v3323_v40, %v2039_v9  ;;  %v2022_v29 = vmul.f32 %v12717_v38, %v16523_v17  ;;  %v2009_v60 = vmul.f32 %v12717_v38, %v16524_v53  ;;  %v16527_v48 = vld [vmem:[#allocation638_spill] sm:$0xff]  ;;  %v16534_v42 = vld [vmem:[#allocation624_spill] sm:$0xff] }
 0x7d8   : > { %v7164_v37 = vmax.f32 %v6908_v57, 0.0  ;;  %v6134_v5 = vpop.permute.xlu0 %6133  ;;  %8733 = vmatpush3.bf16.msra.mxu0 %v7309_v54  ;;  %v3578_v54 = vadd.f32 %v3322_v61, %v2038_v11  ;;  %v7135_v57 = vmax.f32 %v6879_v41, 0.0  ;;  %v4847_v46 = vmul.f32 %v12818_v58, %v16527_v48  ;;  %v16531_v52 = vld [vmem:[#allocation114_spill] sm:$0xff] }
 0x7d9   : > { %v6279_v0 = vpop.permute.xlu1 %6278  ;;  %6453 = vperm.xlu0 %8982, %v5391_v35   ;;  %v5070_v15 = vadd.f32 %v4814_v25, %v3530_v30  ;;  %v6863_v35 = vadd.f32 %v6134_v5, %v5071_v2  ;;  %v5119_v50 = vadd.f32 %v4863_v56, %v3579_v14  ;;  %v3563_v1 = vadd.f32 %v3307_v26, %v2023_v21  ;;  %v16535_v56 = vld [vmem:[#allocation605_spill] sm:$0xff] }
 0x7da   : > { %v6892_v45 = vadd.f32 %v6279_v0, %v5100_v16  ;;  %6598 = vperm.xlu1 %8983, %v5420_v36   ;;  %v7333_v47 = vpack.c.bf16 %v7165_v18, %v7164_v37  ;;  %v16525_v36 = vld [vmem:[#allocation383_spill] sm:$0xff]  ;;  %v4862_v37 = vmul.f32 %v12818_v58, %v16526_v28  ;;  %v16528_v0 = vld [vmem:[#allocation130_spill] sm:$0xff]  ;;  %v3277_v11 = vmul.f32 %v16099_v59, %v16531_v52  ;;  %v16539_v28 = vld [vmem:[#allocation161_spill] sm:$0xff] }
 0x7db   : > { %v3306_v18 = vmul.f32 %v16099_v59, %v16525_v36  ;;  %v3293_v6 = vmul.f32 %v16099_v59, %v16528_v0  ;;  %v7119_v10 = vmax.f32 %v6863_v35, 0.0  ;;  %v5103_v25 = vadd.f32 %v4847_v46, %v3563_v1 }
 0x7dc   : > { %v7148_v32 = vmax.f32 %v6892_v45, 0.0  ;;  %v6374_v44 = vpop.permute.xlu0 %6373  ;;  %8754 = vmatprep.subr.bf16.mxu1 %v7333_v47  ;;  %v2008_v45 = vmul.f32 %v12717_v38, %v16529_v8  ;;  %v5118_v30 = vadd.f32 %v4862_v37, %v3578_v54  ;;  %v1992_v2 = vmul.f32 %v12717_v38, %v16535_v56  ;;  %v16537_v54 = vld [vmem:[#allocation368_spill] sm:$0xff] }
 0x7dd   : > { %v6209_v20 = vpop.permute.xlu1 %6208  ;;  %6693 = vperm.xlu0 %8982, %v5439_v39   ;;  %v3562_v47 = vadd.f32 %v3306_v18, %v2022_v29  ;;  %v5438_v39 = vld [vmem:[%s15294_s2 + $0x7c0] sm:$0xff]  ;;  %v6911_v9 = vadd.f32 %v6374_v44, %v5119_v50  ;;  %v4833_v44 = vmul.f32 %v12818_v58, %v16534_v42  ;;  %v3549_v62 = vadd.f32 %v3293_v6, %v2009_v60 }
 0x7de   : > { %v7325_v22 = vpack.c.bf16 %v7149_v12, %v7148_v32  ;;  %v6878_v51 = vadd.f32 %v6209_v20, %v5086_v43  ;;  %6528 = vperm.xlu1 %8983, %v5406_v31   ;;  %v16530_v43 = vld [vmem:[#allocation113_spill] sm:$0xff]  ;;  %v16533_v32 = vld [vmem:[#allocation382_spill] sm:$0xff]  ;;  %v2041_v37 = vmul.f32 %v12717_v38, %v16539_v28 }
 0x7df   : > { %v1993_v31 = vmul.f32 %v12717_v38, %v16530_v43  ;;  %v16532_v12 = vld [vmem:[#allocation369_spill] sm:$0xff]  ;;  %v4846_v63 = vmul.f32 %v12818_v58, %v16533_v32  ;;  %v5089_v60 = vadd.f32 %v4833_v44, %v3549_v62  ;;  %v16545_v43 = vld [vmem:[#allocation656_spill] sm:$0xff] }
 0x7e0   : > { %v7134_v7 = vmax.f32 %v6878_v51, 0.0  ;;  %v6294_v13 = vpop.permute.xlu0 %6293  ;;  %8755 = vmatpush3.bf16.msra.mxu1 %v7325_v22  ;;  %v3292_v41 = vmul.f32 %v16099_v59, %v16532_v12  ;;  %v5393_v20 = vld [vmem:[%s15294_s2 + $0x658] sm:$0xff]  ;;  %v5422_v51 = vld [vmem:[%s15294_s2 + $0x740] sm:$0xff] }
 0x7e1   : > { %v6129_v16 = vpop.permute.xlu1 %6128  ;;  %6613 = vperm.xlu0 %8982, %v5423_v27   ;;  %v7167_v27 = vmax.f32 %v6911_v9, 0.0  ;;  %v6895_v3 = vadd.f32 %v6294_v13, %v5103_v25  ;;  %v5102_v17 = vadd.f32 %v4846_v63, %v3562_v47  ;;  %v3533_v29 = vadd.f32 %v3277_v11, %v1993_v31  ;;  %v5441_v13 = vld [vmem:[%s15294_s2 + $0x7d8] sm:$0xff]  ;;  %v5392_v25 = vld [vmem:[%s15294_s2 + $0x650] sm:$0xff] }
 0x7e2   : > { %v6862_v4 = vadd.f32 %v6129_v16, %v5070_v15  ;;  %6448 = vperm.xlu1 %8983, %v5390_v34   ;;  %v7318_v5 = vpack.c.bf16 %v7135_v57, %v7134_v7  ;;  %v3548_v22 = vadd.f32 %v3292_v41, %v2008_v45  ;;  %v16536_v15 = vld [vmem:[#allocation353_spill] sm:$0xff]  ;;  %v4832_v57 = vmul.f32 %v12818_v58, %v16537_v54  ;;  %v16538_v7 = vld [vmem:[#allocation608_spill] sm:$0xff]  ;;  %v16540_v16 = vld [vmem:[#allocation162_spill] sm:$0xff] }
 0x7e3   : > { %v3276_v34 = vmul.f32 %v16099_v59, %v16536_v15  ;;  %v4817_v53 = vmul.f32 %v12818_v58, %v16538_v7  ;;  %v3325_v48 = vmul.f32 %v16099_v59, %v16540_v16  ;;  %v7151_v0 = vmax.f32 %v6895_v3, 0.0  ;;  %v16542_v45 = vld [vmem:[#allocation145_spill] sm:$0xff]  ;;  %v16546_v41 = vld [vmem:[#allocation146_spill] sm:$0xff]  ;;  %v16550_v3 = vld [vmem:[#allocation400_spill] sm:$0xff] }
 0x7e4   : > { %v7118_v55 = vmax.f32 %v6862_v4, 0.0  ;;  %v6224_v40 = vpop.permute.xlu0 %6223  ;;  %8734 = vmatprep.subr.bf16.mxu0 %v7318_v5  ;;  %v5088_v50 = vadd.f32 %v4832_v57, %v3548_v22  ;;  %v5408_v4 = vld [vmem:[%s15294_s2 + $0x6d0] sm:$0xff]  ;;  %v16541_v5 = vld [vmem:[#allocation653_spill] sm:$0xff]  ;;  %v2025_v47 = vmul.f32 %v12717_v38, %v16542_v45  ;;  %v4865_v31 = vmul.f32 %v12818_v58, %v16545_v43  ;;  %v5411_v57 = vld [vmem:[%s15294_s2 + $0x6e8] sm:$0xff] }
 0x7e5   : > { %v6369_v21 = vpop.permute.xlu1 %6368  ;;  %6543 = vperm.xlu0 %8982, %v5409_v24   ;;  %v3532_v46 = vadd.f32 %v3276_v34, %v1992_v2  ;;  %v2040_v24 = vmul.f32 %v12717_v38, %v16541_v5  ;;  %v6881_v6 = vadd.f32 %v6224_v40, %v5089_v60  ;;  %v16544_v9 = vld [vmem:[#allocation401_spill] sm:$0xff]  ;;  %v5073_v52 = vadd.f32 %v4817_v53, %v3533_v29  ;;  %v16548_v2 = vld [vmem:[#allocation131_spill] sm:$0xff]  ;;  %v16551_v29 = vld [vmem:[#allocation640_spill] sm:$0xff] }
 0x7e6   : > { %v7310_v19 = vpack.c.bf16 %v7119_v10, %v7118_v55  ;;  %v6910_v61 = vadd.f32 %v6369_v21, %v5118_v30  ;;  %6688 = vperm.xlu1 %8983, %v5438_v39   ;;  %v16543_v39 = vld [vmem:[#allocation352_spill] sm:$0xff]  ;;  %v3324_v55 = vmul.f32 %v16099_v59, %v16544_v9  ;;  %v3309_v32 = vmul.f32 %v16099_v59, %v16546_v41  ;;  %v16547_v21 = vld [vmem:[#allocation637_spill] sm:$0xff]  ;;  %v16553_v60 = vld [vmem:[#allocation623_spill] sm:$0xff] }
 0x7e7   : > { %v4816_v10 = vmul.f32 %v12818_v58, %v16543_v39  ;;  %v5425_v12 = vld [vmem:[%s15294_s2 + $0x758] sm:$0xff]  ;;  %v3581_v63 = vadd.f32 %v3325_v48, %v2041_v37  ;;  %v2024_v42 = vmul.f32 %v12717_v38, %v16547_v21  ;;  %v2011_v22 = vmul.f32 %v12717_v38, %v16548_v2  ;;  %v16558_v39 = vld [vmem:[#allocation626_spill] sm:$0xff] }
 0x7e8   : > { %v7166_v26 = vmax.f32 %v6910_v61, 0.0  ;;  %v6144_v14 = vpop.permute.xlu0 %6143  ;;  %8735 = vmatpush3.bf16.msra.mxu0 %v7310_v19  ;;  %v3580_v19 = vadd.f32 %v3324_v55, %v2040_v24  ;;  %v7137_v61 = vmax.f32 %v6881_v6, 0.0  ;;  %v4849_v15 = vmul.f32 %v12818_v58, %v16551_v29  ;;  %v16555_v5 = vld [vmem:[#allocation116_spill] sm:$0xff] }
 0x7e9   : > { %v6289_v35 = vpop.permute.xlu1 %6288  ;;  %6463 = vperm.xlu0 %8982, %v5393_v20   ;;  %v5072_v44 = vadd.f32 %v4816_v10, %v3532_v46  ;;  %v6865_v20 = vadd.f32 %v6144_v14, %v5073_v52  ;;  %v5121_v34 = vadd.f32 %v4865_v31, %v3581_v63  ;;  %v3565_v53 = vadd.f32 %v3309_v32, %v2025_v47  ;;  %v16559_v31 = vld [vmem:[#allocation607_spill] sm:$0xff] }
 0x7ea   : > { %v7334_v36 = vpack.c.bf16 %v7167_v27, %v7166_v26  ;;  %v6894_v18 = vadd.f32 %v6289_v35, %v5102_v17  ;;  %6608 = vperm.xlu1 %8983, %v5422_v51   ;;  %v16549_v51 = vld [vmem:[#allocation385_spill] sm:$0xff]  ;;  %v4864_v26 = vmul.f32 %v12818_v58, %v16550_v3  ;;  %v16552_v35 = vld [vmem:[#allocation132_spill] sm:$0xff]  ;;  %v3279_v24 = vmul.f32 %v16099_v59, %v16555_v5  ;;  %v16563_v3 = vld [vmem:[#allocation163_spill] sm:$0xff] }
 0x7eb   : > { %v3308_v27 = vmul.f32 %v16099_v59, %v16549_v51  ;;  %v3295_v7 = vmul.f32 %v16099_v59, %v16552_v35  ;;  %v7121_v28 = vmax.f32 %v6865_v20, 0.0  ;;  %v5105_v10 = vadd.f32 %v4849_v15, %v3565_v53 }
 0x7ec   : > { %v7150_v1 = vmax.f32 %v6894_v18, 0.0  ;;  %v6384_v8 = vpop.permute.xlu0 %6383  ;;  %8756 = vmatprep.subr.bf16.mxu1 %v7334_v36  ;;  %v2010_v36 = vmul.f32 %v12717_v38, %v16553_v60  ;;  %v5120_v46 = vadd.f32 %v4864_v26, %v3580_v19  ;;  %v1994_v52 = vmul.f32 %v12717_v38, %v16559_v31  ;;  %v16561_v19 = vld [vmem:[#allocation370_spill] sm:$0xff] }
 0x7ed   : > { %v6219_v30 = vpop.permute.xlu1 %6218  ;;  %6703 = vperm.xlu0 %8982, %v5441_v13   ;;  %v3564_v18 = vadd.f32 %v3308_v27, %v2024_v42  ;;  %v5440_v13 = vld [vmem:[%s15294_s2 + $0x7d0] sm:$0xff]  ;;  %v6913_v37 = vadd.f32 %v6384_v8, %v5121_v34  ;;  %v4835_v8 = vmul.f32 %v12818_v58, %v16558_v39  ;;  %v3551_v43 = vadd.f32 %v3295_v7, %v2011_v22 }
 0x7ee   : > { %v7326_v11 = vpack.c.bf16 %v7151_v0, %v7150_v1  ;;  %v6880_v40 = vadd.f32 %v6219_v30, %v5088_v50  ;;  %6538 = vperm.xlu1 %8983, %v5408_v4   ;;  %v16554_v50 = vld [vmem:[#allocation115_spill] sm:$0xff]  ;;  %v16557_v1 = vld [vmem:[#allocation384_spill] sm:$0xff]  ;;  %v2043_v26 = vmul.f32 %v12717_v38, %v16563_v3 }
 0x7ef   : > { %v1995_v4 = vmul.f32 %v12717_v38, %v16554_v50  ;;  %v16556_v0 = vld [vmem:[#allocation371_spill] sm:$0xff]  ;;  %v4848_v45 = vmul.f32 %v12818_v58, %v16557_v1  ;;  %v5091_v22 = vadd.f32 %v4835_v8, %v3551_v43  ;;  %v16569_v50 = vld [vmem:[#allocation658_spill] sm:$0xff] }
 0x7f0   : > { %v7136_v62 = vmax.f32 %v6880_v40, 0.0  ;;  %v6304_v56 = vpop.permute.xlu0 %6303  ;;  %8757 = vmatpush3.bf16.msra.mxu1 %v7326_v11  ;;  %v3294_v6 = vmul.f32 %v16099_v59, %v16556_v0  ;;  %v5395_v30 = vld [vmem:[%s15294_s2 + $0x668] sm:$0xff]  ;;  %v5424_v40 = vld [vmem:[%s15294_s2 + $0x750] sm:$0xff] }
 0x7f1   : > { %v6139_v17 = vpop.permute.xlu1 %6138  ;;  %6623 = vperm.xlu0 %8982, %v5425_v12   ;;  %v7169_v12 = vmax.f32 %v6913_v37, 0.0  ;;  %v6897_v41 = vadd.f32 %v6304_v56, %v5105_v10  ;;  %v5104_v21 = vadd.f32 %v4848_v45, %v3564_v18  ;;  %v3535_v42 = vadd.f32 %v3279_v24, %v1995_v4  ;;  %v5443_v56 = vld [vmem:[%s15294_s2 + $0x7e8] sm:$0xff]  ;;  %v5394_v10 = vld [vmem:[%s15294_s2 + $0x660] sm:$0xff] }
 0x7f2   : > { %v7319_v54 = vpack.c.bf16 %v7137_v61, %v7136_v62  ;;  %v6864_v14 = vadd.f32 %v6139_v17, %v5072_v44  ;;  %6458 = vperm.xlu1 %8983, %v5392_v25   ;;  %v3550_v11 = vadd.f32 %v3294_v6, %v2010_v36  ;;  %v16560_v44 = vld [vmem:[#allocation355_spill] sm:$0xff]  ;;  %v4834_v61 = vmul.f32 %v12818_v58, %v16561_v19  ;;  %v16562_v62 = vld [vmem:[#allocation610_spill] sm:$0xff]  ;;  %v16564_v17 = vld [vmem:[#allocation164_spill] sm:$0xff] }
 0x7f3   : > { %v3278_v25 = vmul.f32 %v16099_v59, %v16560_v44  ;;  %v4819_v2 = vmul.f32 %v12818_v58, %v16562_v62  ;;  %v3327_v29 = vmul.f32 %v16099_v59, %v16564_v17  ;;  %v7153_v35 = vmax.f32 %v6897_v41, 0.0  ;;  %v16566_v36 = vld [vmem:[#allocation147_spill] sm:$0xff]  ;;  %v16570_v6 = vld [vmem:[#allocation148_spill] sm:$0xff] }
 0x7f4   : > { %v7120_v16 = vmax.f32 %v6864_v14, 0.0  ;;  %v6234_v48 = vpop.permute.xlu0 %6233  ;;  %8736 = vmatprep.subr.bf16.mxu0 %v7319_v54  ;;  %v5090_v34 = vadd.f32 %v4834_v61, %v3550_v11  ;;  %v5410_v54 = vld [vmem:[%s15294_s2 + $0x6e0] sm:$0xff]  ;;  %v16565_v14 = vld [vmem:[#allocation655_spill] sm:$0xff]  ;;  %v2027_v18 = vmul.f32 %v12717_v38, %v16566_v36  ;;  %v4867_v4 = vmul.f32 %v12818_v58, %v16569_v50  ;;  %v5413_v62 = vld [vmem:[%s15294_s2 + $0x6f8] sm:$0xff] }
 0x7f5   : > { %v6379_v47 = vpop.permute.xlu1 %6378  ;;  %6553 = vperm.xlu0 %8982, %v5411_v57   ;;  %v3534_v15 = vadd.f32 %v3278_v25, %v1994_v52  ;;  %v2042_v57 = vmul.f32 %v12717_v38, %v16565_v14  ;;  %v6883_v7 = vadd.f32 %v6234_v48, %v5091_v22  ;;  %v16568_v37 = vld [vmem:[#allocation403_spill] sm:$0xff]  ;;  %v5075_v5 = vadd.f32 %v4819_v2, %v3535_v42  ;;  %v16572_v52 = vld [vmem:[#allocation133_spill] sm:$0xff]  ;;  %v16576_v25 = vld [vmem:[#allocation642_spill] sm:$0xff] }
 0x7f6   : > { %v7311_v9 = vpack.c.bf16 %v7121_v28, %v7120_v16  ;;  %v6912_v55 = vadd.f32 %v6379_v47, %v5120_v46  ;;  %6698 = vperm.xlu1 %8983, %v5440_v13   ;;  %v16567_v13 = vld [vmem:[#allocation354_spill] sm:$0xff]  ;;  %v3326_v16 = vmul.f32 %v16099_v59, %v16568_v37  ;;  %v3311_v1 = vmul.f32 %v16099_v59, %v16570_v6  ;;  %v16571_v47 = vld [vmem:[#allocation639_spill] sm:$0xff]  ;;  %v16577_v2 = vld [vmem:[#allocation117_spill] sm:$0xff] }
 0x7f7   : > { %v4818_v28 = vmul.f32 %v12818_v58, %v16567_v13  ;;  %v5427_v0 = vld [vmem:[%s15294_s2 + $0x768] sm:$0xff]  ;;  %v3583_v45 = vadd.f32 %v3327_v29, %v2043_v26  ;;  %v2026_v39 = vmul.f32 %v12717_v38, %v16571_v47  ;;  %v2013_v11 = vmul.f32 %v12717_v38, %v16572_v52  ;;  %v5442_v26 = vld [vmem:[%s15294_s2 + $0x7e0] sm:$0xff]  ;;  %v5397_v50 = vld [vmem:[%s15294_s2 + $0x678] sm:$0xff] }
 0x7f8   : > { %v7168_v32 = vmax.f32 %v6912_v55, 0.0  ;;  %v6154_v63 = vpop.permute.xlu0 %6153  ;;  %8737 = vmatpush3.bf16.msra.mxu0 %v7311_v9  ;;  %v3582_v9 = vadd.f32 %v3326_v16, %v2042_v57  ;;  %v7139_v55 = vmax.f32 %v6883_v7, 0.0  ;;  %v16574_v41 = vld [vmem:[#allocation387_spill] sm:$0xff]  ;;  %v1997_v22 = vmul.f32 %v12717_v38, %v16577_v2  ;;  %v16579_v14 = vld [vmem:[#allocation118_spill] sm:$0xff]  ;;  %v16580_v7 = vld [vmem:[#allocation373_spill] sm:$0xff] }
 0x7f9   : > { %v6299_v20 = vpop.permute.xlu1 %6298  ;;  %6473 = vperm.xlu0 %8982, %v5395_v30   ;;  %v5074_v8 = vadd.f32 %v4818_v28, %v3534_v15  ;;  %v6867_v30 = vadd.f32 %v6154_v63, %v5075_v5  ;;  %v4851_v63 = vmul.f32 %v12818_v58, %v16576_v25  ;;  %v5123_v19 = vadd.f32 %v4867_v4, %v3583_v45  ;;  %v16581_v36 = vld [vmem:[#allocation386_spill] sm:$0xff]  ;;  %v16582_v28 = vld [vmem:[#allocation628_spill] sm:$0xff]  ;;  %v16583_v4 = vld [vmem:[#allocation165_spill] sm:$0xff] }
 0x7fa   : > { %v7335_v51 = vpack.c.bf16 %v7169_v12, %v7168_v32  ;;  %v6896_v27 = vadd.f32 %v6299_v20, %v5104_v21  ;;  %6618 = vperm.xlu1 %8983, %v5424_v40   ;;  %v16573_v40 = vld [vmem:[#allocation134_spill] sm:$0xff]  ;;  %v3310_v32 = vmul.f32 %v16099_v59, %v16574_v41  ;;  %v3281_v57 = vmul.f32 %v16099_v59, %v16579_v14  ;;  %v16587_v52 = vld [vmem:[#allocation357_spill] sm:$0xff]  ;;  %v5412_v2 = vld [vmem:[%s15294_s2 + $0x6f0] sm:$0xff] }
 0x7fb   : > { %v3297_v12 = vmul.f32 %v16099_v59, %v16573_v40  ;;  %v16575_v21 = vld [vmem:[#allocation402_spill] sm:$0xff]  ;;  %v7123_v17 = vmax.f32 %v6867_v30, 0.0  ;;  %v4837_v37 = vmul.f32 %v12818_v58, %v16582_v28  ;;  %v2045_v5 = vmul.f32 %v12717_v38, %v16583_v4  ;;  %v16586_v30 = vld [vmem:[#allocation149_spill] sm:$0xff]  ;;  %v16588_v40 = vld [vmem:[#allocation372_spill] sm:$0xff] }
 0x7fc   : > { %v7152_v53 = vmax.f32 %v6896_v27, 0.0  ;;  %v6394_v60 = vpop.permute.xlu0 %6393  ;;  %8758 = vmatprep.subr.bf16.mxu1 %v7335_v51  ;;  %v4866_v42 = vmul.f32 %v12818_v58, %v16575_v21  ;;  %v3567_v51 = vadd.f32 %v3311_v1, %v2027_v18  ;;  %v16578_v27 = vld [vmem:[#allocation625_spill] sm:$0xff]  ;;  %v3566_v3 = vadd.f32 %v3310_v32, %v2026_v39  ;;  %v16589_v32 = vld [vmem:[#allocation612_spill] sm:$0xff] }
 0x7fd   : > { %v6229_v46 = vpop.permute.xlu1 %6228  ;;  %6713 = vperm.xlu0 %8982, %v5443_v56   ;;  %v2012_v56 = vmul.f32 %v12717_v38, %v16578_v27  ;;  %v6915_v29 = vadd.f32 %v6394_v60, %v5123_v19  ;;  %v4850_v18 = vmul.f32 %v12818_v58, %v16581_v36  ;;  %v5426_v45 = vld [vmem:[%s15294_s2 + $0x760] sm:$0xff]  ;;  %v4821_v21 = vmul.f32 %v12818_v58, %v16589_v32  ;;  %v5445_v25 = vld [vmem:[%s15294_s2 + $0x7f8] sm:$0xff] }
 0x7fe   : > { %v7327_v24 = vpack.c.bf16 %v7153_v35, %v7152_v53  ;;  %v6882_v48 = vadd.f32 %v6229_v46, %v5090_v34  ;;  %6548 = vperm.xlu1 %8983, %v5410_v54   ;;  %v5122_v54 = vadd.f32 %v4866_v42, %v3582_v9  ;;  %v3553_v35 = vadd.f32 %v3297_v12, %v2013_v11  ;;  %v16594_v14 = vld [vmem:[#allocation356_spill] sm:$0xff]  ;;  %v16599_v4 = vld [vmem:[#allocation641_spill] sm:$0xff] }
 0x7ff   : > { %v3296_v53 = vmul.f32 %v16099_v59, %v16580_v7  ;;  %v5107_v60 = vadd.f32 %v4851_v63, %v3567_v51  ;;  %v7171_v47 = vmax.f32 %v6915_v29, 0.0  ;;  %v5106_v9 = vadd.f32 %v4850_v18, %v3566_v3  ;;  %v16590_v63 = vld [vmem:[#allocation150_spill] sm:$0xff]  ;;  %v16596_v36 = vld [vmem:[#allocation660_spill] sm:$0xff] }
 0x800   : > { %v7138_v43 = vmax.f32 %v6882_v48, 0.0  ;;  %v6314_v31 = vpop.permute.xlu0 %6313  ;;  %8759 = vmatpush3.bf16.msra.mxu1 %v7327_v24  ;;  %v16584_v24 = vld [vmem:[#allocation166_spill] sm:$0xff]  ;;  %v3280_v11 = vmul.f32 %v16099_v59, %v16587_v52  ;;  %v4836_v12 = vmul.f32 %v12818_v58, %v16588_v40  ;;  %v3313_v19 = vmul.f32 %v16099_v59, %v16590_v63 }
 0x801   : > { %v6149_v44 = vpop.permute.xlu1 %6148  ;;  %6633 = vperm.xlu0 %8982, %v5427_v0   ;;  %v3329_v48 = vmul.f32 %v16099_v59, %v16584_v24  ;;  %v16585_v0 = vld [vmem:[#allocation609_spill] sm:$0xff]  ;;  %v3552_v1 = vadd.f32 %v3296_v53, %v2012_v56  ;;  %v6899_v39 = vadd.f32 %v6314_v31, %v5107_v60  ;;  %v5093_v31 = vadd.f32 %v4837_v37, %v3553_v35  ;;  %v16597_v60 = vld [vmem:[#allocation183_spill] sm:$0xff] }
 0x802   : > { %v7320_v61 = vpack.c.bf16 %v7139_v55, %v7138_v43  ;;  %v6866_v20 = vadd.f32 %v6149_v44, %v5074_v8  ;;  %6468 = vperm.xlu1 %8983, %v5394_v10   ;;  %v1996_v6 = vmul.f32 %v12717_v38, %v16585_v0  ;;  %v3537_v55 = vadd.f32 %v3281_v57, %v1997_v22  ;;  %v16591_v22 = vld [vmem:[#allocation657_spill] sm:$0xff] }
 0x803   : > { %v2029_v43 = vmul.f32 %v12717_v38, %v16586_v30  ;;  %v2044_v51 = vmul.f32 %v12717_v38, %v16591_v22  ;;  %v7155_v27 = vmax.f32 %v6899_v39, 0.0  ;;  %v4820_v57 = vmul.f32 %v12818_v58, %v16594_v14  ;;  %v16595_v35 = vld [vmem:[#allocation405_spill] sm:$0xff]  ;;  %v16605_v22 = vld [vmem:[#allocation388_spill] sm:$0xff] }
 0x804   : > { %v7122_v15 = vmax.f32 %v6866_v20, 0.0  ;;  %v6244_v34 = vpop.permute.xlu0 %6243  ;;  %8738 = vmatprep.subr.bf16.mxu0 %v7320_v61  ;;  %v3585_v61 = vadd.f32 %v3329_v48, %v2045_v5  ;;  %v3536_v20 = vadd.f32 %v3280_v11, %v1996_v6  ;;  %v3328_v7 = vmul.f32 %v16099_v59, %v16595_v35  ;;  %v5429_v37 = vld [vmem:[%s15294_s2 + $0x778] sm:$0xff]  ;;  %v5396_v48 = vld [vmem:[%s15294_s2 + $0x670] sm:$0xff] }
 0x805   : > { %v6389_v13 = vpop.permute.xlu1 %6388  ;;  %6563 = vperm.xlu0 %8982, %v5413_v62   ;;  %v5092_v62 = vadd.f32 %v4836_v12, %v3552_v1  ;;  %v6885_v56 = vadd.f32 %v6244_v34, %v5093_v31  ;;  %v4869_v34 = vmul.f32 %v12818_v58, %v16596_v36  ;;  %v5077_v18 = vadd.f32 %v4821_v21, %v3537_v55  ;;  %v16601_v55 = vld [vmem:[#allocation644_spill] sm:$0xff] }
 0x806   : > { %v7312_v16 = vpack.c.bf16 %v7123_v17, %v7122_v15  ;;  %v6914_v46 = vadd.f32 %v6389_v13, %v5122_v54  ;;  %6708 = vperm.xlu1 %8983, %v5442_v26   ;;  %v16592_v17 = vld [vmem:[#allocation167_spill] sm:$0xff]  ;;  %v16593_v15 = vld [vmem:[#allocation168_spill] sm:$0xff]  ;;  %v2028_v5 = vmul.f32 %v12717_v38, %v16599_v4  ;;  %v5076_v24 = vadd.f32 %v4820_v57, %v3536_v20 }
 0x807   : > { %v2047_v29 = vmul.f32 %v12717_v38, %v16592_v17  ;;  %v3331_v54 = vmul.f32 %v16099_v59, %v16593_v15  ;;  %v3584_v0 = vadd.f32 %v3328_v7, %v2044_v51  ;;  %v7141_v6 = vmax.f32 %v6885_v56, 0.0  ;;  %v16602_v11 = vld [vmem:[#allocation404_spill] sm:$0xff]  ;;  %v16610_v4 = vld [vmem:[#allocation215_spill] sm:$0xff] }
 0x808   : > { %v7170_v8 = vmax.f32 %v6914_v46, 0.0  ;;  %v6164_v10 = vpop.permute.xlu0 %6163  ;;  %8739 = vmatpush3.bf16.msra.mxu0 %v7312_v16  ;;  %v2063_v16 = vmul.f32 %v12717_v38, %v16597_v60  ;;  %v16598_v46 = vld [vmem:[#allocation184_spill] sm:$0xff]  ;;  %v3569_v39 = vadd.f32 %v3313_v19, %v2029_v43  ;;  %v4853_v30 = vmul.f32 %v12818_v58, %v16601_v55  ;;  %v16603_v43 = vld [vmem:[#allocation675_spill] sm:$0xff] }
 0x809   : > { %v6309_v41 = vpop.permute.xlu1 %6308  ;;  %6483 = vperm.xlu0 %8982, %v5397_v50   ;;  %v3347_v50 = vmul.f32 %v16099_v59, %v16598_v46  ;;  %v6869_v1 = vadd.f32 %v6164_v10, %v5077_v18  ;;  %v4868_v40 = vmul.f32 %v12818_v58, %v16602_v11  ;;  %v5125_v12 = vadd.f32 %v4869_v34, %v3585_v61  ;;  %v16608_v35 = vld [vmem:[#allocation200_spill] sm:$0xff]  ;;  %v8654_v46 = vpop.f32.mrb[0].mxu1 }
 0x80a   : > { %v7336_v42 = vpack.c.bf16 %v7171_v47, %v7170_v8  ;;  %v6898_v44 = vadd.f32 %v6309_v41, %v5106_v9  ;;  %6628 = vperm.xlu1 %8983, %v5426_v45   ;;  %v16600_v8 = vld [vmem:[#allocation389_spill] sm:$0xff]  ;;  %v14651_v10 = vadd.f32 %v3331_v54, %v2047_v29  ;;  %v4852_v51 = vmul.f32 %v12818_v58, %v16605_v22  ;;  %v16607_v29 = vld [vmem:[#allocation678_spill] sm:$0xff] }
 0x80b   : > { %v3312_v9 = vmul.f32 %v16099_v59, %v16600_v8  ;;  %v3603_v21 = vadd.f32 %v3347_v50, %v2063_v16  ;;  %v5124_v61 = vadd.f32 %v4868_v40, %v3584_v0  ;;  %v4887_v15 = vmul.f32 %v12818_v58, %v16607_v29  ;;  %v16612_v0 = vld [vmem:[#allocation422_spill] sm:$0xff]  ;;  %v16614_v8 = vld [vmem:[#allocation216_spill] sm:$0xff] }
 0x80c   : > { %v7154_v3 = vmax.f32 %v6898_v44, 0.0  ;;  %v6404_v26 = vpop.permute.xlu0 %6403  ;;  %8760 = vmatprep.subr.bf16.mxu1 %v7336_v42  ;;  %v2062_v42 = vmul.f32 %v12717_v38, %v16603_v43  ;;  %v5444_v44 = vld [vmem:[%s15294_s2 + $0x7f0] sm:$0xff]  ;;  %v14676_v7 = vmul.f32 %v16099_v59, %v16608_v35  ;;  %v7370_v43 = vld [vmem:[%s15296_s4] sm:$0xf] }
 0x80d   : > { %v6239_v53 = vpop.permute.xlu1 %6238  ;;  %6723 = vperm.xlu0 %8982, %v5445_v25   ;;  %v3568_v31 = vadd.f32 %v3312_v9, %v2028_v5  ;;  %v7125_v25 = vmax.f32 %v6869_v1, 0.0  ;;  %v6917_v63 = vadd.f32 %v6404_v26, %v5125_v12  ;;  %v7241_v26 = vld [vmem:[%s15295_s3 + $0x18] sm:$0xff]  ;;  %v2095_v5 = vmul.f32 %v12717_v38, %v16610_v4  ;;  %v16613_v1 = vld [vmem:[#allocation662_spill] sm:$0xff]  ;;  %v16615_v12 = vld [vmem:[#allocation711_spill] sm:$0xff] }
 0x80e   : > { %v7328_v13 = vpack.c.bf16 %v7155_v27, %v7154_v3  ;;  %v6884_v28 = vadd.f32 %v6239_v53, %v5092_v62  ;;  %6558 = vperm.xlu1 %8983, %v5412_v2   ;;  %v16604_v62 = vld [vmem:[#allocation199_spill] sm:$0xff]  ;;  %v5109_v3 = vadd.f32 %v4853_v30, %v3569_v39  ;;  %v14672_v57 = vrot.slane %v7241_v26, %v16132_v49  ;;  %v8655_v39 = vpop.f32.mrb[1].mxu1 }
 0x80f   : > { %v14660_v2 = vmul.f32 %v12717_v38, %v16604_v62  ;;  %v16606_v27 = vld [vmem:[#allocation423_spill] sm:$0xff]  ;;  %v5108_v16 = vadd.f32 %v4852_v51, %v3568_v31  ;;  %v3379_v9 = vmul.f32 %v16099_v59, %v16614_v8  ;;  %v5143_v55 = vadd.f32 %v4887_v15, %v3603_v21  ;;  %v8657_v11 = vpop.f32.mrb[2].mxu1  ;;  %v16616_v62 = vld [vmem:[#allocation406_spill] sm:$0xff] }
 0x810   : > { %v7140_v45 = vmax.f32 %v6884_v28, 0.0  ;;  %v6324_v47 = vpop.permute.xlu0 %6323  ;;  %8761 = vmatpush3.bf16.msra.mxu1 %v7328_v13  ;;  %v3346_v56 = vmul.f32 %v16099_v59, %v16606_v27  ;;  %v16609_v53 = vld [vmem:[#allocation659_spill] sm:$0xff]  ;;  %v7173_v28 = vmax.f32 %v6917_v63, 0.0  ;;  %v7446_v50 = vcombine.high %v14672_v57, %v14672_v57  ;;  %v16618_v27 = vld [vmem:[#allocation714_spill] sm:$0xff] }
 0x811   : > { %v6159_v52 = vpop.permute.xlu1 %6158  ;;  %6643 = vperm.xlu0 %8982, %v5429_v37   ;;  %v2046_v36 = vmul.f32 %v12717_v38, %v16609_v53  ;;  %v6901_v18 = vadd.f32 %v6324_v47, %v5109_v3  ;;  %v5428_v13 = vld [vmem:[%s15294_s2 + $0x770] sm:$0xff]  ;;  %v14701_v63 = vadd.f32 %v8655_v39, %v8654_v46  ;;  %v4870_v22 = vmul.f32 %v12818_v58, %v16616_v62  ;;  %v16624_v39 = vld [vmem:[#allocation186_spill] sm:$0xff] }
 0x812   : > { %v7321_v41 = vpack.c.bf16 %v7141_v6, %v7140_v45  ;;  %v6868_v32 = vadd.f32 %v6159_v52, %v5076_v24  ;;  %6478 = vperm.xlu1 %8983, %v5396_v48   ;;  %v3602_v34 = vadd.f32 %v3346_v56, %v2062_v42  ;;  %v16611_v24 = vld [vmem:[#allocation407_spill] sm:$0xff]  ;;  %v4886_v6 = vmul.f32 %v12818_v58, %v16612_v0  ;;  %v8658_v42 = vpop.f32.mrb[3].mxu1 }
 0x813   : > { %v3330_v48 = vmul.f32 %v16099_v59, %v16611_v24  ;;  %v4871_v45 = vmul.f32 %v12818_v58, %v16613_v1  ;;  %v16617_v51 = vld [vmem:[#allocation455_spill] sm:$0xff]  ;;  %v4919_v56 = vmul.f32 %v12818_v58, %v16618_v27  ;;  %v3635_v35 = vadd.f32 %v3379_v9, %v2095_v5  ;;  %v16622_v24 = vld [vmem:[#allocation454_spill] sm:$0xff]  ;;  %v16631_v27 = vld [vmem:[#allocation661_spill] sm:$0xff] }
 0x814   : > { %v7124_v19 = vmax.f32 %v6868_v32, 0.0  ;;  %v6494_v20 = vpop.permute.xlu0 %6493  ;;  %8740 = vmatprep.subr.bf16.mxu0 %v7321_v41  ;;  %v2094_v41 = vmul.f32 %v12717_v38, %v16615_v12  ;;  %v7157_v32 = vmax.f32 %v6901_v18, 0.0  ;;  %v5142_v31 = vadd.f32 %v4886_v6, %v3602_v34  ;;  %v16619_v53 = vld [vmem:[#allocation691_spill] sm:$0xff]  ;;  %v16623_v6 = vld [vmem:[#allocation694_spill] sm:$0xff] }
 0x815   : > { %v6399_v17 = vpop.permute.xlu1 %6398  ;;  %v3586_v40 = vadd.f32 %v3330_v48, %v2046_v36  ;;  %v5127_v3 = vadd.f32 %v4871_v45, %v14651_v10  ;;  %v2078_v36 = vmul.f32 %v12717_v38, %v16619_v53  ;;  %v4918_v48 = vmul.f32 %v12818_v58, %v16622_v24  ;;  %v16627_v42 = vld [vmem:[#allocation170_spill] sm:$0xff]  ;;  %v16632_v53 = vld [vmem:[#allocation409_spill] sm:$0xff] }
 0x816   : > { %v7313_v54 = vpack.c.bf16 %v7125_v25, %v7124_v19  ;;  %v6916_v14 = vadd.f32 %v6399_v17, %v5124_v61  ;;  %6718 = vperm.xlu1 %8983, %v5444_v44   ;;  %v6935_v44 = vadd.f32 %v6494_v20, %v5143_v55  ;;  %v8676_v19 = vpop.f32.mrb[4].mxu1  ;;  %v7431_v61 = vcombine.high %v7241_v26, %v7241_v26  ;;  %v16625_v55 = vld [vmem:[#allocation677_spill] sm:$0xff] }
 0x817   : > { %v8677_v17 = vpop.f32.mrb[5].mxu1  ;;  %v5126_v18 = vadd.f32 %v4870_v22, %v3586_v40  ;;  %v4903_v1 = vmul.f32 %v12818_v58, %v16623_v6  ;;  %v3349_v8 = vmul.f32 %v16099_v59, %v16624_v39  ;;  %v3619_v9 = vadd.f32 %v14676_v7, %v14660_v2  ;;  %v16628_v2 = vld [vmem:[#allocation425_spill] sm:$0xff] }
 0x818   : > { %v7172_v37 = vmax.f32 %v6916_v14, 0.0  ;;  %v6414_v60 = vpop.permute.xlu0 %6413  ;;  %8741 = vmatpush3.bf16.msra.mxu0 %v7313_v54  ;;  %v14710_v54 = vadd.f32 %v8677_v17, %v8676_v19  ;;  %v8679_v14 = vpop.f32.mrb[6].mxu1  ;;  %v14713_v26 = vrot.slane %v7431_v61, %v16132_v49  ;;  %v16621_v49 = vld [vmem:[#allocation439_spill] sm:$0xff]  ;;  %v3348_v7 = vmul.f32 %v16099_v59, %v16628_v2  ;;  %v16630_v61 = vld [vmem:[#allocation680_spill] sm:$0xff]  ;;  %v16638_v39 = vld [vmem:[#allocation201_spill] sm:$0xff] }
 0x819   : > { %v6319_v47 = vpop.permute.xlu1 %6318  ;;  %v6919_v10 = vadd.f32 %v6414_v60, %v5127_v3  ;;  %v3362_v5 = vmul.f32 %v16099_v59, %v16621_v49  ;;  %v5175_v60 = vadd.f32 %v4919_v56, %v3635_v35  ;;  %v5159_v62 = vadd.f32 %v4903_v1, %v3619_v9  ;;  %v16636_v49 = vld [vmem:[#allocation218_spill] sm:$0xff]  ;;  %v16639_v9 = vld [vmem:[#allocation408_spill] sm:$0xff]  ;;  %v16643_v2 = vld [vmem:[#allocation693_spill] sm:$0xff] }
 0x81a   : > { %v7337_v30 = vpack.c.bf16 %v7173_v28, %v7172_v37  ;;  %v6900_v52 = vadd.f32 %v6319_v47, %v5108_v16  ;;  %6638 = vperm.xlu1 %8983, %v5428_v13   ;;  %v8680_v13 = vpop.f32.mrb[7].mxu1  ;;  %v7191_v28 = vmax.f32 %v6935_v44, 0.0  ;;  %v7447_v46 = vcombine.high %v14713_v26, %v14713_v26 }
 0x81b   : > { %7657 = vmatmul.mubr.bf16.vlgmr.msra.gmra.mrb[4].mxu0 %v14081_v23  ;;  %v3378_v23 = vmul.f32 %v16099_v59, %v16617_v51  ;;  %v7175_v11 = vmax.f32 %v6919_v10, 0.0  ;;  %v3333_v44 = vmul.f32 %v16099_v59, %v16627_v42  ;;  %v2048_v56 = vmul.f32 %v12717_v38, %v16631_v27 }
 0x81c   : > { %v7156_v25 = vmax.f32 %v6900_v52, 0.0  ;;  %v6654_v21 = vpop.permute.xlu0 %6653  ;;  %8762 = vmatprep.subr.bf16.mxu1 %v7337_v30  ;;  %7736 = vmatprep.mubr.bf16.mxu0 %v7446_v50  ;;  %v16620_v50 = vld [vmem:[#allocation185_spill] sm:$0xff]  ;;  %v2064_v30 = vmul.f32 %v12717_v38, %v16625_v55  ;;  %v3618_v52 = vadd.f32 %v3362_v5, %v2078_v36  ;;  %v3332_v36 = vmul.f32 %v16099_v59, %v16632_v53 }
 0x81d   : > { %v6489_v20 = vpop.permute.xlu1 %6488  ;;  %v3634_v34 = vadd.f32 %v3378_v23, %v2094_v41  ;;  %v2065_v4 = vmul.f32 %v12717_v38, %v16620_v50  ;;  %v6967_v40 = vadd.f32 %v6654_v21, %v5175_v60  ;;  %v4889_v21 = vmul.f32 %v12818_v58, %v16630_v61 }
 0x81e   : > { %v7329_v29 = vpack.c.bf16 %v7157_v32, %v7156_v25  ;;  %v6934_v15 = vadd.f32 %v6489_v20, %v5142_v31  ;;  %7373 = vperm.xlu1 %8983, %v7370_v43   ;;  %v16626_v31 = vld [vmem:[#allocation169_spill] sm:$0xff]  ;;  %v16629_v25 = vld [vmem:[#allocation438_spill] sm:$0xff]  ;;  %v3604_v3 = vadd.f32 %v3348_v7, %v2064_v30  ;;  %v3381_v5 = vmul.f32 %v16099_v59, %v16636_v49 }
 0x81f   : > { %v5174_v32 = vadd.f32 %v4918_v48, %v3634_v34  ;;  %v2049_v43 = vmul.f32 %v12717_v38, %v16626_v31  ;;  %v4902_v19 = vmul.f32 %v12818_v58, %v16629_v25  ;;  %v3605_v23 = vadd.f32 %v3349_v8, %v2065_v4  ;;  %v16633_v34 = vld [vmem:[#allocation424_spill] sm:$0xff]  ;;  %v16635_v4 = vld [vmem:[#allocation217_spill] sm:$0xff] }
 0x820   : > { %v7190_v37 = vmax.f32 %v6934_v15, 0.0  ;;  %v6574_v16 = vpop.permute.xlu0 %6573  ;;  %8763 = vmatpush3.bf16.msra.mxu1 %v7329_v29  ;;  %v7223_v20 = vmax.f32 %v6967_v40, 0.0  ;;  %v3588_v24 = vadd.f32 %v3332_v36, %v2048_v56  ;;  %v2081_v8 = vmul.f32 %v12717_v38, %v16638_v39  ;;  %v16640_v30 = vld [vmem:[#allocation457_spill] sm:$0xff]  ;;  %v16641_v40 = vld [vmem:[#allocation716_spill] sm:$0xff] }
 0x821   : > { %v6409_v0 = vpop.permute.xlu1 %6408  ;;  %v6951_v17 = vadd.f32 %v6574_v16, %v5159_v62  ;;  %v5158_v14 = vadd.f32 %v4902_v19, %v3618_v52  ;;  %v3589_v35 = vadd.f32 %v3333_v44, %v2049_v43  ;;  %v2097_v16 = vmul.f32 %v12717_v38, %v16635_v4  ;;  %v16646_v56 = vld [vmem:[#allocation456_spill] sm:$0xff] }
 0x822   : > { %v7346_v45 = vpack.c.bf16 %v7191_v28, %v7190_v37  ;;  %v6918_v47 = vadd.f32 %v6409_v0, %v5126_v18  ;;  %v4888_v18 = vmul.f32 %v12818_v58, %v16633_v34  ;;  %v16634_v28 = vld [vmem:[#allocation664_spill] sm:$0xff]  ;;  %v5145_v37 = vadd.f32 %v4889_v21, %v3605_v23  ;;  %v16637_v0 = vld [vmem:[#allocation713_spill] sm:$0xff] }
 0x823   : > { %7697 = vmatmul.mubr.bf16.vlgmr.msra.gmra.mrb[12].mxu1 %v14123_v33  ;;  %v4873_v10 = vmul.f32 %v12818_v58, %v16634_v28  ;;  %v2096_v6 = vmul.f32 %v12717_v38, %v16637_v0  ;;  %v7207_v1 = vmax.f32 %v6951_v17, 0.0  ;;  %v4872_v55 = vmul.f32 %v12818_v58, %v16639_v9  ;;  %v16645_v23 = vld [vmem:[#allocation441_spill] sm:$0xff] }
 0x824   : > { %v7174_v12 = vmax.f32 %v6918_v47, 0.0  ;;  %v6504_v41 = vpop.permute.xlu0 %6503  ;;  %8770 = vmatprep.subr.bf16.mxu0 %v7346_v45  ;;  %7776 = vmatprep.mubr.bf16.mxu1 %v7447_v46  ;;  %v5144_v48 = vadd.f32 %v4888_v18, %v3604_v3  ;;  %v3380_v52 = vmul.f32 %v16099_v59, %v16640_v30  ;;  %v3637_v44 = vadd.f32 %v3381_v5, %v2097_v16  ;;  %v16647_v17 = vld [vmem:[#allocation697_spill] sm:$0xff]  ;;  %v16649_v18 = vld [vmem:[#allocation679_spill] sm:$0xff]  ;;  %v16651_v5 = vld [vmem:[#allocation172_spill] sm:$0xff] }
 0x825   : > { %v6649_v33 = vpop.permute.xlu1 %6648  ;;  %v6937_v60 = vadd.f32 %v6504_v41, %v5145_v37  ;;  %v16642_v41 = vld [vmem:[#allocation202_spill] sm:$0xff]  ;;  %v2080_v7 = vmul.f32 %v12717_v38, %v16643_v2  ;;  %v5128_v25 = vadd.f32 %v4872_v55, %v3588_v24  ;;  %v3364_v27 = vmul.f32 %v16099_v59, %v16645_v23  ;;  %v16650_v16 = vld [vmem:[#allocation171_spill] sm:$0xff]  ;;  %v16660_v23 = vld [vmem:[#allocation220_spill] sm:$0xff] }
 0x826   : > { %v7338_v22 = vpack.c.bf16 %v7175_v11, %v7174_v12  ;;  %v6966_v51 = vadd.f32 %v6649_v33, %v5174_v32  ;;  %v4921_v12 = vmul.f32 %v12818_v58, %v16641_v40  ;;  %v5129_v32 = vadd.f32 %v4873_v10, %v3589_v35  ;;  %v16655_v30 = vld [vmem:[#allocation663_spill] sm:$0xff]  ;;  %v16657_v2 = vld [vmem:[#allocation426_spill] sm:$0xff] }
 0x827   : > { %v3365_v42 = vmul.f32 %v16099_v59, %v16642_v41  ;;  %v3636_v19 = vadd.f32 %v3380_v52, %v2096_v6  ;;  %v7193_v33 = vmax.f32 %v6937_v60, 0.0  ;;  %v4920_v3 = vmul.f32 %v12818_v58, %v16646_v56  ;;  %v16653_v6 = vld [vmem:[#allocation440_spill] sm:$0xff] }
 0x828   : > { %v7222_v29 = vmax.f32 %v6966_v51, 0.0  ;;  %v6424_v15 = vpop.permute.xlu0 %6423  ;;  %8771 = vmatpush3.bf16.msra.mxu0 %v7338_v22  ;;  %v16644_v22 = vld [vmem:[#allocation187_spill] sm:$0xff]  ;;  %v3620_v28 = vadd.f32 %v3364_v27, %v2080_v7  ;;  %v2051_v49 = vmul.f32 %v12717_v38, %v16650_v16  ;;  %v3335_v24 = vmul.f32 %v16099_v59, %v16651_v5 }
 0x829   : > { %v6569_v13 = vpop.permute.xlu1 %6568  ;;  %v6921_v61 = vadd.f32 %v6424_v15, %v5129_v32  ;;  %v2067_v51 = vmul.f32 %v12717_v38, %v16644_v22  ;;  %v16648_v15 = vld [vmem:[#allocation188_spill] sm:$0xff]  ;;  %v3621_v34 = vadd.f32 %v3365_v42, %v2081_v8  ;;  %v5176_v4 = vadd.f32 %v4920_v3, %v3636_v19  ;;  %v16656_v42 = vld [vmem:[#allocation411_spill] sm:$0xff]  ;;  %v16658_v19 = vld [vmem:[#allocation666_spill] sm:$0xff] }
 0x82a   : > { %v7362_v46 = vpack.c.bf16 %v7223_v20, %v7222_v29  ;;  %v6950_v50 = vadd.f32 %v6569_v13, %v5158_v14  ;;  %v4905_v29 = vmul.f32 %v12818_v58, %v16647_v17  ;;  %v5177_v14 = vadd.f32 %v4921_v12, %v3637_v44 }
 0x82b   : > { %v3351_v36 = vmul.f32 %v16099_v59, %v16648_v15  ;;  %v2066_v13 = vmul.f32 %v12717_v38, %v16649_v18  ;;  %v7177_v10 = vmax.f32 %v6921_v61, 0.0  ;;  %v2050_v52 = vmul.f32 %v12717_v38, %v16655_v30  ;;  %v16662_v15 = vld [vmem:[#allocation203_spill] sm:$0xff] }
 0x82c   : > { %v7206_v45 = vmax.f32 %v6950_v50, 0.0  ;;  %v6664_v47 = vpop.permute.xlu0 %6663  ;;  %8792 = vmatprep.subr.bf16.mxu1 %v7362_v46  ;;  %v5161_v39 = vadd.f32 %v4905_v29, %v3621_v34  ;;  %v3591_v41 = vadd.f32 %v3335_v24, %v2051_v49  ;;  %v3334_v44 = vmul.f32 %v16099_v59, %v16656_v42  ;;  %v16663_v34 = vld [vmem:[#allocation410_spill] sm:$0xff] }
 0x82d   : > { %v6499_v11 = vpop.permute.xlu1 %6498  ;;  %v6969_v37 = vadd.f32 %v6664_v47, %v5177_v14  ;;  %v3607_v55 = vadd.f32 %v3351_v36, %v2067_v51  ;;  %v4890_v7 = vmul.f32 %v12818_v58, %v16657_v2  ;;  %v16659_v51 = vld [vmem:[#allocation219_spill] sm:$0xff]  ;;  %v3383_v27 = vmul.f32 %v16099_v59, %v16660_v23 }
 0x82e   : > { %v7354_v31 = vpack.c.bf16 %v7207_v1, %v7206_v45  ;;  %v6936_v43 = vadd.f32 %v6499_v11, %v5144_v48  ;;  %v16652_v48 = vld [vmem:[#allocation427_spill] sm:$0xff]  ;;  %v4904_v1 = vmul.f32 %v12818_v58, %v16653_v6  ;;  %v16654_v45 = vld [vmem:[#allocation682_spill] sm:$0xff]  ;;  %v3590_v56 = vadd.f32 %v3334_v44, %v2050_v52 }
 0x82f   : > { %v3350_v0 = vmul.f32 %v16099_v59, %v16652_v48  ;;  %v4891_v47 = vmul.f32 %v12818_v58, %v16654_v45  ;;  %v7225_v40 = vmax.f32 %v6969_v37, 0.0  ;;  %v2083_v36 = vmul.f32 %v12717_v38, %v16662_v15  ;;  %v16665_v37 = vld [vmem:[#allocation718_spill] sm:$0xff]  ;;  %v16667_v48 = vld [vmem:[#allocation695_spill] sm:$0xff] }
 0x830   : > { %v7192_v21 = vmax.f32 %v6936_v43, 0.0  ;;  %v6584_v62 = vpop.permute.xlu0 %6583  ;;  %8793 = vmatpush3.bf16.msra.mxu1 %v7354_v31  ;;  %v5160_v43 = vadd.f32 %v4904_v1, %v3620_v28  ;;  %v4874_v18 = vmul.f32 %v12818_v58, %v16663_v34  ;;  %v16670_v52 = vld [vmem:[#allocation458_spill] sm:$0xff] }
 0x831   : > { %v6419_v20 = vpop.permute.xlu1 %6418  ;;  %v3606_v11 = vadd.f32 %v3350_v0, %v2066_v13  ;;  %v6953_v12 = vadd.f32 %v6584_v62, %v5161_v39  ;;  %v5147_v61 = vadd.f32 %v4891_v47, %v3607_v55  ;;  %v2099_v62 = vmul.f32 %v12717_v38, %v16659_v51  ;;  %v16664_v13 = vld [vmem:[#allocation459_spill] sm:$0xff] }
 0x832   : > { %v7347_v35 = vpack.c.bf16 %v7193_v33, %v7192_v21  ;;  %v6920_v53 = vadd.f32 %v6419_v20, %v5128_v25  ;;  %v4875_v33 = vmul.f32 %v12818_v58, %v16658_v19  ;;  %v16661_v20 = vld [vmem:[#allocation715_spill] sm:$0xff]  ;;  %v3382_v28 = vmul.f32 %v16099_v59, %v16664_v13  ;;  %v16679_v13 = vld [vmem:[#allocation665_spill] sm:$0xff] }
 0x833   : > { %v5146_v3 = vadd.f32 %v4890_v7, %v3606_v11  ;;  %v2098_v17 = vmul.f32 %v12717_v38, %v16661_v20  ;;  %v7209_v29 = vmax.f32 %v6953_v12, 0.0  ;;  %v3639_v24 = vadd.f32 %v3383_v27, %v2099_v62  ;;  %v16669_v55 = vld [vmem:[#allocation443_spill] sm:$0xff]  ;;  %v16671_v12 = vld [vmem:[#allocation702_spill] sm:$0xff]  ;;  %v16673_v7 = vld [vmem:[#allocation681_spill] sm:$0xff] }
 0x834   : > { %v7176_v46 = vmax.f32 %v6920_v53, 0.0  ;;  %v6514_v50 = vpop.permute.xlu0 %6513  ;;  %8772 = vmatprep.subr.bf16.mxu0 %v7347_v35  ;;  %v2082_v0 = vmul.f32 %v12717_v38, %v16667_v48  ;;  %v5130_v6 = vadd.f32 %v4874_v18, %v3590_v56  ;;  %v3366_v30 = vmul.f32 %v16099_v59, %v16669_v55  ;;  %v16674_v62 = vld [vmem:[#allocation173_spill] sm:$0xff]  ;;  %v16675_v27 = vld [vmem:[#allocation174_spill] sm:$0xff]  ;;  %v16681_v48 = vld [vmem:[#allocation428_spill] sm:$0xff] }
 0x835   : > { %v6659_v60 = vpop.permute.xlu1 %6658  ;;  %v6939_v14 = vadd.f32 %v6514_v50, %v5147_v61  ;;  %v16666_v50 = vld [vmem:[#allocation204_spill] sm:$0xff]  ;;  %v3638_v1 = vadd.f32 %v3382_v28, %v2098_v17  ;;  %v4922_v11 = vmul.f32 %v12818_v58, %v16670_v52  ;;  %v2053_v23 = vmul.f32 %v12717_v38, %v16674_v62  ;;  %v16677_v17 = vld [vmem:[#allocation442_spill] sm:$0xff] }
 0x836   : > { %v7339_v8 = vpack.c.bf16 %v7177_v10, %v7176_v46  ;;  %v6968_v9 = vadd.f32 %v6659_v60, %v5176_v4  ;;  %v4923_v46 = vmul.f32 %v12818_v58, %v16665_v37  ;;  %v5131_v4 = vadd.f32 %v4875_v33, %v3591_v41  ;;  %v16684_v55 = vld [vmem:[#allocation222_spill] sm:$0xff] }
 0x837   : > { %v3367_v5 = vmul.f32 %v16099_v59, %v16666_v50  ;;  %v7195_v60 = vmax.f32 %v6939_v14, 0.0  ;;  %v3622_v19 = vadd.f32 %v3366_v30, %v2082_v0  ;;  %v5178_v51 = vadd.f32 %v4922_v11, %v3638_v1  ;;  %v16682_v1 = vld [vmem:[#allocation668_spill] sm:$0xff] }
 0x838   : > { %v7224_v32 = vmax.f32 %v6968_v9, 0.0  ;;  %v6434_v31 = vpop.permute.xlu0 %6433  ;;  %8773 = vmatpush3.bf16.msra.mxu0 %v7339_v8  ;;  %v16668_v8 = vld [vmem:[#allocation189_spill] sm:$0xff]  ;;  %v3337_v56 = vmul.f32 %v16099_v59, %v16675_v27  ;;  %v2052_v28 = vmul.f32 %v12717_v38, %v16679_v13  ;;  %v4892_v0 = vmul.f32 %v12818_v58, %v16681_v48 }
 0x839   : > { %v6579_v25 = vpop.permute.xlu1 %6578  ;;  %v6923_v45 = vadd.f32 %v6434_v31, %v5131_v4  ;;  %v2069_v9 = vmul.f32 %v12717_v38, %v16668_v8  ;;  %v16672_v31 = vld [vmem:[#allocation190_spill] sm:$0xff]  ;;  %v3623_v2 = vadd.f32 %v3367_v5, %v2083_v36  ;;  %v16680_v5 = vld [vmem:[#allocation413_spill] sm:$0xff]  ;;  %v3385_v30 = vmul.f32 %v16099_v59, %v16684_v55 }
 0x83a   : > { %v7363_v21 = vpack.c.bf16 %v7225_v40, %v7224_v32  ;;  %v6952_v22 = vadd.f32 %v6579_v25, %v5160_v43  ;;  %v4907_v32 = vmul.f32 %v12818_v58, %v16671_v12  ;;  %v5179_v43 = vadd.f32 %v4923_v46, %v3639_v24 }
 0x83b   : > { %v3353_v44 = vmul.f32 %v16099_v59, %v16672_v31  ;;  %v2068_v25 = vmul.f32 %v12717_v38, %v16673_v7  ;;  %v7179_v33 = vmax.f32 %v6923_v45, 0.0  ;;  %v3593_v50 = vadd.f32 %v3337_v56, %v2053_v23  ;;  %v16686_v31 = vld [vmem:[#allocation205_spill] sm:$0xff] }
 0x83c   : > { %v7208_v35 = vmax.f32 %v6952_v22, 0.0  ;;  %v6674_v53 = vpop.permute.xlu0 %6673  ;;  %8794 = vmatprep.subr.bf16.mxu1 %v7363_v21  ;;  %v5163_v15 = vadd.f32 %v4907_v32, %v3623_v2  ;;  %v3336_v24 = vmul.f32 %v16099_v59, %v16680_v5  ;;  %v16687_v2 = vld [vmem:[#allocation412_spill] sm:$0xff] }
 0x83d   : > { %v6509_v10 = vpop.permute.xlu1 %6508  ;;  %v6971_v61 = vadd.f32 %v6674_v53, %v5179_v43  ;;  %v3609_v18 = vadd.f32 %v3353_v44, %v2069_v9  ;;  %v16683_v9 = vld [vmem:[#allocation221_spill] sm:$0xff]  ;;  %v2085_v44 = vmul.f32 %v12717_v38, %v16686_v31  ;;  %v4876_v7 = vmul.f32 %v12818_v58, %v16687_v2 }
 0x83e   : > { %v7355_v16 = vpack.c.bf16 %v7209_v29, %v7208_v35  ;;  %v6938_v49 = vadd.f32 %v6509_v10, %v5146_v3  ;;  %v16676_v3 = vld [vmem:[#allocation429_spill] sm:$0xff]  ;;  %v4906_v29 = vmul.f32 %v12818_v58, %v16677_v17  ;;  %v16678_v35 = vld [vmem:[#allocation684_spill] sm:$0xff]  ;;  %v3592_v52 = vadd.f32 %v3336_v24, %v2052_v28 }
 0x83f   : > { %v3352_v20 = vmul.f32 %v16099_v59, %v16676_v3  ;;  %v4893_v53 = vmul.f32 %v12818_v58, %v16678_v35  ;;  %v7227_v37 = vmax.f32 %v6971_v61, 0.0  ;;  %v16689_v61 = vld [vmem:[#allocation720_spill] sm:$0xff]  ;;  %v16691_v3 = vld [vmem:[#allocation698_spill] sm:$0xff] }
 0x840   : > { %v7194_v47 = vmax.f32 %v6938_v49, 0.0  ;;  %v6594_v39 = vpop.permute.xlu0 %6593  ;;  %8795 = vmatpush3.bf16.msra.mxu1 %v7355_v16  ;;  %v5162_v49 = vadd.f32 %v4906_v29, %v3622_v19  ;;  %v5132_v17 = vadd.f32 %v4876_v7, %v3592_v52  ;;  %v16694_v28 = vld [vmem:[#allocation460_spill] sm:$0xff] }
 0x841   : > { %v6429_v40 = vpop.permute.xlu1 %6428  ;;  %v3608_v10 = vadd.f32 %v3352_v20, %v2068_v25  ;;  %v6955_v46 = vadd.f32 %v6594_v39, %v5163_v15  ;;  %v5149_v45 = vadd.f32 %v4893_v53, %v3609_v18  ;;  %v2101_v39 = vmul.f32 %v12717_v38, %v16683_v9  ;;  %v16688_v25 = vld [vmem:[#allocation461_spill] sm:$0xff] }
 0x842   : > { %v7348_v41 = vpack.c.bf16 %v7195_v60, %v7194_v47  ;;  %v6922_v42 = vadd.f32 %v6429_v40, %v5130_v6  ;;  %v4877_v60 = vmul.f32 %v12818_v58, %v16682_v1  ;;  %v16685_v40 = vld [vmem:[#allocation717_spill] sm:$0xff]  ;;  %v3384_v19 = vmul.f32 %v16099_v59, %v16688_v25  ;;  %v16703_v25 = vld [vmem:[#allocation667_spill] sm:$0xff] }
 0x843   : > { %v5148_v11 = vadd.f32 %v4892_v0, %v3608_v10  ;;  %v2100_v12 = vmul.f32 %v12717_v38, %v16685_v40  ;;  %v7211_v32 = vmax.f32 %v6955_v46, 0.0  ;;  %v3641_v56 = vadd.f32 %v3385_v30, %v2101_v39  ;;  %v16693_v18 = vld [vmem:[#allocation445_spill] sm:$0xff]  ;;  %v16695_v46 = vld [vmem:[#allocation704_spill] sm:$0xff]  ;;  %v16697_v0 = vld [vmem:[#allocation683_spill] sm:$0xff] }
 0x844   : > { %v7178_v21 = vmax.f32 %v6922_v42, 0.0  ;;  %v6524_v22 = vpop.permute.xlu0 %6523  ;;  %8774 = vmatprep.subr.bf16.mxu0 %v7348_v41  ;;  %v2084_v20 = vmul.f32 %v12717_v38, %v16691_v3  ;;  %v3368_v13 = vmul.f32 %v16099_v59, %v16693_v18  ;;  %v4924_v10 = vmul.f32 %v12818_v58, %v16694_v28  ;;  %v16698_v39 = vld [vmem:[#allocation175_spill] sm:$0xff]  ;;  %v16699_v30 = vld [vmem:[#allocation176_spill] sm:$0xff]  ;;  %v16705_v3 = vld [vmem:[#allocation430_spill] sm:$0xff] }
 0x845   : > { %v6669_v14 = vpop.permute.xlu1 %6668  ;;  %v6941_v43 = vadd.f32 %v6524_v22, %v5149_v45  ;;  %v16690_v22 = vld [vmem:[#allocation206_spill] sm:$0xff]  ;;  %v3640_v29 = vadd.f32 %v3384_v19, %v2100_v12  ;;  %v2055_v55 = vmul.f32 %v12717_v38, %v16698_v39  ;;  %v3339_v52 = vmul.f32 %v16099_v59, %v16699_v30  ;;  %v16701_v12 = vld [vmem:[#allocation444_spill] sm:$0xff] }
 0x846   : > { %v7340_v36 = vpack.c.bf16 %v7179_v33, %v7178_v21  ;;  %v6970_v34 = vadd.f32 %v6669_v14, %v5178_v51  ;;  %v4925_v21 = vmul.f32 %v12818_v58, %v16689_v61  ;;  %v5133_v51 = vadd.f32 %v4877_v60, %v3593_v50  ;;  %v16708_v18 = vld [vmem:[#allocation224_spill] sm:$0xff] }
 0x847   : > { %v3369_v27 = vmul.f32 %v16099_v59, %v16690_v22  ;;  %v7197_v14 = vmax.f32 %v6941_v43, 0.0  ;;  %v3624_v1 = vadd.f32 %v3368_v13, %v2084_v20  ;;  %v5180_v9 = vadd.f32 %v4924_v10, %v3640_v29  ;;  %v16706_v29 = vld [vmem:[#allocation670_spill] sm:$0xff] }
 0x848   : > { %v7226_v4 = vmax.f32 %v6970_v34, 0.0  ;;  %v6444_v16 = vpop.permute.xlu0 %6443  ;;  %8775 = vmatpush3.bf16.msra.mxu0 %v7340_v36  ;;  %v16692_v36 = vld [vmem:[#allocation191_spill] sm:$0xff]  ;;  %v2054_v19 = vmul.f32 %v12717_v38, %v16703_v25  ;;  %v3595_v22 = vadd.f32 %v3339_v52, %v2055_v55  ;;  %v4894_v20 = vmul.f32 %v12818_v58, %v16705_v3 }
 0x849   : > { %v6589_v6 = vpop.permute.xlu1 %6588  ;;  %v6925_v35 = vadd.f32 %v6444_v16, %v5133_v51  ;;  %v2071_v34 = vmul.f32 %v12717_v38, %v16692_v36  ;;  %v16696_v16 = vld [vmem:[#allocation192_spill] sm:$0xff]  ;;  %v3625_v48 = vadd.f32 %v3369_v27, %v2085_v44  ;;  %v16704_v27 = vld [vmem:[#allocation415_spill] sm:$0xff]  ;;  %v3387_v13 = vmul.f32 %v16099_v59, %v16708_v18 }
 0x84a   : > { %v7364_v47 = vpack.c.bf16 %v7227_v37, %v7226_v4  ;;  %v6954_v8 = vadd.f32 %v6589_v6, %v5162_v49  ;;  %v4909_v4 = vmul.f32 %v12818_v58, %v16695_v46  ;;  %v5181_v49 = vadd.f32 %v4925_v21, %v3641_v56 }
 0x84b   : > { %v3355_v24 = vmul.f32 %v16099_v59, %v16696_v16  ;;  %v2070_v6 = vmul.f32 %v12717_v38, %v16697_v0  ;;  %v7181_v60 = vmax.f32 %v6925_v35, 0.0  ;;  %v3338_v56 = vmul.f32 %v16099_v59, %v16704_v27  ;;  %v16710_v16 = vld [vmem:[#allocation207_spill] sm:$0xff] }
 0x84c   : > { %v7210_v41 = vmax.f32 %v6954_v8, 0.0  ;;  %v6684_v42 = vpop.permute.xlu0 %6683  ;;  %8796 = vmatprep.subr.bf16.mxu1 %v7364_v47  ;;  %v5165_v31 = vadd.f32 %v4909_v4, %v3625_v48  ;;  %v16711_v48 = vld [vmem:[#allocation414_spill] sm:$0xff] }
 0x84d   : > { %v6519_v33 = vpop.permute.xlu1 %6518  ;;  %v6973_v45 = vadd.f32 %v6684_v42, %v5181_v49  ;;  %v3611_v7 = vadd.f32 %v3355_v24, %v2071_v34  ;;  %v16707_v34 = vld [vmem:[#allocation223_spill] sm:$0xff]  ;;  %v3594_v28 = vadd.f32 %v3338_v56, %v2054_v19  ;;  %v2087_v24 = vmul.f32 %v12717_v38, %v16710_v16  ;;  %v16718_v19 = vld [vmem:[#allocation462_spill] sm:$0xff] }
 0x84e   : > { %v7356_v62 = vpack.c.bf16 %v7211_v32, %v7210_v41  ;;  %v6940_v23 = vadd.f32 %v6519_v33, %v5148_v11  ;;  %v16700_v11 = vld [vmem:[#allocation431_spill] sm:$0xff]  ;;  %v4908_v32 = vmul.f32 %v12818_v58, %v16701_v12  ;;  %v16702_v41 = vld [vmem:[#allocation686_spill] sm:$0xff]  ;;  %v4878_v0 = vmul.f32 %v12818_v58, %v16711_v48 }
 0x84f   : > { %v3354_v40 = vmul.f32 %v16099_v59, %v16700_v11  ;;  %v4895_v42 = vmul.f32 %v12818_v58, %v16702_v41  ;;  %v7229_v61 = vmax.f32 %v6973_v45, 0.0  ;;  %v16713_v45 = vld [vmem:[#allocation722_spill] sm:$0xff]  ;;  %v16715_v11 = vld [vmem:[#allocation703_spill] sm:$0xff] }
 0x850   : > { %v7196_v53 = vmax.f32 %v6940_v23, 0.0  ;;  %v6604_v15 = vpop.permute.xlu0 %6603  ;;  %8797 = vmatpush3.bf16.msra.mxu1 %v7356_v62  ;;  %v5164_v23 = vadd.f32 %v4908_v32, %v3624_v1  ;;  %v5134_v12 = vadd.f32 %v4878_v0, %v3594_v28 }
 0x851   : > { %v6439_v37 = vpop.permute.xlu1 %6438  ;;  %v3610_v33 = vadd.f32 %v3354_v40, %v2070_v6  ;;  %v6957_v21 = vadd.f32 %v6604_v15, %v5165_v31  ;;  %v5151_v35 = vadd.f32 %v4895_v42, %v3611_v7  ;;  %v2103_v15 = vmul.f32 %v12717_v38, %v16707_v34  ;;  %v16712_v6 = vld [vmem:[#allocation463_spill] sm:$0xff] }
 0x852   : > { %v7349_v50 = vpack.c.bf16 %v7197_v14, %v7196_v53  ;;  %v6924_v5 = vadd.f32 %v6439_v37, %v5132_v17  ;;  %v4879_v14 = vmul.f32 %v12818_v58, %v16706_v29  ;;  %v16709_v37 = vld [vmem:[#allocation719_spill] sm:$0xff]  ;;  %v3386_v1 = vmul.f32 %v16099_v59, %v16712_v6  ;;  %v16727_v6 = vld [vmem:[#allocation669_spill] sm:$0xff] }
 0x853   : > { %v5150_v10 = vadd.f32 %v4894_v20, %v3610_v33  ;;  %v2102_v46 = vmul.f32 %v12717_v38, %v16709_v37  ;;  %v7213_v4 = vmax.f32 %v6957_v21, 0.0  ;;  %v3643_v52 = vadd.f32 %v3387_v13, %v2103_v15  ;;  %v16717_v7 = vld [vmem:[#allocation447_spill] sm:$0xff]  ;;  %v16719_v21 = vld [vmem:[#allocation706_spill] sm:$0xff]  ;;  %v16721_v20 = vld [vmem:[#allocation685_spill] sm:$0xff] }
 0x854   : > { %v7180_v47 = vmax.f32 %v6924_v5, 0.0  ;;  %v6534_v8 = vpop.permute.xlu0 %6533  ;;  %8776 = vmatprep.subr.bf16.mxu0 %v7349_v50  ;;  %v2086_v40 = vmul.f32 %v12717_v38, %v16715_v11  ;;  %v3370_v25 = vmul.f32 %v16099_v59, %v16717_v7  ;;  %v4926_v33 = vmul.f32 %v12818_v58, %v16718_v19  ;;  %v16722_v15 = vld [vmem:[#allocation177_spill] sm:$0xff]  ;;  %v16723_v13 = vld [vmem:[#allocation178_spill] sm:$0xff]  ;;  %v16729_v11 = vld [vmem:[#allocation432_spill] sm:$0xff] }
 0x855   : > { %v6679_v43 = vpop.permute.xlu1 %6678  ;;  %v6943_v49 = vadd.f32 %v6534_v8, %v5151_v35  ;;  %v16714_v8 = vld [vmem:[#allocation208_spill] sm:$0xff]  ;;  %v3642_v32 = vadd.f32 %v3386_v1, %v2102_v46  ;;  %v2057_v18 = vmul.f32 %v12717_v38, %v16722_v15  ;;  %v3341_v28 = vmul.f32 %v16099_v59, %v16723_v13  ;;  %v16725_v46 = vld [vmem:[#allocation446_spill] sm:$0xff] }
 0x856   : > { %v7341_v44 = vpack.c.bf16 %v7181_v60, %v7180_v47  ;;  %v6972_v2 = vadd.f32 %v6679_v43, %v5180_v9  ;;  %v4927_v47 = vmul.f32 %v12818_v58, %v16713_v45  ;;  %v5135_v9 = vadd.f32 %v4879_v14, %v3595_v22  ;;  %v16732_v7 = vld [vmem:[#allocation226_spill] sm:$0xff] }
 0x857   : > { %v3371_v30 = vmul.f32 %v16099_v59, %v16714_v8  ;;  %v7199_v43 = vmax.f32 %v6943_v49, 0.0  ;;  %v3626_v29 = vadd.f32 %v3370_v25, %v2086_v40  ;;  %v5182_v34 = vadd.f32 %v4926_v33, %v3642_v32  ;;  %v16730_v32 = vld [vmem:[#allocation672_spill] sm:$0xff]  ;;  %v16733_v33 = vld [vmem:[#allocation721_spill] sm:$0xff] }
 0x858   : > { %v7228_v51 = vmax.f32 %v6972_v2, 0.0  ;;  %v6454_v62 = vpop.permute.xlu0 %6453  ;;  %8777 = vmatpush3.bf16.msra.mxu0 %v7341_v44  ;;  %v16716_v44 = vld [vmem:[#allocation193_spill] sm:$0xff]  ;;  %v2056_v1 = vmul.f32 %v12717_v38, %v16727_v6  ;;  %v3597_v8 = vadd.f32 %v3341_v28, %v2057_v18  ;;  %v4896_v40 = vmul.f32 %v12818_v58, %v16729_v11 }
 0x859   : > { %v6599_v17 = vpop.permute.xlu1 %6598  ;;  %v6927_v41 = vadd.f32 %v6454_v62, %v5135_v9  ;;  %v2073_v2 = vmul.f32 %v12717_v38, %v16716_v44  ;;  %v16720_v62 = vld [vmem:[#allocation194_spill] sm:$0xff]  ;;  %v3627_v3 = vadd.f32 %v3371_v30, %v2087_v24  ;;  %v16728_v30 = vld [vmem:[#allocation417_spill] sm:$0xff]  ;;  %v3389_v25 = vmul.f32 %v16099_v59, %v16732_v7 }
 0x85a   : > { %v7365_v53 = vpack.c.bf16 %v7229_v61, %v7228_v51  ;;  %v6956_v36 = vadd.f32 %v6599_v17, %v5164_v23  ;;  %v4911_v51 = vmul.f32 %v12818_v58, %v16719_v21  ;;  %v5183_v23 = vadd.f32 %v4927_v47, %v3643_v52 }
 0x85b   : > { %v3357_v56 = vmul.f32 %v16099_v59, %v16720_v62  ;;  %v2072_v17 = vmul.f32 %v12717_v38, %v16721_v20  ;;  %v7183_v14 = vmax.f32 %v6927_v41, 0.0  ;;  %v3340_v52 = vmul.f32 %v16099_v59, %v16728_v30  ;;  %v16734_v62 = vld [vmem:[#allocation209_spill] sm:$0xff] }
 0x85c   : > { %v7212_v50 = vmax.f32 %v6956_v36, 0.0  ;;  %v6694_v5 = vpop.permute.xlu0 %6693  ;;  %8798 = vmatprep.subr.bf16.mxu1 %v7365_v53  ;;  %v5167_v16 = vadd.f32 %v4911_v51, %v3627_v3  ;;  %v16735_v3 = vld [vmem:[#allocation210_spill] sm:$0xff] }
 0x85d   : > { %v6529_v60 = vpop.permute.xlu1 %6528  ;;  %v6975_v35 = vadd.f32 %v6694_v5, %v5183_v23  ;;  %v3613_v0 = vadd.f32 %v3357_v56, %v2073_v2  ;;  %v16731_v2 = vld [vmem:[#allocation225_spill] sm:$0xff]  ;;  %v3596_v19 = vadd.f32 %v3340_v52, %v2056_v1  ;;  %v2089_v56 = vmul.f32 %v12717_v38, %v16734_v62  ;;  %v16740_v1 = vld [vmem:[#allocation195_spill] sm:$0xff]  ;;  %v16743_v52 = vld [vmem:[#allocation708_spill] sm:$0xff] }
 0x85e   : > { %v7357_v39 = vpack.c.bf16 %v7213_v4, %v7212_v50  ;;  %v6942_v55 = vadd.f32 %v6529_v60, %v5150_v10  ;;  %v16724_v10 = vld [vmem:[#allocation433_spill] sm:$0xff]  ;;  %v4910_v4 = vmul.f32 %v12818_v58, %v16725_v46  ;;  %v16726_v50 = vld [vmem:[#allocation688_spill] sm:$0xff]  ;;  %v3373_v20 = vmul.f32 %v16099_v59, %v16735_v3 }
 0x85f   : > { %v3356_v37 = vmul.f32 %v16099_v59, %v16724_v10  ;;  %v4897_v5 = vmul.f32 %v12818_v58, %v16726_v50  ;;  %v7231_v45 = vmax.f32 %v6975_v35, 0.0 }
 0x860   : > { %v7198_v42 = vmax.f32 %v6942_v55, 0.0  ;;  %v6614_v31 = vpop.permute.xlu0 %6613  ;;  %8799 = vmatpush3.bf16.msra.mxu1 %v7357_v39  ;;  %v5166_v55 = vadd.f32 %v4910_v4, %v3626_v29 }
 0x861   : > { %v6449_v61 = vpop.permute.xlu1 %6448  ;;  %v3612_v60 = vadd.f32 %v3356_v37, %v2072_v17  ;;  %v6959_v47 = vadd.f32 %v6614_v31, %v5167_v16  ;;  %v5153_v41 = vadd.f32 %v4897_v5, %v3613_v0  ;;  %v2105_v31 = vmul.f32 %v12717_v38, %v16731_v2  ;;  %v16736_v17 = vld [vmem:[#allocation416_spill] sm:$0xff]  ;;  %v16739_v37 = vld [vmem:[#allocation705_spill] sm:$0xff] }
 0x862   : > { %v7350_v22 = vpack.c.bf16 %v7199_v43, %v7198_v42  ;;  %v6926_v27 = vadd.f32 %v6449_v61, %v5134_v12  ;;  %v4881_v43 = vmul.f32 %v12818_v58, %v16730_v32  ;;  %v2104_v61 = vmul.f32 %v12717_v38, %v16733_v33  ;;  %v16744_v32 = vld [vmem:[#allocation196_spill] sm:$0xff] }
 0x863   : > { %v7215_v21 = vmax.f32 %v6959_v47, 0.0  ;;  %v4880_v29 = vmul.f32 %v12818_v58, %v16736_v17  ;;  %v3645_v10 = vadd.f32 %v3389_v25, %v2105_v31  ;;  %v2088_v46 = vmul.f32 %v12717_v38, %v16739_v37  ;;  %v16750_v17 = vld [vmem:[#allocation690_spill] sm:$0xff] }
 0x864   : > { %v7182_v53 = vmax.f32 %v6926_v27, 0.0  ;;  %v6544_v36 = vpop.permute.xlu0 %6543  ;;  %8778 = vmatprep.subr.bf16.mxu0 %v7350_v22  ;;  %v5152_v27 = vadd.f32 %v4896_v40, %v3612_v60  ;;  %v5137_v15 = vadd.f32 %v4881_v43, %v3597_v8  ;;  %v2075_v60 = vmul.f32 %v12717_v38, %v16740_v1 }
 0x865   : > { %v6689_v49 = vpop.permute.xlu1 %6688  ;;  %v6945_v51 = vadd.f32 %v6544_v36, %v5153_v41  ;;  %v3359_v43 = vmul.f32 %v16099_v59, %v16744_v32  ;;  %v3629_v41 = vadd.f32 %v3373_v20, %v2089_v56  ;;  %v16749_v56 = vld [vmem:[#allocation448_spill] sm:$0xff]  ;;  %v16757_v32 = vld [vmem:[#allocation723_spill] sm:$0xff] }
 0x866   : > { %v7342_v24 = vpack.c.bf16 %v7183_v14, %v7182_v53  ;;  %v6974_v48 = vadd.f32 %v6689_v49, %v5182_v34  ;;  %v16737_v14 = vld [vmem:[#allocation465_spill] sm:$0xff]  ;;  %v16738_v34 = vld [vmem:[#allocation724_spill] sm:$0xff]  ;;  %v5136_v49 = vadd.f32 %v4880_v29, %v3596_v19  ;;  %v4912_v3 = vmul.f32 %v12818_v58, %v16749_v56 }
 0x867   : > { %v3388_v35 = vmul.f32 %v16099_v59, %v16737_v14  ;;  %v4929_v36 = vmul.f32 %v12818_v58, %v16738_v34  ;;  %v7201_v5 = vmax.f32 %v6945_v51, 0.0  ;;  %v16747_v51 = vld [vmem:[#allocation180_spill] sm:$0xff]  ;;  %v3615_v34 = vadd.f32 %v3359_v43, %v2075_v60 }
 0x868   : > { %v7230_v9 = vmax.f32 %v6974_v48, 0.0  ;;  %v6464_v39 = vpop.permute.xlu0 %6463  ;;  %8779 = vmatpush3.bf16.msra.mxu0 %v7342_v24  ;;  %v2106_v43 = vmul.f32 %v12717_v38, %v16757_v32 }
 0x869   : > { %v6609_v12 = vpop.permute.xlu1 %6608  ;;  %v3644_v4 = vadd.f32 %v3388_v35, %v2104_v61  ;;  %v6929_v16 = vadd.f32 %v6464_v39, %v5137_v15  ;;  %v4913_v39 = vmul.f32 %v12818_v58, %v16743_v52  ;;  %v5185_v11 = vadd.f32 %v4929_v36, %v3645_v10  ;;  %v16746_v61 = vld [vmem:[#allocation179_spill] sm:$0xff] }
 0x86a   : > { %v7366_v42 = vpack.c.bf16 %v7231_v45, %v7230_v9  ;;  %v6958_v44 = vadd.f32 %v6609_v12, %v5166_v55  ;;  %v16741_v45 = vld [vmem:[#allocation449_spill] sm:$0xff]  ;;  %v16742_v9 = vld [vmem:[#allocation464_spill] sm:$0xff]  ;;  %v16751_v36 = vld [vmem:[#allocation671_spill] sm:$0xff] }
 0x86b   : > { %v3372_v47 = vmul.f32 %v16099_v59, %v16741_v45  ;;  %v4928_v55 = vmul.f32 %v12818_v58, %v16742_v9  ;;  %v7185_v31 = vmax.f32 %v6929_v16, 0.0  ;;  %v5169_v29 = vadd.f32 %v4913_v39, %v3629_v41  ;;  %v16752_v16 = vld [vmem:[#allocation419_spill] sm:$0xff]  ;;  %v16756_v39 = vld [vmem:[#allocation228_spill] sm:$0xff] }
 0x86c   : > { %v7214_v23 = vmax.f32 %v6958_v44, 0.0  ;;  %v6704_v22 = vpop.permute.xlu0 %6703  ;;  %8800 = vmatprep.subr.bf16.mxu1 %v7366_v42  ;;  %v16745_v42 = vld [vmem:[#allocation687_spill] sm:$0xff]  ;;  %v2058_v15 = vmul.f32 %v12717_v38, %v16751_v36 }
 0x86d   : > { %v6539_v53 = vpop.permute.xlu1 %6538  ;;  %v2074_v44 = vmul.f32 %v12717_v38, %v16745_v42  ;;  %v3628_v2 = vadd.f32 %v3372_v47, %v2088_v46  ;;  %v6977_v7 = vadd.f32 %v6704_v22, %v5185_v11  ;;  %v5184_v33 = vadd.f32 %v4928_v55, %v3644_v4  ;;  %v16754_v47 = vld [vmem:[#allocation674_spill] sm:$0xff] }
 0x86e   : > { %v7358_v18 = vpack.c.bf16 %v7215_v21, %v7214_v23  ;;  %v6944_v13 = vadd.f32 %v6539_v53, %v5152_v27  ;;  %v8698_v28 = vpop.f32.mrb[0].mxu0  ;;  %v2059_v21 = vmul.f32 %v12717_v38, %v16746_v61  ;;  %v3343_v23 = vmul.f32 %v16099_v59, %v16747_v51  ;;  %v16748_v27 = vld [vmem:[#allocation435_spill] sm:$0xff] }
 0x86f   : > { %v8699_v50 = vpop.f32.mrb[1].mxu0  ;;  %v3358_v62 = vmul.f32 %v16099_v59, %v16748_v27  ;;  %v4899_v22 = vmul.f32 %v12818_v58, %v16750_v17  ;;  %v7233_v10 = vmax.f32 %v6977_v7, 0.0  ;;  %v4883_v9 = vmul.f32 %v12818_v58, %v16754_v47  ;;  %v16760_v61 = vld [vmem:[#allocation467_spill] sm:$0xff]  ;;  %v16769_v47 = vld [vmem:[#allocation689_spill] sm:$0xff] }
 0x870   : > { %v7200_v24 = vmax.f32 %v6944_v13, 0.0  ;;  %v6624_v48 = vpop.permute.xlu0 %6623  ;;  %8801 = vmatpush3.bf16.msra.mxu1 %v7358_v18  ;;  %v14962_v0 = vadd.f32 %v8699_v50, %v8698_v28  ;;  %v8701_v6 = vpop.f32.mrb[2].mxu0  ;;  %v5168_v13 = vadd.f32 %v4912_v3, %v3628_v2  ;;  %v3391_v11 = vmul.f32 %v16099_v59, %v16756_v39 }
 0x871   : > { %v6459_v8 = vpop.permute.xlu1 %6458  ;;  %v8702_v30 = vpop.f32.mrb[3].mxu0  ;;  %v3614_v18 = vadd.f32 %v3358_v62, %v2074_v44  ;;  %v6961_v37 = vadd.f32 %v6624_v48, %v5169_v29  ;;  %v16753_v6 = vld [vmem:[#allocation434_spill] sm:$0xff]  ;;  %v5155_v55 = vadd.f32 %v4899_v22, %v3615_v34  ;;  %v16763_v22 = vld [vmem:[#allocation707_spill] sm:$0xff] }
 0x872   : > { %v7351_v40 = vpack.c.bf16 %v7201_v5, %v7200_v24  ;;  %v6928_v12 = vadd.f32 %v6459_v8, %v5136_v49  ;;  %v3599_v5 = vadd.f32 %v3343_v23, %v2059_v21  ;;  %v3342_v24 = vmul.f32 %v16099_v59, %v16752_v16  ;;  %v16755_v30 = vld [vmem:[#allocation227_spill] sm:$0xff]  ;;  %v16761_v23 = vld [vmem:[#allocation726_spill] sm:$0xff] }
 0x873   : > { %v4898_v1 = vmul.f32 %v12818_v58, %v16753_v6  ;;  %v2107_v52 = vmul.f32 %v12717_v38, %v16755_v30  ;;  %v7217_v41 = vmax.f32 %v6961_v37, 0.0  ;;  %v3390_v21 = vmul.f32 %v16099_v59, %v16760_v61  ;;  %v16766_v37 = vld [vmem:[#allocation466_spill] sm:$0xff] }
 0x874   : > { %v7184_v25 = vmax.f32 %v6928_v12, 0.0  ;;  %v6554_v19 = vpop.permute.xlu0 %6553  ;;  %8780 = vmatprep.subr.bf16.mxu0 %v7351_v40  ;;  %v3598_v40 = vadd.f32 %v3342_v24, %v2058_v15  ;;  %v4931_v27 = vmul.f32 %v12818_v58, %v16761_v23  ;;  %v5139_v62 = vadd.f32 %v4883_v9, %v3599_v5  ;;  %v16767_v5 = vld [vmem:[#allocation710_spill] sm:$0xff] }
 0x875   : > { %v6699_v20 = vpop.permute.xlu1 %6698  ;;  %v5154_v12 = vadd.f32 %v4898_v1, %v3614_v18  ;;  %v6947_v42 = vadd.f32 %v6554_v19, %v5155_v55  ;;  %v16762_v19 = vld [vmem:[#allocation212_spill] sm:$0xff]  ;;  %v3647_v17 = vadd.f32 %v3391_v11, %v2107_v52  ;;  %v2090_v29 = vmul.f32 %v12717_v38, %v16763_v22  ;;  %v16764_v18 = vld [vmem:[#allocation197_spill] sm:$0xff] }
 0x876   : > { %v7343_v14 = vpack.c.bf16 %v7185_v31, %v7184_v25  ;;  %v6976_v35 = vadd.f32 %v6699_v20, %v5184_v33  ;;  %v8720_v53 = vpop.f32.mrb[8].mxu1  ;;  %v16758_v31 = vld [vmem:[#allocation211_spill] sm:$0xff]  ;;  %v16759_v25 = vld [vmem:[#allocation418_spill] sm:$0xff]  ;;  %v3375_v20 = vmul.f32 %v16099_v59, %v16762_v19  ;;  %v4915_v16 = vmul.f32 %v12818_v58, %v16767_v5  ;;  %v16770_v11 = vld [vmem:[#allocation181_spill] sm:$0xff] }
 0x877   : > { %v8721_v28 = vpop.f32.mrb[9].mxu1  ;;  %v2091_v7 = vmul.f32 %v12717_v38, %v16758_v31  ;;  %v4882_v33 = vmul.f32 %v12818_v58, %v16759_v25  ;;  %v5187_v24 = vadd.f32 %v4931_v27, %v3647_v17  ;;  %v2076_v9 = vmul.f32 %v12717_v38, %v16769_v47  ;;  %v16776_v17 = vld [vmem:[#allocation421_spill] sm:$0xff]  ;;  %v16783_v47 = vld [vmem:[#allocation420_spill] sm:$0xff] }
 0x878   : > { %v7232_v46 = vmax.f32 %v6976_v35, 0.0  ;;  %v6474_v4 = vpop.permute.xlu0 %6473  ;;  %8781 = vmatpush3.bf16.msra.mxu0 %v7343_v14  ;;  %v14988_v49 = vadd.f32 %v8721_v28, %v8720_v53  ;;  %v8723_v50 = vpop.f32.mrb[10].mxu1  ;;  %v3646_v35 = vadd.f32 %v3390_v21, %v2106_v43  ;;  %v7203_v53 = vmax.f32 %v6947_v42, 0.0  ;;  %v16765_v28 = vld [vmem:[#allocation451_spill] sm:$0xff]  ;;  %v16772_v43 = vld [vmem:[#allocation437_spill] sm:$0xff]  ;;  %v16773_v42 = vld [vmem:[#allocation450_spill] sm:$0xff] }
 0x879   : > { %v6619_v60 = vpop.permute.xlu1 %6618  ;;  %v8724_v45 = vpop.f32.mrb[11].mxu1  ;;  %v5138_v14 = vadd.f32 %v4882_v33, %v3598_v40  ;;  %v6931_v34 = vadd.f32 %v6474_v4, %v5139_v62  ;;  %v16768_v4 = vld [vmem:[#allocation198_spill] sm:$0xff]  ;;  %v2061_v40 = vmul.f32 %v12717_v38, %v16770_v11  ;;  %v3344_v22 = vmul.f32 %v16099_v59, %v16776_v17 }
 0x87a   : > { %v7367_v48 = vpack.c.bf16 %v7233_v10, %v7232_v46  ;;  %v6960_v8 = vadd.f32 %v6619_v60, %v5168_v13  ;;  %v2077_v13 = vmul.f32 %v12717_v38, %v16764_v18  ;;  %v3374_v10 = vmul.f32 %v16099_v59, %v16765_v28 }
 0x87b   : > { %v4930_v46 = vmul.f32 %v12818_v58, %v16766_v37  ;;  %v3361_v60 = vmul.f32 %v16099_v59, %v16768_v4  ;;  %v3631_v45 = vadd.f32 %v3375_v20, %v2091_v7  ;;  %v16774_v7 = vld [vmem:[#allocation692_spill] sm:$0xff]  ;;  %v16780_v37 = vld [vmem:[#allocation230_spill] sm:$0xff] }
 0x87c   : > { %v7216_v44 = vmax.f32 %v6960_v8, 0.0  ;;  %v6714_v2 = vpop.permute.xlu0 %6713  ;;  %8802 = vmatprep.subr.bf16.mxu1 %v7367_v48  ;;  %v3630_v55 = vadd.f32 %v3374_v10, %v2090_v29  ;;  %v7187_v48 = vmax.f32 %v6931_v34, 0.0  ;;  %v16777_v29 = vld [vmem:[#allocation436_spill] sm:$0xff]  ;;  %v16779_v10 = vld [vmem:[#allocation229_spill] sm:$0xff] }
 0x87d   : > { %v6549_v51 = vpop.permute.xlu1 %6548  ;;  %v6979_v8 = vadd.f32 %v6714_v2, %v5187_v24  ;;  %v5186_v39 = vadd.f32 %v4930_v46, %v3646_v35  ;;  %v4901_v2 = vmul.f32 %v12818_v58, %v16774_v7  ;;  %v5171_v25 = vadd.f32 %v4915_v16, %v3631_v45  ;;  %v16778_v34 = vld [vmem:[#allocation676_spill] sm:$0xff]  ;;  %v16781_v16 = vld [vmem:[#allocation725_spill] sm:$0xff] }
 0x87e   : > { %v7359_v56 = vpack.c.bf16 %v7217_v41, %v7216_v44  ;;  %v6946_v3 = vadd.f32 %v6549_v51, %v5154_v12  ;;  %v16771_v12 = vld [vmem:[#allocation182_spill] sm:$0xff]  ;;  %v3360_v41 = vmul.f32 %v16099_v59, %v16772_v43  ;;  %v4914_v44 = vmul.f32 %v12818_v58, %v16773_v42  ;;  %v16775_v51 = vld [vmem:[#allocation673_spill] sm:$0xff] }
 0x87f   : > { %v3345_v32 = vmul.f32 %v16099_v59, %v16771_v12  ;;  %v3617_v21 = vadd.f32 %v3361_v60, %v2077_v13  ;;  %v2060_v23 = vmul.f32 %v12717_v38, %v16775_v51  ;;  %v7235_v62 = vmax.f32 %v6979_v8, 0.0  ;;  %v16782_v60 = vld [vmem:[#allocation213_spill] sm:$0xff]  ;;  %v16789_v51 = vld [vmem:[#allocation468_spill] sm:$0xff] }
 0x880   : > { %v7202_v36 = vmax.f32 %v6946_v3, 0.0  ;;  %v6634_v15 = vpop.permute.xlu0 %6633  ;;  %8803 = vmatpush3.bf16.msra.mxu1 %v7359_v56  ;;  %v3616_v27 = vadd.f32 %v3360_v41, %v2076_v9  ;;  %v5170_v19 = vadd.f32 %v4914_v44, %v3630_v55  ;;  %v3393_v46 = vmul.f32 %v16099_v59, %v16780_v37  ;;  %v16784_v55 = vld [vmem:[#allocation469_spill] sm:$0xff] }
 0x881   : > { %v6469_v50 = vpop.permute.xlu1 %6468  ;;  %v6963_v56 = vadd.f32 %v6634_v15, %v5171_v25  ;;  %v3601_v20 = vadd.f32 %v3345_v32, %v2061_v40  ;;  %v5157_v18 = vadd.f32 %v4901_v2, %v3617_v21  ;;  %v2109_v15 = vmul.f32 %v12717_v38, %v16779_v10  ;;  %v16786_v32 = vld [vmem:[#allocation214_spill] sm:$0xff]  ;;  %v16787_v41 = vld [vmem:[#allocation709_spill] sm:$0xff] }
 0x882   : > { %v7352_v6 = vpack.c.bf16 %v7203_v53, %v7202_v36  ;;  %v6930_v1 = vadd.f32 %v6469_v50, %v5138_v14  ;;  %v4900_v14 = vmul.f32 %v12818_v58, %v16777_v29  ;;  %v4885_v36 = vmul.f32 %v12818_v58, %v16778_v34 }
 0x883   : > { %v3600_v50 = vadd.f32 %v3344_v22, %v2060_v23  ;;  %v2108_v24 = vmul.f32 %v12717_v38, %v16781_v16  ;;  %v2093_v45 = vmul.f32 %v12717_v38, %v16782_v60  ;;  %v4884_v9 = vmul.f32 %v12818_v58, %v16783_v47 }
 0x884   : > { %v7186_v30 = vmax.f32 %v6930_v1, 0.0  ;;  %v6564_v52 = vpop.permute.xlu0 %6563  ;;  %8782 = vmatprep.subr.bf16.mxu0 %v7352_v6  ;;  %v5156_v5 = vadd.f32 %v4900_v14, %v3616_v27  ;;  %v7219_v6 = vmax.f32 %v6963_v56, 0.0  ;;  %v5141_v11 = vadd.f32 %v4885_v36, %v3601_v20 }
 0x885   : > { %v6709_v31 = vpop.permute.xlu1 %6708  ;;  %v6949_v1 = vadd.f32 %v6564_v52, %v5157_v18  ;;  %v3377_v52 = vmul.f32 %v16099_v59, %v16786_v32  ;;  %v3649_v43 = vadd.f32 %v3393_v46, %v2109_v15  ;;  %v2092_v42 = vmul.f32 %v12717_v38, %v16787_v41 }
 0x886   : > { %v7344_v33 = vpack.c.bf16 %v7187_v48, %v7186_v30  ;;  %v6978_v61 = vadd.f32 %v6709_v31, %v5186_v39  ;;  %v3392_v48 = vmul.f32 %v16099_v59, %v16784_v55  ;;  %v16785_v30 = vld [vmem:[#allocation729_spill] sm:$0xff]  ;;  %v5140_v31 = vadd.f32 %v4884_v9, %v3600_v50 }
 0x887   : > { %v4933_v39 = vmul.f32 %v12818_v58, %v16785_v30  ;;  %v7205_v2 = vmax.f32 %v6949_v1, 0.0  ;;  %v4932_v23 = vmul.f32 %v12818_v58, %v16789_v51  ;;  %v3633_v20 = vadd.f32 %v3377_v52, %v2093_v45  ;;  %v16792_v51 = vld [vmem:[#allocation696_spill] sm:$0xff] }
 0x888   : > { %v7234_v3 = vmax.f32 %v6978_v61, 0.0  ;;  %8783 = vmatpush3.bf16.msra.mxu0 %v7344_v33  ;;  %v6484_v35 = vpop.permute.xlu0 %6483  ;;  %v3648_v7 = vadd.f32 %v3392_v48, %v2108_v24  ;;  %v16788_v61 = vld [vmem:[#allocation453_spill] sm:$0xff] }
 0x889   : > { %v6629_v53 = vpop.permute.xlu1 %6628  ;;  %v6933_v25 = vadd.f32 %v6484_v35, %v5141_v11  ;;  %v3376_v21 = vmul.f32 %v16099_v59, %v16788_v61  ;;  %v16791_v59 = vld [vmem:[#allocation452_spill] sm:$0xff] }
 0x88a   : > { %v7368_v13 = vpack.c.bf16 %v7235_v62, %v7234_v3  ;;  %v6962_v28 = vadd.f32 %v6629_v53, %v5170_v19  ;;  %v16790_v62 = vld [vmem:[#allocation712_spill] sm:$0xff]  ;;  %v5189_v3 = vadd.f32 %v4933_v39, %v3649_v43  ;;  %v5188_v35 = vadd.f32 %v4932_v23, %v3648_v7 }
 0x88b   : > { %v4917_v56 = vmul.f32 %v12818_v58, %v16790_v62  ;;  %v3632_v17 = vadd.f32 %v3376_v21, %v2092_v42  ;;  %v7189_v22 = vmax.f32 %v6933_v25, 0.0  ;;  %v4916_v36 = vmul.f32 %v12818_v58, %v16791_v59 }
 0x88c   : > { %v7218_v4 = vmax.f32 %v6962_v28, 0.0  ;;  %8804 = vmatprep.subr.bf16.mxu1 %v7368_v13  ;;  %v6724_v44 = vpop.permute.xlu0 %6723  ;;  %v9317_v42 = vmov 1966171168  }
 0x88d   : > { %v6559_v8 = vpop.permute.xlu1 %6558  ;;  %v6981_v29 = vadd.f32 %v6724_v44, %v5189_v3  ;;  %v5173_v18 = vadd.f32 %v4917_v56, %v3633_v20  ;;  %v5172_v46 = vadd.f32 %v4916_v36, %v3632_v17  ;;  %v15085_v20 = vld [vmem:[%s15297_s5] sm:$0xff]  }
 0x88e   : > { %v7360_v40 = vpack.c.bf16 %v7219_v6, %v7218_v4  ;;  %v6948_v12 = vadd.f32 %v6559_v8, %v5156_v5 }
 0x88f   : > { %v7237_v10 = vmax.f32 %v6981_v29, 0.0 }
 0x890   : > { %v7204_v33 = vmax.f32 %v6948_v12, 0.0  ;;  %8805 = vmatpush3.bf16.msra.mxu1 %v7360_v40  ;;  %v6644_v53 = vpop.permute.xlu0 %6643 }
 0x891   : > { %v6479_v27 = vpop.permute.xlu1 %6478  ;;  %v6965_v15 = vadd.f32 %v6644_v53, %v5173_v18  ;;  %v7841_v18 = vld [vmem:[#allocation2 + $0x3] sm:$0x1] }
 0x892   : > { %v7353_v19 = vpack.c.bf16 %v7205_v2, %v7204_v33  ;;  %v6932_v38 = vadd.f32 %v6479_v27, %v5140_v31 }
 0x893   : > { %v7221_v24 = vmax.f32 %v6965_v15, 0.0 }
 0x894   : > { %v7188_v14 = vmax.f32 %v6932_v38, 0.0  ;;  %8784 = vmatprep.subr.bf16.mxu0 %v7353_v19  ;;  %v7832_v38 = vld [vmem:[#allocation2] sm:$0x1] }
 0x895   : > { %v6719_v34 = vpop.permute.xlu1 %6718 }
 0x896   : > { %v7345_v13 = vpack.c.bf16 %v7189_v22, %v7188_v14  ;;  %v6980_v28 = vadd.f32 %v6719_v34, %v5188_v35  ;;  %v7835_v14 = vld [vmem:[#allocation2 + $0x1] sm:$0x1]  ;;  %v7838_v35 = vld [vmem:[#allocation2 + $0x2] sm:$0x1] }
 0x898   : > { %v7236_v37 = vmax.f32 %v6980_v28, 0.0  ;;  %8785 = vmatpush3.bf16.msra.mxu0 %v7345_v13 }
 0x899   : > { %v6639_v50 = vpop.permute.xlu1 %6638 }
 0x89a   : > { %v7369_v5 = vpack.c.bf16 %v7237_v10, %v7236_v37  ;;  %v6964_v16 = vadd.f32 %v6639_v50, %v5172_v46 }
 0x89b   : > { %7737 = vmatmul.mubr.bf16.vlgmr.msra.gmra.mrb[8].mxu0 %v14672_v57 }
 0x89c   : > { %v7220_v6 = vmax.f32 %v6964_v16, 0.0  ;;  %8806 = vmatprep.subr.bf16.mxu1 %v7369_v5  ;;  %8853 = vmatprep.mubr.msk.bf16.mxu0 %vm7899_vm3, %v15085_v20 }
 0x89d   : > { %v7374_v1 = vpop.permute.xlu1 %7373 }
 0x89e   : > { %v7361_v4 = vpack.c.bf16 %v7221_v24, %v7220_v6  ;;  %v7499_v58 = vadd.f32 %v14701_v63, %v7374_v1 }
 0x8a0   : > { %v7539_v60 = vadd.f32 %v14710_v54, %v7499_v58  ;;  %8807 = vmatpush3.bf16.msra.mxu1 %v7361_v4 }
 0x8a2   : > { %v7579_v45 = vadd.f32 %v14962_v0, %v7539_v60 }
 0x8a3   : > { %7777 = vmatmul.mubr.bf16.vlgmr.msra.gmra.mrb[16].mxu1 %v14713_v26 }
 0x8a4   : > { %v7619_v47 = vadd.f32 %v14988_v49, %v7579_v45  ;;  %v7796_v49 = vunpack.c.l.s4 %v9317_v42  ;;  %8863 = vmatprep.mubr.msk.bf16.mxu1 %vm7899_vm3, %v15085_v20 }
 0x8a6   : > { %v7797_v2 = vunpack.c.0.s8 %v7796_v49 }
 0x8a8   : > { %v7800_v23 = vsub.s32 %v7797_v2, %v16792_v51 }
 0x8ee   : > { %v8742_v9 = vpop.f32.mrb[4].mxu0 }
 0x8ef   : > { %v8743_v55 = vpop.f32.mrb[5].mxu0 }
 0x8f0   : > { %v8744_v48 = vadd.f32 %v8743_v55, %v8742_v9  ;;  %v8745_v57 = vpop.f32.mrb[6].mxu0 }
 0x8f1   : > { %v8746_v8 = vpop.f32.mrb[7].mxu0  ;;  %v8989_v57 = vld [vmem:[%s15297_s5 + $0x8] sm:$0xff]  }
 0x8f2   : > { %v7659_v30 = vadd.f32 %v8744_v48, %v7619_v47 }
 0x8f6   : > { %v8764_v39 = vpop.f32.mrb[12].mxu1 }
 0x8f7   : > { %v8765_v11 = vpop.f32.mrb[13].mxu1 }
 0x8f8   : > { %v8766_v40 = vadd.f32 %v8765_v11, %v8764_v39  ;;  %v8767_v12 = vpop.f32.mrb[14].mxu1 }
 0x8f9   : > { %v8768_v63 = vpop.f32.mrb[15].mxu1 }
 0x8fa   : > { %v7699_v32 = vadd.f32 %v8766_v40, %v7659_v30  ;;  %v8990_v30 = vld [vmem:[%s15297_s5 + $0x10] sm:$0xff]   ;;  %v8207_v63 = vld [vmem:[%s15298_s6] sm:$0x1] }
 0x96e   : > { %v8786_v54 = vpop.f32.mrb[8].mxu0 }
 0x96f   : > { %v8787_v52 = vpop.f32.mrb[9].mxu0 }
 0x970   : > { %v8788_v43 = vadd.f32 %v8787_v52, %v8786_v54  ;;  %v8789_v0 = vpop.f32.mrb[10].mxu0  ;;  %v8991_v54 = vld [vmem:[%s15297_s5 + $0x18] sm:$0xff]   ;;  %v8257_v52 = vsel %vm7912_vm7, %v8207_v63, 0 }
 0x971   : > { %v8790_v41 = vpop.f32.mrb[11].mxu0 }
 0x972   : > { %v7739_v26 = vadd.f32 %v8788_v43, %v7699_v32 }
 0x976   : > { %v8808_v44 = vpop.f32.mrb[16].mxu1 }
 0x977   : > { %v8809_v31 = vpop.f32.mrb[17].mxu1 }
 0x978   : > { %v8810_v7 = vadd.f32 %v8809_v31, %v8808_v44  ;;  %v8811_v25 = vpop.f32.mrb[18].mxu1 }
 0x979   : > { %v8812_v33 = vpop.f32.mrb[19].mxu1 }
 0x97a   : > { %v7779_v61 = vadd.f32 %v8810_v7, %v7739_v26 }
 0x97c   : > { %v7784_v21 = vmax.f32 %v7779_v61, 0.0 }
 0x97e   : > { %v7793_v27 = vpack.c.bf16 %v7784_v21, %v7784_v21  ;;  %v7786_v37 = vsel %vm7785_vm4, %v7784_v21, 0.0 }
 0x980   : > { %v7801_v62 = vrot.slane %v7793_v27, %v7800_v23 }
 0x982   : > { %v7802_v56 = vcombine.high %v7801_v62, %v7801_v62  ;;  %v7809_v3 = vrot.slane %v7801_v62, %v7800_v23 }
 0x984   : > { %v8570_v17 = vpack.i.b16 %v7809_v3, %v7809_v3  ;;  %v7818_v22 = vunpack.i.h.s16 %v7809_v3  ;;  %v7816_v29 = vrot.slane %v7802_v56, %v7800_v23 }
 0x986   : > { %7844 = vrot.lane.b32.xlu0 %v8570_v17, %s9318_s20  ;;  %v7822_v53 = vpack.i.b16 %v7818_v22, %v7818_v22  ;;  %v8571_v34 = vpack.i.b16 %v7816_v29, %v7816_v29  ;;  %v7820_v59 = vunpack.i.h.s16 %v7816_v29  ;;  %v7833_v36 = vsel %vm15078_vm2, %v8570_v17, %v7832_v38 }
 0x987   : > { %7834 = vst [vmem:[#allocation2] sm:$0x1] %v7833_v36 }
 0x988   : > { %7846 = vrot.lane.b32.xlu1 %v7822_v53, %s9318_s20  ;;  %v7824_v13 = vpack.i.b16 %v7820_v59, %v7820_v59  ;;  %v7836_v28 = vsel %vm15078_vm2, %v7822_v53, %v7835_v14  ;;  %v7839_v10 = vsel %vm15078_vm2, %v8571_v34, %v7838_v35 }
 0x989   : > { %7837 = vst [vmem:[#allocation2 + $0x1] sm:$0x1] %v7836_v28  ;;  %7840 = vst [vmem:[#allocation2 + $0x2] sm:$0x1] %v7839_v10 }
 0x98a   : > { %7848 = vrot.lane.b32.xlu0 %v8571_v34, %s9318_s20  ;;  %v7842_v15 = vsel %vm15078_vm2, %v7824_v13, %v7841_v18 }
 0x98b   : > { %7843 = vst [vmem:[#allocation2 + $0x3] sm:$0x1] %v7842_v15 }
 0x98c   : > { %7850 = vrot.lane.b32.xlu1 %v7824_v13, %s9318_s20  ;;  %s311_s20 = scalar_lea.vmem %s15299_s7, %s8568_s22  ;;  %s8567_s22 = sshll.u32 %s301_s17, 8 }
 0x98d   : > { %s15174_s21 = scalar_lea.vmem [#allocation3], %s8567_s22 }
 0x98e   : > { %v7858_v5 = vld [vmem:[#allocation2] sm:$0x1]  ;;  %s8477_s24 = sshll.u32 %s15174_s21, 4  ;;  %s15241_s24 = int_to_ptr.vmem [resolvable:$true] %s8477_s24 }
 0x98f   : > { %s9249_s12 = scalar_lea.vmem %s15241_s24, 4096  ;;  %p9256_p0 = scmp.lt.s32.totalorder %s15241_s24, %s9254_s18 }
 0x990   : > { %v7861_v6 = vld [vmem:[#allocation2 + $0x1] sm:$0x1]  ;;  %v7864_v58 = vld [vmem:[#allocation2 + $0x2] sm:$0x1]  ;;  %p9250_p11 = scmp.ne.s32.totalorder %s15241_s24, %s9249_s12  ;;  %p9257_p1 = scmp.lt.s32.totalorder %s9255_s19, %s9249_s12 }
 0x992   : > { %v7867_v47 = vld [vmem:[#allocation2 + $0x3] sm:$0x1]  ;;  %p9251_p12 = pnand %p9250_p11, %p9405_p5  ;;  %p9258_p2 = por %p9257_p1, %p9256_p0 }
 0x994   : > { %p9252_p13 = pneg %p9251_p12 }
 0x996   : > { %p9259_p3 = pnand %p9258_p2, %p9252_p13 }
 0x9a9   : > { %7787 = vadd.xlane.f32.xlu0 %v7786_v37 }
 0x9f8   : > { %v7845_v50 = vpop.permute.xlu0 %7844 }
 0x9f9   : > { %v7859_v16 = vsel %vm15100_vm6, %v7845_v50, %v7858_v5 }
 0x9fa   : > { %7860 = vst [vmem:[#allocation2] sm:$0x1] %v7859_v16  ;;  %v7847_v24 = vpop.permute.xlu1 %7846 }
 0x9fb   : > { %v7862_v1 = vsel %vm15100_vm6, %v7847_v24, %v7861_v6 }
 0x9fc   : > { %7863 = vst [vmem:[#allocation2 + $0x1] sm:$0x1] %v7862_v1  ;;  %v7849_v4 = vpop.permute.xlu0 %7848 }
 0x9fd   : > { %v7865_v60 = vsel %vm15100_vm6, %v7849_v4, %v7864_v58 }
 0x9fe   : > { %7866 = vst [vmem:[#allocation2 + $0x2] sm:$0x1] %v7865_v60  ;;  %v7851_v45 = vpop.permute.xlu1 %7850 }
 0x9ff   : > { %v7868_v9 = vsel %vm15100_vm6, %v7851_v45, %v7867_v47 }
 0xa00   : > { %7869 = vst [vmem:[#allocation2 + $0x3] sm:$0x1] %v7868_v9 }
 0xa01   : > { %v7878_v55 = vld [vmem:[#allocation2] sm:$0x1] }
 0xa02   : > { %8925 = vmatprep.subr.msk.bf16.mxu0 %vm7912_vm7, %v7878_v55  ;;  %v7914_v48 = vsel %vm7912_vm7, %v7878_v55, 0 }
 0xa03   : > { %8852 = vmatpush3.bf16.msra.mxu0 %v7914_v48  ;;  %v7982_v8 = vld [vmem:[#allocation2 + $0x1] sm:$0x1] }
 0xa04   : > { %8926 = vmatprep.subr.msk.bf16.mxu1 %vm7912_vm7, %v7982_v8  ;;  %v7984_v39 = vsel %vm7912_vm7, %v7982_v8, 0 }
 0xa05   : > { %8862 = vmatpush3.bf16.msra.mxu1 %v7984_v39  ;;  %v8052_v11 = vld [vmem:[#allocation2 + $0x2] sm:$0x1] }
 0xa06   : > { %8854 = vmatmul.mubr.msk.bf16.vlgmr.msra.gmra.mrb[12].mxu0 %vm7899_vm3, %v8989_v57  ;;  %8927 = vmatprep.subr.msk.bf16.mxu0 %vm7912_vm7, %v8052_v11  ;;  %v8054_v40 = vsel %vm7912_vm7, %v8052_v11, 0 }
 0xa07   : > { %8872 = vmatpush3.bf16.msra.mxu0 %v8054_v40  ;;  %v8122_v12 = vld [vmem:[#allocation2 + $0x3] sm:$0x1]  ;;  %8857 = vmatprep.mubr.msk.bf16.mxu0 %vm7899_vm3, %v8990_v30 }
 0xa08   : > { %8928 = vmatprep.subr.msk.bf16.mxu1 %vm7912_vm7, %v8122_v12  ;;  %8864 = vmatmul.mubr.msk.bf16.vlgmr.msra.gmra.mrb[20].mxu1 %vm7899_vm3, %v8989_v57  ;;  %v8124_v32 = vsel %vm7912_vm7, %v8122_v12, 0 }
 0xa09   : > { %8882 = vmatpush3.bf16.msra.mxu1 %v8124_v32  ;;  %8867 = vmatprep.mubr.msk.bf16.mxu1 %vm7899_vm3, %v8990_v30 }
 0xa0a   : > { %8929 = vmatprep.subr.msk.bf16.mxu0 %vm7912_vm7, %v8207_v63 }
 0xa0e   : > { %8858 = vmatmul.mubr.msk.bf16.gmra.mrb[16].mxu0 %vm7899_vm3, %v8991_v54 }
 0xa0f   : > { %8873 = vmatprep.mubr.msk.bf16.mxu0 %vm7899_vm3, %v15085_v20 }
 0xa10   : > { %8868 = vmatmul.mubr.msk.bf16.gmra.mrb[24].mxu1 %vm7899_vm3, %v8991_v54 }
 0xa11   : > { %8883 = vmatprep.mubr.msk.bf16.mxu1 %vm7899_vm3, %v15085_v20 }
 0xa16   : > { %8874 = vmatmul.mubr.msk.bf16.vlgmr.msra.gmra.mrb[20].mxu0 %vm7899_vm3, %v8989_v57 }
 0xa17   : > { %8877 = vmatprep.mubr.msk.bf16.mxu0 %vm7899_vm3, %v8990_v30  ;;  %8892 = vmatpush3.bf16.msra.mxu0 %v8257_v52 }
 0xa18   : > { %8884 = vmatmul.mubr.msk.bf16.vlgmr.msra.gmra.mrb[28].mxu1 %vm7899_vm3, %v8989_v57 }
 0xa19   : > { %8887 = vmatprep.mubr.msk.bf16.mxu1 %vm7899_vm3, %v8990_v30 }
 0xa1e   : > { %8878 = vmatmul.mubr.msk.bf16.gmra.mrb[24].mxu0 %vm7899_vm3, %v8991_v54 }
 0xa20   : > { %8888 = vmatmul.mubr.msk.bf16.gmra.mrb[32].mxu1 %vm7899_vm3, %v8991_v54 }
 0xa36   : > { %v7788_v43 = vpop.xlane.xlu0 %7787 }
 0xa37   : > { %v7790_v0 = vmul.f32 0.25, %v7788_v43 }
 0xa39   : > { %7792 = vst.msk [vmem:[%s311_s20] sm:$0xf] %vm7791_vm8, %v7790_v0 }
 0xad9   : > { %v8855_v41 = vpop.f32.mrb[12].mxu0 }
 0xada   : > { %v7950_v26 = vpop.f32.mrb[13].mxu0 }
 0xadb   : > { %v8856_v42 = vpop.f32.mrb[14].mxu0  ;;  %v8865_v49 = vpop.f32.mrb[20].mxu1 }
 0xadc   : > { %v8192_v44 = vpack.c.bf16 %v8856_v42, %v8855_v41  ;;  %v7953_v31 = vpop.f32.mrb[15].mxu0  ;;  %v8020_v7 = vpop.f32.mrb[21].mxu1 }
 0xadd   : > { %v8191_v2 = vpack.c.bf16 %v7953_v31, %v7950_v26  ;;  %v8866_v25 = vpop.f32.mrb[22].mxu1 }
 0xade   : > { %v8196_v33 = vpack.c.bf16 %v8866_v25, %v8865_v49  ;;  %v8023_v61 = vpop.f32.mrb[23].mxu1 }
 0xadf   : > { %8893 = vmatprep.mubr.msk.bf16.mxu0 %vm7899_vm3, %v8191_v2  ;;  %v8195_v21 = vpack.c.bf16 %v8023_v61, %v8020_v7 }
 0xae0   : > { %8894 = vmatmul.mubr.msk.bf16.vlgmr.msra.gmra.mrb[28].mxu0 %vm7899_vm3, %v8192_v44 }
 0xae1   : > { %v8859_v51 = vpop.f32.mrb[16].mxu0 }
 0xae2   : > { %v7966_v23 = vpop.f32.mrb[17].mxu0 }
 0xae3   : > { %v8860_v27 = vpop.f32.mrb[18].mxu0  ;;  %v8869_v62 = vpop.f32.mrb[24].mxu1 }
 0xae4   : > { %v8194_v56 = vpack.c.bf16 %v8860_v27, %v8859_v51  ;;  %v7969_v3 = vpop.f32.mrb[19].mxu0  ;;  %v8036_v19 = vpop.f32.mrb[25].mxu1 }
 0xae5   : > { %v8193_v38 = vpack.c.bf16 %v7969_v3, %v7966_v23  ;;  %v8870_v20 = vpop.f32.mrb[26].mxu1 }
 0xae6   : > { %v8198_v17 = vpack.c.bf16 %v8870_v20, %v8869_v62  ;;  %v8039_v22 = vpop.f32.mrb[27].mxu1 }
 0xae7   : > { %8897 = vmatprep.mubr.msk.bf16.mxu0 %vm7899_vm3, %v8193_v38  ;;  %v8197_v29 = vpack.c.bf16 %v8039_v22, %v8036_v19 }
 0xae8   : > { %8898 = vmatmul.mubr.msk.bf16.gmra.mrb[32].mxu0 %vm7899_vm3, %v8194_v56 }
 0xae9   : > { %8901 = vmatprep.mubr.msk.bf16.mxu0 %vm7899_vm3, %v8195_v21  ;;  %v8875_v14 = vpop.f32.mrb[20].mxu0 }
 0xaea   : > { %v8090_v35 = vpop.f32.mrb[21].mxu0 }
 0xaeb   : > { %v8876_v53 = vpop.f32.mrb[22].mxu0  ;;  %v8885_v34 = vpop.f32.mrb[28].mxu1 }
 0xaec   : > { %v8200_v59 = vpack.c.bf16 %v8876_v53, %v8875_v14  ;;  %v8093_v36 = vpop.f32.mrb[23].mxu0  ;;  %v8160_v18 = vpop.f32.mrb[29].mxu1 }
 0xaed   : > { %v8199_v13 = vpack.c.bf16 %v8093_v36, %v8090_v35  ;;  %v8886_v28 = vpop.f32.mrb[30].mxu1 }
 0xaee   : > { %v8204_v10 = vpack.c.bf16 %v8886_v28, %v8885_v34  ;;  %v8163_v15 = vpop.f32.mrb[31].mxu1 }
 0xaef   : > { %v8203_v37 = vpack.c.bf16 %v8163_v15, %v8160_v18 }
 0xaf0   : > { %8902 = vmatmul.mubr.msk.bf16.gmra.mrb[36].mxu0 %vm7899_vm3, %v8196_v33 }
 0xaf1   : > { %8905 = vmatprep.mubr.msk.bf16.mxu0 %vm7899_vm3, %v8197_v29  ;;  %v8879_v46 = vpop.f32.mrb[24].mxu0 }
 0xaf2   : > { %v8106_v50 = vpop.f32.mrb[25].mxu0 }
 0xaf3   : > { %v8880_v5 = vpop.f32.mrb[26].mxu0  ;;  %v8889_v16 = vpop.f32.mrb[32].mxu1 }
 0xaf4   : > { %v8202_v24 = vpack.c.bf16 %v8880_v5, %v8879_v46  ;;  %v8109_v6 = vpop.f32.mrb[27].mxu0  ;;  %v8176_v1 = vpop.f32.mrb[33].mxu1 }
 0xaf5   : > { %v8201_v4 = vpack.c.bf16 %v8109_v6, %v8106_v50  ;;  %v8890_v58 = vpop.f32.mrb[34].mxu1 }
 0xaf6   : > { %v8206_v60 = vpack.c.bf16 %v8890_v58, %v8889_v16  ;;  %v8179_v45 = vpop.f32.mrb[35].mxu1 }
 0xaf7   : > { %v8205_v47 = vpack.c.bf16 %v8179_v45, %v8176_v1 }
 0xaf8   : > { %8906 = vmatmul.mubr.msk.bf16.gmra.mrb[40].mxu0 %vm7899_vm3, %v8198_v17 }
 0xaf9   : > { %8909 = vmatprep.mubr.msk.bf16.mxu0 %vm7899_vm3, %v8199_v13 }
 0xb00   : > { %8910 = vmatmul.mubr.msk.bf16.gmra.mrb[44].mxu0 %vm7899_vm3, %v8200_v59 }
 0xb01   : > { %8913 = vmatprep.mubr.msk.bf16.mxu0 %vm7899_vm3, %v8201_v4 }
 0xb08   : > { %8914 = vmatmul.mubr.msk.bf16.gmra.mrb[48].mxu0 %vm7899_vm3, %v8202_v24 }
 0xb09   : > { %8917 = vmatprep.mubr.msk.bf16.mxu0 %vm7899_vm3, %v8203_v37 }
 0xb10   : > { %8918 = vmatmul.mubr.msk.bf16.gmra.mrb[52].mxu0 %vm7899_vm3, %v8204_v10 }
 0xb11   : > { %8921 = vmatprep.mubr.msk.bf16.mxu0 %vm7899_vm3, %v8205_v47 }
 0xb18   : > { %8922 = vmatmul.mubr.msk.bf16.gmra.mrb[56].mxu0 %vm7899_vm3, %v8206_v60 }
 0xbb3   : > { %v8895_v9 = vpop.f32.mrb[28].mxu0 }
 0xbb4   : > { %8423 = vst.msk [vmem:[%s15174_s21 + $0x10] sm:$0xff] %vm8420_vm9, %v8895_v9  ;;  %v8293_v55 = vpop.f32.mrb[29].mxu0 }
 0xbb5   : > { %8421 = vst.msk [vmem:[%s15174_s21] sm:$0xff] %vm8420_vm9, %v8293_v55  ;;  %v8896_v48 = vpop.f32.mrb[30].mxu0 }
 0xbb6   : > { %8424 = vst.msk [vmem:[%s15174_s21 + $0x18] sm:$0xff] %vm8420_vm9, %v8896_v48  ;;  %v8296_v57 = vpop.f32.mrb[31].mxu0 }
 0xbb7   : > { %8422 = vst.msk [vmem:[%s15174_s21 + $0x8] sm:$0xff] %vm8420_vm9, %v8296_v57 }
 0xbbb   : > { %v8899_v8 = vpop.f32.mrb[32].mxu0 }
 0xbbc   : > { %8427 = vst.msk [vmem:[%s15174_s21 + $0x30] sm:$0xff] %vm8420_vm9, %v8899_v8  ;;  %v8309_v30 = vpop.f32.mrb[33].mxu0 }
 0xbbd   : > { %8425 = vst.msk [vmem:[%s15174_s21 + $0x20] sm:$0xff] %vm8420_vm9, %v8309_v30  ;;  %v8900_v39 = vpop.f32.mrb[34].mxu0 }
 0xbbe   : > { %8428 = vst.msk [vmem:[%s15174_s21 + $0x38] sm:$0xff] %vm8420_vm9, %v8900_v39  ;;  %v8312_v11 = vpop.f32.mrb[35].mxu0 }
 0xbbf   : > { %8426 = vst.msk [vmem:[%s15174_s21 + $0x28] sm:$0xff] %vm8420_vm9, %v8312_v11 }
 0xbc3   : > { %v8903_v40 = vpop.f32.mrb[36].mxu0 }
 0xbc4   : > { %8610 = vst.msk [vmem:[%s15174_s21 + $0x50] sm:$0xff] %vm8420_vm9, %v8903_v40  ;;  %v8325_v12 = vpop.f32.mrb[37].mxu0 }
 0xbc5   : > { %8608 = vst.msk [vmem:[%s15174_s21 + $0x40] sm:$0xff] %vm8420_vm9, %v8325_v12  ;;  %v8904_v63 = vpop.f32.mrb[38].mxu0 }
 0xbc6   : > { %8611 = vst.msk [vmem:[%s15174_s21 + $0x58] sm:$0xff] %vm8420_vm9, %v8904_v63  ;;  %v8328_v32 = vpop.f32.mrb[39].mxu0 }
 0xbc7   : > { %8609 = vst.msk [vmem:[%s15174_s21 + $0x48] sm:$0xff] %vm8420_vm9, %v8328_v32 }
 0xbcb   : > { %v8907_v54 = vpop.f32.mrb[40].mxu0 }
 0xbcc   : > { %8614 = vst.msk [vmem:[%s15174_s21 + $0x70] sm:$0xff] %vm8420_vm9, %v8907_v54  ;;  %v8341_v52 = vpop.f32.mrb[41].mxu0 }
 0xbcd   : > { %8612 = vst.msk [vmem:[%s15174_s21 + $0x60] sm:$0xff] %vm8420_vm9, %v8341_v52  ;;  %v8908_v43 = vpop.f32.mrb[42].mxu0 }
 0xbce   : > { %8615 = vst.msk [vmem:[%s15174_s21 + $0x78] sm:$0xff] %vm8420_vm9, %v8908_v43  ;;  %v8344_v0 = vpop.f32.mrb[43].mxu0 }
 0xbcf   : > { %8613 = vst.msk [vmem:[%s15174_s21 + $0x68] sm:$0xff] %vm8420_vm9, %v8344_v0 }
 0xbd3   : > { %v8911_v41 = vpop.f32.mrb[44].mxu0 }
 0xbd4   : > { %8618 = vst.msk [vmem:[%s15174_s21 + $0x90] sm:$0xff] %vm8420_vm9, %v8911_v41  ;;  %v8357_v26 = vpop.f32.mrb[45].mxu0 }
 0xbd5   : > { %8616 = vst.msk [vmem:[%s15174_s21 + $0x80] sm:$0xff] %vm8420_vm9, %v8357_v26  ;;  %v8912_v42 = vpop.f32.mrb[46].mxu0 }
 0xbd6   : > { %8619 = vst.msk [vmem:[%s15174_s21 + $0x98] sm:$0xff] %vm8420_vm9, %v8912_v42  ;;  %v8360_v49 = vpop.f32.mrb[47].mxu0 }
 0xbd7   : > { %8617 = vst.msk [vmem:[%s15174_s21 + $0x88] sm:$0xff] %vm8420_vm9, %v8360_v49 }
 0xbdb   : > { %v8915_v44 = vpop.f32.mrb[48].mxu0 }
 0xbdc   : > { %8622 = vst.msk [vmem:[%s15174_s21 + $0xb0] sm:$0xff] %vm8420_vm9, %v8915_v44  ;;  %v8373_v31 = vpop.f32.mrb[49].mxu0 }
 0xbdd   : > { %8620 = vst.msk [vmem:[%s15174_s21 + $0xa0] sm:$0xff] %vm8420_vm9, %v8373_v31  ;;  %v8916_v7 = vpop.f32.mrb[50].mxu0 }
 0xbde   : > { %8623 = vst.msk [vmem:[%s15174_s21 + $0xb8] sm:$0xff] %vm8420_vm9, %v8916_v7  ;;  %v8376_v2 = vpop.f32.mrb[51].mxu0 }
 0xbdf   : > { %8621 = vst.msk [vmem:[%s15174_s21 + $0xa8] sm:$0xff] %vm8420_vm9, %v8376_v2 }
 0xbe3   : > { %v8919_v25 = vpop.f32.mrb[52].mxu0 }
 0xbe4   : > { %8626 = vst.msk [vmem:[%s15174_s21 + $0xd0] sm:$0xff] %vm8420_vm9, %v8919_v25  ;;  %v8389_v33 = vpop.f32.mrb[53].mxu0 }
 0xbe5   : > { %8624 = vst.msk [vmem:[%s15174_s21 + $0xc0] sm:$0xff] %vm8420_vm9, %v8389_v33  ;;  %v8920_v61 = vpop.f32.mrb[54].mxu0 }
 0xbe6   : > { %8627 = vst.msk [vmem:[%s15174_s21 + $0xd8] sm:$0xff] %vm8420_vm9, %v8920_v61  ;;  %v8392_v21 = vpop.f32.mrb[55].mxu0 }
 0xbe7   : > { %8625 = vst.msk [vmem:[%s15174_s21 + $0xc8] sm:$0xff] %vm8420_vm9, %v8392_v21 }
 0xbeb   : > { %v8923_v51 = vpop.f32.mrb[56].mxu0 }
 0xbec   : > { %8630 = vst.msk [vmem:[%s15174_s21 + $0xf0] sm:$0xff] %vm8420_vm9, %v8923_v51  ;;  %v8405_v23 = vpop.f32.mrb[57].mxu0 }
 0xbed   : > { %8628 = vst.msk [vmem:[%s15174_s21 + $0xe0] sm:$0xff] %vm8420_vm9, %v8405_v23  ;;  %v8924_v27 = vpop.f32.mrb[58].mxu0 }
 0xbee   : > { %8631 = vst.msk [vmem:[%s15174_s21 + $0xf8] sm:$0xff] %vm8420_vm9, %v8924_v27  ;;  %v8408_v62 = vpop.f32.mrb[59].mxu0 }
 0xbef   : > { %8629 = vst.msk [vmem:[%s15174_s21 + $0xe8] sm:$0xff] %vm8420_vm9, %v8408_v62 }
 0xbf0   : > { %9262 = shalt.err (!%p9259_p3)
}
 0xbf1   : > { %s9263_s20 = scalar_lea.hbm %s15239_s10, 4096  ;;  %s9267_s21 = scalar_lea.hbm %s15300_s8, 8192 }
 0xbf2   : > { %p9264_p4 = scmp.ne.s32.totalorder %s15239_s10, %s9263_s20  ;;  %p9268_p9 = scmp.lt.u32.totalorder %s15239_s10, %s15300_s8 }
 0xbf3   : > { %p9269_p10 = scmp.lt.u32.totalorder %s9267_s21, %s9263_s20  ;;  %p9271_p12 = scmp.lt.u32.totalorder %s9263_s20, %s15239_s10 }
 0xbf4   : > { %p9265_p7 = pnand %p9264_p4, %p9405_p5 }
 0xbf5   : > { %p9270_p11 = por %p9269_p10, %p9268_p9 }
 0xbf6   : > { %p9266_p8 = pneg %p9265_p7 }
 0xbf7   : > { %p9272_p13 = por %p9271_p12, %p9270_p11 }
 0xbf9   : > { %p9273_p0 = pnand %p9272_p13, %p9266_p8 }
 0xbfb   : > { %9276 = shalt.err (!%p9273_p0)
}
 0xbfc   : > { %s9320_s26 = smov 128   ;;  %s9321_s12 = smov 8  }
 0xbfd   : > { %8930 = dma.vmem_to_hbm [thread:$0]  (%p9405_p5), %s15241_s24, 4096, %s15239_s10, %s15251_s9, %s9320_s26, %s9320_s26, %s9321_s12  }
 0xbfe PF: > { %p8936_p1 = scmp.ge.s32.totalorder %s9311_s30, 2  ;;  %s8499_s13 = sand.u32 1, %s9299_s27  }
 0xbff   : > { %s8500_s18 = scalar_lea.sflag [#allocation4], %s8499_s13 }
 0xc00   : > { %p8933_p2 = pnand %p8936_p1, %p9409_p6 }
 0xc02   : > { %9294 = dma.done.wait (!%p8933_p2), %s8500_s18, 4096  }
 0xc03   : > { %9296 = vsyncadd (!%p8933_p2), %s8500_s18, 4294963200  ;;  %p19_p3 = scmp.ge.s32.totalorder %s9392_s11, 4   ;;  %s16797_s27 = smov %s9303_s28 }
 0xc04   : > { %s16798_s28 = smov %s9307_s29  ;;  %s16799_s29 = smov %s9403_s14 }
 0xc05   : > { %s16800_s30 = smov %s9392_s11  ;;  %21 = sbr.rel (!%p19_p3) target bundleno = 3 (0x3), region = 101 }
 0xc0c   :  { %8505 = vsyncpa [#allocation4], 1 }
 0xc0d   :  { %8507 = vsyncpa [#allocation4 + $0x1], 1 }

</bundles_post_ra>
